<compile_context>
chip_gen: v7x
topology: tpu7x:2x2x1
jax: 0.10.0
libtpu: 0.0.40
codegen_flags: <defaults>
</compile_context>

<pallas_src>
import math
from functools import partial

import jax
import jax.numpy as jnp
from jax.experimental import pallas as pl
from jax.experimental.pallas import tpu as pltpu


# --------------------------- in-kernel helpers ------------------------------

def _layer_norm(x, g, b, eps=1e-5):
    mu = jnp.mean(x, axis=-1, keepdims=True)
    var = jnp.mean((x - mu) ** 2, axis=-1, keepdims=True)
    return (x - mu) * jax.lax.rsqrt(var + eps) * g + b


def _mha_into_proj(q, k, v, wo, bo, nhead, scale):
    """Multi-head attention folded straight into the output projection.

    Per-head outputs are accumulated through the corresponding row-slice of Wo
    instead of being lane-concatenated (removes XLU relayouts).  q may have a
    different row count than k/v (cross attention)."""
    d = q.shape[-1]
    hd = d // nhead
    out = jnp.zeros((q.shape[0], wo.shape[-1]), jnp.float32)
    for h in range(nhead):
        sl = slice(h * hd, (h + 1) * hd)
        qh, kh, vh = q[:, sl], k[:, sl], v[:, sl]
        # q @ k.T without an explicit in-kernel transpose.
        s = jax.lax.dot_general(qh, kh, (((1,), (1,)), ((), ())),
                                preferred_element_type=jnp.float32) * scale
        m = jnp.max(s, axis=-1, keepdims=True)
        p = jnp.exp(s - m)
        p = p / jnp.sum(p, axis=-1, keepdims=True)          # exact divide
        oh = jnp.dot(p, vh, preferred_element_type=jnp.float32)
        out = out + jnp.dot(oh, wo[sl, :], preferred_element_type=jnp.float32)
    return out + bo


# ------------------------------ fused kernel --------------------------------

def _fused_forward_kernel(
        # SMEM scalars
        state_ref, bword_ref, length_ref,
        # embeddings / shared sinusoidal PE
        e_emb_ref, d_emb_ref, pe_ref,
        # encoder stacked weights [L, ...]
        e_wqkv_ref, e_bqkv_ref, e_wo_ref, e_bo_ref,
        e_ln1g_ref, e_ln1b_ref, e_w1_ref, e_b1_ref,
        e_w2_ref, e_b2_ref, e_ln2g_ref, e_ln2b_ref,
        # decoder stacked weights [L, ...]
        d_swqkv_ref, d_sbqkv_ref, d_swo_ref, d_sbo_ref,
        d_ln1g_ref, d_ln1b_ref,
        d_cwq_ref, d_cbq_ref, d_cwkv_ref, d_cbkv_ref, d_cwo_ref, d_cbo_ref,
        d_ln2g_ref, d_ln2b_ref,
        d_w1_ref, d_b1_ref, d_w2_ref, d_b2_ref,
        d_ln3g_ref, d_ln3b_ref,
        # fused value|policy head
        h_w1_ref, h_b1_ref, h_w2_ref, h_b2_ref, h_w3_ref, h_b3_ref,
        # grammar masks [NUM_VARS, V] (additive, 0 / -inf)
        vt_ref, vtt_ref,
        # outputs
        value_ref, policy_ref,
        # scratch (token one-hots)
        oh_enc_scr, oh_dec_scr,
        *, nhead, max_depth):
    S, V = oh_enc_scr.shape
    T = oh_dec_scr.shape[0]
    D = e_emb_ref.shape[1]
    Le = e_wqkv_ref.shape[0]
    Ld = d_swqkv_ref.shape[0]
    scale = 1.0 / math.sqrt(D // nhead)
    sqrt_d = math.sqrt(D)

    lane_ids = jax.lax.broadcasted_iota(jnp.int32, (1, V), 1)

    # ---- one-hot token rows (MXU-friendly in-kernel embedding gather) ----
    for i in range(S):
        oh_enc_scr[i:i + 1, :] = (lane_ids == state_ref[i]).astype(jnp.float32)
    for i in range(T):
        oh_dec_scr[i:i + 1, :] = (lane_ids == bword_ref[i]).astype(jnp.float32)

    # ------------------------------ encoder --------------------------------
    x = jnp.dot(oh_enc_scr[...], e_emb_ref[...],
                preferred_element_type=jnp.float32) * sqrt_d + pe_ref[0:S, :]
    for l in range(Le):
        qkv = (jnp.dot(x, e_wqkv_ref[l], preferred_element_type=jnp.float32)
               + e_bqkv_ref[l])
        attn = _mha_into_proj(qkv[:, :D], qkv[:, D:2 * D], qkv[:, 2 * D:],
                              e_wo_ref[l], e_bo_ref[l], nhead, scale)
        h1 = _layer_norm(x + attn, e_ln1g_ref[l], e_ln1b_ref[l])
        ff = jnp.maximum(jnp.dot(h1, e_w1_ref[l], preferred_element_type=jnp.float32)
                         + e_b1_ref[l], 0.0)
        ff = jnp.dot(ff, e_w2_ref[l], preferred_element_type=jnp.float32) + e_b2_ref[l]
        x = _layer_norm(h1 + ff, e_ln2g_ref[l], e_ln2b_ref[l])
    memory = x                                                     # [S, D]

    # ------------------------------ decoder --------------------------------
    y = jnp.dot(oh_dec_scr[...], d_emb_ref[...],
                preferred_element_type=jnp.float32) * sqrt_d + pe_ref[0:T, :]
    for l in range(Ld):
        # self-attention (no causal mask; see TODO at top of file)
        qkv = (jnp.dot(y, d_swqkv_ref[l], preferred_element_type=jnp.float32)
               + d_sbqkv_ref[l])
        sa = _mha_into_proj(qkv[:, :D], qkv[:, D:2 * D], qkv[:, 2 * D:],
                            d_swo_ref[l], d_sbo_ref[l], nhead, scale)
        h1 = _layer_norm(y + sa, d_ln1g_ref[l], d_ln1b_ref[l])
        # cross-attention against the encoder memory
        q = jnp.dot(h1, d_cwq_ref[l], preferred_element_type=jnp.float32) + d_cbq_ref[l]
        kv = (jnp.dot(memory, d_cwkv_ref[l], preferred_element_type=jnp.float32)
              + d_cbkv_ref[l])
        ca = _mha_into_proj(q, kv[:, :D], kv[:, D:],
                            d_cwo_ref[l], d_cbo_ref[l], nhead, scale)
        h2 = _layer_norm(h1 + ca, d_ln2g_ref[l], d_ln2b_ref[l])
        ff = jnp.maximum(jnp.dot(h2, d_w1_ref[l], preferred_element_type=jnp.float32)
                         + d_b1_ref[l], 0.0)
        ff = jnp.dot(ff, d_w2_ref[l], preferred_element_type=jnp.float32) + d_b2_ref[l]
        y = _layer_norm(h2 + ff, d_ln3g_ref[l], d_ln3b_ref[l])

    # --------- fused value|policy head on the first decoder position --------
    x0 = y[0:1, :]                                                 # [1, D]
    h = jnp.maximum(jnp.dot(x0, h_w1_ref[...], preferred_element_type=jnp.float32)
                    + h_b1_ref[...], 0.0)
    h = jnp.maximum(jnp.dot(h, h_w2_ref[...], preferred_element_type=jnp.float32)
                    + h_b2_ref[...], 0.0)
    slab = jnp.dot(h, h_w3_ref[...], preferred_element_type=jnp.float32) + h_b3_ref[...]
    value = slab[:, 0:1]                                           # [1, 1]
    logits = slab[:, 1:]                                           # [1, V]

    # ---------- in-kernel grammar-mask selection + masked softmax ----------
    use_term = length_ref[0] > max_depth
    var = state_ref[0]
    num_vars = vt_ref.shape[0]
    mask = jnp.where(use_term, vtt_ref[0:1, :], vt_ref[0:1, :])
    for v in range(1, num_vars):
        row = jnp.where(use_term, vtt_ref[v:v + 1, :], vt_ref[v:v + 1, :])
        mask = jnp.where(var == v, row, mask)

    z = logits + mask                                              # -inf masks rules
    m = jnp.max(z, axis=-1, keepdims=True)
    e = jnp.exp(z - m)
    policy = e / jnp.sum(e, axis=-1, keepdims=True)                # sums to 1

    value_ref[...] = value
    policy_ref[...] = policy


# ------------------------------ rl_grammar ----------------------------------

@partial(jax.jit, static_argnames=("nhead", "max_depth"))
def rl_grammar_forward(params, state, bword, length,
                       variable_token, variable_token_terminal,
                       *, nhead, max_depth):
    # state / bword: [seq, batch=1] int32 (PyTorch nn.Transformer layout).
    enc, dec, heads = params["encoder"], params["decoder"], params["heads"]
    S = state.shape[0]
    T = bword.shape[0]
    V = variable_token.shape[1]

    state_tok = state[:, 0].astype(jnp.int32)                      # [S]
    bword_tok = bword[:, 0].astype(jnp.int32)                      # [T]
    length_arr = jnp.reshape(jnp.asarray(length, jnp.int32), (1,))

    args = [
        state_tok, bword_tok, length_arr,
        enc["embedding"], dec["embedding"], enc["pe"],
        enc["wqkv"], enc["bqkv"], enc["wo"], enc["bo"],
        enc["ln1_g"], enc["ln1_b"], enc["w1"], enc["b1"],
        enc["w2"], enc["b2"], enc["ln2_g"], enc["ln2_b"],
        dec["s_wqkv"], dec["s_bqkv"], dec["s_wo"], dec["s_bo"],
        dec["ln1_g"], dec["ln1_b"],
        dec["c_wq"], dec["c_bq"], dec["c_wkv"], dec["c_bkv"],
        dec["c_wo"], dec["c_bo"], dec["ln2_g"], dec["ln2_b"],
        dec["w1"], dec["b1"], dec["w2"], dec["b2"],
        dec["ln3_g"], dec["ln3_b"],
        heads["w1"], heads["b1"], heads["w2"], heads["b2"],
        heads["w3"], heads["b3"],
        variable_token, variable_token_terminal,
    ]
    smem = pl.BlockSpec(memory_space=pltpu.MemorySpace.SMEM)
    vmem = pl.BlockSpec(memory_space=pltpu.MemorySpace.VMEM)
    in_specs = [smem, smem, smem] + [vmem] * (len(args) - 3)

    value, policy = pl.pallas_call(
        partial(_fused_forward_kernel, nhead=nhead, max_depth=max_depth),
        out_shape=(jax.ShapeDtypeStruct((1, 1), jnp.float32),
                   jax.ShapeDtypeStruct((1, V), jnp.float32)),
        in_specs=in_specs,
        out_specs=(vmem, vmem),
        scratch_shapes=[pltpu.VMEM((S, V), jnp.float32),
                        pltpu.VMEM((T, V), jnp.float32)],
    )(*args)

    return policy[0], value[0]                                     # (V,), (1,)


# --------------------------- parameter creation -----------------------------

def sinusoidal_pe(max_len, d_model):
    pos = jnp.arange(max_len, dtype=jnp.float32)[:, None]
    div = jnp.exp(jnp.arange(0, d_model, 2, dtype=jnp.float32)
                  * (-math.log(10000.0) / d_model))
    pe = jnp.zeros((max_len, d_model), jnp.float32)
    pe = pe.at[:, 0::2].set(jnp.sin(pos * div))
    pe = pe.at[:, 1::2].set(jnp.cos(pos * div))
    return pe


def fuse_head_params(vmlp, pmlp):
    """Pack value_mlp | policy_mlp into one 3-matmul head producing [1, 1+V]."""
    hv = vmlp["w1"].shape[1]
    hp = pmlp["w1"].shape[1]
    V = pmlp["w3"].shape[1]
    w1 = jnp.concatenate([vmlp["w1"], pmlp["w1"]], axis=1)         # [D, hv+hp]
    b1 = jnp.concatenate([vmlp["b1"], pmlp["b1"]], axis=1)
    w2 = jnp.zeros((hv + hp, hv + hp), jnp.float32)
    w2 = w2.at[:hv, :hv].set(vmlp["w2"]).at[hv:, hv:].set(pmlp["w2"])
    b2 = jnp.concatenate([vmlp["b2"], pmlp["b2"]], axis=1)
    w3 = jnp.zeros((hv + hp, 1 + V), jnp.float32)
    w3 = w3.at[:hv, 0:1].set(vmlp["w3"]).at[hv:, 1:].set(pmlp["w3"])
    b3 = jnp.concatenate([vmlp["b3"], pmlp["b3"]], axis=1)         # [1, 1+V]
    return {"w1": w1, "b1": b1, "w2": w2, "b2": b2, "w3": w3, "b3": b3}


def init_params(key, vocab, d_model, nhead, d_hid, num_layers, max_len=64):
    keys = iter(jax.random.split(key, 64))

    def nrm(shape, scale=0.05):
        return jax.random.normal(next(keys), shape, jnp.float32) * scale

    def zeros(shape):
        return jnp.zeros(shape, jnp.float32)

    def ones(shape):
        return jnp.ones(shape, jnp.float32)

    L = num_layers
    pe = sinusoidal_pe(max_len, d_model)      # shared sinusoidal table (enc == dec)

    encoder = {
        "embedding": nrm((vocab, d_model), 0.1), "pe": pe,
        "wqkv": nrm((L, d_model, 3 * d_model)), "bqkv": zeros((L, 1, 3 * d_model)),
        "wo": nrm((L, d_model, d_model)), "bo": zeros((L, 1, d_model)),
        "ln1_g": ones((L, 1, d_model)), "ln1_b": zeros((L, 1, d_model)),
        "w1": nrm((L, d_model, d_hid)), "b1": zeros((L, 1, d_hid)),
        "w2": nrm((L, d_hid, d_model)), "b2": zeros((L, 1, d_model)),
        "ln2_g": ones((L, 1, d_model)), "ln2_b": zeros((L, 1, d_model)),
    }
    decoder = {
        "embedding": nrm((vocab, d_model), 0.1),
        "s_wqkv": nrm((L, d_model, 3 * d_model)), "s_bqkv": zeros((L, 1, 3 * d_model)),
        "s_wo": nrm((L, d_model, d_model)), "s_bo": zeros((L, 1, d_model)),
        "ln1_g": ones((L, 1, d_model)), "ln1_b": zeros((L, 1, d_model)),
        "c_wq": nrm((L, d_model, d_model)), "c_bq": zeros((L, 1, d_model)),
        "c_wkv": nrm((L, d_model, 2 * d_model)), "c_bkv": zeros((L, 1, 2 * d_model)),
        "c_wo": nrm((L, d_model, d_model)), "c_bo": zeros((L, 1, d_model)),
        "ln2_g": ones((L, 1, d_model)), "ln2_b": zeros((L, 1, d_model)),
        "w1": nrm((L, d_model, d_hid)), "b1": zeros((L, 1, d_hid)),
        "w2": nrm((L, d_hid, d_model)), "b2": zeros((L, 1, d_model)),
        "ln3_g": ones((L, 1, d_model)), "ln3_b": zeros((L, 1, d_model)),
    }
    # value_mlp / policy_mlp hidden width 256 is hard-coded in the module.
    value_mlp = {"w1": nrm((d_model, 256)), "b1": zeros((1, 256)),
                 "w2": nrm((256, 256)), "b2": zeros((1, 256)),
                 "w3": nrm((256, 1)), "b3": zeros((1, 1))}
    policy_mlp = {"w1": nrm((d_model, 256)), "b1": zeros((1, 256)),
                  "w2": nrm((256, 256)), "b2": zeros((1, 256)),
                  "w3": nrm((256, vocab)), "b3": zeros((1, vocab))}
    heads = fuse_head_params(value_mlp, policy_mlp)
    return {"encoder": encoder, "decoder": decoder, "heads": heads}


# ---------------------------------- main ------------------------------------

if __name__ == "__main__":
    VOCAB = 16        # len(grammar.dict_vtw)
    D_MODEL = 32
    NHEAD = 4
    D_HID = 32
    NUM_LAYERS = 2
    MAX_DEPTH = 30
    NUM_VARS = 4      # synthetic grammar: tokens 0..3 are variables
    SRC_LEN = 8
    TGT_LEN = 8
    BATCH = 1         # forward uses state[0,0].item() and .squeeze(0) => batch 1
    # TODO(synk): to use v7x's second TensorCore, batch multiple grammar states
    # per launch (stack along sublanes in multiples of 8); at batch=1 the
    # forward is purely launch-bound.

    key = jax.random.PRNGKey(0)
    pkey, skey, bkey = jax.random.split(key, 3)
    params = init_params(pkey, VOCAB, D_MODEL, NHEAD, D_HID, NUM_LAYERS)

    # Synthetic deterministic grammar rule masks, stacked as [NUM_VARS, VOCAB]
    # device arrays (-inf except allowed rules) so selection stays on-device.
    vt_rows, vtt_rows = [], []
    for v in range(NUM_VARS):
        allowed = jnp.array([(v * 3 + j) % VOCAB for j in range(5)])
        allowed_term = jnp.array([(v * 3 + j) % VOCAB for j in range(2)])
        base = jnp.full((VOCAB,), -jnp.inf, jnp.float32)
        vt_rows.append(base.at[allowed].set(0.0))
        vtt_rows.append(base.at[allowed_term].set(0.0))
    variable_token = jnp.stack(vt_rows)                 # [NUM_VARS, VOCAB]
    variable_token_terminal = jnp.stack(vtt_rows)       # [NUM_VARS, VOCAB]

    state = jax.random.randint(skey, (SRC_LEN, BATCH), 0, VOCAB, jnp.int32)
    state = state.at[0, 0].set(2)   # first token must be a grammar variable
    bword = jax.random.randint(bkey, (TGT_LEN, BATCH), 0, VOCAB, jnp.int32)
    length = jnp.int32(5)           # <= max_depth branch

    policy, value = rl_grammar_forward(
        params, state, bword, length,
        variable_token, variable_token_terminal,
        nhead=NHEAD, max_depth=MAX_DEPTH)
    (policy, value) = jax.block_until_ready((policy, value))

    assert policy.shape == (VOCAB,), policy.shape
    assert value.shape == (1,), value.shape
    assert bool(jnp.isfinite(value).all())
    assert bool(jnp.isfinite(policy).all())
    assert bool(jnp.allclose(policy.sum(), 1.0, atol=1e-4))
    print("KERNEL_OK")
</pallas_src>

<mosaic_0001>
module attributes {stable_mosaic.version = 11 : i64} {
  func.func @_fused_forward_kernel(%arg0: memref<8xi32, #tpu.memory_space<smem>>, %arg1: memref<8xi32, #tpu.memory_space<smem>>, %arg2: memref<1xi32, #tpu.memory_space<smem>>, %arg3: memref<16x32xf32, #tpu.memory_space<vmem>>, %arg4: memref<16x32xf32, #tpu.memory_space<vmem>>, %arg5: memref<64x32xf32, #tpu.memory_space<vmem>>, %arg6: memref<2x32x96xf32, #tpu.memory_space<vmem>>, %arg7: memref<2x1x96xf32, #tpu.memory_space<vmem>>, %arg8: memref<2x32x32xf32, #tpu.memory_space<vmem>>, %arg9: memref<2x1x32xf32, #tpu.memory_space<vmem>>, %arg10: memref<2x1x32xf32, #tpu.memory_space<vmem>>, %arg11: memref<2x1x32xf32, #tpu.memory_space<vmem>>, %arg12: memref<2x32x32xf32, #tpu.memory_space<vmem>>, %arg13: memref<2x1x32xf32, #tpu.memory_space<vmem>>, %arg14: memref<2x32x32xf32, #tpu.memory_space<vmem>>, %arg15: memref<2x1x32xf32, #tpu.memory_space<vmem>>, %arg16: memref<2x1x32xf32, #tpu.memory_space<vmem>>, %arg17: memref<2x1x32xf32, #tpu.memory_space<vmem>>, %arg18: memref<2x32x96xf32, #tpu.memory_space<vmem>>, %arg19: memref<2x1x96xf32, #tpu.memory_space<vmem>>, %arg20: memref<2x32x32xf32, #tpu.memory_space<vmem>>, %arg21: memref<2x1x32xf32, #tpu.memory_space<vmem>>, %arg22: memref<2x1x32xf32, #tpu.memory_space<vmem>>, %arg23: memref<2x1x32xf32, #tpu.memory_space<vmem>>, %arg24: memref<2x32x32xf32, #tpu.memory_space<vmem>>, %arg25: memref<2x1x32xf32, #tpu.memory_space<vmem>>, %arg26: memref<2x32x64xf32, #tpu.memory_space<vmem>>, %arg27: memref<2x1x64xf32, #tpu.memory_space<vmem>>, %arg28: memref<2x32x32xf32, #tpu.memory_space<vmem>>, %arg29: memref<2x1x32xf32, #tpu.memory_space<vmem>>, %arg30: memref<2x1x32xf32, #tpu.memory_space<vmem>>, %arg31: memref<2x1x32xf32, #tpu.memory_space<vmem>>, %arg32: memref<2x32x32xf32, #tpu.memory_space<vmem>>, %arg33: memref<2x1x32xf32, #tpu.memory_space<vmem>>, %arg34: memref<2x32x32xf32, #tpu.memory_space<vmem>>, %arg35: memref<2x1x32xf32, #tpu.memory_space<vmem>>, %arg36: memref<2x1x32xf32, #tpu.memory_space<vmem>>, %arg37: memref<2x1x32xf32, #tpu.memory_space<vmem>>, %arg38: memref<32x512xf32, #tpu.memory_space<vmem>>, %arg39: memref<1x512xf32, #tpu.memory_space<vmem>>, %arg40: memref<512x512xf32, #tpu.memory_space<vmem>>, %arg41: memref<1x512xf32, #tpu.memory_space<vmem>>, %arg42: memref<512x17xf32, #tpu.memory_space<vmem>>, %arg43: memref<1x17xf32, #tpu.memory_space<vmem>>, %arg44: memref<4x16xf32, #tpu.memory_space<vmem>>, %arg45: memref<4x16xf32, #tpu.memory_space<vmem>>, %arg46: memref<1x1xf32, #tpu.memory_space<vmem>>, %arg47: memref<1x16xf32, #tpu.memory_space<vmem>>, %arg48: memref<8x16xf32, #tpu.memory_space<vmem>>, %arg49: memref<8x16xf32, #tpu.memory_space<vmem>>) attributes {dimension_semantics = [], scalar_prefetch = 0 : i64, scratch_operands = 2 : i64, tpu.core_type = #tpu.core_type<tc>} {
    %0 = tpu.iota {dimensions = array<i32: 1>} : vector<1x16xi32>
    %c0 = arith.constant 0 : index
    %1 = memref.load %arg0[%c0] : memref<8xi32, #tpu.memory_space<smem>>
    %2 = vector.broadcast %1 : i32 to vector<1x16xi32>
    %3 = arith.cmpi eq, %0, %2 : vector<1x16xi32>
    %4 = arith.extui %3 : vector<1x16xi1> to vector<1x16xi32>
    %5 = arith.sitofp %4 : vector<1x16xi32> to vector<1x16xf32>
    %c0_0 = arith.constant 0 : index
    %c0_1 = arith.constant 0 : index
    %6 = vector.load %arg48[%c0_0, %c0_1] : memref<8x16xf32, #tpu.memory_space<vmem>>, vector<1x16xf32>
    tpu.vector_store %arg48[%c0_0, %c0_1], %5 {strides = array<i32>} : memref<8x16xf32, #tpu.memory_space<vmem>>, vector<1x16xf32>,
    %c1 = arith.constant 1 : index
    %7 = memref.load %arg0[%c1] : memref<8xi32, #tpu.memory_space<smem>>
    %8 = vector.broadcast %7 : i32 to vector<1x16xi32>
    %9 = arith.cmpi eq, %0, %8 : vector<1x16xi32>
    %10 = arith.extui %9 : vector<1x16xi1> to vector<1x16xi32>
    %11 = arith.sitofp %10 : vector<1x16xi32> to vector<1x16xf32>
    %c1_2 = arith.constant 1 : index
    %c0_3 = arith.constant 0 : index
    %12 = vector.load %arg48[%c1_2, %c0_3] : memref<8x16xf32, #tpu.memory_space<vmem>>, vector<1x16xf32>
    tpu.vector_store %arg48[%c1_2, %c0_3], %11 {strides = array<i32>} : memref<8x16xf32, #tpu.memory_space<vmem>>, vector<1x16xf32>,
    %c2 = arith.constant 2 : index
    %13 = memref.load %arg0[%c2] : memref<8xi32, #tpu.memory_space<smem>>
    %14 = vector.broadcast %13 : i32 to vector<1x16xi32>
    %15 = arith.cmpi eq, %0, %14 : vector<1x16xi32>
    %16 = arith.extui %15 : vector<1x16xi1> to vector<1x16xi32>
    %17 = arith.sitofp %16 : vector<1x16xi32> to vector<1x16xf32>
    %c2_4 = arith.constant 2 : index
    %c0_5 = arith.constant 0 : index
    %18 = vector.load %arg48[%c2_4, %c0_5] : memref<8x16xf32, #tpu.memory_space<vmem>>, vector<1x16xf32>
    tpu.vector_store %arg48[%c2_4, %c0_5], %17 {strides = array<i32>} : memref<8x16xf32, #tpu.memory_space<vmem>>, vector<1x16xf32>,
    %c3 = arith.constant 3 : index
    %19 = memref.load %arg0[%c3] : memref<8xi32, #tpu.memory_space<smem>>
    %20 = vector.broadcast %19 : i32 to vector<1x16xi32>
    %21 = arith.cmpi eq, %0, %20 : vector<1x16xi32>
    %22 = arith.extui %21 : vector<1x16xi1> to vector<1x16xi32>
    %23 = arith.sitofp %22 : vector<1x16xi32> to vector<1x16xf32>
    %c3_6 = arith.constant 3 : index
    %c0_7 = arith.constant 0 : index
    %24 = vector.load %arg48[%c3_6, %c0_7] : memref<8x16xf32, #tpu.memory_space<vmem>>, vector<1x16xf32>
    tpu.vector_store %arg48[%c3_6, %c0_7], %23 {strides = array<i32>} : memref<8x16xf32, #tpu.memory_space<vmem>>, vector<1x16xf32>,
    %c4 = arith.constant 4 : index
    %25 = memref.load %arg0[%c4] : memref<8xi32, #tpu.memory_space<smem>>
    %26 = vector.broadcast %25 : i32 to vector<1x16xi32>
    %27 = arith.cmpi eq, %0, %26 : vector<1x16xi32>
    %28 = arith.extui %27 : vector<1x16xi1> to vector<1x16xi32>
    %29 = arith.sitofp %28 : vector<1x16xi32> to vector<1x16xf32>
    %c4_8 = arith.constant 4 : index
    %c0_9 = arith.constant 0 : index
    %30 = vector.load %arg48[%c4_8, %c0_9] : memref<8x16xf32, #tpu.memory_space<vmem>>, vector<1x16xf32>
    tpu.vector_store %arg48[%c4_8, %c0_9], %29 {strides = array<i32>} : memref<8x16xf32, #tpu.memory_space<vmem>>, vector<1x16xf32>,
    %c5 = arith.constant 5 : index
    %31 = memref.load %arg0[%c5] : memref<8xi32, #tpu.memory_space<smem>>
    %32 = vector.broadcast %31 : i32 to vector<1x16xi32>
    %33 = arith.cmpi eq, %0, %32 : vector<1x16xi32>
    %34 = arith.extui %33 : vector<1x16xi1> to vector<1x16xi32>
    %35 = arith.sitofp %34 : vector<1x16xi32> to vector<1x16xf32>
    %c5_10 = arith.constant 5 : index
    %c0_11 = arith.constant 0 : index
    %36 = vector.load %arg48[%c5_10, %c0_11] : memref<8x16xf32, #tpu.memory_space<vmem>>, vector<1x16xf32>
    tpu.vector_store %arg48[%c5_10, %c0_11], %35 {strides = array<i32>} : memref<8x16xf32, #tpu.memory_space<vmem>>, vector<1x16xf32>,
    %c6 = arith.constant 6 : index
    %37 = memref.load %arg0[%c6] : memref<8xi32, #tpu.memory_space<smem>>
    %38 = vector.broadcast %37 : i32 to vector<1x16xi32>
    %39 = arith.cmpi eq, %0, %38 : vector<1x16xi32>
    %40 = arith.extui %39 : vector<1x16xi1> to vector<1x16xi32>
    %41 = arith.sitofp %40 : vector<1x16xi32> to vector<1x16xf32>
    %c6_12 = arith.constant 6 : index
    %c0_13 = arith.constant 0 : index
    %42 = vector.load %arg48[%c6_12, %c0_13] : memref<8x16xf32, #tpu.memory_space<vmem>>, vector<1x16xf32>
    tpu.vector_store %arg48[%c6_12, %c0_13], %41 {strides = array<i32>} : memref<8x16xf32, #tpu.memory_space<vmem>>, vector<1x16xf32>,
    %c7 = arith.constant 7 : index
    %43 = memref.load %arg0[%c7] : memref<8xi32, #tpu.memory_space<smem>>
    %44 = vector.broadcast %43 : i32 to vector<1x16xi32>
    %45 = arith.cmpi eq, %0, %44 : vector<1x16xi32>
    %46 = arith.extui %45 : vector<1x16xi1> to vector<1x16xi32>
    %47 = arith.sitofp %46 : vector<1x16xi32> to vector<1x16xf32>
    %c7_14 = arith.constant 7 : index
    %c0_15 = arith.constant 0 : index
    %48 = vector.load %arg48[%c7_14, %c0_15] : memref<8x16xf32, #tpu.memory_space<vmem>>, vector<1x16xf32>
    tpu.vector_store %arg48[%c7_14, %c0_15], %47 {strides = array<i32>} : memref<8x16xf32, #tpu.memory_space<vmem>>, vector<1x16xf32>,
    %c0_16 = arith.constant 0 : index
    %49 = memref.load %arg1[%c0_16] : memref<8xi32, #tpu.memory_space<smem>>
    %50 = vector.broadcast %49 : i32 to vector<1x16xi32>
    %51 = arith.cmpi eq, %0, %50 : vector<1x16xi32>
    %52 = arith.extui %51 : vector<1x16xi1> to vector<1x16xi32>
    %53 = arith.sitofp %52 : vector<1x16xi32> to vector<1x16xf32>
    %c0_17 = arith.constant 0 : index
    %c0_18 = arith.constant 0 : index
    %54 = vector.load %arg49[%c0_17, %c0_18] : memref<8x16xf32, #tpu.memory_space<vmem>>, vector<1x16xf32>
    tpu.vector_store %arg49[%c0_17, %c0_18], %53 {strides = array<i32>} : memref<8x16xf32, #tpu.memory_space<vmem>>, vector<1x16xf32>,
    %c1_19 = arith.constant 1 : index
    %55 = memref.load %arg1[%c1_19] : memref<8xi32, #tpu.memory_space<smem>>
    %56 = vector.broadcast %55 : i32 to vector<1x16xi32>
    %57 = arith.cmpi eq, %0, %56 : vector<1x16xi32>
    %58 = arith.extui %57 : vector<1x16xi1> to vector<1x16xi32>
    %59 = arith.sitofp %58 : vector<1x16xi32> to vector<1x16xf32>
    %c1_20 = arith.constant 1 : index
    %c0_21 = arith.constant 0 : index
    %60 = vector.load %arg49[%c1_20, %c0_21] : memref<8x16xf32, #tpu.memory_space<vmem>>, vector<1x16xf32>
    tpu.vector_store %arg49[%c1_20, %c0_21], %59 {strides = array<i32>} : memref<8x16xf32, #tpu.memory_space<vmem>>, vector<1x16xf32>,
    %c2_22 = arith.constant 2 : index
    %61 = memref.load %arg1[%c2_22] : memref<8xi32, #tpu.memory_space<smem>>
    %62 = vector.broadcast %61 : i32 to vector<1x16xi32>
    %63 = arith.cmpi eq, %0, %62 : vector<1x16xi32>
    %64 = arith.extui %63 : vector<1x16xi1> to vector<1x16xi32>
    %65 = arith.sitofp %64 : vector<1x16xi32> to vector<1x16xf32>
    %c2_23 = arith.constant 2 : index
    %c0_24 = arith.constant 0 : index
    %66 = vector.load %arg49[%c2_23, %c0_24] : memref<8x16xf32, #tpu.memory_space<vmem>>, vector<1x16xf32>
    tpu.vector_store %arg49[%c2_23, %c0_24], %65 {strides = array<i32>} : memref<8x16xf32, #tpu.memory_space<vmem>>, vector<1x16xf32>,
    %c3_25 = arith.constant 3 : index
    %67 = memref.load %arg1[%c3_25] : memref<8xi32, #tpu.memory_space<smem>>
    %68 = vector.broadcast %67 : i32 to vector<1x16xi32>
    %69 = arith.cmpi eq, %0, %68 : vector<1x16xi32>
    %70 = arith.extui %69 : vector<1x16xi1> to vector<1x16xi32>
    %71 = arith.sitofp %70 : vector<1x16xi32> to vector<1x16xf32>
    %c3_26 = arith.constant 3 : index
    %c0_27 = arith.constant 0 : index
    %72 = vector.load %arg49[%c3_26, %c0_27] : memref<8x16xf32, #tpu.memory_space<vmem>>, vector<1x16xf32>
    tpu.vector_store %arg49[%c3_26, %c0_27], %71 {strides = array<i32>} : memref<8x16xf32, #tpu.memory_space<vmem>>, vector<1x16xf32>,
    %c4_28 = arith.constant 4 : index
    %73 = memref.load %arg1[%c4_28] : memref<8xi32, #tpu.memory_space<smem>>
    %74 = vector.broadcast %73 : i32 to vector<1x16xi32>
    %75 = arith.cmpi eq, %0, %74 : vector<1x16xi32>
    %76 = arith.extui %75 : vector<1x16xi1> to vector<1x16xi32>
    %77 = arith.sitofp %76 : vector<1x16xi32> to vector<1x16xf32>
    %c4_29 = arith.constant 4 : index
    %c0_30 = arith.constant 0 : index
    %78 = vector.load %arg49[%c4_29, %c0_30] : memref<8x16xf32, #tpu.memory_space<vmem>>, vector<1x16xf32>
    tpu.vector_store %arg49[%c4_29, %c0_30], %77 {strides = array<i32>} : memref<8x16xf32, #tpu.memory_space<vmem>>, vector<1x16xf32>,
    %c5_31 = arith.constant 5 : index
    %79 = memref.load %arg1[%c5_31] : memref<8xi32, #tpu.memory_space<smem>>
    %80 = vector.broadcast %79 : i32 to vector<1x16xi32>
    %81 = arith.cmpi eq, %0, %80 : vector<1x16xi32>
    %82 = arith.extui %81 : vector<1x16xi1> to vector<1x16xi32>
    %83 = arith.sitofp %82 : vector<1x16xi32> to vector<1x16xf32>
    %c5_32 = arith.constant 5 : index
    %c0_33 = arith.constant 0 : index
    %84 = vector.load %arg49[%c5_32, %c0_33] : memref<8x16xf32, #tpu.memory_space<vmem>>, vector<1x16xf32>
    tpu.vector_store %arg49[%c5_32, %c0_33], %83 {strides = array<i32>} : memref<8x16xf32, #tpu.memory_space<vmem>>, vector<1x16xf32>,
    %c6_34 = arith.constant 6 : index
    %85 = memref.load %arg1[%c6_34] : memref<8xi32, #tpu.memory_space<smem>>
    %86 = vector.broadcast %85 : i32 to vector<1x16xi32>
    %87 = arith.cmpi eq, %0, %86 : vector<1x16xi32>
    %88 = arith.extui %87 : vector<1x16xi1> to vector<1x16xi32>
    %89 = arith.sitofp %88 : vector<1x16xi32> to vector<1x16xf32>
    %c6_35 = arith.constant 6 : index
    %c0_36 = arith.constant 0 : index
    %90 = vector.load %arg49[%c6_35, %c0_36] : memref<8x16xf32, #tpu.memory_space<vmem>>, vector<1x16xf32>
    tpu.vector_store %arg49[%c6_35, %c0_36], %89 {strides = array<i32>} : memref<8x16xf32, #tpu.memory_space<vmem>>, vector<1x16xf32>,
    %c7_37 = arith.constant 7 : index
    %91 = memref.load %arg1[%c7_37] : memref<8xi32, #tpu.memory_space<smem>>
    %92 = vector.broadcast %91 : i32 to vector<1x16xi32>
    %93 = arith.cmpi eq, %0, %92 : vector<1x16xi32>
    %94 = arith.extui %93 : vector<1x16xi1> to vector<1x16xi32>
    %95 = arith.sitofp %94 : vector<1x16xi32> to vector<1x16xf32>
    %c7_38 = arith.constant 7 : index
    %c0_39 = arith.constant 0 : index
    %96 = vector.load %arg49[%c7_38, %c0_39] : memref<8x16xf32, #tpu.memory_space<vmem>>, vector<1x16xf32>
    tpu.vector_store %arg49[%c7_38, %c0_39], %95 {strides = array<i32>} : memref<8x16xf32, #tpu.memory_space<vmem>>, vector<1x16xf32>,
    %c0_40 = arith.constant 0 : index
    %c0_41 = arith.constant 0 : index
    %97 = vector.load %arg48[%c0_40, %c0_41] : memref<8x16xf32, #tpu.memory_space<vmem>>, vector<8x16xf32>
    %c0_42 = arith.constant 0 : index
    %c0_43 = arith.constant 0 : index
    %98 = vector.load %arg3[%c0_42, %c0_43] : memref<16x32xf32, #tpu.memory_space<vmem>>, vector<16x32xf32>
    %cst = arith.constant dense<0.000000e+00> : vector<8x32xf32>
    %99 = tpu.matmul %97, %98, %cst {dimension_numbers = #tpu.dot_dimension_numbers<[1], [0], [0], [1], [0, 0, 1, 1], [], []>} : vector<8x16xf32>, vector<16x32xf32>, vector<8x32xf32> -> vector<8x32xf32>
    %cst_44 = arith.constant 5.65685415 : f32
    %100 = vector.broadcast %cst_44 : f32 to vector<8x32xf32>
    %101 = arith.mulf %99, %100 : vector<8x32xf32>
    %c0_45 = arith.constant 0 : index
    %c0_46 = arith.constant 0 : index
    %102 = vector.load %arg5[%c0_45, %c0_46] : memref<64x32xf32, #tpu.memory_space<vmem>>, vector<8x32xf32>
    %103 = arith.addf %101, %102 : vector<8x32xf32>
    %c0_47 = arith.constant 0 : index
    %c0_48 = arith.constant 0 : index
    %c0_49 = arith.constant 0 : index
    %104 = vector.load %arg6[%c0_47, %c0_48, %c0_49] : memref<2x32x96xf32, #tpu.memory_space<vmem>>, vector<1x32x96xf32>
    %105 = vector.shape_cast %104 : vector<1x32x96xf32> to vector<32x96xf32>
    %cst_50 = arith.constant dense<0.000000e+00> : vector<8x96xf32>
    %106 = tpu.matmul %103, %105, %cst_50 {dimension_numbers = #tpu.dot_dimension_numbers<[1], [0], [0], [1], [0, 0, 1, 1], [], []>} : vector<8x32xf32>, vector<32x96xf32>, vector<8x96xf32> -> vector<8x96xf32>
    %c0_51 = arith.constant 0 : index
    %c0_52 = arith.constant 0 : index
    %c0_53 = arith.constant 0 : index
    %107 = vector.load %arg7[%c0_51, %c0_52, %c0_53] : memref<2x1x96xf32, #tpu.memory_space<vmem>>, vector<1x1x96xf32>
    %108 = vector.shape_cast %107 : vector<1x1x96xf32> to vector<1x96xf32>
    %109 = vector.broadcast %108 : vector<1x96xf32> to vector<8x96xf32>
    %110 = arith.addf %106, %109 : vector<8x96xf32>
    %111 = vector.extract_strided_slice %110 {offsets = [0, 0], sizes = [8, 32], strides = [1, 1]} : vector<8x96xf32> to vector<8x32xf32>
    %112 = vector.extract_strided_slice %110 {offsets = [0, 32], sizes = [8, 32], strides = [1, 1]} : vector<8x96xf32> to vector<8x32xf32>
    %113 = vector.extract_strided_slice %110 {offsets = [0, 64], sizes = [8, 32], strides = [1, 1]} : vector<8x96xf32> to vector<8x32xf32>
    %c0_54 = arith.constant 0 : index
    %c0_55 = arith.constant 0 : index
    %c0_56 = arith.constant 0 : index
    %114 = vector.load %arg8[%c0_54, %c0_55, %c0_56] : memref<2x32x32xf32, #tpu.memory_space<vmem>>, vector<1x32x32xf32>
    %115 = vector.shape_cast %114 : vector<1x32x32xf32> to vector<32x32xf32>
    %c0_57 = arith.constant 0 : index
    %c0_58 = arith.constant 0 : index
    %c0_59 = arith.constant 0 : index
    %116 = vector.load %arg9[%c0_57, %c0_58, %c0_59] : memref<2x1x32xf32, #tpu.memory_space<vmem>>, vector<1x1x32xf32>
    %117 = vector.shape_cast %116 : vector<1x1x32xf32> to vector<1x32xf32>
    %cst_60 = arith.constant 0.000000e+00 : f32
    %118 = vector.broadcast %cst_60 : f32 to vector<8x32xf32>
    %119 = vector.extract_strided_slice %111 {offsets = [0, 0], sizes = [8, 8], strides = [1, 1]} : vector<8x32xf32> to vector<8x8xf32>
    %120 = vector.extract_strided_slice %112 {offsets = [0, 0], sizes = [8, 8], strides = [1, 1]} : vector<8x32xf32> to vector<8x8xf32>
    %121 = vector.extract_strided_slice %113 {offsets = [0, 0], sizes = [8, 8], strides = [1, 1]} : vector<8x32xf32> to vector<8x8xf32>
    %cst_61 = arith.constant dense<0.000000e+00> : vector<8x8xf32>
    %122 = tpu.matmul %119, %120, %cst_61 {dimension_numbers = #tpu.dot_dimension_numbers<[1], [1], [0], [0], [0, 0, 1, 0], [], []>} : vector<8x8xf32>, vector<8x8xf32>, vector<8x8xf32> -> vector<8x8xf32>
    %cst_62 = arith.constant 0.353553385 : f32
    %123 = vector.broadcast %cst_62 : f32 to vector<8x8xf32>
    %124 = arith.mulf %122, %123 : vector<8x8xf32>
    %cst_63 = arith.constant dense<0xFF800000> : vector<8xf32>
    %125 = vector.multi_reduction <maximumf>, %124, %cst_63 [1] : vector<8x8xf32> to vector<8xf32>
    %126 = vector.shape_cast %125 : vector<8xf32> to vector<8x1xf32>
    %127 = vector.broadcast %126 : vector<8x1xf32> to vector<8x8xf32>
    %128 = arith.subf %124, %127 : vector<8x8xf32>
    %129 = math.exp %128 : vector<8x8xf32>
    %cst_64 = arith.constant dense<0.000000e+00> : vector<8xf32>
    %130 = vector.multi_reduction <add>, %129, %cst_64 [1] : vector<8x8xf32> to vector<8xf32>
    %131 = vector.shape_cast %130 : vector<8xf32> to vector<8x1xf32>
    %132 = vector.broadcast %131 : vector<8x1xf32> to vector<8x8xf32>
    %133 = arith.divf %129, %132 : vector<8x8xf32>
    %cst_65 = arith.constant dense<0.000000e+00> : vector<8x8xf32>
    %134 = tpu.matmul %133, %121, %cst_65 {dimension_numbers = #tpu.dot_dimension_numbers<[1], [0], [0], [1], [0, 0, 1, 1], [], []>} : vector<8x8xf32>, vector<8x8xf32>, vector<8x8xf32> -> vector<8x8xf32>
    %135 = vector.extract_strided_slice %115 {offsets = [0, 0], sizes = [8, 32], strides = [1, 1]} : vector<32x32xf32> to vector<8x32xf32>
    %cst_66 = arith.constant dense<0.000000e+00> : vector<8x32xf32>
    %136 = tpu.matmul %134, %135, %cst_66 {dimension_numbers = #tpu.dot_dimension_numbers<[1], [0], [0], [1], [0, 0, 1, 1], [], []>} : vector<8x8xf32>, vector<8x32xf32>, vector<8x32xf32> -> vector<8x32xf32>
    %137 = arith.addf %118, %136 : vector<8x32xf32>
    %138 = vector.extract_strided_slice %111 {offsets = [0, 8], sizes = [8, 8], strides = [1, 1]} : vector<8x32xf32> to vector<8x8xf32>
    %139 = vector.extract_strided_slice %112 {offsets = [0, 8], sizes = [8, 8], strides = [1, 1]} : vector<8x32xf32> to vector<8x8xf32>
    %140 = vector.extract_strided_slice %113 {offsets = [0, 8], sizes = [8, 8], strides = [1, 1]} : vector<8x32xf32> to vector<8x8xf32>
    %cst_67 = arith.constant dense<0.000000e+00> : vector<8x8xf32>
    %141 = tpu.matmul %138, %139, %cst_67 {dimension_numbers = #tpu.dot_dimension_numbers<[1], [1], [0], [0], [0, 0, 1, 0], [], []>} : vector<8x8xf32>, vector<8x8xf32>, vector<8x8xf32> -> vector<8x8xf32>
    %cst_68 = arith.constant 0.353553385 : f32
    %142 = vector.broadcast %cst_68 : f32 to vector<8x8xf32>
    %143 = arith.mulf %141, %142 : vector<8x8xf32>
    %cst_69 = arith.constant dense<0xFF800000> : vector<8xf32>
    %144 = vector.multi_reduction <maximumf>, %143, %cst_69 [1] : vector<8x8xf32> to vector<8xf32>
    %145 = vector.shape_cast %144 : vector<8xf32> to vector<8x1xf32>
    %146 = vector.broadcast %145 : vector<8x1xf32> to vector<8x8xf32>
    %147 = arith.subf %143, %146 : vector<8x8xf32>
    %148 = math.exp %147 : vector<8x8xf32>
    %cst_70 = arith.constant dense<0.000000e+00> : vector<8xf32>
    %149 = vector.multi_reduction <add>, %148, %cst_70 [1] : vector<8x8xf32> to vector<8xf32>
    %150 = vector.shape_cast %149 : vector<8xf32> to vector<8x1xf32>
    %151 = vector.broadcast %150 : vector<8x1xf32> to vector<8x8xf32>
    %152 = arith.divf %148, %151 : vector<8x8xf32>
    %cst_71 = arith.constant dense<0.000000e+00> : vector<8x8xf32>
    %153 = tpu.matmul %152, %140, %cst_71 {dimension_numbers = #tpu.dot_dimension_numbers<[1], [0], [0], [1], [0, 0, 1, 1], [], []>} : vector<8x8xf32>, vector<8x8xf32>, vector<8x8xf32> -> vector<8x8xf32>
    %154 = vector.extract_strided_slice %115 {offsets = [8, 0], sizes = [8, 32], strides = [1, 1]} : vector<32x32xf32> to vector<8x32xf32>
    %cst_72 = arith.constant dense<0.000000e+00> : vector<8x32xf32>
    %155 = tpu.matmul %153, %154, %cst_72 {dimension_numbers = #tpu.dot_dimension_numbers<[1], [0], [0], [1], [0, 0, 1, 1], [], []>} : vector<8x8xf32>, vector<8x32xf32>, vector<8x32xf32> -> vector<8x32xf32>
    %156 = arith.addf %137, %155 : vector<8x32xf32>
    %157 = vector.extract_strided_slice %111 {offsets = [0, 16], sizes = [8, 8], strides = [1, 1]} : vector<8x32xf32> to vector<8x8xf32>
    %158 = vector.extract_strided_slice %112 {offsets = [0, 16], sizes = [8, 8], strides = [1, 1]} : vector<8x32xf32> to vector<8x8xf32>
    %159 = vector.extract_strided_slice %113 {offsets = [0, 16], sizes = [8, 8], strides = [1, 1]} : vector<8x32xf32> to vector<8x8xf32>
    %cst_73 = arith.constant dense<0.000000e+00> : vector<8x8xf32>
    %160 = tpu.matmul %157, %158, %cst_73 {dimension_numbers = #tpu.dot_dimension_numbers<[1], [1], [0], [0], [0, 0, 1, 0], [], []>} : vector<8x8xf32>, vector<8x8xf32>, vector<8x8xf32> -> vector<8x8xf32>
    %cst_74 = arith.constant 0.353553385 : f32
    %161 = vector.broadcast %cst_74 : f32 to vector<8x8xf32>
    %162 = arith.mulf %160, %161 : vector<8x8xf32>
    %cst_75 = arith.constant dense<0xFF800000> : vector<8xf32>
    %163 = vector.multi_reduction <maximumf>, %162, %cst_75 [1] : vector<8x8xf32> to vector<8xf32>
    %164 = vector.shape_cast %163 : vector<8xf32> to vector<8x1xf32>
    %165 = vector.broadcast %164 : vector<8x1xf32> to vector<8x8xf32>
    %166 = arith.subf %162, %165 : vector<8x8xf32>
    %167 = math.exp %166 : vector<8x8xf32>
    %cst_76 = arith.constant dense<0.000000e+00> : vector<8xf32>
    %168 = vector.multi_reduction <add>, %167, %cst_76 [1] : vector<8x8xf32> to vector<8xf32>
    %169 = vector.shape_cast %168 : vector<8xf32> to vector<8x1xf32>
    %170 = vector.broadcast %169 : vector<8x1xf32> to vector<8x8xf32>
    %171 = arith.divf %167, %170 : vector<8x8xf32>
    %cst_77 = arith.constant dense<0.000000e+00> : vector<8x8xf32>
    %172 = tpu.matmul %171, %159, %cst_77 {dimension_numbers = #tpu.dot_dimension_numbers<[1], [0], [0], [1], [0, 0, 1, 1], [], []>} : vector<8x8xf32>, vector<8x8xf32>, vector<8x8xf32> -> vector<8x8xf32>
    %173 = vector.extract_strided_slice %115 {offsets = [16, 0], sizes = [8, 32], strides = [1, 1]} : vector<32x32xf32> to vector<8x32xf32>
    %cst_78 = arith.constant dense<0.000000e+00> : vector<8x32xf32>
    %174 = tpu.matmul %172, %173, %cst_78 {dimension_numbers = #tpu.dot_dimension_numbers<[1], [0], [0], [1], [0, 0, 1, 1], [], []>} : vector<8x8xf32>, vector<8x32xf32>, vector<8x32xf32> -> vector<8x32xf32>
    %175 = arith.addf %156, %174 : vector<8x32xf32>
    %176 = vector.extract_strided_slice %111 {offsets = [0, 24], sizes = [8, 8], strides = [1, 1]} : vector<8x32xf32> to vector<8x8xf32>
    %177 = vector.extract_strided_slice %112 {offsets = [0, 24], sizes = [8, 8], strides = [1, 1]} : vector<8x32xf32> to vector<8x8xf32>
    %178 = vector.extract_strided_slice %113 {offsets = [0, 24], sizes = [8, 8], strides = [1, 1]} : vector<8x32xf32> to vector<8x8xf32>
    %cst_79 = arith.constant dense<0.000000e+00> : vector<8x8xf32>
    %179 = tpu.matmul %176, %177, %cst_79 {dimension_numbers = #tpu.dot_dimension_numbers<[1], [1], [0], [0], [0, 0, 1, 0], [], []>} : vector<8x8xf32>, vector<8x8xf32>, vector<8x8xf32> -> vector<8x8xf32>
    %cst_80 = arith.constant 0.353553385 : f32
    %180 = vector.broadcast %cst_80 : f32 to vector<8x8xf32>
    %181 = arith.mulf %179, %180 : vector<8x8xf32>
    %cst_81 = arith.constant dense<0xFF800000> : vector<8xf32>
    %182 = vector.multi_reduction <maximumf>, %181, %cst_81 [1] : vector<8x8xf32> to vector<8xf32>
    %183 = vector.shape_cast %182 : vector<8xf32> to vector<8x1xf32>
    %184 = vector.broadcast %183 : vector<8x1xf32> to vector<8x8xf32>
    %185 = arith.subf %181, %184 : vector<8x8xf32>
    %186 = math.exp %185 : vector<8x8xf32>
    %cst_82 = arith.constant dense<0.000000e+00> : vector<8xf32>
    %187 = vector.multi_reduction <add>, %186, %cst_82 [1] : vector<8x8xf32> to vector<8xf32>
    %188 = vector.shape_cast %187 : vector<8xf32> to vector<8x1xf32>
    %189 = vector.broadcast %188 : vector<8x1xf32> to vector<8x8xf32>
    %190 = arith.divf %186, %189 : vector<8x8xf32>
    %cst_83 = arith.constant dense<0.000000e+00> : vector<8x8xf32>
    %191 = tpu.matmul %190, %178, %cst_83 {dimension_numbers = #tpu.dot_dimension_numbers<[1], [0], [0], [1], [0, 0, 1, 1], [], []>} : vector<8x8xf32>, vector<8x8xf32>, vector<8x8xf32> -> vector<8x8xf32>
    %192 = vector.extract_strided_slice %115 {offsets = [24, 0], sizes = [8, 32], strides = [1, 1]} : vector<32x32xf32> to vector<8x32xf32>
    %cst_84 = arith.constant dense<0.000000e+00> : vector<8x32xf32>
    %193 = tpu.matmul %191, %192, %cst_84 {dimension_numbers = #tpu.dot_dimension_numbers<[1], [0], [0], [1], [0, 0, 1, 1], [], []>} : vector<8x8xf32>, vector<8x32xf32>, vector<8x32xf32> -> vector<8x32xf32>
    %194 = arith.addf %175, %193 : vector<8x32xf32>
    %195 = vector.broadcast %117 : vector<1x32xf32> to vector<8x32xf32>
    %196 = arith.addf %194, %195 : vector<8x32xf32>
    %197 = arith.addf %103, %196 : vector<8x32xf32>
    %c0_85 = arith.constant 0 : index
    %c0_86 = arith.constant 0 : index
    %c0_87 = arith.constant 0 : index
    %198 = vector.load %arg10[%c0_85, %c0_86, %c0_87] : memref<2x1x32xf32, #tpu.memory_space<vmem>>, vector<1x1x32xf32>
    %199 = vector.shape_cast %198 : vector<1x1x32xf32> to vector<1x32xf32>
    %c0_88 = arith.constant 0 : index
    %c0_89 = arith.constant 0 : index
    %c0_90 = arith.constant 0 : index
    %200 = vector.load %arg11[%c0_88, %c0_89, %c0_90] : memref<2x1x32xf32, #tpu.memory_space<vmem>>, vector<1x1x32xf32>
    %201 = vector.shape_cast %200 : vector<1x1x32xf32> to vector<1x32xf32>
    %cst_91 = arith.constant dense<0.000000e+00> : vector<8xf32>
    %202 = vector.multi_reduction <add>, %197, %cst_91 [1] : vector<8x32xf32> to vector<8xf32>
    %203 = vector.shape_cast %202 : vector<8xf32> to vector<8x1xf32>
    %cst_92 = arith.constant 3.200000e+01 : f32
    %204 = vector.broadcast %cst_92 : f32 to vector<8x1xf32>
    %205 = arith.divf %203, %204 : vector<8x1xf32>
    %206 = vector.broadcast %205 : vector<8x1xf32> to vector<8x32xf32>
    %207 = arith.subf %197, %206 : vector<8x32xf32>
    %208 = arith.mulf %207, %207 : vector<8x32xf32>
    %cst_93 = arith.constant dense<0.000000e+00> : vector<8xf32>
    %209 = vector.multi_reduction <add>, %208, %cst_93 [1] : vector<8x32xf32> to vector<8xf32>
    %210 = vector.shape_cast %209 : vector<8xf32> to vector<8x1xf32>
    %cst_94 = arith.constant 3.200000e+01 : f32
    %211 = vector.broadcast %cst_94 : f32 to vector<8x1xf32>
    %212 = arith.divf %210, %211 : vector<8x1xf32>
    %213 = vector.broadcast %205 : vector<8x1xf32> to vector<8x32xf32>
    %214 = arith.subf %197, %213 : vector<8x32xf32>
    %cst_95 = arith.constant 9.99999974E-6 : f32
    %215 = vector.broadcast %cst_95 : f32 to vector<8x1xf32>
    %216 = arith.addf %212, %215 : vector<8x1xf32>
    %217 = math.rsqrt %216 : vector<8x1xf32>
    %218 = vector.broadcast %217 : vector<8x1xf32> to vector<8x32xf32>
    %219 = arith.mulf %214, %218 : vector<8x32xf32>
    %220 = vector.broadcast %199 : vector<1x32xf32> to vector<8x32xf32>
    %221 = arith.mulf %219, %220 : vector<8x32xf32>
    %222 = vector.broadcast %201 : vector<1x32xf32> to vector<8x32xf32>
    %223 = arith.addf %221, %222 : vector<8x32xf32>
    %c0_96 = arith.constant 0 : index
    %c0_97 = arith.constant 0 : index
    %c0_98 = arith.constant 0 : index
    %224 = vector.load %arg12[%c0_96, %c0_97, %c0_98] : memref<2x32x32xf32, #tpu.memory_space<vmem>>, vector<1x32x32xf32>
    %225 = vector.shape_cast %224 : vector<1x32x32xf32> to vector<32x32xf32>
    %cst_99 = arith.constant dense<0.000000e+00> : vector<8x32xf32>
    %226 = tpu.matmul %223, %225, %cst_99 {dimension_numbers = #tpu.dot_dimension_numbers<[1], [0], [0], [1], [0, 0, 1, 1], [], []>} : vector<8x32xf32>, vector<32x32xf32>, vector<8x32xf32> -> vector<8x32xf32>
    %c0_100 = arith.constant 0 : index
    %c0_101 = arith.constant 0 : index
    %c0_102 = arith.constant 0 : index
    %227 = vector.load %arg13[%c0_100, %c0_101, %c0_102] : memref<2x1x32xf32, #tpu.memory_space<vmem>>, vector<1x1x32xf32>
    %228 = vector.shape_cast %227 : vector<1x1x32xf32> to vector<1x32xf32>
    %229 = vector.broadcast %228 : vector<1x32xf32> to vector<8x32xf32>
    %230 = arith.addf %226, %229 : vector<8x32xf32>
    %cst_103 = arith.constant 0.000000e+00 : f32
    %231 = vector.broadcast %cst_103 : f32 to vector<8x32xf32>
    %232 = arith.maximumf %230, %231 : vector<8x32xf32>
    %c0_104 = arith.constant 0 : index
    %c0_105 = arith.constant 0 : index
    %c0_106 = arith.constant 0 : index
    %233 = vector.load %arg14[%c0_104, %c0_105, %c0_106] : memref<2x32x32xf32, #tpu.memory_space<vmem>>, vector<1x32x32xf32>
    %234 = vector.shape_cast %233 : vector<1x32x32xf32> to vector<32x32xf32>
    %cst_107 = arith.constant dense<0.000000e+00> : vector<8x32xf32>
    %235 = tpu.matmul %232, %234, %cst_107 {dimension_numbers = #tpu.dot_dimension_numbers<[1], [0], [0], [1], [0, 0, 1, 1], [], []>} : vector<8x32xf32>, vector<32x32xf32>, vector<8x32xf32> -> vector<8x32xf32>
    %c0_108 = arith.constant 0 : index
    %c0_109 = arith.constant 0 : index
    %c0_110 = arith.constant 0 : index
    %236 = vector.load %arg15[%c0_108, %c0_109, %c0_110] : memref<2x1x32xf32, #tpu.memory_space<vmem>>, vector<1x1x32xf32>
    %237 = vector.shape_cast %236 : vector<1x1x32xf32> to vector<1x32xf32>
    %238 = vector.broadcast %237 : vector<1x32xf32> to vector<8x32xf32>
    %239 = arith.addf %235, %238 : vector<8x32xf32>
    %240 = arith.addf %223, %239 : vector<8x32xf32>
    %c0_111 = arith.constant 0 : index
    %c0_112 = arith.constant 0 : index
    %c0_113 = arith.constant 0 : index
    %241 = vector.load %arg16[%c0_111, %c0_112, %c0_113] : memref<2x1x32xf32, #tpu.memory_space<vmem>>, vector<1x1x32xf32>
    %242 = vector.shape_cast %241 : vector<1x1x32xf32> to vector<1x32xf32>
    %c0_114 = arith.constant 0 : index
    %c0_115 = arith.constant 0 : index
    %c0_116 = arith.constant 0 : index
    %243 = vector.load %arg17[%c0_114, %c0_115, %c0_116] : memref<2x1x32xf32, #tpu.memory_space<vmem>>, vector<1x1x32xf32>
    %244 = vector.shape_cast %243 : vector<1x1x32xf32> to vector<1x32xf32>
    %cst_117 = arith.constant dense<0.000000e+00> : vector<8xf32>
    %245 = vector.multi_reduction <add>, %240, %cst_117 [1] : vector<8x32xf32> to vector<8xf32>
    %246 = vector.shape_cast %245 : vector<8xf32> to vector<8x1xf32>
    %cst_118 = arith.constant 3.200000e+01 : f32
    %247 = vector.broadcast %cst_118 : f32 to vector<8x1xf32>
    %248 = arith.divf %246, %247 : vector<8x1xf32>
    %249 = vector.broadcast %248 : vector<8x1xf32> to vector<8x32xf32>
    %250 = arith.subf %240, %249 : vector<8x32xf32>
    %251 = arith.mulf %250, %250 : vector<8x32xf32>
    %cst_119 = arith.constant dense<0.000000e+00> : vector<8xf32>
    %252 = vector.multi_reduction <add>, %251, %cst_119 [1] : vector<8x32xf32> to vector<8xf32>
    %253 = vector.shape_cast %252 : vector<8xf32> to vector<8x1xf32>
    %cst_120 = arith.constant 3.200000e+01 : f32
    %254 = vector.broadcast %cst_120 : f32 to vector<8x1xf32>
    %255 = arith.divf %253, %254 : vector<8x1xf32>
    %256 = vector.broadcast %248 : vector<8x1xf32> to vector<8x32xf32>
    %257 = arith.subf %240, %256 : vector<8x32xf32>
    %cst_121 = arith.constant 9.99999974E-6 : f32
    %258 = vector.broadcast %cst_121 : f32 to vector<8x1xf32>
    %259 = arith.addf %255, %258 : vector<8x1xf32>
    %260 = math.rsqrt %259 : vector<8x1xf32>
    %261 = vector.broadcast %260 : vector<8x1xf32> to vector<8x32xf32>
    %262 = arith.mulf %257, %261 : vector<8x32xf32>
    %263 = vector.broadcast %242 : vector<1x32xf32> to vector<8x32xf32>
    %264 = arith.mulf %262, %263 : vector<8x32xf32>
    %265 = vector.broadcast %244 : vector<1x32xf32> to vector<8x32xf32>
    %266 = arith.addf %264, %265 : vector<8x32xf32>
    %c1_122 = arith.constant 1 : index
    %c0_123 = arith.constant 0 : index
    %c0_124 = arith.constant 0 : index
    %267 = vector.load %arg6[%c1_122, %c0_123, %c0_124] : memref<2x32x96xf32, #tpu.memory_space<vmem>>, vector<1x32x96xf32>
    %268 = vector.shape_cast %267 : vector<1x32x96xf32> to vector<32x96xf32>
    %cst_125 = arith.constant dense<0.000000e+00> : vector<8x96xf32>
    %269 = tpu.matmul %266, %268, %cst_125 {dimension_numbers = #tpu.dot_dimension_numbers<[1], [0], [0], [1], [0, 0, 1, 1], [], []>} : vector<8x32xf32>, vector<32x96xf32>, vector<8x96xf32> -> vector<8x96xf32>
    %c1_126 = arith.constant 1 : index
    %c0_127 = arith.constant 0 : index
    %c0_128 = arith.constant 0 : index
    %270 = vector.load %arg7[%c1_126, %c0_127, %c0_128] : memref<2x1x96xf32, #tpu.memory_space<vmem>>, vector<1x1x96xf32>
    %271 = vector.shape_cast %270 : vector<1x1x96xf32> to vector<1x96xf32>
    %272 = vector.broadcast %271 : vector<1x96xf32> to vector<8x96xf32>
    %273 = arith.addf %269, %272 : vector<8x96xf32>
    %274 = vector.extract_strided_slice %273 {offsets = [0, 0], sizes = [8, 32], strides = [1, 1]} : vector<8x96xf32> to vector<8x32xf32>
    %275 = vector.extract_strided_slice %273 {offsets = [0, 32], sizes = [8, 32], strides = [1, 1]} : vector<8x96xf32> to vector<8x32xf32>
    %276 = vector.extract_strided_slice %273 {offsets = [0, 64], sizes = [8, 32], strides = [1, 1]} : vector<8x96xf32> to vector<8x32xf32>
    %c1_129 = arith.constant 1 : index
    %c0_130 = arith.constant 0 : index
    %c0_131 = arith.constant 0 : index
    %277 = vector.load %arg8[%c1_129, %c0_130, %c0_131] : memref<2x32x32xf32, #tpu.memory_space<vmem>>, vector<1x32x32xf32>
    %278 = vector.shape_cast %277 : vector<1x32x32xf32> to vector<32x32xf32>
    %c1_132 = arith.constant 1 : index
    %c0_133 = arith.constant 0 : index
    %c0_134 = arith.constant 0 : index
    %279 = vector.load %arg9[%c1_132, %c0_133, %c0_134] : memref<2x1x32xf32, #tpu.memory_space<vmem>>, vector<1x1x32xf32>
    %280 = vector.shape_cast %279 : vector<1x1x32xf32> to vector<1x32xf32>
    %cst_135 = arith.constant 0.000000e+00 : f32
    %281 = vector.broadcast %cst_135 : f32 to vector<8x32xf32>
    %282 = vector.extract_strided_slice %274 {offsets = [0, 0], sizes = [8, 8], strides = [1, 1]} : vector<8x32xf32> to vector<8x8xf32>
    %283 = vector.extract_strided_slice %275 {offsets = [0, 0], sizes = [8, 8], strides = [1, 1]} : vector<8x32xf32> to vector<8x8xf32>
    %284 = vector.extract_strided_slice %276 {offsets = [0, 0], sizes = [8, 8], strides = [1, 1]} : vector<8x32xf32> to vector<8x8xf32>
    %cst_136 = arith.constant dense<0.000000e+00> : vector<8x8xf32>
    %285 = tpu.matmul %282, %283, %cst_136 {dimension_numbers = #tpu.dot_dimension_numbers<[1], [1], [0], [0], [0, 0, 1, 0], [], []>} : vector<8x8xf32>, vector<8x8xf32>, vector<8x8xf32> -> vector<8x8xf32>
    %cst_137 = arith.constant 0.353553385 : f32
    %286 = vector.broadcast %cst_137 : f32 to vector<8x8xf32>
    %287 = arith.mulf %285, %286 : vector<8x8xf32>
    %cst_138 = arith.constant dense<0xFF800000> : vector<8xf32>
    %288 = vector.multi_reduction <maximumf>, %287, %cst_138 [1] : vector<8x8xf32> to vector<8xf32>
    %289 = vector.shape_cast %288 : vector<8xf32> to vector<8x1xf32>
    %290 = vector.broadcast %289 : vector<8x1xf32> to vector<8x8xf32>
    %291 = arith.subf %287, %290 : vector<8x8xf32>
    %292 = math.exp %291 : vector<8x8xf32>
    %cst_139 = arith.constant dense<0.000000e+00> : vector<8xf32>
    %293 = vector.multi_reduction <add>, %292, %cst_139 [1] : vector<8x8xf32> to vector<8xf32>
    %294 = vector.shape_cast %293 : vector<8xf32> to vector<8x1xf32>
    %295 = vector.broadcast %294 : vector<8x1xf32> to vector<8x8xf32>
    %296 = arith.divf %292, %295 : vector<8x8xf32>
    %cst_140 = arith.constant dense<0.000000e+00> : vector<8x8xf32>
    %297 = tpu.matmul %296, %284, %cst_140 {dimension_numbers = #tpu.dot_dimension_numbers<[1], [0], [0], [1], [0, 0, 1, 1], [], []>} : vector<8x8xf32>, vector<8x8xf32>, vector<8x8xf32> -> vector<8x8xf32>
    %298 = vector.extract_strided_slice %278 {offsets = [0, 0], sizes = [8, 32], strides = [1, 1]} : vector<32x32xf32> to vector<8x32xf32>
    %cst_141 = arith.constant dense<0.000000e+00> : vector<8x32xf32>
    %299 = tpu.matmul %297, %298, %cst_141 {dimension_numbers = #tpu.dot_dimension_numbers<[1], [0], [0], [1], [0, 0, 1, 1], [], []>} : vector<8x8xf32>, vector<8x32xf32>, vector<8x32xf32> -> vector<8x32xf32>
    %300 = arith.addf %281, %299 : vector<8x32xf32>
    %301 = vector.extract_strided_slice %274 {offsets = [0, 8], sizes = [8, 8], strides = [1, 1]} : vector<8x32xf32> to vector<8x8xf32>
    %302 = vector.extract_strided_slice %275 {offsets = [0, 8], sizes = [8, 8], strides = [1, 1]} : vector<8x32xf32> to vector<8x8xf32>
    %303 = vector.extract_strided_slice %276 {offsets = [0, 8], sizes = [8, 8], strides = [1, 1]} : vector<8x32xf32> to vector<8x8xf32>
    %cst_142 = arith.constant dense<0.000000e+00> : vector<8x8xf32>
    %304 = tpu.matmul %301, %302, %cst_142 {dimension_numbers = #tpu.dot_dimension_numbers<[1], [1], [0], [0], [0, 0, 1, 0], [], []>} : vector<8x8xf32>, vector<8x8xf32>, vector<8x8xf32> -> vector<8x8xf32>
    %cst_143 = arith.constant 0.353553385 : f32
    %305 = vector.broadcast %cst_143 : f32 to vector<8x8xf32>
    %306 = arith.mulf %304, %305 : vector<8x8xf32>
    %cst_144 = arith.constant dense<0xFF800000> : vector<8xf32>
    %307 = vector.multi_reduction <maximumf>, %306, %cst_144 [1] : vector<8x8xf32> to vector<8xf32>
    %308 = vector.shape_cast %307 : vector<8xf32> to vector<8x1xf32>
    %309 = vector.broadcast %308 : vector<8x1xf32> to vector<8x8xf32>
    %310 = arith.subf %306, %309 : vector<8x8xf32>
    %311 = math.exp %310 : vector<8x8xf32>
    %cst_145 = arith.constant dense<0.000000e+00> : vector<8xf32>
    %312 = vector.multi_reduction <add>, %311, %cst_145 [1] : vector<8x8xf32> to vector<8xf32>
    %313 = vector.shape_cast %312 : vector<8xf32> to vector<8x1xf32>
    %314 = vector.broadcast %313 : vector<8x1xf32> to vector<8x8xf32>
    %315 = arith.divf %311, %314 : vector<8x8xf32>
    %cst_146 = arith.constant dense<0.000000e+00> : vector<8x8xf32>
    %316 = tpu.matmul %315, %303, %cst_146 {dimension_numbers = #tpu.dot_dimension_numbers<[1], [0], [0], [1], [0, 0, 1, 1], [], []>} : vector<8x8xf32>, vector<8x8xf32>, vector<8x8xf32> -> vector<8x8xf32>
    %317 = vector.extract_strided_slice %278 {offsets = [8, 0], sizes = [8, 32], strides = [1, 1]} : vector<32x32xf32> to vector<8x32xf32>
    %cst_147 = arith.constant dense<0.000000e+00> : vector<8x32xf32>
    %318 = tpu.matmul %316, %317, %cst_147 {dimension_numbers = #tpu.dot_dimension_numbers<[1], [0], [0], [1], [0, 0, 1, 1], [], []>} : vector<8x8xf32>, vector<8x32xf32>, vector<8x32xf32> -> vector<8x32xf32>
    %319 = arith.addf %300, %318 : vector<8x32xf32>
    %320 = vector.extract_strided_slice %274 {offsets = [0, 16], sizes = [8, 8], strides = [1, 1]} : vector<8x32xf32> to vector<8x8xf32>
    %321 = vector.extract_strided_slice %275 {offsets = [0, 16], sizes = [8, 8], strides = [1, 1]} : vector<8x32xf32> to vector<8x8xf32>
    %322 = vector.extract_strided_slice %276 {offsets = [0, 16], sizes = [8, 8], strides = [1, 1]} : vector<8x32xf32> to vector<8x8xf32>
    %cst_148 = arith.constant dense<0.000000e+00> : vector<8x8xf32>
    %323 = tpu.matmul %320, %321, %cst_148 {dimension_numbers = #tpu.dot_dimension_numbers<[1], [1], [0], [0], [0, 0, 1, 0], [], []>} : vector<8x8xf32>, vector<8x8xf32>, vector<8x8xf32> -> vector<8x8xf32>
    %cst_149 = arith.constant 0.353553385 : f32
    %324 = vector.broadcast %cst_149 : f32 to vector<8x8xf32>
    %325 = arith.mulf %323, %324 : vector<8x8xf32>
    %cst_150 = arith.constant dense<0xFF800000> : vector<8xf32>
    %326 = vector.multi_reduction <maximumf>, %325, %cst_150 [1] : vector<8x8xf32> to vector<8xf32>
    %327 = vector.shape_cast %326 : vector<8xf32> to vector<8x1xf32>
    %328 = vector.broadcast %327 : vector<8x1xf32> to vector<8x8xf32>
    %329 = arith.subf %325, %328 : vector<8x8xf32>
    %330 = math.exp %329 : vector<8x8xf32>
    %cst_151 = arith.constant dense<0.000000e+00> : vector<8xf32>
    %331 = vector.multi_reduction <add>, %330, %cst_151 [1] : vector<8x8xf32> to vector<8xf32>
    %332 = vector.shape_cast %331 : vector<8xf32> to vector<8x1xf32>
    %333 = vector.broadcast %332 : vector<8x1xf32> to vector<8x8xf32>
    %334 = arith.divf %330, %333 : vector<8x8xf32>
    %cst_152 = arith.constant dense<0.000000e+00> : vector<8x8xf32>
    %335 = tpu.matmul %334, %322, %cst_152 {dimension_numbers = #tpu.dot_dimension_numbers<[1], [0], [0], [1], [0, 0, 1, 1], [], []>} : vector<8x8xf32>, vector<8x8xf32>, vector<8x8xf32> -> vector<8x8xf32>
    %336 = vector.extract_strided_slice %278 {offsets = [16, 0], sizes = [8, 32], strides = [1, 1]} : vector<32x32xf32> to vector<8x32xf32>
    %cst_153 = arith.constant dense<0.000000e+00> : vector<8x32xf32>
    %337 = tpu.matmul %335, %336, %cst_153 {dimension_numbers = #tpu.dot_dimension_numbers<[1], [0], [0], [1], [0, 0, 1, 1], [], []>} : vector<8x8xf32>, vector<8x32xf32>, vector<8x32xf32> -> vector<8x32xf32>
    %338 = arith.addf %319, %337 : vector<8x32xf32>
    %339 = vector.extract_strided_slice %274 {offsets = [0, 24], sizes = [8, 8], strides = [1, 1]} : vector<8x32xf32> to vector<8x8xf32>
    %340 = vector.extract_strided_slice %275 {offsets = [0, 24], sizes = [8, 8], strides = [1, 1]} : vector<8x32xf32> to vector<8x8xf32>
    %341 = vector.extract_strided_slice %276 {offsets = [0, 24], sizes = [8, 8], strides = [1, 1]} : vector<8x32xf32> to vector<8x8xf32>
    %cst_154 = arith.constant dense<0.000000e+00> : vector<8x8xf32>
    %342 = tpu.matmul %339, %340, %cst_154 {dimension_numbers = #tpu.dot_dimension_numbers<[1], [1], [0], [0], [0, 0, 1, 0], [], []>} : vector<8x8xf32>, vector<8x8xf32>, vector<8x8xf32> -> vector<8x8xf32>
    %cst_155 = arith.constant 0.353553385 : f32
    %343 = vector.broadcast %cst_155 : f32 to vector<8x8xf32>
    %344 = arith.mulf %342, %343 : vector<8x8xf32>
    %cst_156 = arith.constant dense<0xFF800000> : vector<8xf32>
    %345 = vector.multi_reduction <maximumf>, %344, %cst_156 [1] : vector<8x8xf32> to vector<8xf32>
    %346 = vector.shape_cast %345 : vector<8xf32> to vector<8x1xf32>
    %347 = vector.broadcast %346 : vector<8x1xf32> to vector<8x8xf32>
    %348 = arith.subf %344, %347 : vector<8x8xf32>
    %349 = math.exp %348 : vector<8x8xf32>
    %cst_157 = arith.constant dense<0.000000e+00> : vector<8xf32>
    %350 = vector.multi_reduction <add>, %349, %cst_157 [1] : vector<8x8xf32> to vector<8xf32>
    %351 = vector.shape_cast %350 : vector<8xf32> to vector<8x1xf32>
    %352 = vector.broadcast %351 : vector<8x1xf32> to vector<8x8xf32>
    %353 = arith.divf %349, %352 : vector<8x8xf32>
    %cst_158 = arith.constant dense<0.000000e+00> : vector<8x8xf32>
    %354 = tpu.matmul %353, %341, %cst_158 {dimension_numbers = #tpu.dot_dimension_numbers<[1], [0], [0], [1], [0, 0, 1, 1], [], []>} : vector<8x8xf32>, vector<8x8xf32>, vector<8x8xf32> -> vector<8x8xf32>
    %355 = vector.extract_strided_slice %278 {offsets = [24, 0], sizes = [8, 32], strides = [1, 1]} : vector<32x32xf32> to vector<8x32xf32>
    %cst_159 = arith.constant dense<0.000000e+00> : vector<8x32xf32>
    %356 = tpu.matmul %354, %355, %cst_159 {dimension_numbers = #tpu.dot_dimension_numbers<[1], [0], [0], [1], [0, 0, 1, 1], [], []>} : vector<8x8xf32>, vector<8x32xf32>, vector<8x32xf32> -> vector<8x32xf32>
    %357 = arith.addf %338, %356 : vector<8x32xf32>
    %358 = vector.broadcast %280 : vector<1x32xf32> to vector<8x32xf32>
    %359 = arith.addf %357, %358 : vector<8x32xf32>
    %360 = arith.addf %266, %359 : vector<8x32xf32>
    %c1_160 = arith.constant 1 : index
    %c0_161 = arith.constant 0 : index
    %c0_162 = arith.constant 0 : index
    %361 = vector.load %arg10[%c1_160, %c0_161, %c0_162] : memref<2x1x32xf32, #tpu.memory_space<vmem>>, vector<1x1x32xf32>
    %362 = vector.shape_cast %361 : vector<1x1x32xf32> to vector<1x32xf32>
    %c1_163 = arith.constant 1 : index
    %c0_164 = arith.constant 0 : index
    %c0_165 = arith.constant 0 : index
    %363 = vector.load %arg11[%c1_163, %c0_164, %c0_165] : memref<2x1x32xf32, #tpu.memory_space<vmem>>, vector<1x1x32xf32>
    %364 = vector.shape_cast %363 : vector<1x1x32xf32> to vector<1x32xf32>
    %cst_166 = arith.constant dense<0.000000e+00> : vector<8xf32>
    %365 = vector.multi_reduction <add>, %360, %cst_166 [1] : vector<8x32xf32> to vector<8xf32>
    %366 = vector.shape_cast %365 : vector<8xf32> to vector<8x1xf32>
    %cst_167 = arith.constant 3.200000e+01 : f32
    %367 = vector.broadcast %cst_167 : f32 to vector<8x1xf32>
    %368 = arith.divf %366, %367 : vector<8x1xf32>
    %369 = vector.broadcast %368 : vector<8x1xf32> to vector<8x32xf32>
    %370 = arith.subf %360, %369 : vector<8x32xf32>
    %371 = arith.mulf %370, %370 : vector<8x32xf32>
    %cst_168 = arith.constant dense<0.000000e+00> : vector<8xf32>
    %372 = vector.multi_reduction <add>, %371, %cst_168 [1] : vector<8x32xf32> to vector<8xf32>
    %373 = vector.shape_cast %372 : vector<8xf32> to vector<8x1xf32>
    %cst_169 = arith.constant 3.200000e+01 : f32
    %374 = vector.broadcast %cst_169 : f32 to vector<8x1xf32>
    %375 = arith.divf %373, %374 : vector<8x1xf32>
    %376 = vector.broadcast %368 : vector<8x1xf32> to vector<8x32xf32>
    %377 = arith.subf %360, %376 : vector<8x32xf32>
    %cst_170 = arith.constant 9.99999974E-6 : f32
    %378 = vector.broadcast %cst_170 : f32 to vector<8x1xf32>
    %379 = arith.addf %375, %378 : vector<8x1xf32>
    %380 = math.rsqrt %379 : vector<8x1xf32>
    %381 = vector.broadcast %380 : vector<8x1xf32> to vector<8x32xf32>
    %382 = arith.mulf %377, %381 : vector<8x32xf32>
    %383 = vector.broadcast %362 : vector<1x32xf32> to vector<8x32xf32>
    %384 = arith.mulf %382, %383 : vector<8x32xf32>
    %385 = vector.broadcast %364 : vector<1x32xf32> to vector<8x32xf32>
    %386 = arith.addf %384, %385 : vector<8x32xf32>
    %c1_171 = arith.constant 1 : index
    %c0_172 = arith.constant 0 : index
    %c0_173 = arith.constant 0 : index
    %387 = vector.load %arg12[%c1_171, %c0_172, %c0_173] : memref<2x32x32xf32, #tpu.memory_space<vmem>>, vector<1x32x32xf32>
    %388 = vector.shape_cast %387 : vector<1x32x32xf32> to vector<32x32xf32>
    %cst_174 = arith.constant dense<0.000000e+00> : vector<8x32xf32>
    %389 = tpu.matmul %386, %388, %cst_174 {dimension_numbers = #tpu.dot_dimension_numbers<[1], [0], [0], [1], [0, 0, 1, 1], [], []>} : vector<8x32xf32>, vector<32x32xf32>, vector<8x32xf32> -> vector<8x32xf32>
    %c1_175 = arith.constant 1 : index
    %c0_176 = arith.constant 0 : index
    %c0_177 = arith.constant 0 : index
    %390 = vector.load %arg13[%c1_175, %c0_176, %c0_177] : memref<2x1x32xf32, #tpu.memory_space<vmem>>, vector<1x1x32xf32>
    %391 = vector.shape_cast %390 : vector<1x1x32xf32> to vector<1x32xf32>
    %392 = vector.broadcast %391 : vector<1x32xf32> to vector<8x32xf32>
    %393 = arith.addf %389, %392 : vector<8x32xf32>
    %cst_178 = arith.constant 0.000000e+00 : f32
    %394 = vector.broadcast %cst_178 : f32 to vector<8x32xf32>
    %395 = arith.maximumf %393, %394 : vector<8x32xf32>
    %c1_179 = arith.constant 1 : index
    %c0_180 = arith.constant 0 : index
    %c0_181 = arith.constant 0 : index
    %396 = vector.load %arg14[%c1_179, %c0_180, %c0_181] : memref<2x32x32xf32, #tpu.memory_space<vmem>>, vector<1x32x32xf32>
    %397 = vector.shape_cast %396 : vector<1x32x32xf32> to vector<32x32xf32>
    %cst_182 = arith.constant dense<0.000000e+00> : vector<8x32xf32>
    %398 = tpu.matmul %395, %397, %cst_182 {dimension_numbers = #tpu.dot_dimension_numbers<[1], [0], [0], [1], [0, 0, 1, 1], [], []>} : vector<8x32xf32>, vector<32x32xf32>, vector<8x32xf32> -> vector<8x32xf32>
    %c1_183 = arith.constant 1 : index
    %c0_184 = arith.constant 0 : index
    %c0_185 = arith.constant 0 : index
    %399 = vector.load %arg15[%c1_183, %c0_184, %c0_185] : memref<2x1x32xf32, #tpu.memory_space<vmem>>, vector<1x1x32xf32>
    %400 = vector.shape_cast %399 : vector<1x1x32xf32> to vector<1x32xf32>
    %401 = vector.broadcast %400 : vector<1x32xf32> to vector<8x32xf32>
    %402 = arith.addf %398, %401 : vector<8x32xf32>
    %403 = arith.addf %386, %402 : vector<8x32xf32>
    %c1_186 = arith.constant 1 : index
    %c0_187 = arith.constant 0 : index
    %c0_188 = arith.constant 0 : index
    %404 = vector.load %arg16[%c1_186, %c0_187, %c0_188] : memref<2x1x32xf32, #tpu.memory_space<vmem>>, vector<1x1x32xf32>
    %405 = vector.shape_cast %404 : vector<1x1x32xf32> to vector<1x32xf32>
    %c1_189 = arith.constant 1 : index
    %c0_190 = arith.constant 0 : index
    %c0_191 = arith.constant 0 : index
    %406 = vector.load %arg17[%c1_189, %c0_190, %c0_191] : memref<2x1x32xf32, #tpu.memory_space<vmem>>, vector<1x1x32xf32>
    %407 = vector.shape_cast %406 : vector<1x1x32xf32> to vector<1x32xf32>
    %cst_192 = arith.constant dense<0.000000e+00> : vector<8xf32>
    %408 = vector.multi_reduction <add>, %403, %cst_192 [1] : vector<8x32xf32> to vector<8xf32>
    %409 = vector.shape_cast %408 : vector<8xf32> to vector<8x1xf32>
    %cst_193 = arith.constant 3.200000e+01 : f32
    %410 = vector.broadcast %cst_193 : f32 to vector<8x1xf32>
    %411 = arith.divf %409, %410 : vector<8x1xf32>
    %412 = vector.broadcast %411 : vector<8x1xf32> to vector<8x32xf32>
    %413 = arith.subf %403, %412 : vector<8x32xf32>
    %414 = arith.mulf %413, %413 : vector<8x32xf32>
    %cst_194 = arith.constant dense<0.000000e+00> : vector<8xf32>
    %415 = vector.multi_reduction <add>, %414, %cst_194 [1] : vector<8x32xf32> to vector<8xf32>
    %416 = vector.shape_cast %415 : vector<8xf32> to vector<8x1xf32>
    %cst_195 = arith.constant 3.200000e+01 : f32
    %417 = vector.broadcast %cst_195 : f32 to vector<8x1xf32>
    %418 = arith.divf %416, %417 : vector<8x1xf32>
    %419 = vector.broadcast %411 : vector<8x1xf32> to vector<8x32xf32>
    %420 = arith.subf %403, %419 : vector<8x32xf32>
    %cst_196 = arith.constant 9.99999974E-6 : f32
    %421 = vector.broadcast %cst_196 : f32 to vector<8x1xf32>
    %422 = arith.addf %418, %421 : vector<8x1xf32>
    %423 = math.rsqrt %422 : vector<8x1xf32>
    %424 = vector.broadcast %423 : vector<8x1xf32> to vector<8x32xf32>
    %425 = arith.mulf %420, %424 : vector<8x32xf32>
    %426 = vector.broadcast %405 : vector<1x32xf32> to vector<8x32xf32>
    %427 = arith.mulf %425, %426 : vector<8x32xf32>
    %428 = vector.broadcast %407 : vector<1x32xf32> to vector<8x32xf32>
    %429 = arith.addf %427, %428 : vector<8x32xf32>
    %c0_197 = arith.constant 0 : index
    %c0_198 = arith.constant 0 : index
    %430 = vector.load %arg49[%c0_197, %c0_198] : memref<8x16xf32, #tpu.memory_space<vmem>>, vector<8x16xf32>
    %c0_199 = arith.constant 0 : index
    %c0_200 = arith.constant 0 : index
    %431 = vector.load %arg4[%c0_199, %c0_200] : memref<16x32xf32, #tpu.memory_space<vmem>>, vector<16x32xf32>
    %cst_201 = arith.constant dense<0.000000e+00> : vector<8x32xf32>
    %432 = tpu.matmul %430, %431, %cst_201 {dimension_numbers = #tpu.dot_dimension_numbers<[1], [0], [0], [1], [0, 0, 1, 1], [], []>} : vector<8x16xf32>, vector<16x32xf32>, vector<8x32xf32> -> vector<8x32xf32>
    %cst_202 = arith.constant 5.65685415 : f32
    %433 = vector.broadcast %cst_202 : f32 to vector<8x32xf32>
    %434 = arith.mulf %432, %433 : vector<8x32xf32>
    %c0_203 = arith.constant 0 : index
    %c0_204 = arith.constant 0 : index
    %435 = vector.load %arg5[%c0_203, %c0_204] : memref<64x32xf32, #tpu.memory_space<vmem>>, vector<8x32xf32>
    %436 = arith.addf %434, %435 : vector<8x32xf32>
    %c0_205 = arith.constant 0 : index
    %c0_206 = arith.constant 0 : index
    %c0_207 = arith.constant 0 : index
    %437 = vector.load %arg18[%c0_205, %c0_206, %c0_207] : memref<2x32x96xf32, #tpu.memory_space<vmem>>, vector<1x32x96xf32>
    %438 = vector.shape_cast %437 : vector<1x32x96xf32> to vector<32x96xf32>
    %cst_208 = arith.constant dense<0.000000e+00> : vector<8x96xf32>
    %439 = tpu.matmul %436, %438, %cst_208 {dimension_numbers = #tpu.dot_dimension_numbers<[1], [0], [0], [1], [0, 0, 1, 1], [], []>} : vector<8x32xf32>, vector<32x96xf32>, vector<8x96xf32> -> vector<8x96xf32>
    %c0_209 = arith.constant 0 : index
    %c0_210 = arith.constant 0 : index
    %c0_211 = arith.constant 0 : index
    %440 = vector.load %arg19[%c0_209, %c0_210, %c0_211] : memref<2x1x96xf32, #tpu.memory_space<vmem>>, vector<1x1x96xf32>
    %441 = vector.shape_cast %440 : vector<1x1x96xf32> to vector<1x96xf32>
    %442 = vector.broadcast %441 : vector<1x96xf32> to vector<8x96xf32>
    %443 = arith.addf %439, %442 : vector<8x96xf32>
    %444 = vector.extract_strided_slice %443 {offsets = [0, 0], sizes = [8, 32], strides = [1, 1]} : vector<8x96xf32> to vector<8x32xf32>
    %445 = vector.extract_strided_slice %443 {offsets = [0, 32], sizes = [8, 32], strides = [1, 1]} : vector<8x96xf32> to vector<8x32xf32>
    %446 = vector.extract_strided_slice %443 {offsets = [0, 64], sizes = [8, 32], strides = [1, 1]} : vector<8x96xf32> to vector<8x32xf32>
    %c0_212 = arith.constant 0 : index
    %c0_213 = arith.constant 0 : index
    %c0_214 = arith.constant 0 : index
    %447 = vector.load %arg20[%c0_212, %c0_213, %c0_214] : memref<2x32x32xf32, #tpu.memory_space<vmem>>, vector<1x32x32xf32>
    %448 = vector.shape_cast %447 : vector<1x32x32xf32> to vector<32x32xf32>
    %c0_215 = arith.constant 0 : index
    %c0_216 = arith.constant 0 : index
    %c0_217 = arith.constant 0 : index
    %449 = vector.load %arg21[%c0_215, %c0_216, %c0_217] : memref<2x1x32xf32, #tpu.memory_space<vmem>>, vector<1x1x32xf32>
    %450 = vector.shape_cast %449 : vector<1x1x32xf32> to vector<1x32xf32>
    %cst_218 = arith.constant 0.000000e+00 : f32
    %451 = vector.broadcast %cst_218 : f32 to vector<8x32xf32>
    %452 = vector.extract_strided_slice %444 {offsets = [0, 0], sizes = [8, 8], strides = [1, 1]} : vector<8x32xf32> to vector<8x8xf32>
    %453 = vector.extract_strided_slice %445 {offsets = [0, 0], sizes = [8, 8], strides = [1, 1]} : vector<8x32xf32> to vector<8x8xf32>
    %454 = vector.extract_strided_slice %446 {offsets = [0, 0], sizes = [8, 8], strides = [1, 1]} : vector<8x32xf32> to vector<8x8xf32>
    %cst_219 = arith.constant dense<0.000000e+00> : vector<8x8xf32>
    %455 = tpu.matmul %452, %453, %cst_219 {dimension_numbers = #tpu.dot_dimension_numbers<[1], [1], [0], [0], [0, 0, 1, 0], [], []>} : vector<8x8xf32>, vector<8x8xf32>, vector<8x8xf32> -> vector<8x8xf32>
    %cst_220 = arith.constant 0.353553385 : f32
    %456 = vector.broadcast %cst_220 : f32 to vector<8x8xf32>
    %457 = arith.mulf %455, %456 : vector<8x8xf32>
    %cst_221 = arith.constant dense<0xFF800000> : vector<8xf32>
    %458 = vector.multi_reduction <maximumf>, %457, %cst_221 [1] : vector<8x8xf32> to vector<8xf32>
    %459 = vector.shape_cast %458 : vector<8xf32> to vector<8x1xf32>
    %460 = vector.broadcast %459 : vector<8x1xf32> to vector<8x8xf32>
    %461 = arith.subf %457, %460 : vector<8x8xf32>
    %462 = math.exp %461 : vector<8x8xf32>
    %cst_222 = arith.constant dense<0.000000e+00> : vector<8xf32>
    %463 = vector.multi_reduction <add>, %462, %cst_222 [1] : vector<8x8xf32> to vector<8xf32>
    %464 = vector.shape_cast %463 : vector<8xf32> to vector<8x1xf32>
    %465 = vector.broadcast %464 : vector<8x1xf32> to vector<8x8xf32>
    %466 = arith.divf %462, %465 : vector<8x8xf32>
    %cst_223 = arith.constant dense<0.000000e+00> : vector<8x8xf32>
    %467 = tpu.matmul %466, %454, %cst_223 {dimension_numbers = #tpu.dot_dimension_numbers<[1], [0], [0], [1], [0, 0, 1, 1], [], []>} : vector<8x8xf32>, vector<8x8xf32>, vector<8x8xf32> -> vector<8x8xf32>
    %468 = vector.extract_strided_slice %448 {offsets = [0, 0], sizes = [8, 32], strides = [1, 1]} : vector<32x32xf32> to vector<8x32xf32>
    %cst_224 = arith.constant dense<0.000000e+00> : vector<8x32xf32>
    %469 = tpu.matmul %467, %468, %cst_224 {dimension_numbers = #tpu.dot_dimension_numbers<[1], [0], [0], [1], [0, 0, 1, 1], [], []>} : vector<8x8xf32>, vector<8x32xf32>, vector<8x32xf32> -> vector<8x32xf32>
    %470 = arith.addf %451, %469 : vector<8x32xf32>
    %471 = vector.extract_strided_slice %444 {offsets = [0, 8], sizes = [8, 8], strides = [1, 1]} : vector<8x32xf32> to vector<8x8xf32>
    %472 = vector.extract_strided_slice %445 {offsets = [0, 8], sizes = [8, 8], strides = [1, 1]} : vector<8x32xf32> to vector<8x8xf32>
    %473 = vector.extract_strided_slice %446 {offsets = [0, 8], sizes = [8, 8], strides = [1, 1]} : vector<8x32xf32> to vector<8x8xf32>
    %cst_225 = arith.constant dense<0.000000e+00> : vector<8x8xf32>
    %474 = tpu.matmul %471, %472, %cst_225 {dimension_numbers = #tpu.dot_dimension_numbers<[1], [1], [0], [0], [0, 0, 1, 0], [], []>} : vector<8x8xf32>, vector<8x8xf32>, vector<8x8xf32> -> vector<8x8xf32>
    %cst_226 = arith.constant 0.353553385 : f32
    %475 = vector.broadcast %cst_226 : f32 to vector<8x8xf32>
    %476 = arith.mulf %474, %475 : vector<8x8xf32>
    %cst_227 = arith.constant dense<0xFF800000> : vector<8xf32>
    %477 = vector.multi_reduction <maximumf>, %476, %cst_227 [1] : vector<8x8xf32> to vector<8xf32>
    %478 = vector.shape_cast %477 : vector<8xf32> to vector<8x1xf32>
    %479 = vector.broadcast %478 : vector<8x1xf32> to vector<8x8xf32>
    %480 = arith.subf %476, %479 : vector<8x8xf32>
    %481 = math.exp %480 : vector<8x8xf32>
    %cst_228 = arith.constant dense<0.000000e+00> : vector<8xf32>
    %482 = vector.multi_reduction <add>, %481, %cst_228 [1] : vector<8x8xf32> to vector<8xf32>
    %483 = vector.shape_cast %482 : vector<8xf32> to vector<8x1xf32>
    %484 = vector.broadcast %483 : vector<8x1xf32> to vector<8x8xf32>
    %485 = arith.divf %481, %484 : vector<8x8xf32>
    %cst_229 = arith.constant dense<0.000000e+00> : vector<8x8xf32>
    %486 = tpu.matmul %485, %473, %cst_229 {dimension_numbers = #tpu.dot_dimension_numbers<[1], [0], [0], [1], [0, 0, 1, 1], [], []>} : vector<8x8xf32>, vector<8x8xf32>, vector<8x8xf32> -> vector<8x8xf32>
    %487 = vector.extract_strided_slice %448 {offsets = [8, 0], sizes = [8, 32], strides = [1, 1]} : vector<32x32xf32> to vector<8x32xf32>
    %cst_230 = arith.constant dense<0.000000e+00> : vector<8x32xf32>
    %488 = tpu.matmul %486, %487, %cst_230 {dimension_numbers = #tpu.dot_dimension_numbers<[1], [0], [0], [1], [0, 0, 1, 1], [], []>} : vector<8x8xf32>, vector<8x32xf32>, vector<8x32xf32> -> vector<8x32xf32>
    %489 = arith.addf %470, %488 : vector<8x32xf32>
    %490 = vector.extract_strided_slice %444 {offsets = [0, 16], sizes = [8, 8], strides = [1, 1]} : vector<8x32xf32> to vector<8x8xf32>
    %491 = vector.extract_strided_slice %445 {offsets = [0, 16], sizes = [8, 8], strides = [1, 1]} : vector<8x32xf32> to vector<8x8xf32>
    %492 = vector.extract_strided_slice %446 {offsets = [0, 16], sizes = [8, 8], strides = [1, 1]} : vector<8x32xf32> to vector<8x8xf32>
    %cst_231 = arith.constant dense<0.000000e+00> : vector<8x8xf32>
    %493 = tpu.matmul %490, %491, %cst_231 {dimension_numbers = #tpu.dot_dimension_numbers<[1], [1], [0], [0], [0, 0, 1, 0], [], []>} : vector<8x8xf32>, vector<8x8xf32>, vector<8x8xf32> -> vector<8x8xf32>
    %cst_232 = arith.constant 0.353553385 : f32
    %494 = vector.broadcast %cst_232 : f32 to vector<8x8xf32>
    %495 = arith.mulf %493, %494 : vector<8x8xf32>
    %cst_233 = arith.constant dense<0xFF800000> : vector<8xf32>
    %496 = vector.multi_reduction <maximumf>, %495, %cst_233 [1] : vector<8x8xf32> to vector<8xf32>
    %497 = vector.shape_cast %496 : vector<8xf32> to vector<8x1xf32>
    %498 = vector.broadcast %497 : vector<8x1xf32> to vector<8x8xf32>
    %499 = arith.subf %495, %498 : vector<8x8xf32>
    %500 = math.exp %499 : vector<8x8xf32>
    %cst_234 = arith.constant dense<0.000000e+00> : vector<8xf32>
    %501 = vector.multi_reduction <add>, %500, %cst_234 [1] : vector<8x8xf32> to vector<8xf32>
    %502 = vector.shape_cast %501 : vector<8xf32> to vector<8x1xf32>
    %503 = vector.broadcast %502 : vector<8x1xf32> to vector<8x8xf32>
    %504 = arith.divf %500, %503 : vector<8x8xf32>
    %cst_235 = arith.constant dense<0.000000e+00> : vector<8x8xf32>
    %505 = tpu.matmul %504, %492, %cst_235 {dimension_numbers = #tpu.dot_dimension_numbers<[1], [0], [0], [1], [0, 0, 1, 1], [], []>} : vector<8x8xf32>, vector<8x8xf32>, vector<8x8xf32> -> vector<8x8xf32>
    %506 = vector.extract_strided_slice %448 {offsets = [16, 0], sizes = [8, 32], strides = [1, 1]} : vector<32x32xf32> to vector<8x32xf32>
    %cst_236 = arith.constant dense<0.000000e+00> : vector<8x32xf32>
    %507 = tpu.matmul %505, %506, %cst_236 {dimension_numbers = #tpu.dot_dimension_numbers<[1], [0], [0], [1], [0, 0, 1, 1], [], []>} : vector<8x8xf32>, vector<8x32xf32>, vector<8x32xf32> -> vector<8x32xf32>
    %508 = arith.addf %489, %507 : vector<8x32xf32>
    %509 = vector.extract_strided_slice %444 {offsets = [0, 24], sizes = [8, 8], strides = [1, 1]} : vector<8x32xf32> to vector<8x8xf32>
    %510 = vector.extract_strided_slice %445 {offsets = [0, 24], sizes = [8, 8], strides = [1, 1]} : vector<8x32xf32> to vector<8x8xf32>
    %511 = vector.extract_strided_slice %446 {offsets = [0, 24], sizes = [8, 8], strides = [1, 1]} : vector<8x32xf32> to vector<8x8xf32>
    %cst_237 = arith.constant dense<0.000000e+00> : vector<8x8xf32>
    %512 = tpu.matmul %509, %510, %cst_237 {dimension_numbers = #tpu.dot_dimension_numbers<[1], [1], [0], [0], [0, 0, 1, 0], [], []>} : vector<8x8xf32>, vector<8x8xf32>, vector<8x8xf32> -> vector<8x8xf32>
    %cst_238 = arith.constant 0.353553385 : f32
    %513 = vector.broadcast %cst_238 : f32 to vector<8x8xf32>
    %514 = arith.mulf %512, %513 : vector<8x8xf32>
    %cst_239 = arith.constant dense<0xFF800000> : vector<8xf32>
    %515 = vector.multi_reduction <maximumf>, %514, %cst_239 [1] : vector<8x8xf32> to vector<8xf32>
    %516 = vector.shape_cast %515 : vector<8xf32> to vector<8x1xf32>
    %517 = vector.broadcast %516 : vector<8x1xf32> to vector<8x8xf32>
    %518 = arith.subf %514, %517 : vector<8x8xf32>
    %519 = math.exp %518 : vector<8x8xf32>
    %cst_240 = arith.constant dense<0.000000e+00> : vector<8xf32>
    %520 = vector.multi_reduction <add>, %519, %cst_240 [1] : vector<8x8xf32> to vector<8xf32>
    %521 = vector.shape_cast %520 : vector<8xf32> to vector<8x1xf32>
    %522 = vector.broadcast %521 : vector<8x1xf32> to vector<8x8xf32>
    %523 = arith.divf %519, %522 : vector<8x8xf32>
    %cst_241 = arith.constant dense<0.000000e+00> : vector<8x8xf32>
    %524 = tpu.matmul %523, %511, %cst_241 {dimension_numbers = #tpu.dot_dimension_numbers<[1], [0], [0], [1], [0, 0, 1, 1], [], []>} : vector<8x8xf32>, vector<8x8xf32>, vector<8x8xf32> -> vector<8x8xf32>
    %525 = vector.extract_strided_slice %448 {offsets = [24, 0], sizes = [8, 32], strides = [1, 1]} : vector<32x32xf32> to vector<8x32xf32>
    %cst_242 = arith.constant dense<0.000000e+00> : vector<8x32xf32>
    %526 = tpu.matmul %524, %525, %cst_242 {dimension_numbers = #tpu.dot_dimension_numbers<[1], [0], [0], [1], [0, 0, 1, 1], [], []>} : vector<8x8xf32>, vector<8x32xf32>, vector<8x32xf32> -> vector<8x32xf32>
    %527 = arith.addf %508, %526 : vector<8x32xf32>
    %528 = vector.broadcast %450 : vector<1x32xf32> to vector<8x32xf32>
    %529 = arith.addf %527, %528 : vector<8x32xf32>
    %530 = arith.addf %436, %529 : vector<8x32xf32>
    %c0_243 = arith.constant 0 : index
    %c0_244 = arith.constant 0 : index
    %c0_245 = arith.constant 0 : index
    %531 = vector.load %arg22[%c0_243, %c0_244, %c0_245] : memref<2x1x32xf32, #tpu.memory_space<vmem>>, vector<1x1x32xf32>
    %532 = vector.shape_cast %531 : vector<1x1x32xf32> to vector<1x32xf32>
    %c0_246 = arith.constant 0 : index
    %c0_247 = arith.constant 0 : index
    %c0_248 = arith.constant 0 : index
    %533 = vector.load %arg23[%c0_246, %c0_247, %c0_248] : memref<2x1x32xf32, #tpu.memory_space<vmem>>, vector<1x1x32xf32>
    %534 = vector.shape_cast %533 : vector<1x1x32xf32> to vector<1x32xf32>
    %cst_249 = arith.constant dense<0.000000e+00> : vector<8xf32>
    %535 = vector.multi_reduction <add>, %530, %cst_249 [1] : vector<8x32xf32> to vector<8xf32>
    %536 = vector.shape_cast %535 : vector<8xf32> to vector<8x1xf32>
    %cst_250 = arith.constant 3.200000e+01 : f32
    %537 = vector.broadcast %cst_250 : f32 to vector<8x1xf32>
    %538 = arith.divf %536, %537 : vector<8x1xf32>
    %539 = vector.broadcast %538 : vector<8x1xf32> to vector<8x32xf32>
    %540 = arith.subf %530, %539 : vector<8x32xf32>
    %541 = arith.mulf %540, %540 : vector<8x32xf32>
    %cst_251 = arith.constant dense<0.000000e+00> : vector<8xf32>
    %542 = vector.multi_reduction <add>, %541, %cst_251 [1] : vector<8x32xf32> to vector<8xf32>
    %543 = vector.shape_cast %542 : vector<8xf32> to vector<8x1xf32>
    %cst_252 = arith.constant 3.200000e+01 : f32
    %544 = vector.broadcast %cst_252 : f32 to vector<8x1xf32>
    %545 = arith.divf %543, %544 : vector<8x1xf32>
    %546 = vector.broadcast %538 : vector<8x1xf32> to vector<8x32xf32>
    %547 = arith.subf %530, %546 : vector<8x32xf32>
    %cst_253 = arith.constant 9.99999974E-6 : f32
    %548 = vector.broadcast %cst_253 : f32 to vector<8x1xf32>
    %549 = arith.addf %545, %548 : vector<8x1xf32>
    %550 = math.rsqrt %549 : vector<8x1xf32>
    %551 = vector.broadcast %550 : vector<8x1xf32> to vector<8x32xf32>
    %552 = arith.mulf %547, %551 : vector<8x32xf32>
    %553 = vector.broadcast %532 : vector<1x32xf32> to vector<8x32xf32>
    %554 = arith.mulf %552, %553 : vector<8x32xf32>
    %555 = vector.broadcast %534 : vector<1x32xf32> to vector<8x32xf32>
    %556 = arith.addf %554, %555 : vector<8x32xf32>
    %c0_254 = arith.constant 0 : index
    %c0_255 = arith.constant 0 : index
    %c0_256 = arith.constant 0 : index
    %557 = vector.load %arg24[%c0_254, %c0_255, %c0_256] : memref<2x32x32xf32, #tpu.memory_space<vmem>>, vector<1x32x32xf32>
    %558 = vector.shape_cast %557 : vector<1x32x32xf32> to vector<32x32xf32>
    %cst_257 = arith.constant dense<0.000000e+00> : vector<8x32xf32>
    %559 = tpu.matmul %556, %558, %cst_257 {dimension_numbers = #tpu.dot_dimension_numbers<[1], [0], [0], [1], [0, 0, 1, 1], [], []>} : vector<8x32xf32>, vector<32x32xf32>, vector<8x32xf32> -> vector<8x32xf32>
    %c0_258 = arith.constant 0 : index
    %c0_259 = arith.constant 0 : index
    %c0_260 = arith.constant 0 : index
    %560 = vector.load %arg25[%c0_258, %c0_259, %c0_260] : memref<2x1x32xf32, #tpu.memory_space<vmem>>, vector<1x1x32xf32>
    %561 = vector.shape_cast %560 : vector<1x1x32xf32> to vector<1x32xf32>
    %562 = vector.broadcast %561 : vector<1x32xf32> to vector<8x32xf32>
    %563 = arith.addf %559, %562 : vector<8x32xf32>
    %c0_261 = arith.constant 0 : index
    %c0_262 = arith.constant 0 : index
    %c0_263 = arith.constant 0 : index
    %564 = vector.load %arg26[%c0_261, %c0_262, %c0_263] : memref<2x32x64xf32, #tpu.memory_space<vmem>>, vector<1x32x64xf32>
    %565 = vector.shape_cast %564 : vector<1x32x64xf32> to vector<32x64xf32>
    %cst_264 = arith.constant dense<0.000000e+00> : vector<8x64xf32>
    %566 = tpu.matmul %429, %565, %cst_264 {dimension_numbers = #tpu.dot_dimension_numbers<[1], [0], [0], [1], [0, 0, 1, 1], [], []>} : vector<8x32xf32>, vector<32x64xf32>, vector<8x64xf32> -> vector<8x64xf32>
    %c0_265 = arith.constant 0 : index
    %c0_266 = arith.constant 0 : index
    %c0_267 = arith.constant 0 : index
    %567 = vector.load %arg27[%c0_265, %c0_266, %c0_267] : memref<2x1x64xf32, #tpu.memory_space<vmem>>, vector<1x1x64xf32>
    %568 = vector.shape_cast %567 : vector<1x1x64xf32> to vector<1x64xf32>
    %569 = vector.broadcast %568 : vector<1x64xf32> to vector<8x64xf32>
    %570 = arith.addf %566, %569 : vector<8x64xf32>
    %571 = vector.extract_strided_slice %570 {offsets = [0, 0], sizes = [8, 32], strides = [1, 1]} : vector<8x64xf32> to vector<8x32xf32>
    %572 = vector.extract_strided_slice %570 {offsets = [0, 32], sizes = [8, 32], strides = [1, 1]} : vector<8x64xf32> to vector<8x32xf32>
    %c0_268 = arith.constant 0 : index
    %c0_269 = arith.constant 0 : index
    %c0_270 = arith.constant 0 : index
    %573 = vector.load %arg28[%c0_268, %c0_269, %c0_270] : memref<2x32x32xf32, #tpu.memory_space<vmem>>, vector<1x32x32xf32>
    %574 = vector.shape_cast %573 : vector<1x32x32xf32> to vector<32x32xf32>
    %c0_271 = arith.constant 0 : index
    %c0_272 = arith.constant 0 : index
    %c0_273 = arith.constant 0 : index
    %575 = vector.load %arg29[%c0_271, %c0_272, %c0_273] : memref<2x1x32xf32, #tpu.memory_space<vmem>>, vector<1x1x32xf32>
    %576 = vector.shape_cast %575 : vector<1x1x32xf32> to vector<1x32xf32>
    %cst_274 = arith.constant 0.000000e+00 : f32
    %577 = vector.broadcast %cst_274 : f32 to vector<8x32xf32>
    %578 = vector.extract_strided_slice %563 {offsets = [0, 0], sizes = [8, 8], strides = [1, 1]} : vector<8x32xf32> to vector<8x8xf32>
    %579 = vector.extract_strided_slice %571 {offsets = [0, 0], sizes = [8, 8], strides = [1, 1]} : vector<8x32xf32> to vector<8x8xf32>
    %580 = vector.extract_strided_slice %572 {offsets = [0, 0], sizes = [8, 8], strides = [1, 1]} : vector<8x32xf32> to vector<8x8xf32>
    %cst_275 = arith.constant dense<0.000000e+00> : vector<8x8xf32>
    %581 = tpu.matmul %578, %579, %cst_275 {dimension_numbers = #tpu.dot_dimension_numbers<[1], [1], [0], [0], [0, 0, 1, 0], [], []>} : vector<8x8xf32>, vector<8x8xf32>, vector<8x8xf32> -> vector<8x8xf32>
    %cst_276 = arith.constant 0.353553385 : f32
    %582 = vector.broadcast %cst_276 : f32 to vector<8x8xf32>
    %583 = arith.mulf %581, %582 : vector<8x8xf32>
    %cst_277 = arith.constant dense<0xFF800000> : vector<8xf32>
    %584 = vector.multi_reduction <maximumf>, %583, %cst_277 [1] : vector<8x8xf32> to vector<8xf32>
    %585 = vector.shape_cast %584 : vector<8xf32> to vector<8x1xf32>
    %586 = vector.broadcast %585 : vector<8x1xf32> to vector<8x8xf32>
    %587 = arith.subf %583, %586 : vector<8x8xf32>
    %588 = math.exp %587 : vector<8x8xf32>
    %cst_278 = arith.constant dense<0.000000e+00> : vector<8xf32>
    %589 = vector.multi_reduction <add>, %588, %cst_278 [1] : vector<8x8xf32> to vector<8xf32>
    %590 = vector.shape_cast %589 : vector<8xf32> to vector<8x1xf32>
    %591 = vector.broadcast %590 : vector<8x1xf32> to vector<8x8xf32>
    %592 = arith.divf %588, %591 : vector<8x8xf32>
    %cst_279 = arith.constant dense<0.000000e+00> : vector<8x8xf32>
    %593 = tpu.matmul %592, %580, %cst_279 {dimension_numbers = #tpu.dot_dimension_numbers<[1], [0], [0], [1], [0, 0, 1, 1], [], []>} : vector<8x8xf32>, vector<8x8xf32>, vector<8x8xf32> -> vector<8x8xf32>
    %594 = vector.extract_strided_slice %574 {offsets = [0, 0], sizes = [8, 32], strides = [1, 1]} : vector<32x32xf32> to vector<8x32xf32>
    %cst_280 = arith.constant dense<0.000000e+00> : vector<8x32xf32>
    %595 = tpu.matmul %593, %594, %cst_280 {dimension_numbers = #tpu.dot_dimension_numbers<[1], [0], [0], [1], [0, 0, 1, 1], [], []>} : vector<8x8xf32>, vector<8x32xf32>, vector<8x32xf32> -> vector<8x32xf32>
    %596 = arith.addf %577, %595 : vector<8x32xf32>
    %597 = vector.extract_strided_slice %563 {offsets = [0, 8], sizes = [8, 8], strides = [1, 1]} : vector<8x32xf32> to vector<8x8xf32>
    %598 = vector.extract_strided_slice %571 {offsets = [0, 8], sizes = [8, 8], strides = [1, 1]} : vector<8x32xf32> to vector<8x8xf32>
    %599 = vector.extract_strided_slice %572 {offsets = [0, 8], sizes = [8, 8], strides = [1, 1]} : vector<8x32xf32> to vector<8x8xf32>
    %cst_281 = arith.constant dense<0.000000e+00> : vector<8x8xf32>
    %600 = tpu.matmul %597, %598, %cst_281 {dimension_numbers = #tpu.dot_dimension_numbers<[1], [1], [0], [0], [0, 0, 1, 0], [], []>} : vector<8x8xf32>, vector<8x8xf32>, vector<8x8xf32> -> vector<8x8xf32>
    %cst_282 = arith.constant 0.353553385 : f32
    %601 = vector.broadcast %cst_282 : f32 to vector<8x8xf32>
    %602 = arith.mulf %600, %601 : vector<8x8xf32>
    %cst_283 = arith.constant dense<0xFF800000> : vector<8xf32>
    %603 = vector.multi_reduction <maximumf>, %602, %cst_283 [1] : vector<8x8xf32> to vector<8xf32>
    %604 = vector.shape_cast %603 : vector<8xf32> to vector<8x1xf32>
    %605 = vector.broadcast %604 : vector<8x1xf32> to vector<8x8xf32>
    %606 = arith.subf %602, %605 : vector<8x8xf32>
    %607 = math.exp %606 : vector<8x8xf32>
    %cst_284 = arith.constant dense<0.000000e+00> : vector<8xf32>
    %608 = vector.multi_reduction <add>, %607, %cst_284 [1] : vector<8x8xf32> to vector<8xf32>
    %609 = vector.shape_cast %608 : vector<8xf32> to vector<8x1xf32>
    %610 = vector.broadcast %609 : vector<8x1xf32> to vector<8x8xf32>
    %611 = arith.divf %607, %610 : vector<8x8xf32>
    %cst_285 = arith.constant dense<0.000000e+00> : vector<8x8xf32>
    %612 = tpu.matmul %611, %599, %cst_285 {dimension_numbers = #tpu.dot_dimension_numbers<[1], [0], [0], [1], [0, 0, 1, 1], [], []>} : vector<8x8xf32>, vector<8x8xf32>, vector<8x8xf32> -> vector<8x8xf32>
    %613 = vector.extract_strided_slice %574 {offsets = [8, 0], sizes = [8, 32], strides = [1, 1]} : vector<32x32xf32> to vector<8x32xf32>
    %cst_286 = arith.constant dense<0.000000e+00> : vector<8x32xf32>
    %614 = tpu.matmul %612, %613, %cst_286 {dimension_numbers = #tpu.dot_dimension_numbers<[1], [0], [0], [1], [0, 0, 1, 1], [], []>} : vector<8x8xf32>, vector<8x32xf32>, vector<8x32xf32> -> vector<8x32xf32>
    %615 = arith.addf %596, %614 : vector<8x32xf32>
    %616 = vector.extract_strided_slice %563 {offsets = [0, 16], sizes = [8, 8], strides = [1, 1]} : vector<8x32xf32> to vector<8x8xf32>
    %617 = vector.extract_strided_slice %571 {offsets = [0, 16], sizes = [8, 8], strides = [1, 1]} : vector<8x32xf32> to vector<8x8xf32>
    %618 = vector.extract_strided_slice %572 {offsets = [0, 16], sizes = [8, 8], strides = [1, 1]} : vector<8x32xf32> to vector<8x8xf32>
    %cst_287 = arith.constant dense<0.000000e+00> : vector<8x8xf32>
    %619 = tpu.matmul %616, %617, %cst_287 {dimension_numbers = #tpu.dot_dimension_numbers<[1], [1], [0], [0], [0, 0, 1, 0], [], []>} : vector<8x8xf32>, vector<8x8xf32>, vector<8x8xf32> -> vector<8x8xf32>
    %cst_288 = arith.constant 0.353553385 : f32
    %620 = vector.broadcast %cst_288 : f32 to vector<8x8xf32>
    %621 = arith.mulf %619, %620 : vector<8x8xf32>
    %cst_289 = arith.constant dense<0xFF800000> : vector<8xf32>
    %622 = vector.multi_reduction <maximumf>, %621, %cst_289 [1] : vector<8x8xf32> to vector<8xf32>
    %623 = vector.shape_cast %622 : vector<8xf32> to vector<8x1xf32>
    %624 = vector.broadcast %623 : vector<8x1xf32> to vector<8x8xf32>
    %625 = arith.subf %621, %624 : vector<8x8xf32>
    %626 = math.exp %625 : vector<8x8xf32>
    %cst_290 = arith.constant dense<0.000000e+00> : vector<8xf32>
    %627 = vector.multi_reduction <add>, %626, %cst_290 [1] : vector<8x8xf32> to vector<8xf32>
    %628 = vector.shape_cast %627 : vector<8xf32> to vector<8x1xf32>
    %629 = vector.broadcast %628 : vector<8x1xf32> to vector<8x8xf32>
    %630 = arith.divf %626, %629 : vector<8x8xf32>
    %cst_291 = arith.constant dense<0.000000e+00> : vector<8x8xf32>
    %631 = tpu.matmul %630, %618, %cst_291 {dimension_numbers = #tpu.dot_dimension_numbers<[1], [0], [0], [1], [0, 0, 1, 1], [], []>} : vector<8x8xf32>, vector<8x8xf32>, vector<8x8xf32> -> vector<8x8xf32>
    %632 = vector.extract_strided_slice %574 {offsets = [16, 0], sizes = [8, 32], strides = [1, 1]} : vector<32x32xf32> to vector<8x32xf32>
    %cst_292 = arith.constant dense<0.000000e+00> : vector<8x32xf32>
    %633 = tpu.matmul %631, %632, %cst_292 {dimension_numbers = #tpu.dot_dimension_numbers<[1], [0], [0], [1], [0, 0, 1, 1], [], []>} : vector<8x8xf32>, vector<8x32xf32>, vector<8x32xf32> -> vector<8x32xf32>
    %634 = arith.addf %615, %633 : vector<8x32xf32>
    %635 = vector.extract_strided_slice %563 {offsets = [0, 24], sizes = [8, 8], strides = [1, 1]} : vector<8x32xf32> to vector<8x8xf32>
    %636 = vector.extract_strided_slice %571 {offsets = [0, 24], sizes = [8, 8], strides = [1, 1]} : vector<8x32xf32> to vector<8x8xf32>
    %637 = vector.extract_strided_slice %572 {offsets = [0, 24], sizes = [8, 8], strides = [1, 1]} : vector<8x32xf32> to vector<8x8xf32>
    %cst_293 = arith.constant dense<0.000000e+00> : vector<8x8xf32>
    %638 = tpu.matmul %635, %636, %cst_293 {dimension_numbers = #tpu.dot_dimension_numbers<[1], [1], [0], [0], [0, 0, 1, 0], [], []>} : vector<8x8xf32>, vector<8x8xf32>, vector<8x8xf32> -> vector<8x8xf32>
    %cst_294 = arith.constant 0.353553385 : f32
    %639 = vector.broadcast %cst_294 : f32 to vector<8x8xf32>
    %640 = arith.mulf %638, %639 : vector<8x8xf32>
    %cst_295 = arith.constant dense<0xFF800000> : vector<8xf32>
    %641 = vector.multi_reduction <maximumf>, %640, %cst_295 [1] : vector<8x8xf32> to vector<8xf32>
    %642 = vector.shape_cast %641 : vector<8xf32> to vector<8x1xf32>
    %643 = vector.broadcast %642 : vector<8x1xf32> to vector<8x8xf32>
    %644 = arith.subf %640, %643 : vector<8x8xf32>
    %645 = math.exp %644 : vector<8x8xf32>
    %cst_296 = arith.constant dense<0.000000e+00> : vector<8xf32>
    %646 = vector.multi_reduction <add>, %645, %cst_296 [1] : vector<8x8xf32> to vector<8xf32>
    %647 = vector.shape_cast %646 : vector<8xf32> to vector<8x1xf32>
    %648 = vector.broadcast %647 : vector<8x1xf32> to vector<8x8xf32>
    %649 = arith.divf %645, %648 : vector<8x8xf32>
    %cst_297 = arith.constant dense<0.000000e+00> : vector<8x8xf32>
    %650 = tpu.matmul %649, %637, %cst_297 {dimension_numbers = #tpu.dot_dimension_numbers<[1], [0], [0], [1], [0, 0, 1, 1], [], []>} : vector<8x8xf32>, vector<8x8xf32>, vector<8x8xf32> -> vector<8x8xf32>
    %651 = vector.extract_strided_slice %574 {offsets = [24, 0], sizes = [8, 32], strides = [1, 1]} : vector<32x32xf32> to vector<8x32xf32>
    %cst_298 = arith.constant dense<0.000000e+00> : vector<8x32xf32>
    %652 = tpu.matmul %650, %651, %cst_298 {dimension_numbers = #tpu.dot_dimension_numbers<[1], [0], [0], [1], [0, 0, 1, 1], [], []>} : vector<8x8xf32>, vector<8x32xf32>, vector<8x32xf32> -> vector<8x32xf32>
    %653 = arith.addf %634, %652 : vector<8x32xf32>
    %654 = vector.broadcast %576 : vector<1x32xf32> to vector<8x32xf32>
    %655 = arith.addf %653, %654 : vector<8x32xf32>
    %656 = arith.addf %556, %655 : vector<8x32xf32>
    %c0_299 = arith.constant 0 : index
    %c0_300 = arith.constant 0 : index
    %c0_301 = arith.constant 0 : index
    %657 = vector.load %arg30[%c0_299, %c0_300, %c0_301] : memref<2x1x32xf32, #tpu.memory_space<vmem>>, vector<1x1x32xf32>
    %658 = vector.shape_cast %657 : vector<1x1x32xf32> to vector<1x32xf32>
    %c0_302 = arith.constant 0 : index
    %c0_303 = arith.constant 0 : index
    %c0_304 = arith.constant 0 : index
    %659 = vector.load %arg31[%c0_302, %c0_303, %c0_304] : memref<2x1x32xf32, #tpu.memory_space<vmem>>, vector<1x1x32xf32>
    %660 = vector.shape_cast %659 : vector<1x1x32xf32> to vector<1x32xf32>
    %cst_305 = arith.constant dense<0.000000e+00> : vector<8xf32>
    %661 = vector.multi_reduction <add>, %656, %cst_305 [1] : vector<8x32xf32> to vector<8xf32>
    %662 = vector.shape_cast %661 : vector<8xf32> to vector<8x1xf32>
    %cst_306 = arith.constant 3.200000e+01 : f32
    %663 = vector.broadcast %cst_306 : f32 to vector<8x1xf32>
    %664 = arith.divf %662, %663 : vector<8x1xf32>
    %665 = vector.broadcast %664 : vector<8x1xf32> to vector<8x32xf32>
    %666 = arith.subf %656, %665 : vector<8x32xf32>
    %667 = arith.mulf %666, %666 : vector<8x32xf32>
    %cst_307 = arith.constant dense<0.000000e+00> : vector<8xf32>
    %668 = vector.multi_reduction <add>, %667, %cst_307 [1] : vector<8x32xf32> to vector<8xf32>
    %669 = vector.shape_cast %668 : vector<8xf32> to vector<8x1xf32>
    %cst_308 = arith.constant 3.200000e+01 : f32
    %670 = vector.broadcast %cst_308 : f32 to vector<8x1xf32>
    %671 = arith.divf %669, %670 : vector<8x1xf32>
    %672 = vector.broadcast %664 : vector<8x1xf32> to vector<8x32xf32>
    %673 = arith.subf %656, %672 : vector<8x32xf32>
    %cst_309 = arith.constant 9.99999974E-6 : f32
    %674 = vector.broadcast %cst_309 : f32 to vector<8x1xf32>
    %675 = arith.addf %671, %674 : vector<8x1xf32>
    %676 = math.rsqrt %675 : vector<8x1xf32>
    %677 = vector.broadcast %676 : vector<8x1xf32> to vector<8x32xf32>
    %678 = arith.mulf %673, %677 : vector<8x32xf32>
    %679 = vector.broadcast %658 : vector<1x32xf32> to vector<8x32xf32>
    %680 = arith.mulf %678, %679 : vector<8x32xf32>
    %681 = vector.broadcast %660 : vector<1x32xf32> to vector<8x32xf32>
    %682 = arith.addf %680, %681 : vector<8x32xf32>
    %c0_310 = arith.constant 0 : index
    %c0_311 = arith.constant 0 : index
    %c0_312 = arith.constant 0 : index
    %683 = vector.load %arg32[%c0_310, %c0_311, %c0_312] : memref<2x32x32xf32, #tpu.memory_space<vmem>>, vector<1x32x32xf32>
    %684 = vector.shape_cast %683 : vector<1x32x32xf32> to vector<32x32xf32>
    %cst_313 = arith.constant dense<0.000000e+00> : vector<8x32xf32>
    %685 = tpu.matmul %682, %684, %cst_313 {dimension_numbers = #tpu.dot_dimension_numbers<[1], [0], [0], [1], [0, 0, 1, 1], [], []>} : vector<8x32xf32>, vector<32x32xf32>, vector<8x32xf32> -> vector<8x32xf32>
    %c0_314 = arith.constant 0 : index
    %c0_315 = arith.constant 0 : index
    %c0_316 = arith.constant 0 : index
    %686 = vector.load %arg33[%c0_314, %c0_315, %c0_316] : memref<2x1x32xf32, #tpu.memory_space<vmem>>, vector<1x1x32xf32>
    %687 = vector.shape_cast %686 : vector<1x1x32xf32> to vector<1x32xf32>
    %688 = vector.broadcast %687 : vector<1x32xf32> to vector<8x32xf32>
    %689 = arith.addf %685, %688 : vector<8x32xf32>
    %cst_317 = arith.constant 0.000000e+00 : f32
    %690 = vector.broadcast %cst_317 : f32 to vector<8x32xf32>
    %691 = arith.maximumf %689, %690 : vector<8x32xf32>
    %c0_318 = arith.constant 0 : index
    %c0_319 = arith.constant 0 : index
    %c0_320 = arith.constant 0 : index
    %692 = vector.load %arg34[%c0_318, %c0_319, %c0_320] : memref<2x32x32xf32, #tpu.memory_space<vmem>>, vector<1x32x32xf32>
    %693 = vector.shape_cast %692 : vector<1x32x32xf32> to vector<32x32xf32>
    %cst_321 = arith.constant dense<0.000000e+00> : vector<8x32xf32>
    %694 = tpu.matmul %691, %693, %cst_321 {dimension_numbers = #tpu.dot_dimension_numbers<[1], [0], [0], [1], [0, 0, 1, 1], [], []>} : vector<8x32xf32>, vector<32x32xf32>, vector<8x32xf32> -> vector<8x32xf32>
    %c0_322 = arith.constant 0 : index
    %c0_323 = arith.constant 0 : index
    %c0_324 = arith.constant 0 : index
    %695 = vector.load %arg35[%c0_322, %c0_323, %c0_324] : memref<2x1x32xf32, #tpu.memory_space<vmem>>, vector<1x1x32xf32>
    %696 = vector.shape_cast %695 : vector<1x1x32xf32> to vector<1x32xf32>
    %697 = vector.broadcast %696 : vector<1x32xf32> to vector<8x32xf32>
    %698 = arith.addf %694, %697 : vector<8x32xf32>
    %699 = arith.addf %682, %698 : vector<8x32xf32>
    %c0_325 = arith.constant 0 : index
    %c0_326 = arith.constant 0 : index
    %c0_327 = arith.constant 0 : index
    %700 = vector.load %arg36[%c0_325, %c0_326, %c0_327] : memref<2x1x32xf32, #tpu.memory_space<vmem>>, vector<1x1x32xf32>
    %701 = vector.shape_cast %700 : vector<1x1x32xf32> to vector<1x32xf32>
    %c0_328 = arith.constant 0 : index
    %c0_329 = arith.constant 0 : index
    %c0_330 = arith.constant 0 : index
    %702 = vector.load %arg37[%c0_328, %c0_329, %c0_330] : memref<2x1x32xf32, #tpu.memory_space<vmem>>, vector<1x1x32xf32>
    %703 = vector.shape_cast %702 : vector<1x1x32xf32> to vector<1x32xf32>
    %cst_331 = arith.constant dense<0.000000e+00> : vector<8xf32>
    %704 = vector.multi_reduction <add>, %699, %cst_331 [1] : vector<8x32xf32> to vector<8xf32>
    %705 = vector.shape_cast %704 : vector<8xf32> to vector<8x1xf32>
    %cst_332 = arith.constant 3.200000e+01 : f32
    %706 = vector.broadcast %cst_332 : f32 to vector<8x1xf32>
    %707 = arith.divf %705, %706 : vector<8x1xf32>
    %708 = vector.broadcast %707 : vector<8x1xf32> to vector<8x32xf32>
    %709 = arith.subf %699, %708 : vector<8x32xf32>
    %710 = arith.mulf %709, %709 : vector<8x32xf32>
    %cst_333 = arith.constant dense<0.000000e+00> : vector<8xf32>
    %711 = vector.multi_reduction <add>, %710, %cst_333 [1] : vector<8x32xf32> to vector<8xf32>
    %712 = vector.shape_cast %711 : vector<8xf32> to vector<8x1xf32>
    %cst_334 = arith.constant 3.200000e+01 : f32
    %713 = vector.broadcast %cst_334 : f32 to vector<8x1xf32>
    %714 = arith.divf %712, %713 : vector<8x1xf32>
    %715 = vector.broadcast %707 : vector<8x1xf32> to vector<8x32xf32>
    %716 = arith.subf %699, %715 : vector<8x32xf32>
    %cst_335 = arith.constant 9.99999974E-6 : f32
    %717 = vector.broadcast %cst_335 : f32 to vector<8x1xf32>
    %718 = arith.addf %714, %717 : vector<8x1xf32>
    %719 = math.rsqrt %718 : vector<8x1xf32>
    %720 = vector.broadcast %719 : vector<8x1xf32> to vector<8x32xf32>
    %721 = arith.mulf %716, %720 : vector<8x32xf32>
    %722 = vector.broadcast %701 : vector<1x32xf32> to vector<8x32xf32>
    %723 = arith.mulf %721, %722 : vector<8x32xf32>
    %724 = vector.broadcast %703 : vector<1x32xf32> to vector<8x32xf32>
    %725 = arith.addf %723, %724 : vector<8x32xf32>
    %c1_336 = arith.constant 1 : index
    %c0_337 = arith.constant 0 : index
    %c0_338 = arith.constant 0 : index
    %726 = vector.load %arg18[%c1_336, %c0_337, %c0_338] : memref<2x32x96xf32, #tpu.memory_space<vmem>>, vector<1x32x96xf32>
    %727 = vector.shape_cast %726 : vector<1x32x96xf32> to vector<32x96xf32>
    %cst_339 = arith.constant dense<0.000000e+00> : vector<8x96xf32>
    %728 = tpu.matmul %725, %727, %cst_339 {dimension_numbers = #tpu.dot_dimension_numbers<[1], [0], [0], [1], [0, 0, 1, 1], [], []>} : vector<8x32xf32>, vector<32x96xf32>, vector<8x96xf32> -> vector<8x96xf32>
    %c1_340 = arith.constant 1 : index
    %c0_341 = arith.constant 0 : index
    %c0_342 = arith.constant 0 : index
    %729 = vector.load %arg19[%c1_340, %c0_341, %c0_342] : memref<2x1x96xf32, #tpu.memory_space<vmem>>, vector<1x1x96xf32>
    %730 = vector.shape_cast %729 : vector<1x1x96xf32> to vector<1x96xf32>
    %731 = vector.broadcast %730 : vector<1x96xf32> to vector<8x96xf32>
    %732 = arith.addf %728, %731 : vector<8x96xf32>
    %733 = vector.extract_strided_slice %732 {offsets = [0, 0], sizes = [8, 32], strides = [1, 1]} : vector<8x96xf32> to vector<8x32xf32>
    %734 = vector.extract_strided_slice %732 {offsets = [0, 32], sizes = [8, 32], strides = [1, 1]} : vector<8x96xf32> to vector<8x32xf32>
    %735 = vector.extract_strided_slice %732 {offsets = [0, 64], sizes = [8, 32], strides = [1, 1]} : vector<8x96xf32> to vector<8x32xf32>
    %c1_343 = arith.constant 1 : index
    %c0_344 = arith.constant 0 : index
    %c0_345 = arith.constant 0 : index
    %736 = vector.load %arg20[%c1_343, %c0_344, %c0_345] : memref<2x32x32xf32, #tpu.memory_space<vmem>>, vector<1x32x32xf32>
    %737 = vector.shape_cast %736 : vector<1x32x32xf32> to vector<32x32xf32>
    %c1_346 = arith.constant 1 : index
    %c0_347 = arith.constant 0 : index
    %c0_348 = arith.constant 0 : index
    %738 = vector.load %arg21[%c1_346, %c0_347, %c0_348] : memref<2x1x32xf32, #tpu.memory_space<vmem>>, vector<1x1x32xf32>
    %739 = vector.shape_cast %738 : vector<1x1x32xf32> to vector<1x32xf32>
    %cst_349 = arith.constant 0.000000e+00 : f32
    %740 = vector.broadcast %cst_349 : f32 to vector<8x32xf32>
    %741 = vector.extract_strided_slice %733 {offsets = [0, 0], sizes = [8, 8], strides = [1, 1]} : vector<8x32xf32> to vector<8x8xf32>
    %742 = vector.extract_strided_slice %734 {offsets = [0, 0], sizes = [8, 8], strides = [1, 1]} : vector<8x32xf32> to vector<8x8xf32>
    %743 = vector.extract_strided_slice %735 {offsets = [0, 0], sizes = [8, 8], strides = [1, 1]} : vector<8x32xf32> to vector<8x8xf32>
    %cst_350 = arith.constant dense<0.000000e+00> : vector<8x8xf32>
    %744 = tpu.matmul %741, %742, %cst_350 {dimension_numbers = #tpu.dot_dimension_numbers<[1], [1], [0], [0], [0, 0, 1, 0], [], []>} : vector<8x8xf32>, vector<8x8xf32>, vector<8x8xf32> -> vector<8x8xf32>
    %cst_351 = arith.constant 0.353553385 : f32
    %745 = vector.broadcast %cst_351 : f32 to vector<8x8xf32>
    %746 = arith.mulf %744, %745 : vector<8x8xf32>
    %cst_352 = arith.constant dense<0xFF800000> : vector<8xf32>
    %747 = vector.multi_reduction <maximumf>, %746, %cst_352 [1] : vector<8x8xf32> to vector<8xf32>
    %748 = vector.shape_cast %747 : vector<8xf32> to vector<8x1xf32>
    %749 = vector.broadcast %748 : vector<8x1xf32> to vector<8x8xf32>
    %750 = arith.subf %746, %749 : vector<8x8xf32>
    %751 = math.exp %750 : vector<8x8xf32>
    %cst_353 = arith.constant dense<0.000000e+00> : vector<8xf32>
    %752 = vector.multi_reduction <add>, %751, %cst_353 [1] : vector<8x8xf32> to vector<8xf32>
    %753 = vector.shape_cast %752 : vector<8xf32> to vector<8x1xf32>
    %754 = vector.broadcast %753 : vector<8x1xf32> to vector<8x8xf32>
    %755 = arith.divf %751, %754 : vector<8x8xf32>
    %cst_354 = arith.constant dense<0.000000e+00> : vector<8x8xf32>
    %756 = tpu.matmul %755, %743, %cst_354 {dimension_numbers = #tpu.dot_dimension_numbers<[1], [0], [0], [1], [0, 0, 1, 1], [], []>} : vector<8x8xf32>, vector<8x8xf32>, vector<8x8xf32> -> vector<8x8xf32>
    %757 = vector.extract_strided_slice %737 {offsets = [0, 0], sizes = [8, 32], strides = [1, 1]} : vector<32x32xf32> to vector<8x32xf32>
    %cst_355 = arith.constant dense<0.000000e+00> : vector<8x32xf32>
    %758 = tpu.matmul %756, %757, %cst_355 {dimension_numbers = #tpu.dot_dimension_numbers<[1], [0], [0], [1], [0, 0, 1, 1], [], []>} : vector<8x8xf32>, vector<8x32xf32>, vector<8x32xf32> -> vector<8x32xf32>
    %759 = arith.addf %740, %758 : vector<8x32xf32>
    %760 = vector.extract_strided_slice %733 {offsets = [0, 8], sizes = [8, 8], strides = [1, 1]} : vector<8x32xf32> to vector<8x8xf32>
    %761 = vector.extract_strided_slice %734 {offsets = [0, 8], sizes = [8, 8], strides = [1, 1]} : vector<8x32xf32> to vector<8x8xf32>
    %762 = vector.extract_strided_slice %735 {offsets = [0, 8], sizes = [8, 8], strides = [1, 1]} : vector<8x32xf32> to vector<8x8xf32>
    %cst_356 = arith.constant dense<0.000000e+00> : vector<8x8xf32>
    %763 = tpu.matmul %760, %761, %cst_356 {dimension_numbers = #tpu.dot_dimension_numbers<[1], [1], [0], [0], [0, 0, 1, 0], [], []>} : vector<8x8xf32>, vector<8x8xf32>, vector<8x8xf32> -> vector<8x8xf32>
    %cst_357 = arith.constant 0.353553385 : f32
    %764 = vector.broadcast %cst_357 : f32 to vector<8x8xf32>
    %765 = arith.mulf %763, %764 : vector<8x8xf32>
    %cst_358 = arith.constant dense<0xFF800000> : vector<8xf32>
    %766 = vector.multi_reduction <maximumf>, %765, %cst_358 [1] : vector<8x8xf32> to vector<8xf32>
    %767 = vector.shape_cast %766 : vector<8xf32> to vector<8x1xf32>
    %768 = vector.broadcast %767 : vector<8x1xf32> to vector<8x8xf32>
    %769 = arith.subf %765, %768 : vector<8x8xf32>
    %770 = math.exp %769 : vector<8x8xf32>
    %cst_359 = arith.constant dense<0.000000e+00> : vector<8xf32>
    %771 = vector.multi_reduction <add>, %770, %cst_359 [1] : vector<8x8xf32> to vector<8xf32>
    %772 = vector.shape_cast %771 : vector<8xf32> to vector<8x1xf32>
    %773 = vector.broadcast %772 : vector<8x1xf32> to vector<8x8xf32>
    %774 = arith.divf %770, %773 : vector<8x8xf32>
    %cst_360 = arith.constant dense<0.000000e+00> : vector<8x8xf32>
    %775 = tpu.matmul %774, %762, %cst_360 {dimension_numbers = #tpu.dot_dimension_numbers<[1], [0], [0], [1], [0, 0, 1, 1], [], []>} : vector<8x8xf32>, vector<8x8xf32>, vector<8x8xf32> -> vector<8x8xf32>
    %776 = vector.extract_strided_slice %737 {offsets = [8, 0], sizes = [8, 32], strides = [1, 1]} : vector<32x32xf32> to vector<8x32xf32>
    %cst_361 = arith.constant dense<0.000000e+00> : vector<8x32xf32>
    %777 = tpu.matmul %775, %776, %cst_361 {dimension_numbers = #tpu.dot_dimension_numbers<[1], [0], [0], [1], [0, 0, 1, 1], [], []>} : vector<8x8xf32>, vector<8x32xf32>, vector<8x32xf32> -> vector<8x32xf32>
    %778 = arith.addf %759, %777 : vector<8x32xf32>
    %779 = vector.extract_strided_slice %733 {offsets = [0, 16], sizes = [8, 8], strides = [1, 1]} : vector<8x32xf32> to vector<8x8xf32>
    %780 = vector.extract_strided_slice %734 {offsets = [0, 16], sizes = [8, 8], strides = [1, 1]} : vector<8x32xf32> to vector<8x8xf32>
    %781 = vector.extract_strided_slice %735 {offsets = [0, 16], sizes = [8, 8], strides = [1, 1]} : vector<8x32xf32> to vector<8x8xf32>
    %cst_362 = arith.constant dense<0.000000e+00> : vector<8x8xf32>
    %782 = tpu.matmul %779, %780, %cst_362 {dimension_numbers = #tpu.dot_dimension_numbers<[1], [1], [0], [0], [0, 0, 1, 0], [], []>} : vector<8x8xf32>, vector<8x8xf32>, vector<8x8xf32> -> vector<8x8xf32>
    %cst_363 = arith.constant 0.353553385 : f32
    %783 = vector.broadcast %cst_363 : f32 to vector<8x8xf32>
    %784 = arith.mulf %782, %783 : vector<8x8xf32>
    %cst_364 = arith.constant dense<0xFF800000> : vector<8xf32>
    %785 = vector.multi_reduction <maximumf>, %784, %cst_364 [1] : vector<8x8xf32> to vector<8xf32>
    %786 = vector.shape_cast %785 : vector<8xf32> to vector<8x1xf32>
    %787 = vector.broadcast %786 : vector<8x1xf32> to vector<8x8xf32>
    %788 = arith.subf %784, %787 : vector<8x8xf32>
    %789 = math.exp %788 : vector<8x8xf32>
    %cst_365 = arith.constant dense<0.000000e+00> : vector<8xf32>
    %790 = vector.multi_reduction <add>, %789, %cst_365 [1] : vector<8x8xf32> to vector<8xf32>
    %791 = vector.shape_cast %790 : vector<8xf32> to vector<8x1xf32>
    %792 = vector.broadcast %791 : vector<8x1xf32> to vector<8x8xf32>
    %793 = arith.divf %789, %792 : vector<8x8xf32>
    %cst_366 = arith.constant dense<0.000000e+00> : vector<8x8xf32>
    %794 = tpu.matmul %793, %781, %cst_366 {dimension_numbers = #tpu.dot_dimension_numbers<[1], [0], [0], [1], [0, 0, 1, 1], [], []>} : vector<8x8xf32>, vector<8x8xf32>, vector<8x8xf32> -> vector<8x8xf32>
    %795 = vector.extract_strided_slice %737 {offsets = [16, 0], sizes = [8, 32], strides = [1, 1]} : vector<32x32xf32> to vector<8x32xf32>
    %cst_367 = arith.constant dense<0.000000e+00> : vector<8x32xf32>
    %796 = tpu.matmul %794, %795, %cst_367 {dimension_numbers = #tpu.dot_dimension_numbers<[1], [0], [0], [1], [0, 0, 1, 1], [], []>} : vector<8x8xf32>, vector<8x32xf32>, vector<8x32xf32> -> vector<8x32xf32>
    %797 = arith.addf %778, %796 : vector<8x32xf32>
    %798 = vector.extract_strided_slice %733 {offsets = [0, 24], sizes = [8, 8], strides = [1, 1]} : vector<8x32xf32> to vector<8x8xf32>
    %799 = vector.extract_strided_slice %734 {offsets = [0, 24], sizes = [8, 8], strides = [1, 1]} : vector<8x32xf32> to vector<8x8xf32>
    %800 = vector.extract_strided_slice %735 {offsets = [0, 24], sizes = [8, 8], strides = [1, 1]} : vector<8x32xf32> to vector<8x8xf32>
    %cst_368 = arith.constant dense<0.000000e+00> : vector<8x8xf32>
    %801 = tpu.matmul %798, %799, %cst_368 {dimension_numbers = #tpu.dot_dimension_numbers<[1], [1], [0], [0], [0, 0, 1, 0], [], []>} : vector<8x8xf32>, vector<8x8xf32>, vector<8x8xf32> -> vector<8x8xf32>
    %cst_369 = arith.constant 0.353553385 : f32
    %802 = vector.broadcast %cst_369 : f32 to vector<8x8xf32>
    %803 = arith.mulf %801, %802 : vector<8x8xf32>
    %cst_370 = arith.constant dense<0xFF800000> : vector<8xf32>
    %804 = vector.multi_reduction <maximumf>, %803, %cst_370 [1] : vector<8x8xf32> to vector<8xf32>
    %805 = vector.shape_cast %804 : vector<8xf32> to vector<8x1xf32>
    %806 = vector.broadcast %805 : vector<8x1xf32> to vector<8x8xf32>
    %807 = arith.subf %803, %806 : vector<8x8xf32>
    %808 = math.exp %807 : vector<8x8xf32>
    %cst_371 = arith.constant dense<0.000000e+00> : vector<8xf32>
    %809 = vector.multi_reduction <add>, %808, %cst_371 [1] : vector<8x8xf32> to vector<8xf32>
    %810 = vector.shape_cast %809 : vector<8xf32> to vector<8x1xf32>
    %811 = vector.broadcast %810 : vector<8x1xf32> to vector<8x8xf32>
    %812 = arith.divf %808, %811 : vector<8x8xf32>
    %cst_372 = arith.constant dense<0.000000e+00> : vector<8x8xf32>
    %813 = tpu.matmul %812, %800, %cst_372 {dimension_numbers = #tpu.dot_dimension_numbers<[1], [0], [0], [1], [0, 0, 1, 1], [], []>} : vector<8x8xf32>, vector<8x8xf32>, vector<8x8xf32> -> vector<8x8xf32>
    %814 = vector.extract_strided_slice %737 {offsets = [24, 0], sizes = [8, 32], strides = [1, 1]} : vector<32x32xf32> to vector<8x32xf32>
    %cst_373 = arith.constant dense<0.000000e+00> : vector<8x32xf32>
    %815 = tpu.matmul %813, %814, %cst_373 {dimension_numbers = #tpu.dot_dimension_numbers<[1], [0], [0], [1], [0, 0, 1, 1], [], []>} : vector<8x8xf32>, vector<8x32xf32>, vector<8x32xf32> -> vector<8x32xf32>
    %816 = arith.addf %797, %815 : vector<8x32xf32>
    %817 = vector.broadcast %739 : vector<1x32xf32> to vector<8x32xf32>
    %818 = arith.addf %816, %817 : vector<8x32xf32>
    %819 = arith.addf %725, %818 : vector<8x32xf32>
    %c1_374 = arith.constant 1 : index
    %c0_375 = arith.constant 0 : index
    %c0_376 = arith.constant 0 : index
    %820 = vector.load %arg22[%c1_374, %c0_375, %c0_376] : memref<2x1x32xf32, #tpu.memory_space<vmem>>, vector<1x1x32xf32>
    %821 = vector.shape_cast %820 : vector<1x1x32xf32> to vector<1x32xf32>
    %c1_377 = arith.constant 1 : index
    %c0_378 = arith.constant 0 : index
    %c0_379 = arith.constant 0 : index
    %822 = vector.load %arg23[%c1_377, %c0_378, %c0_379] : memref<2x1x32xf32, #tpu.memory_space<vmem>>, vector<1x1x32xf32>
    %823 = vector.shape_cast %822 : vector<1x1x32xf32> to vector<1x32xf32>
    %cst_380 = arith.constant dense<0.000000e+00> : vector<8xf32>
    %824 = vector.multi_reduction <add>, %819, %cst_380 [1] : vector<8x32xf32> to vector<8xf32>
    %825 = vector.shape_cast %824 : vector<8xf32> to vector<8x1xf32>
    %cst_381 = arith.constant 3.200000e+01 : f32
    %826 = vector.broadcast %cst_381 : f32 to vector<8x1xf32>
    %827 = arith.divf %825, %826 : vector<8x1xf32>
    %828 = vector.broadcast %827 : vector<8x1xf32> to vector<8x32xf32>
    %829 = arith.subf %819, %828 : vector<8x32xf32>
    %830 = arith.mulf %829, %829 : vector<8x32xf32>
    %cst_382 = arith.constant dense<0.000000e+00> : vector<8xf32>
    %831 = vector.multi_reduction <add>, %830, %cst_382 [1] : vector<8x32xf32> to vector<8xf32>
    %832 = vector.shape_cast %831 : vector<8xf32> to vector<8x1xf32>
    %cst_383 = arith.constant 3.200000e+01 : f32
    %833 = vector.broadcast %cst_383 : f32 to vector<8x1xf32>
    %834 = arith.divf %832, %833 : vector<8x1xf32>
    %835 = vector.broadcast %827 : vector<8x1xf32> to vector<8x32xf32>
    %836 = arith.subf %819, %835 : vector<8x32xf32>
    %cst_384 = arith.constant 9.99999974E-6 : f32
    %837 = vector.broadcast %cst_384 : f32 to vector<8x1xf32>
    %838 = arith.addf %834, %837 : vector<8x1xf32>
    %839 = math.rsqrt %838 : vector<8x1xf32>
    %840 = vector.broadcast %839 : vector<8x1xf32> to vector<8x32xf32>
    %841 = arith.mulf %836, %840 : vector<8x32xf32>
    %842 = vector.broadcast %821 : vector<1x32xf32> to vector<8x32xf32>
    %843 = arith.mulf %841, %842 : vector<8x32xf32>
    %844 = vector.broadcast %823 : vector<1x32xf32> to vector<8x32xf32>
    %845 = arith.addf %843, %844 : vector<8x32xf32>
    %c1_385 = arith.constant 1 : index
    %c0_386 = arith.constant 0 : index
    %c0_387 = arith.constant 0 : index
    %846 = vector.load %arg24[%c1_385, %c0_386, %c0_387] : memref<2x32x32xf32, #tpu.memory_space<vmem>>, vector<1x32x32xf32>
    %847 = vector.shape_cast %846 : vector<1x32x32xf32> to vector<32x32xf32>
    %cst_388 = arith.constant dense<0.000000e+00> : vector<8x32xf32>
    %848 = tpu.matmul %845, %847, %cst_388 {dimension_numbers = #tpu.dot_dimension_numbers<[1], [0], [0], [1], [0, 0, 1, 1], [], []>} : vector<8x32xf32>, vector<32x32xf32>, vector<8x32xf32> -> vector<8x32xf32>
    %c1_389 = arith.constant 1 : index
    %c0_390 = arith.constant 0 : index
    %c0_391 = arith.constant 0 : index
    %849 = vector.load %arg25[%c1_389, %c0_390, %c0_391] : memref<2x1x32xf32, #tpu.memory_space<vmem>>, vector<1x1x32xf32>
    %850 = vector.shape_cast %849 : vector<1x1x32xf32> to vector<1x32xf32>
    %851 = vector.broadcast %850 : vector<1x32xf32> to vector<8x32xf32>
    %852 = arith.addf %848, %851 : vector<8x32xf32>
    %c1_392 = arith.constant 1 : index
    %c0_393 = arith.constant 0 : index
    %c0_394 = arith.constant 0 : index
    %853 = vector.load %arg26[%c1_392, %c0_393, %c0_394] : memref<2x32x64xf32, #tpu.memory_space<vmem>>, vector<1x32x64xf32>
    %854 = vector.shape_cast %853 : vector<1x32x64xf32> to vector<32x64xf32>
    %cst_395 = arith.constant dense<0.000000e+00> : vector<8x64xf32>
    %855 = tpu.matmul %429, %854, %cst_395 {dimension_numbers = #tpu.dot_dimension_numbers<[1], [0], [0], [1], [0, 0, 1, 1], [], []>} : vector<8x32xf32>, vector<32x64xf32>, vector<8x64xf32> -> vector<8x64xf32>
    %c1_396 = arith.constant 1 : index
    %c0_397 = arith.constant 0 : index
    %c0_398 = arith.constant 0 : index
    %856 = vector.load %arg27[%c1_396, %c0_397, %c0_398] : memref<2x1x64xf32, #tpu.memory_space<vmem>>, vector<1x1x64xf32>
    %857 = vector.shape_cast %856 : vector<1x1x64xf32> to vector<1x64xf32>
    %858 = vector.broadcast %857 : vector<1x64xf32> to vector<8x64xf32>
    %859 = arith.addf %855, %858 : vector<8x64xf32>
    %860 = vector.extract_strided_slice %859 {offsets = [0, 0], sizes = [8, 32], strides = [1, 1]} : vector<8x64xf32> to vector<8x32xf32>
    %861 = vector.extract_strided_slice %859 {offsets = [0, 32], sizes = [8, 32], strides = [1, 1]} : vector<8x64xf32> to vector<8x32xf32>
    %c1_399 = arith.constant 1 : index
    %c0_400 = arith.constant 0 : index
    %c0_401 = arith.constant 0 : index
    %862 = vector.load %arg28[%c1_399, %c0_400, %c0_401] : memref<2x32x32xf32, #tpu.memory_space<vmem>>, vector<1x32x32xf32>
    %863 = vector.shape_cast %862 : vector<1x32x32xf32> to vector<32x32xf32>
    %c1_402 = arith.constant 1 : index
    %c0_403 = arith.constant 0 : index
    %c0_404 = arith.constant 0 : index
    %864 = vector.load %arg29[%c1_402, %c0_403, %c0_404] : memref<2x1x32xf32, #tpu.memory_space<vmem>>, vector<1x1x32xf32>
    %865 = vector.shape_cast %864 : vector<1x1x32xf32> to vector<1x32xf32>
    %cst_405 = arith.constant 0.000000e+00 : f32
    %866 = vector.broadcast %cst_405 : f32 to vector<8x32xf32>
    %867 = vector.extract_strided_slice %852 {offsets = [0, 0], sizes = [8, 8], strides = [1, 1]} : vector<8x32xf32> to vector<8x8xf32>
    %868 = vector.extract_strided_slice %860 {offsets = [0, 0], sizes = [8, 8], strides = [1, 1]} : vector<8x32xf32> to vector<8x8xf32>
    %869 = vector.extract_strided_slice %861 {offsets = [0, 0], sizes = [8, 8], strides = [1, 1]} : vector<8x32xf32> to vector<8x8xf32>
    %cst_406 = arith.constant dense<0.000000e+00> : vector<8x8xf32>
    %870 = tpu.matmul %867, %868, %cst_406 {dimension_numbers = #tpu.dot_dimension_numbers<[1], [1], [0], [0], [0, 0, 1, 0], [], []>} : vector<8x8xf32>, vector<8x8xf32>, vector<8x8xf32> -> vector<8x8xf32>
    %cst_407 = arith.constant 0.353553385 : f32
    %871 = vector.broadcast %cst_407 : f32 to vector<8x8xf32>
    %872 = arith.mulf %870, %871 : vector<8x8xf32>
    %cst_408 = arith.constant dense<0xFF800000> : vector<8xf32>
    %873 = vector.multi_reduction <maximumf>, %872, %cst_408 [1] : vector<8x8xf32> to vector<8xf32>
    %874 = vector.shape_cast %873 : vector<8xf32> to vector<8x1xf32>
    %875 = vector.broadcast %874 : vector<8x1xf32> to vector<8x8xf32>
    %876 = arith.subf %872, %875 : vector<8x8xf32>
    %877 = math.exp %876 : vector<8x8xf32>
    %cst_409 = arith.constant dense<0.000000e+00> : vector<8xf32>
    %878 = vector.multi_reduction <add>, %877, %cst_409 [1] : vector<8x8xf32> to vector<8xf32>
    %879 = vector.shape_cast %878 : vector<8xf32> to vector<8x1xf32>
    %880 = vector.broadcast %879 : vector<8x1xf32> to vector<8x8xf32>
    %881 = arith.divf %877, %880 : vector<8x8xf32>
    %cst_410 = arith.constant dense<0.000000e+00> : vector<8x8xf32>
    %882 = tpu.matmul %881, %869, %cst_410 {dimension_numbers = #tpu.dot_dimension_numbers<[1], [0], [0], [1], [0, 0, 1, 1], [], []>} : vector<8x8xf32>, vector<8x8xf32>, vector<8x8xf32> -> vector<8x8xf32>
    %883 = vector.extract_strided_slice %863 {offsets = [0, 0], sizes = [8, 32], strides = [1, 1]} : vector<32x32xf32> to vector<8x32xf32>
    %cst_411 = arith.constant dense<0.000000e+00> : vector<8x32xf32>
    %884 = tpu.matmul %882, %883, %cst_411 {dimension_numbers = #tpu.dot_dimension_numbers<[1], [0], [0], [1], [0, 0, 1, 1], [], []>} : vector<8x8xf32>, vector<8x32xf32>, vector<8x32xf32> -> vector<8x32xf32>
    %885 = arith.addf %866, %884 : vector<8x32xf32>
    %886 = vector.extract_strided_slice %852 {offsets = [0, 8], sizes = [8, 8], strides = [1, 1]} : vector<8x32xf32> to vector<8x8xf32>
    %887 = vector.extract_strided_slice %860 {offsets = [0, 8], sizes = [8, 8], strides = [1, 1]} : vector<8x32xf32> to vector<8x8xf32>
    %888 = vector.extract_strided_slice %861 {offsets = [0, 8], sizes = [8, 8], strides = [1, 1]} : vector<8x32xf32> to vector<8x8xf32>
    %cst_412 = arith.constant dense<0.000000e+00> : vector<8x8xf32>
    %889 = tpu.matmul %886, %887, %cst_412 {dimension_numbers = #tpu.dot_dimension_numbers<[1], [1], [0], [0], [0, 0, 1, 0], [], []>} : vector<8x8xf32>, vector<8x8xf32>, vector<8x8xf32> -> vector<8x8xf32>
    %cst_413 = arith.constant 0.353553385 : f32
    %890 = vector.broadcast %cst_413 : f32 to vector<8x8xf32>
    %891 = arith.mulf %889, %890 : vector<8x8xf32>
    %cst_414 = arith.constant dense<0xFF800000> : vector<8xf32>
    %892 = vector.multi_reduction <maximumf>, %891, %cst_414 [1] : vector<8x8xf32> to vector<8xf32>
    %893 = vector.shape_cast %892 : vector<8xf32> to vector<8x1xf32>
    %894 = vector.broadcast %893 : vector<8x1xf32> to vector<8x8xf32>
    %895 = arith.subf %891, %894 : vector<8x8xf32>
    %896 = math.exp %895 : vector<8x8xf32>
    %cst_415 = arith.constant dense<0.000000e+00> : vector<8xf32>
    %897 = vector.multi_reduction <add>, %896, %cst_415 [1] : vector<8x8xf32> to vector<8xf32>
    %898 = vector.shape_cast %897 : vector<8xf32> to vector<8x1xf32>
    %899 = vector.broadcast %898 : vector<8x1xf32> to vector<8x8xf32>
    %900 = arith.divf %896, %899 : vector<8x8xf32>
    %cst_416 = arith.constant dense<0.000000e+00> : vector<8x8xf32>
    %901 = tpu.matmul %900, %888, %cst_416 {dimension_numbers = #tpu.dot_dimension_numbers<[1], [0], [0], [1], [0, 0, 1, 1], [], []>} : vector<8x8xf32>, vector<8x8xf32>, vector<8x8xf32> -> vector<8x8xf32>
    %902 = vector.extract_strided_slice %863 {offsets = [8, 0], sizes = [8, 32], strides = [1, 1]} : vector<32x32xf32> to vector<8x32xf32>
    %cst_417 = arith.constant dense<0.000000e+00> : vector<8x32xf32>
    %903 = tpu.matmul %901, %902, %cst_417 {dimension_numbers = #tpu.dot_dimension_numbers<[1], [0], [0], [1], [0, 0, 1, 1], [], []>} : vector<8x8xf32>, vector<8x32xf32>, vector<8x32xf32> -> vector<8x32xf32>
    %904 = arith.addf %885, %903 : vector<8x32xf32>
    %905 = vector.extract_strided_slice %852 {offsets = [0, 16], sizes = [8, 8], strides = [1, 1]} : vector<8x32xf32> to vector<8x8xf32>
    %906 = vector.extract_strided_slice %860 {offsets = [0, 16], sizes = [8, 8], strides = [1, 1]} : vector<8x32xf32> to vector<8x8xf32>
    %907 = vector.extract_strided_slice %861 {offsets = [0, 16], sizes = [8, 8], strides = [1, 1]} : vector<8x32xf32> to vector<8x8xf32>
    %cst_418 = arith.constant dense<0.000000e+00> : vector<8x8xf32>
    %908 = tpu.matmul %905, %906, %cst_418 {dimension_numbers = #tpu.dot_dimension_numbers<[1], [1], [0], [0], [0, 0, 1, 0], [], []>} : vector<8x8xf32>, vector<8x8xf32>, vector<8x8xf32> -> vector<8x8xf32>
    %cst_419 = arith.constant 0.353553385 : f32
    %909 = vector.broadcast %cst_419 : f32 to vector<8x8xf32>
    %910 = arith.mulf %908, %909 : vector<8x8xf32>
    %cst_420 = arith.constant dense<0xFF800000> : vector<8xf32>
    %911 = vector.multi_reduction <maximumf>, %910, %cst_420 [1] : vector<8x8xf32> to vector<8xf32>
    %912 = vector.shape_cast %911 : vector<8xf32> to vector<8x1xf32>
    %913 = vector.broadcast %912 : vector<8x1xf32> to vector<8x8xf32>
    %914 = arith.subf %910, %913 : vector<8x8xf32>
    %915 = math.exp %914 : vector<8x8xf32>
    %cst_421 = arith.constant dense<0.000000e+00> : vector<8xf32>
    %916 = vector.multi_reduction <add>, %915, %cst_421 [1] : vector<8x8xf32> to vector<8xf32>
    %917 = vector.shape_cast %916 : vector<8xf32> to vector<8x1xf32>
    %918 = vector.broadcast %917 : vector<8x1xf32> to vector<8x8xf32>
    %919 = arith.divf %915, %918 : vector<8x8xf32>
    %cst_422 = arith.constant dense<0.000000e+00> : vector<8x8xf32>
    %920 = tpu.matmul %919, %907, %cst_422 {dimension_numbers = #tpu.dot_dimension_numbers<[1], [0], [0], [1], [0, 0, 1, 1], [], []>} : vector<8x8xf32>, vector<8x8xf32>, vector<8x8xf32> -> vector<8x8xf32>
    %921 = vector.extract_strided_slice %863 {offsets = [16, 0], sizes = [8, 32], strides = [1, 1]} : vector<32x32xf32> to vector<8x32xf32>
    %cst_423 = arith.constant dense<0.000000e+00> : vector<8x32xf32>
    %922 = tpu.matmul %920, %921, %cst_423 {dimension_numbers = #tpu.dot_dimension_numbers<[1], [0], [0], [1], [0, 0, 1, 1], [], []>} : vector<8x8xf32>, vector<8x32xf32>, vector<8x32xf32> -> vector<8x32xf32>
    %923 = arith.addf %904, %922 : vector<8x32xf32>
    %924 = vector.extract_strided_slice %852 {offsets = [0, 24], sizes = [8, 8], strides = [1, 1]} : vector<8x32xf32> to vector<8x8xf32>
    %925 = vector.extract_strided_slice %860 {offsets = [0, 24], sizes = [8, 8], strides = [1, 1]} : vector<8x32xf32> to vector<8x8xf32>
    %926 = vector.extract_strided_slice %861 {offsets = [0, 24], sizes = [8, 8], strides = [1, 1]} : vector<8x32xf32> to vector<8x8xf32>
    %cst_424 = arith.constant dense<0.000000e+00> : vector<8x8xf32>
    %927 = tpu.matmul %924, %925, %cst_424 {dimension_numbers = #tpu.dot_dimension_numbers<[1], [1], [0], [0], [0, 0, 1, 0], [], []>} : vector<8x8xf32>, vector<8x8xf32>, vector<8x8xf32> -> vector<8x8xf32>
    %cst_425 = arith.constant 0.353553385 : f32
    %928 = vector.broadcast %cst_425 : f32 to vector<8x8xf32>
    %929 = arith.mulf %927, %928 : vector<8x8xf32>
    %cst_426 = arith.constant dense<0xFF800000> : vector<8xf32>
    %930 = vector.multi_reduction <maximumf>, %929, %cst_426 [1] : vector<8x8xf32> to vector<8xf32>
    %931 = vector.shape_cast %930 : vector<8xf32> to vector<8x1xf32>
    %932 = vector.broadcast %931 : vector<8x1xf32> to vector<8x8xf32>
    %933 = arith.subf %929, %932 : vector<8x8xf32>
    %934 = math.exp %933 : vector<8x8xf32>
    %cst_427 = arith.constant dense<0.000000e+00> : vector<8xf32>
    %935 = vector.multi_reduction <add>, %934, %cst_427 [1] : vector<8x8xf32> to vector<8xf32>
    %936 = vector.shape_cast %935 : vector<8xf32> to vector<8x1xf32>
    %937 = vector.broadcast %936 : vector<8x1xf32> to vector<8x8xf32>
    %938 = arith.divf %934, %937 : vector<8x8xf32>
    %cst_428 = arith.constant dense<0.000000e+00> : vector<8x8xf32>
    %939 = tpu.matmul %938, %926, %cst_428 {dimension_numbers = #tpu.dot_dimension_numbers<[1], [0], [0], [1], [0, 0, 1, 1], [], []>} : vector<8x8xf32>, vector<8x8xf32>, vector<8x8xf32> -> vector<8x8xf32>
    %940 = vector.extract_strided_slice %863 {offsets = [24, 0], sizes = [8, 32], strides = [1, 1]} : vector<32x32xf32> to vector<8x32xf32>
    %cst_429 = arith.constant dense<0.000000e+00> : vector<8x32xf32>
    %941 = tpu.matmul %939, %940, %cst_429 {dimension_numbers = #tpu.dot_dimension_numbers<[1], [0], [0], [1], [0, 0, 1, 1], [], []>} : vector<8x8xf32>, vector<8x32xf32>, vector<8x32xf32> -> vector<8x32xf32>
    %942 = arith.addf %923, %941 : vector<8x32xf32>
    %943 = vector.broadcast %865 : vector<1x32xf32> to vector<8x32xf32>
    %944 = arith.addf %942, %943 : vector<8x32xf32>
    %945 = arith.addf %845, %944 : vector<8x32xf32>
    %c1_430 = arith.constant 1 : index
    %c0_431 = arith.constant 0 : index
    %c0_432 = arith.constant 0 : index
    %946 = vector.load %arg30[%c1_430, %c0_431, %c0_432] : memref<2x1x32xf32, #tpu.memory_space<vmem>>, vector<1x1x32xf32>
    %947 = vector.shape_cast %946 : vector<1x1x32xf32> to vector<1x32xf32>
    %c1_433 = arith.constant 1 : index
    %c0_434 = arith.constant 0 : index
    %c0_435 = arith.constant 0 : index
    %948 = vector.load %arg31[%c1_433, %c0_434, %c0_435] : memref<2x1x32xf32, #tpu.memory_space<vmem>>, vector<1x1x32xf32>
    %949 = vector.shape_cast %948 : vector<1x1x32xf32> to vector<1x32xf32>
    %cst_436 = arith.constant dense<0.000000e+00> : vector<8xf32>
    %950 = vector.multi_reduction <add>, %945, %cst_436 [1] : vector<8x32xf32> to vector<8xf32>
    %951 = vector.shape_cast %950 : vector<8xf32> to vector<8x1xf32>
    %cst_437 = arith.constant 3.200000e+01 : f32
    %952 = vector.broadcast %cst_437 : f32 to vector<8x1xf32>
    %953 = arith.divf %951, %952 : vector<8x1xf32>
    %954 = vector.broadcast %953 : vector<8x1xf32> to vector<8x32xf32>
    %955 = arith.subf %945, %954 : vector<8x32xf32>
    %956 = arith.mulf %955, %955 : vector<8x32xf32>
    %cst_438 = arith.constant dense<0.000000e+00> : vector<8xf32>
    %957 = vector.multi_reduction <add>, %956, %cst_438 [1] : vector<8x32xf32> to vector<8xf32>
    %958 = vector.shape_cast %957 : vector<8xf32> to vector<8x1xf32>
    %cst_439 = arith.constant 3.200000e+01 : f32
    %959 = vector.broadcast %cst_439 : f32 to vector<8x1xf32>
    %960 = arith.divf %958, %959 : vector<8x1xf32>
    %961 = vector.broadcast %953 : vector<8x1xf32> to vector<8x32xf32>
    %962 = arith.subf %945, %961 : vector<8x32xf32>
    %cst_440 = arith.constant 9.99999974E-6 : f32
    %963 = vector.broadcast %cst_440 : f32 to vector<8x1xf32>
    %964 = arith.addf %960, %963 : vector<8x1xf32>
    %965 = math.rsqrt %964 : vector<8x1xf32>
    %966 = vector.broadcast %965 : vector<8x1xf32> to vector<8x32xf32>
    %967 = arith.mulf %962, %966 : vector<8x32xf32>
    %968 = vector.broadcast %947 : vector<1x32xf32> to vector<8x32xf32>
    %969 = arith.mulf %967, %968 : vector<8x32xf32>
    %970 = vector.broadcast %949 : vector<1x32xf32> to vector<8x32xf32>
    %971 = arith.addf %969, %970 : vector<8x32xf32>
    %c1_441 = arith.constant 1 : index
    %c0_442 = arith.constant 0 : index
    %c0_443 = arith.constant 0 : index
    %972 = vector.load %arg32[%c1_441, %c0_442, %c0_443] : memref<2x32x32xf32, #tpu.memory_space<vmem>>, vector<1x32x32xf32>
    %973 = vector.shape_cast %972 : vector<1x32x32xf32> to vector<32x32xf32>
    %cst_444 = arith.constant dense<0.000000e+00> : vector<8x32xf32>
    %974 = tpu.matmul %971, %973, %cst_444 {dimension_numbers = #tpu.dot_dimension_numbers<[1], [0], [0], [1], [0, 0, 1, 1], [], []>} : vector<8x32xf32>, vector<32x32xf32>, vector<8x32xf32> -> vector<8x32xf32>
    %c1_445 = arith.constant 1 : index
    %c0_446 = arith.constant 0 : index
    %c0_447 = arith.constant 0 : index
    %975 = vector.load %arg33[%c1_445, %c0_446, %c0_447] : memref<2x1x32xf32, #tpu.memory_space<vmem>>, vector<1x1x32xf32>
    %976 = vector.shape_cast %975 : vector<1x1x32xf32> to vector<1x32xf32>
    %977 = vector.broadcast %976 : vector<1x32xf32> to vector<8x32xf32>
    %978 = arith.addf %974, %977 : vector<8x32xf32>
    %cst_448 = arith.constant 0.000000e+00 : f32
    %979 = vector.broadcast %cst_448 : f32 to vector<8x32xf32>
    %980 = arith.maximumf %978, %979 : vector<8x32xf32>
    %c1_449 = arith.constant 1 : index
    %c0_450 = arith.constant 0 : index
    %c0_451 = arith.constant 0 : index
    %981 = vector.load %arg34[%c1_449, %c0_450, %c0_451] : memref<2x32x32xf32, #tpu.memory_space<vmem>>, vector<1x32x32xf32>
    %982 = vector.shape_cast %981 : vector<1x32x32xf32> to vector<32x32xf32>
    %cst_452 = arith.constant dense<0.000000e+00> : vector<8x32xf32>
    %983 = tpu.matmul %980, %982, %cst_452 {dimension_numbers = #tpu.dot_dimension_numbers<[1], [0], [0], [1], [0, 0, 1, 1], [], []>} : vector<8x32xf32>, vector<32x32xf32>, vector<8x32xf32> -> vector<8x32xf32>
    %c1_453 = arith.constant 1 : index
    %c0_454 = arith.constant 0 : index
    %c0_455 = arith.constant 0 : index
    %984 = vector.load %arg35[%c1_453, %c0_454, %c0_455] : memref<2x1x32xf32, #tpu.memory_space<vmem>>, vector<1x1x32xf32>
    %985 = vector.shape_cast %984 : vector<1x1x32xf32> to vector<1x32xf32>
    %986 = vector.broadcast %985 : vector<1x32xf32> to vector<8x32xf32>
    %987 = arith.addf %983, %986 : vector<8x32xf32>
    %988 = arith.addf %971, %987 : vector<8x32xf32>
    %c1_456 = arith.constant 1 : index
    %c0_457 = arith.constant 0 : index
    %c0_458 = arith.constant 0 : index
    %989 = vector.load %arg36[%c1_456, %c0_457, %c0_458] : memref<2x1x32xf32, #tpu.memory_space<vmem>>, vector<1x1x32xf32>
    %990 = vector.shape_cast %989 : vector<1x1x32xf32> to vector<1x32xf32>
    %c1_459 = arith.constant 1 : index
    %c0_460 = arith.constant 0 : index
    %c0_461 = arith.constant 0 : index
    %991 = vector.load %arg37[%c1_459, %c0_460, %c0_461] : memref<2x1x32xf32, #tpu.memory_space<vmem>>, vector<1x1x32xf32>
    %992 = vector.shape_cast %991 : vector<1x1x32xf32> to vector<1x32xf32>
    %cst_462 = arith.constant dense<0.000000e+00> : vector<8xf32>
    %993 = vector.multi_reduction <add>, %988, %cst_462 [1] : vector<8x32xf32> to vector<8xf32>
    %994 = vector.shape_cast %993 : vector<8xf32> to vector<8x1xf32>
    %cst_463 = arith.constant 3.200000e+01 : f32
    %995 = vector.broadcast %cst_463 : f32 to vector<8x1xf32>
    %996 = arith.divf %994, %995 : vector<8x1xf32>
    %997 = vector.broadcast %996 : vector<8x1xf32> to vector<8x32xf32>
    %998 = arith.subf %988, %997 : vector<8x32xf32>
    %999 = arith.mulf %998, %998 : vector<8x32xf32>
    %cst_464 = arith.constant dense<0.000000e+00> : vector<8xf32>
    %1000 = vector.multi_reduction <add>, %999, %cst_464 [1] : vector<8x32xf32> to vector<8xf32>
    %1001 = vector.shape_cast %1000 : vector<8xf32> to vector<8x1xf32>
    %cst_465 = arith.constant 3.200000e+01 : f32
    %1002 = vector.broadcast %cst_465 : f32 to vector<8x1xf32>
    %1003 = arith.divf %1001, %1002 : vector<8x1xf32>
    %1004 = vector.broadcast %996 : vector<8x1xf32> to vector<8x32xf32>
    %1005 = arith.subf %988, %1004 : vector<8x32xf32>
    %cst_466 = arith.constant 9.99999974E-6 : f32
    %1006 = vector.broadcast %cst_466 : f32 to vector<8x1xf32>
    %1007 = arith.addf %1003, %1006 : vector<8x1xf32>
    %1008 = math.rsqrt %1007 : vector<8x1xf32>
    %1009 = vector.broadcast %1008 : vector<8x1xf32> to vector<8x32xf32>
    %1010 = arith.mulf %1005, %1009 : vector<8x32xf32>
    %1011 = vector.broadcast %990 : vector<1x32xf32> to vector<8x32xf32>
    %1012 = arith.mulf %1010, %1011 : vector<8x32xf32>
    %1013 = vector.broadcast %992 : vector<1x32xf32> to vector<8x32xf32>
    %1014 = arith.addf %1012, %1013 : vector<8x32xf32>
    %1015 = vector.extract_strided_slice %1014 {offsets = [0, 0], sizes = [1, 32], strides = [1, 1]} : vector<8x32xf32> to vector<1x32xf32>
    %c0_467 = arith.constant 0 : index
    %c0_468 = arith.constant 0 : index
    %1016 = vector.load %arg38[%c0_467, %c0_468] : memref<32x512xf32, #tpu.memory_space<vmem>>, vector<32x512xf32>
    %cst_469 = arith.constant dense<0.000000e+00> : vector<1x512xf32>
    %1017 = tpu.matmul %1015, %1016, %cst_469 {dimension_numbers = #tpu.dot_dimension_numbers<[1], [0], [0], [1], [0, 0, 1, 1], [], []>} : vector<1x32xf32>, vector<32x512xf32>, vector<1x512xf32> -> vector<1x512xf32>
    %c0_470 = arith.constant 0 : index
    %c0_471 = arith.constant 0 : index
    %1018 = vector.load %arg39[%c0_470, %c0_471] : memref<1x512xf32, #tpu.memory_space<vmem>>, vector<1x512xf32>
    %1019 = arith.addf %1017, %1018 : vector<1x512xf32>
    %cst_472 = arith.constant 0.000000e+00 : f32
    %1020 = vector.broadcast %cst_472 : f32 to vector<1x512xf32>
    %1021 = arith.maximumf %1019, %1020 : vector<1x512xf32>
    %c0_473 = arith.constant 0 : index
    %c0_474 = arith.constant 0 : index
    %1022 = vector.load %arg40[%c0_473, %c0_474] : memref<512x512xf32, #tpu.memory_space<vmem>>, vector<512x512xf32>
    %cst_475 = arith.constant dense<0.000000e+00> : vector<1x512xf32>
    %1023 = tpu.matmul %1021, %1022, %cst_475 {dimension_numbers = #tpu.dot_dimension_numbers<[1], [0], [0], [1], [0, 0, 1, 1], [], []>} : vector<1x512xf32>, vector<512x512xf32>, vector<1x512xf32> -> vector<1x512xf32>
    %c0_476 = arith.constant 0 : index
    %c0_477 = arith.constant 0 : index
    %1024 = vector.load %arg41[%c0_476, %c0_477] : memref<1x512xf32, #tpu.memory_space<vmem>>, vector<1x512xf32>
    %1025 = arith.addf %1023, %1024 : vector<1x512xf32>
    %cst_478 = arith.constant 0.000000e+00 : f32
    %1026 = vector.broadcast %cst_478 : f32 to vector<1x512xf32>
    %1027 = arith.maximumf %1025, %1026 : vector<1x512xf32>
    %c0_479 = arith.constant 0 : index
    %c0_480 = arith.constant 0 : index
    %1028 = vector.load %arg42[%c0_479, %c0_480] : memref<512x17xf32, #tpu.memory_space<vmem>>, vector<512x17xf32>
    %cst_481 = arith.constant dense<0.000000e+00> : vector<1x17xf32>
    %1029 = tpu.matmul %1027, %1028, %cst_481 {dimension_numbers = #tpu.dot_dimension_numbers<[1], [0], [0], [1], [0, 0, 1, 1], [], []>} : vector<1x512xf32>, vector<512x17xf32>, vector<1x17xf32> -> vector<1x17xf32>
    %c0_482 = arith.constant 0 : index
    %c0_483 = arith.constant 0 : index
    %1030 = vector.load %arg43[%c0_482, %c0_483] : memref<1x17xf32, #tpu.memory_space<vmem>>, vector<1x17xf32>
    %1031 = arith.addf %1029, %1030 : vector<1x17xf32>
    %1032 = vector.extract_strided_slice %1031 {offsets = [0, 0], sizes = [1, 1], strides = [1, 1]} : vector<1x17xf32> to vector<1x1xf32>
    %1033 = vector.extract_strided_slice %1031 {offsets = [0, 1], sizes = [1, 16], strides = [1, 1]} : vector<1x17xf32> to vector<1x16xf32>
    %c0_484 = arith.constant 0 : index
    %1034 = memref.load %arg2[%c0_484] : memref<1xi32, #tpu.memory_space<smem>>
    %c30_i32 = arith.constant 30 : i32
    %1035 = arith.cmpi sgt, %1034, %c30_i32 : i32
    %c0_485 = arith.constant 0 : index
    %1036 = memref.load %arg0[%c0_485] : memref<8xi32, #tpu.memory_space<smem>>
    %c0_486 = arith.constant 0 : index
    %c0_487 = arith.constant 0 : index
    %1037 = vector.load %arg45[%c0_486, %c0_487] : memref<4x16xf32, #tpu.memory_space<vmem>>, vector<1x16xf32>
    %c0_488 = arith.constant 0 : index
    %c0_489 = arith.constant 0 : index
    %1038 = vector.load %arg44[%c0_488, %c0_489] : memref<4x16xf32, #tpu.memory_space<vmem>>, vector<1x16xf32>
    %1039 = arith.select %1035, %1037, %1038 : vector<1x16xf32>
    %c1_490 = arith.constant 1 : index
    %c0_491 = arith.constant 0 : index
    %1040 = vector.load %arg45[%c1_490, %c0_491] : memref<4x16xf32, #tpu.memory_space<vmem>>, vector<1x16xf32>
    %c1_492 = arith.constant 1 : index
    %c0_493 = arith.constant 0 : index
    %1041 = vector.load %arg44[%c1_492, %c0_493] : memref<4x16xf32, #tpu.memory_space<vmem>>, vector<1x16xf32>
    %1042 = arith.select %1035, %1040, %1041 : vector<1x16xf32>
    %c1_i32 = arith.constant 1 : i32
    %1043 = arith.cmpi eq, %1036, %c1_i32 : i32
    %1044 = arith.select %1043, %1042, %1039 : vector<1x16xf32>
    %c2_494 = arith.constant 2 : index
    %c0_495 = arith.constant 0 : index
    %1045 = vector.load %arg45[%c2_494, %c0_495] : memref<4x16xf32, #tpu.memory_space<vmem>>, vector<1x16xf32>
    %c2_496 = arith.constant 2 : index
    %c0_497 = arith.constant 0 : index
    %1046 = vector.load %arg44[%c2_496, %c0_497] : memref<4x16xf32, #tpu.memory_space<vmem>>, vector<1x16xf32>
    %1047 = arith.select %1035, %1045, %1046 : vector<1x16xf32>
    %c2_i32 = arith.constant 2 : i32
    %1048 = arith.cmpi eq, %1036, %c2_i32 : i32
    %1049 = arith.select %1048, %1047, %1044 : vector<1x16xf32>
    %c3_498 = arith.constant 3 : index
    %c0_499 = arith.constant 0 : index
    %1050 = vector.load %arg45[%c3_498, %c0_499] : memref<4x16xf32, #tpu.memory_space<vmem>>, vector<1x16xf32>
    %c3_500 = arith.constant 3 : index
    %c0_501 = arith.constant 0 : index
    %1051 = vector.load %arg44[%c3_500, %c0_501] : memref<4x16xf32, #tpu.memory_space<vmem>>, vector<1x16xf32>
    %1052 = arith.select %1035, %1050, %1051 : vector<1x16xf32>
    %c3_i32 = arith.constant 3 : i32
    %1053 = arith.cmpi eq, %1036, %c3_i32 : i32
    %1054 = arith.select %1053, %1052, %1049 : vector<1x16xf32>
    %1055 = arith.addf %1033, %1054 : vector<1x16xf32>
    %cst_502 = arith.constant dense<0xFF800000> : vector<1xf32>
    %1056 = vector.multi_reduction <maximumf>, %1055, %cst_502 [1] : vector<1x16xf32> to vector<1xf32>
    %1057 = vector.shape_cast %1056 : vector<1xf32> to vector<1x1xf32>
    %1058 = vector.broadcast %1057 : vector<1x1xf32> to vector<1x16xf32>
    %1059 = arith.subf %1055, %1058 : vector<1x16xf32>
    %1060 = math.exp %1059 : vector<1x16xf32>
    %cst_503 = arith.constant dense<0.000000e+00> : vector<1xf32>
    %1061 = vector.multi_reduction <add>, %1060, %cst_503 [1] : vector<1x16xf32> to vector<1xf32>
    %1062 = vector.shape_cast %1061 : vector<1xf32> to vector<1x1xf32>
    %1063 = vector.broadcast %1062 : vector<1x1xf32> to vector<1x16xf32>
    %1064 = arith.divf %1060, %1063 : vector<1x16xf32>
    %c0_504 = arith.constant 0 : index
    %c0_505 = arith.constant 0 : index
    %1065 = vector.load %arg46[%c0_504, %c0_505] : memref<1x1xf32, #tpu.memory_space<vmem>>, vector<1x1xf32>
    tpu.vector_store %arg46[%c0_504, %c0_505], %1032 {strides = array<i32>} : memref<1x1xf32, #tpu.memory_space<vmem>>, vector<1x1xf32>,
    %c0_506 = arith.constant 0 : index
    %c0_507 = arith.constant 0 : index
    %1066 = vector.load %arg47[%c0_506, %c0_507] : memref<1x16xf32, #tpu.memory_space<vmem>>, vector<1x16xf32>
    tpu.vector_store %arg47[%c0_506, %c0_507], %1064 {strides = array<i32>} : memref<1x16xf32, #tpu.memory_space<vmem>>, vector<1x16xf32>,
    return
  }
}

</mosaic_0001>

<bundles_post_ra>
// kernel: rl_grammar_forward.1
= control target key start
LH: loop header
LB: loop body
LE: loop exit
PB: predicated region body
PF: predicated region fallthrough
CT: control target
= control target key end

     0   :  { %s11768_s6 = smov 1   ;;  %s11769_s10 = smov 2   ;;  %s13243_s0 = inlined_call_operand.smem [shape: u32[48], index: -1, kind: input, shape index: {}] }
   0x1   :  { %s11872_s5 = sld [smem:[%s13243_s0]]   ;;  %s11770_s14 = smov 3  }
   0x2   :  { %s11877_s9 = sld [smem:[%s13243_s0 + %s11768_s6]]   ;;  %s11771_s18 = smov 4  }
   0x3   :  { %s11882_s13 = sld [smem:[%s13243_s0 + %s11769_s10]]   ;;  %s11772_s22 = smov 5  }
   0x4   :  { %s11887_s17 = sld [smem:[%s13243_s0 + %s11770_s14]]   ;;  %s11773_s26 = smov 6  }
   0x5   :  { %s11892_s21 = sld [smem:[%s13243_s0 + %s11771_s18]]   ;;  %s11774_s30 = smov 7  }
   0x6   :  { %s11897_s25 = sld [smem:[%s13243_s0 + %s11772_s22]]   ;;  %s11775_s4 = smov 8  }
   0x7   :  { %s11902_s29 = sld [smem:[%s13243_s0 + %s11773_s26]]   ;;  %s11776_s10 = smov 9  }
   0x8   :  { %s11907_s3 = sld [smem:[%s13243_s0 + %s11774_s30]]   ;;  %s11777_s15 = smov 10  }
   0x9   :  { %13270 = sst [smem:[#allocation67_spill]] %s11882_s13  ;;  %s11778_s20 = smov 11  }
   0xa   :  { %13271 = sst [smem:[#allocation68_spill]] %s11887_s17  ;;  %s11779_s26 = smov 12  }
   0xb   :  { %13272 = sst [smem:[#allocation69_spill]] %s11892_s21  ;;  %s11780_s1 = smov 13  }
   0xc   :  { %13273 = sst [smem:[#allocation70_spill]] %s11897_s25  ;;  %s11781_s7 = smov 14  }
   0xd   :  { %13274 = sst [smem:[#allocation71_spill]] %s11902_s29  ;;  %s11783_s22 = smov 16  }
   0xe   :  { %s11912_s8 = sld [smem:[%s13243_s0 + %s11775_s4]]   ;;  %s11784_s28 = smov 17  }
   0xf   :  { %s11917_s14 = sld [smem:[%s13243_s0 + %s11776_s10]]  }
  0x10   :  { %s11922_s19 = sld [smem:[%s13243_s0 + %s11777_s15]]   ;;  %s11782_s15 = smov 15  }
  0x11   :  { %s11927_s24 = sld [smem:[%s13243_s0 + %s11778_s20]]  }
  0x12   :  { %s11932_s30 = sld [smem:[%s13243_s0 + %s11779_s26]]  }
  0x13   :  { %s11937_s6 = sld [smem:[%s13243_s0 + %s11780_s1]]  }
  0x14   :  { %13275 = sst [smem:[#allocation72_spill]] %s11912_s8 }
  0x15   :  { %s11942_s12 = sld [smem:[%s13243_s0 + %s11781_s7]]   ;;  %s11785_s7 = smov 18  }
  0x16   :  { %13276 = sst [smem:[#allocation73_spill]] %s11922_s19 }
  0x17   :  { %s11947_s20 = sld [smem:[%s13243_s0 + %s11782_s15]]   ;;  %s11786_s15 = smov 19  }
  0x18   :  { %13277 = sst [smem:[#allocation74_spill]] %s11932_s30 }
  0x19   :  { %13278 = sst [smem:[#allocation75_spill]] %s11937_s6 }
  0x1a   :  { %s11952_s27 = sld [smem:[%s13243_s0 + %s11783_s22]]   ;;  %s11787_s22 = smov 20  }
  0x1b   :  { %13279 = sst [smem:[#allocation76_spill]] %s11942_s12 }
  0x1c   :  { %s11957_s4 = sld [smem:[%s13243_s0 + %s11784_s28]]   ;;  %s11788_s28 = smov 21  }
  0x1d   :  { %s11962_s13 = sld [smem:[%s13243_s0 + %s11785_s7]]   ;;  %s11789_s7 = smov 22  }
  0x1e   :  { %s11967_s21 = sld [smem:[%s13243_s0 + %s11786_s15]]   ;;  %s11790_s15 = smov 23  }
  0x1f   :  { %s11977_s12 = sld [smem:[%s13243_s0 + %s11788_s28]]   ;;  %s11792_s28 = smov 25  }
  0x20   :  { %13280 = sst [smem:[#allocation77_spill]] %s11952_s27 }
  0x21   :  { %s11972_s27 = sld [smem:[%s13243_s0 + %s11787_s22]]   ;;  %s11791_s22 = smov 24  }
  0x22   :  { %13281 = sst [smem:[#allocation78_spill]] %s11957_s4 }
  0x23   :  { %13282 = sst [smem:[#allocation79_spill]] %s11962_s13 }
  0x24   :  { %s11982_s13 = sld [smem:[%s13243_s0 + %s11789_s7]]   ;;  %s11793_s7 = smov 26  }
  0x25   :  { %13284 = sst [smem:[#allocation81_spill]] %s11977_s12 }
  0x26   :  { %s11987_s30 = sld [smem:[%s13243_s0 + %s11790_s15]]   ;;  %s11794_s15 = smov 27  }
  0x27   :  { %13283 = sst [smem:[#allocation80_spill]] %s11972_s27 }
  0x28   :  { %s11992_s27 = sld [smem:[%s13243_s0 + %s11791_s22]]   ;;  %s11795_s22 = smov 28  }
  0x29   :  { %s11997_s8 = sld [smem:[%s13243_s0 + %s11792_s28]]   ;;  %s11796_s28 = smov 29  }
  0x2a   :  { %s12002_s25 = sld [smem:[%s13243_s0 + %s11793_s7]]   ;;  %s11797_s7 = smov 30  }
  0x2b   :  { %s12007_s29 = sld [smem:[%s13243_s0 + %s11794_s15]]   ;;  %s11798_s15 = smov 31  }
  0x2c   :  { %13285 = sst [smem:[#allocation82_spill]] %s11987_s30 }
  0x2d   :  { %s12017_s17 = sld [smem:[%s13243_s0 + %s11796_s28]]   ;;  %s11800_s28 = smov 33  }
  0x2e   :  { %13286 = sst [smem:[#allocation83_spill]] %s11992_s27 }
  0x2f   :  { %s12012_s27 = sld [smem:[%s13243_s0 + %s11795_s22]]   ;;  %s11799_s22 = smov 32  }
  0x30   :  { %13287 = sst [smem:[#allocation84_spill]] %s12002_s25 }
  0x31   :  { %13288 = sst [smem:[#allocation85_spill]] %s12007_s29 }
  0x32   :  { %s12022_s25 = sld [smem:[%s13243_s0 + %s11797_s7]]   ;;  %s11801_s7 = smov 34  }
  0x33   :  { %13289 = sst [smem:[#allocation86_spill]] %s12017_s17 }
  0x34   :  { %s12027_s29 = sld [smem:[%s13243_s0 + %s11798_s15]]   ;;  %s11802_s15 = smov 35  }
  0x35   :  { %s12032_s30 = sld [smem:[%s13243_s0 + %s11799_s22]]   ;;  %s11803_s22 = smov 36  }
  0x36   :  { %s12037_s17 = sld [smem:[%s13243_s0 + %s11800_s28]]   ;;  %s11804_s28 = smov 37  }
  0x37   :  { %s12042_s12 = sld [smem:[%s13243_s0 + %s11801_s7]]   ;;  %s11805_s7 = smov 38  }
  0x38   :  { %s12052_s4 = sld [smem:[%s13243_s0 + %s11803_s22]]   ;;  %s11807_s22 = smov 40  }
  0x39   :  { %s12062_s6 = sld [smem:[%s13243_s0 + %s11805_s7]]   ;;  %s11809_s7 = smov 42  }
  0x3a   :  { %13290 = sst [smem:[#allocation87_spill]] %s12027_s29 }
  0x3b   :  { %s12047_s29 = sld [smem:[%s13243_s0 + %s11802_s15]]   ;;  %s11806_s15 = smov 39  }
  0x3c   :  { %13291 = sst [smem:[#allocation88_spill]] %s12037_s17 }
  0x3d   :  { %s12057_s17 = sld [smem:[%s13243_s0 + %s11804_s28]]   ;;  %s11808_s28 = smov 41  }
  0x3e   :  { %s12072_s19 = sld [smem:[%s13243_s0 + %s11807_s22]]   ;;  %s11811_s22 = smov 44  }
  0x3f   :  { %13294 = sst [smem:[#allocation91_spill]] %s12062_s6 }
  0x40   :  { %s12082_s6 = sld [smem:[%s13243_s0 + %s11809_s7]]   ;;  %s11813_s7 = smov 46  }
  0x41   :  { %13292 = sst [smem:[#allocation89_spill]] %s12047_s29 }
  0x42   :  { %s12067_s29 = sld [smem:[%s13243_s0 + %s11806_s15]]   ;;  %s11810_s15 = smov 43  }
  0x43   :  { %13293 = sst [smem:[#allocation90_spill]] %s12057_s17 }
  0x44   :  { %13296 = sst [smem:[#allocation93_spill]] %s12072_s19 }
  0x45   :  { %s12077_s17 = sld [smem:[%s13243_s0 + %s11808_s28]]   ;;  %s11812_s28 = smov 45  }
  0x46   :  { %13298 = sst [smem:[#allocation95_spill]] %s12082_s6 }
  0x47   :  { %s12092_s19 = sld [smem:[%s13243_s0 + %s11811_s22]]  }
  0x48   :  { %13295 = sst [smem:[#allocation92_spill]] %s12067_s29 }
  0x49   :  { %s12087_s29 = sld [smem:[%s13243_s0 + %s11810_s15]]   ;;  %s11814_s15 = smov 47  }
  0x4a   :  { %s12102_s6 = sld [smem:[%s13243_s0 + %s11813_s7]]  }
  0x4b   :  { %13297 = sst [smem:[#allocation94_spill]] %s12077_s17 }
  0x4c   :  { %s12097_s17 = sld [smem:[%s13243_s0 + %s11812_s28]]  }
  0x4f   :  { %13299 = sst [smem:[#allocation96_spill]] %s12087_s29 }
  0x50   :  { %s12107_s29 = sld [smem:[%s13243_s0 + %s11814_s15]]  }
  0x51   :  { %102 = vsyncpa [#allocation8], 0 }
  0x52   :  { %103 = vsyncpa [#allocation10], 0 }
  0x53   :  { %104 = vsyncpa [#allocation6], 0 }
  0x54   :  { %105 = vsyncpa [#allocation13], 0 }
  0x55   :  { %106 = vsyncpa [#allocation16], 0 }
  0x56   :  { %107 = vsyncpa [#allocation19], 0 }
  0x57   :  { %108 = vsyncpa [#allocation22], 0 }
  0x58   :  { %109 = vsyncpa [#allocation25], 0 }
  0x59   :  { %110 = vsyncpa [#allocation28], 0 }
  0x5a   :  { %111 = vsyncpa [#allocation31], 0 }
  0x5b   :  { %112 = vsyncpa [#allocation34], 0 }
  0x5c   :  { %113 = vsyncpa [#allocation37], 0 }
  0x5d   :  { %114 = vsyncpa [#allocation40], 0 }
  0x5e   :  { %115 = vsyncpa [#allocation43], 0 }
  0x5f   :  { %116 = vsyncpa [#allocation46], 0 }
  0x60   :  { %117 = vsyncpa [#allocation7], 0 }
  0x61   :  { %118 = vsyncpa [#allocation49], 0  ;;  %s11815_s0 = smov [#allocation12]   ;;  %s11816_s23 = smov [#allocation15]  }
  0x62   :  { %s168_s22 = sshll.u32 %s11815_s0, 4  ;;  %s192_s26 = sshll.u32 %s11816_s23, 4  ;;  %s169_s22 = int_to_ptr.vmem [resolvable:$true] %s168_s22  ;;  %s12109_s26 = int_to_ptr.vmem [resolvable:$true] %s192_s26 }
  0x63   :  { %s11138_s28 = scalar_lea.hbm %s11917_s14, 32 }
  0x64   :  { %p11139_p0 = scmp.ne.s32.totalorder %s11917_s14, %s11138_s28  ;;  %p11142_p1 = scmp.lt.u32.totalorder %s11138_s28, %s11917_s14 }
  0x66   :  { %p11144_p2 = pnand %p11142_p1, %p11139_p0 }
  0x68   :  { %11147 = shalt.err (!%p11144_p2)
}
  0x69   :  { %s11148_s1 = scalar_lea.vmem %s169_s22, 32  ;;  %p11153_p4 = scmp.lt.s32.totalorder %s169_s22, %s169_s22 }
  0x6a   :  { %p11149_p3 = scmp.ne.s32.totalorder %s169_s22, %s11148_s1  ;;  %p11154_p5 = scmp.lt.s32.totalorder %s11148_s1, %s11148_s1 }
  0x6c   :  { %p11155_p6 = por %p11154_p5, %p11153_p4 }
  0x6e   :  { %p11156_p7 = pnand %p11155_p6, %p11149_p3 }
  0x70   :  { %11159 = shalt.err (!%p11156_p7)
}
  0x71   :  { %s11817_s2 = smov 16   ;;  %s11818_s7 = smov 1  }
  0x72   :  { %174 = dma.hbm_to_vmem [thread:$0]  %s11917_s14, 32, %s169_s22, [#allocation13], %s11817_s2, %s11817_s2, %s11818_s7  }
  0x73   :  { %s11160_s10 = scalar_lea.hbm %s11927_s24, 32 }
  0x74   :  { %p11161_p8 = scmp.ne.s32.totalorder %s11927_s24, %s11160_s10  ;;  %p11164_p9 = scmp.lt.u32.totalorder %s11160_s10, %s11927_s24 }
  0x76   :  { %p11166_p10 = pnand %p11164_p9, %p11161_p8 }
  0x78   :  { %11169 = shalt.err (!%p11166_p10)
}
  0x79   :  { %s11170_s11 = scalar_lea.vmem %s12109_s26, 32  ;;  %p11175_p12 = scmp.lt.s32.totalorder %s12109_s26, %s12109_s26 }
  0x7a   :  { %p11171_p11 = scmp.ne.s32.totalorder %s12109_s26, %s11170_s11  ;;  %p11176_p13 = scmp.lt.s32.totalorder %s11170_s11, %s11170_s11 }
  0x7c   :  { %p11177_p0 = por %p11176_p13, %p11175_p12 }
  0x7e   :  { %p11178_p1 = pnand %p11177_p0, %p11171_p11 }
  0x80   :  { %11181 = shalt.err (!%p11178_p1)
}
  0x81   :  { %198 = dma.hbm_to_vmem [thread:$0]  %s11927_s24, 32, %s12109_s26, [#allocation16], %s11817_s2, %s11817_s2, %s11818_s7  }
  0x82   :  { %s11819_s14 = smov [#allocation18]   ;;  %s11820_s16 = smov [#allocation21]  }
  0x83   :  { %s220_s15 = sshll.u32 %s11819_s14, 4  ;;  %s248_s18 = sshll.u32 %s11820_s16, 4  ;;  %s221_s15 = int_to_ptr.vmem [resolvable:$true] %s220_s15  ;;  %s12130_s18 = int_to_ptr.vmem [resolvable:$true] %s248_s18 }
  0x84   :  { %s11182_s0 = scalar_lea.hbm %s11947_s20, 32 }
  0x85   :  { %p11183_p2 = scmp.ne.s32.totalorder %s11947_s20, %s11182_s0  ;;  %p11186_p3 = scmp.lt.u32.totalorder %s11182_s0, %s11947_s20 }
  0x87   :  { %p11188_p4 = pnand %p11186_p3, %p11183_p2 }
  0x89   :  { %11191 = shalt.err (!%p11188_p4)
}
  0x8a   :  { %s11192_s22 = scalar_lea.vmem %s221_s15, 32  ;;  %p11197_p6 = scmp.lt.s32.totalorder %s221_s15, %s221_s15 }
  0x8b   :  { %p11193_p5 = scmp.ne.s32.totalorder %s221_s15, %s11192_s22  ;;  %p11198_p7 = scmp.lt.s32.totalorder %s11192_s22, %s11192_s22 }
  0x8d   :  { %p11199_p8 = por %p11198_p7, %p11197_p6 }
  0x8f   :  { %p11200_p9 = pnand %p11199_p8, %p11193_p5 }
  0x91   :  { %11203 = shalt.err (!%p11200_p9)
}
  0x92   :  { %226 = dma.hbm_to_vmem [thread:$0]  %s11947_s20, 32, %s221_s15, [#allocation19], %s11817_s2, %s11817_s2, %s11818_s7  }
  0x93   :  { %s11204_s24 = scalar_lea.hbm %s11967_s21, 32 }
  0x94   :  { %p11205_p10 = scmp.ne.s32.totalorder %s11967_s21, %s11204_s24  ;;  %p11208_p11 = scmp.lt.u32.totalorder %s11204_s24, %s11967_s21 }
  0x96   :  { %p11210_p12 = pnand %p11208_p11, %p11205_p10 }
  0x98   :  { %11213 = shalt.err (!%p11210_p12)
}
  0x99   :  { %s11214_s23 = scalar_lea.vmem %s12130_s18, 32  ;;  %p11219_p0 = scmp.lt.s32.totalorder %s12130_s18, %s12130_s18 }
  0x9a   :  { %p11215_p13 = scmp.ne.s32.totalorder %s12130_s18, %s11214_s23  ;;  %p11220_p1 = scmp.lt.s32.totalorder %s11214_s23, %s11214_s23 }
  0x9c   :  { %p11221_p2 = por %p11220_p1, %p11219_p0 }
  0x9e   :  { %p11222_p3 = pnand %p11221_p2, %p11215_p13 }
  0xa0   :  { %11225 = shalt.err (!%p11222_p3)
}
  0xa1   :  { %254 = dma.hbm_to_vmem [thread:$0]  %s11967_s21, 32, %s12130_s18, [#allocation22], %s11817_s2, %s11817_s2, %s11818_s7  }
  0xa2   :  { %s11821_s20 = smov [#allocation24]   ;;  %s11822_s28 = smov [#allocation27]  }
  0xa3   :  { %s274_s26 = sshll.u32 %s11821_s20, 4  ;;  %s300_s1 = sshll.u32 %s11822_s28, 4  ;;  %s275_s26 = int_to_ptr.vmem [resolvable:$true] %s274_s26  ;;  %s12151_s1 = int_to_ptr.vmem [resolvable:$true] %s300_s1 }
  0xa4   :  { %s11226_s10 = scalar_lea.hbm %s11982_s13, 32 }
  0xa5   :  { %p11227_p4 = scmp.ne.s32.totalorder %s11982_s13, %s11226_s10  ;;  %p11230_p5 = scmp.lt.u32.totalorder %s11226_s10, %s11982_s13 }
  0xa7   :  { %p11232_p6 = pnand %p11230_p5, %p11227_p4 }
  0xa9   :  { %11235 = shalt.err (!%p11232_p6)
}
  0xaa   :  { %s11236_s11 = scalar_lea.vmem %s275_s26, 32  ;;  %p11241_p8 = scmp.lt.s32.totalorder %s275_s26, %s275_s26 }
  0xab   :  { %p11237_p7 = scmp.ne.s32.totalorder %s275_s26, %s11236_s11  ;;  %p11242_p9 = scmp.lt.s32.totalorder %s11236_s11, %s11236_s11 }
  0xad   :  { %p11243_p10 = por %p11242_p9, %p11241_p8 }
  0xaf   :  { %p11244_p11 = pnand %p11243_p10, %p11237_p7 }
  0xb1   :  { %11247 = shalt.err (!%p11244_p11)
}
  0xb2   :  { %280 = dma.hbm_to_vmem [thread:$0]  %s11982_s13, 32, %s275_s26, [#allocation25], %s11817_s2, %s11817_s2, %s11818_s7  }
  0xb3   :  { %s11248_s21 = scalar_lea.hbm %s11997_s8, 32 }
  0xb4   :  { %p11249_p12 = scmp.ne.s32.totalorder %s11997_s8, %s11248_s21  ;;  %p11252_p13 = scmp.lt.u32.totalorder %s11248_s21, %s11997_s8 }
  0xb6   :  { %p11254_p0 = pnand %p11252_p13, %p11249_p12 }
  0xb8   :  { %11257 = shalt.err (!%p11254_p0)
}
  0xb9   :  { %s11258_s14 = scalar_lea.vmem %s12151_s1, 32  ;;  %p11263_p2 = scmp.lt.s32.totalorder %s12151_s1, %s12151_s1 }
  0xba   :  { %p11259_p1 = scmp.ne.s32.totalorder %s12151_s1, %s11258_s14  ;;  %p11264_p3 = scmp.lt.s32.totalorder %s11258_s14, %s11258_s14 }
  0xbc   :  { %p11265_p4 = por %p11264_p3, %p11263_p2 }
  0xbe   :  { %p11266_p5 = pnand %p11265_p4, %p11259_p1 }
  0xc0   :  { %11269 = shalt.err (!%p11266_p5)
}
  0xc1   :  { %306 = dma.hbm_to_vmem [thread:$0]  %s11997_s8, 32, %s12151_s1, [#allocation28], %s11817_s2, %s11817_s2, %s11818_s7  }
  0xc2   :  { %s11823_s13 = smov [#allocation30]   ;;  %s11270_s16 = scalar_lea.hbm %s12012_s27, 1024 }
  0xc3   :  { %s326_s15 = sshll.u32 %s11823_s13, 4  ;;  %p11271_p6 = scmp.ne.s32.totalorder %s12012_s27, %s11270_s16  ;;  %s327_s15 = int_to_ptr.vmem [resolvable:$true] %s326_s15 }
  0xc4   :  { %p11274_p7 = scmp.lt.u32.totalorder %s11270_s16, %s12012_s27 }
  0xc6   :  { %p11276_p8 = pnand %p11274_p7, %p11271_p6 }
  0xc8   :  { %11279 = shalt.err (!%p11276_p8)
}
  0xc9   :  { %s11280_s18 = scalar_lea.vmem %s327_s15, 1024  ;;  %p11285_p10 = scmp.lt.s32.totalorder %s327_s15, %s327_s15 }
  0xca   :  { %p11281_p9 = scmp.ne.s32.totalorder %s327_s15, %s11280_s18  ;;  %p11286_p11 = scmp.lt.s32.totalorder %s11280_s18, %s11280_s18 }
  0xcc   :  { %p11287_p12 = por %p11286_p11, %p11285_p10 }
  0xce   :  { %p11288_p13 = pnand %p11287_p12, %p11281_p9 }
  0xd0   :  { %11291 = shalt.err (!%p11288_p13)
}
  0xd1   :  { %s11824_s0 = smov 128   ;;  %s11825_s8 = smov 8  }
  0xd2   :  { %332 = dma.hbm_to_vmem [thread:$0]  %s12012_s27, 1024, %s327_s15, [#allocation31], %s11824_s0, %s11824_s0, %s11825_s8  }
  0xd3   :  { %s11826_s22 = smov [#allocation33]   ;;  %s11827_s23 = smov [#allocation36]  }
  0xd4   :  { %s350_s24 = sshll.u32 %s11826_s22, 4  ;;  %s374_s20 = sshll.u32 %s11827_s23, 4  ;;  %s351_s24 = int_to_ptr.vmem [resolvable:$true] %s350_s24  ;;  %s375_s20 = int_to_ptr.vmem [resolvable:$true] %s374_s20 }
  0xd5   :  { %s11292_s26 = scalar_lea.hbm %s12022_s25, 32 }
  0xd6   :  { %p11293_p0 = scmp.ne.s32.totalorder %s12022_s25, %s11292_s26  ;;  %p11296_p1 = scmp.lt.u32.totalorder %s11292_s26, %s12022_s25 }
  0xd8   :  { %p11298_p2 = pnand %p11296_p1, %p11293_p0 }
  0xda   :  { %11301 = shalt.err (!%p11298_p2)
}
  0xdb   :  { %s11302_s28 = scalar_lea.vmem %s351_s24, 32  ;;  %p11307_p4 = scmp.lt.s32.totalorder %s351_s24, %s351_s24 }
  0xdc   :  { %p11303_p3 = scmp.ne.s32.totalorder %s351_s24, %s11302_s28  ;;  %p11308_p5 = scmp.lt.s32.totalorder %s11302_s28, %s11302_s28 }
  0xde   :  { %p11309_p6 = por %p11308_p5, %p11307_p4 }
  0xe0   :  { %p11310_p7 = pnand %p11309_p6, %p11303_p3 }
  0xe2   :  { %11313 = shalt.err (!%p11310_p7)
}
  0xe3   :  { %356 = dma.hbm_to_vmem [thread:$0]  %s12022_s25, 32, %s351_s24, [#allocation34], %s11817_s2, %s11817_s2, %s11818_s7  }
  0xe4   :  { %s11314_s27 = scalar_lea.hbm %s12032_s30, 1024 }
  0xe5   :  { %p11315_p8 = scmp.ne.s32.totalorder %s12032_s30, %s11314_s27  ;;  %p11318_p9 = scmp.lt.u32.totalorder %s11314_s27, %s12032_s30 }
  0xe7   :  { %p11320_p10 = pnand %p11318_p9, %p11315_p8 }
  0xe9   :  { %11323 = shalt.err (!%p11320_p10)
}
  0xea   :  { %s11324_s1 = scalar_lea.vmem %s375_s20, 1024  ;;  %p11329_p12 = scmp.lt.s32.totalorder %s375_s20, %s375_s20 }
  0xeb   :  { %p11325_p11 = scmp.ne.s32.totalorder %s375_s20, %s11324_s1  ;;  %p11330_p13 = scmp.lt.s32.totalorder %s11324_s1, %s11324_s1 }
  0xed   :  { %p11331_p0 = por %p11330_p13, %p11329_p12 }
  0xef   :  { %p11332_p1 = pnand %p11331_p0, %p11325_p11 }
  0xf1   :  { %11335 = shalt.err (!%p11332_p1)
}
  0xf2   :  { %380 = dma.hbm_to_vmem [thread:$0]  %s12032_s30, 1024, %s375_s20, [#allocation37], %s11824_s0, %s11824_s0, %s11825_s8  }
  0xf3   :  { %s11828_s25 = smov [#allocation39]   ;;  %s11829_s11 = smov [#allocation42]  }
  0xf4   :  { %s398_s10 = sshll.u32 %s11828_s25, 4  ;;  %s422_s21 = sshll.u32 %s11829_s11, 4  ;;  %s399_s10 = int_to_ptr.vmem [resolvable:$true] %s398_s10  ;;  %s423_s21 = int_to_ptr.vmem [resolvable:$true] %s422_s21 }
  0xf5   :  { %s11336_s14 = scalar_lea.hbm %s12042_s12, 1024 }
  0xf6   :  { %p11337_p2 = scmp.ne.s32.totalorder %s12042_s12, %s11336_s14  ;;  %p11340_p3 = scmp.lt.u32.totalorder %s11336_s14, %s12042_s12 }
  0xf8   :  { %p11342_p4 = pnand %p11340_p3, %p11337_p2 }
  0xfa   :  { %11345 = shalt.err (!%p11342_p4)
}
  0xfb   :  { %s11346_s13 = scalar_lea.vmem %s399_s10, 1024  ;;  %p11351_p6 = scmp.lt.s32.totalorder %s399_s10, %s399_s10 }
  0xfc   :  { %p11347_p5 = scmp.ne.s32.totalorder %s399_s10, %s11346_s13  ;;  %p11352_p7 = scmp.lt.s32.totalorder %s11346_s13, %s11346_s13 }
  0xfe   :  { %p11353_p8 = por %p11352_p7, %p11351_p6 }
 0x100   :  { %p11354_p9 = pnand %p11353_p8, %p11347_p5 }
 0x102   :  { %11357 = shalt.err (!%p11354_p9)
}
 0x103   :  { %404 = dma.hbm_to_vmem [thread:$0]  %s12042_s12, 1024, %s399_s10, [#allocation40], %s11824_s0, %s11824_s0, %s11825_s8  }
 0x104   :  { %s125_s30 = sshll.u32 %s11872_s5, 4  ;;  %s11358_s15 = scalar_lea.hbm %s12052_s4, 32  ;;  %s126_s30 = int_to_ptr.vmem [resolvable:$true] %s125_s30 }
 0x105   :  { %p11359_p10 = scmp.ne.s32.totalorder %s12052_s4, %s11358_s15  ;;  %p11362_p11 = scmp.lt.u32.totalorder %s11358_s15, %s12052_s4 }
 0x107   :  { %p11364_p12 = pnand %p11362_p11, %p11359_p10 }
 0x109   :  { %11367 = shalt.err (!%p11364_p12)
}
 0x10a   :  { %s11368_s16 = scalar_lea.vmem %s423_s21, 32  ;;  %p11373_p0 = scmp.lt.s32.totalorder %s423_s21, %s423_s21 }
 0x10b   :  { %p11369_p13 = scmp.ne.s32.totalorder %s423_s21, %s11368_s16  ;;  %p11374_p1 = scmp.lt.s32.totalorder %s11368_s16, %s11368_s16 }
 0x10d   :  { %p11375_p2 = por %p11374_p1, %p11373_p0 }
 0x10f   :  { %p11376_p3 = pnand %p11375_p2, %p11369_p13 }
 0x111   :  { %11379 = shalt.err (!%p11376_p3)
}
 0x112   :  { %428 = dma.hbm_to_vmem [thread:$0]  %s12052_s4, 32, %s423_s21, [#allocation43], %s11817_s2, %s11817_s2, %s11818_s7  }
 0x113   :  { %s11380_s12 = scalar_lea.vmem %s126_s30, 16  ;;  %p11385_p5 = scmp.lt.s32.totalorder %s126_s30, %s126_s30 }
 0x114   :  { %p11381_p4 = scmp.ne.s32.totalorder %s126_s30, %s11380_s12  ;;  %p11386_p6 = scmp.lt.s32.totalorder %s11380_s12, %s11380_s12 }
 0x116   :  { %p11387_p7 = por %p11386_p6, %p11385_p5 }
 0x118   :  { %p11388_p8 = pnand %p11387_p7, %p11381_p4 }
 0x11a   :  { %11391 = shalt.err (!%p11388_p8)
}
 0x11b   :  { %s11830_s5 = smov [#allocation5]   ;;  %s135_s18 = sshll.u32 %s11877_s9, 4  ;;  %s136_s18 = int_to_ptr.vmem [resolvable:$true] %s135_s18 }
 0x11c   :  { %128 = dma.vmem_to_smem %s126_s30, 16, %s11830_s5, [#allocation8]  }
 0x11d   :  { %s11392_s0 = scalar_lea.vmem %s136_s18, 16  ;;  %p11397_p10 = scmp.lt.s32.totalorder %s136_s18, %s136_s18 }
 0x11e   :  { %p11393_p9 = scmp.ne.s32.totalorder %s136_s18, %s11392_s0  ;;  %p11398_p11 = scmp.lt.s32.totalorder %s11392_s0, %s11392_s0 }
 0x120   :  { %p11399_p12 = por %p11398_p11, %p11397_p10 }
 0x122   :  { %p11400_p13 = pnand %p11399_p12, %p11393_p9 }
 0x124   :  { %11403 = shalt.err (!%p11400_p13)
}
 0x125   :  { %s11831_s4 = smov [#allocation9]   ;;  %s11832_s8 = smov [#allocation11]  }
 0x126   :  { %138 = dma.vmem_to_smem %s136_s18, 16, %s11831_s4, [#allocation10]  }
 0x127   :  { %s154_s22 = sshll.u32 %s11832_s8, 4  ;;  %s11833_s24 = smov [#allocation14]   ;;  %s155_s22 = int_to_ptr.vmem [resolvable:$true] %s154_s22 }
 0x128   :  { %s180_s23 = sshll.u32 %s11833_s24, 4  ;;  %s11404_s20 = scalar_lea.hbm %s11907_s3, 32  ;;  %s181_s23 = int_to_ptr.vmem [resolvable:$true] %s180_s23 }
 0x129   :  { %p11405_p0 = scmp.ne.s32.totalorder %s11907_s3, %s11404_s20  ;;  %p11408_p1 = scmp.lt.u32.totalorder %s11404_s20, %s11907_s3 }
 0x12b   :  { %p11410_p2 = pnand %p11408_p1, %p11405_p0 }
 0x12d   :  { %11413 = shalt.err (!%p11410_p2)
}
 0x12e   :  { %s11414_s9 = scalar_lea.vmem %s155_s22, 32  ;;  %p11419_p4 = scmp.lt.s32.totalorder %s155_s22, %s155_s22 }
 0x12f   :  { %p11415_p3 = scmp.ne.s32.totalorder %s155_s22, %s11414_s9  ;;  %p11420_p5 = scmp.lt.s32.totalorder %s11414_s9, %s11414_s9 }
 0x131   :  { %p11421_p6 = por %p11420_p5, %p11419_p4 }
 0x133   :  { %p11422_p7 = pnand %p11421_p6, %p11415_p3 }
 0x135   :  { %11425 = shalt.err (!%p11422_p7)
}
 0x136   :  { %s13300_s26 = sld [smem:[#allocation73_spill]] }
 0x137   :  { %160 = dma.hbm_to_vmem [thread:$0]  %s11907_s3, 32, %s155_s22, [#allocation6], %s11817_s2, %s11817_s2, %s11818_s7  }
 0x13c   :  { %s11426_s28 = scalar_lea.hbm %s13300_s26, 32 }
 0x13d   :  { %p11427_p8 = scmp.ne.s32.totalorder %s13300_s26, %s11426_s28  ;;  %p11430_p9 = scmp.lt.u32.totalorder %s11426_s28, %s13300_s26 }
 0x13f   :  { %p11432_p10 = pnand %p11430_p9, %p11427_p8 }
 0x141   :  { %11435 = shalt.err (!%p11432_p10)
}
 0x142   :  { %s11436_s27 = scalar_lea.vmem %s181_s23, 32  ;;  %p11441_p12 = scmp.lt.s32.totalorder %s181_s23, %s181_s23 }
 0x143   :  { %p11437_p11 = scmp.ne.s32.totalorder %s181_s23, %s11436_s27  ;;  %p11442_p13 = scmp.lt.s32.totalorder %s11436_s27, %s11436_s27 }
 0x145   :  { %p11443_p0 = por %p11442_p13, %p11441_p12 }
 0x147   :  { %p11444_p1 = pnand %p11443_p0, %p11437_p11 }
 0x149   :  { %11447 = shalt.err (!%p11444_p1)
}
 0x14a   :  { %s13301_s1 = sld [smem:[#allocation75_spill]]  ;;  %s11834_s3 = smov [#allocation17]  }
 0x14b   :  { %186 = dma.hbm_to_vmem [thread:$0]  %s13300_s26, 32, %s181_s23, [#allocation13], %s11817_s2, %s11817_s2, %s11818_s7  }
 0x14c   :  { %s206_s25 = sshll.u32 %s11834_s3, 4  ;;  %s11835_s10 = smov [#allocation20]   ;;  %s207_s25 = int_to_ptr.vmem [resolvable:$true] %s206_s25 }
 0x14d   :  { %s234_s11 = sshll.u32 %s11835_s10, 4  ;;  %s235_s11 = int_to_ptr.vmem [resolvable:$true] %s234_s11 }
 0x150   :  { %s11448_s21 = scalar_lea.hbm %s13301_s1, 32 }
 0x151   :  { %p11449_p2 = scmp.ne.s32.totalorder %s13301_s1, %s11448_s21  ;;  %p11452_p3 = scmp.lt.u32.totalorder %s11448_s21, %s13301_s1 }
 0x153   :  { %p11454_p4 = pnand %p11452_p3, %p11449_p2 }
 0x155   :  { %11457 = shalt.err (!%p11454_p4)
}
 0x156   :  { %s11458_s14 = scalar_lea.vmem %s207_s25, 32  ;;  %p11463_p6 = scmp.lt.s32.totalorder %s207_s25, %s207_s25 }
 0x157   :  { %p11459_p5 = scmp.ne.s32.totalorder %s207_s25, %s11458_s14  ;;  %p11464_p7 = scmp.lt.s32.totalorder %s11458_s14, %s11458_s14 }
 0x159   :  { %p11465_p8 = por %p11464_p7, %p11463_p6 }
 0x15b   :  { %p11466_p9 = pnand %p11465_p8, %p11459_p5 }
 0x15d   :  { %11469 = shalt.err (!%p11466_p9)
}
 0x15e   :  { %s13302_s13 = sld [smem:[#allocation78_spill]] }
 0x15f   :  { %212 = dma.hbm_to_vmem [thread:$0]  %s13301_s1, 32, %s207_s25, [#allocation16], %s11817_s2, %s11817_s2, %s11818_s7  }
 0x164   :  { %s11470_s30 = scalar_lea.hbm %s13302_s13, 32 }
 0x165   :  { %p11471_p10 = scmp.ne.s32.totalorder %s13302_s13, %s11470_s30  ;;  %p11474_p11 = scmp.lt.u32.totalorder %s11470_s30, %s13302_s13 }
 0x167   :  { %p11476_p12 = pnand %p11474_p11, %p11471_p10 }
 0x169   :  { %11479 = shalt.err (!%p11476_p12)
}
 0x16a   :  { %s11480_s15 = scalar_lea.vmem %s235_s11, 32  ;;  %p11485_p0 = scmp.lt.s32.totalorder %s235_s11, %s235_s11 }
 0x16b   :  { %p11481_p13 = scmp.ne.s32.totalorder %s235_s11, %s11480_s15  ;;  %p11486_p1 = scmp.lt.s32.totalorder %s11480_s15, %s11480_s15 }
 0x16d   :  { %p11487_p2 = por %p11486_p1, %p11485_p0 }
 0x16f   :  { %p11488_p3 = pnand %p11487_p2, %p11481_p13 }
 0x171   :  { %11491 = shalt.err (!%p11488_p3)
}
 0x172   :  { %s13303_s16 = sld [smem:[#allocation81_spill]]  ;;  %s11836_s12 = smov [#allocation23]  }
 0x173   :  { %240 = dma.hbm_to_vmem [thread:$0]  %s13302_s13, 32, %s235_s11, [#allocation19], %s11817_s2, %s11817_s2, %s11818_s7  }
 0x174   :  { %s262_s5 = sshll.u32 %s11836_s12, 4  ;;  %s11837_s18 = smov [#allocation26]   ;;  %s263_s5 = int_to_ptr.vmem [resolvable:$true] %s262_s5 }
 0x175   :  { %s286_s0 = sshll.u32 %s11837_s18, 4  ;;  %s287_s0 = int_to_ptr.vmem [resolvable:$true] %s286_s0 }
 0x178   :  { %s11492_s4 = scalar_lea.hbm %s13303_s16, 32 }
 0x179   :  { %p11493_p4 = scmp.ne.s32.totalorder %s13303_s16, %s11492_s4  ;;  %p11496_p5 = scmp.lt.u32.totalorder %s11492_s4, %s13303_s16 }
 0x17b   :  { %p11498_p6 = pnand %p11496_p5, %p11493_p4 }
 0x17d   :  { %11501 = shalt.err (!%p11498_p6)
}
 0x17e   :  { %s11502_s8 = scalar_lea.vmem %s263_s5, 32  ;;  %p11507_p8 = scmp.lt.s32.totalorder %s263_s5, %s263_s5 }
 0x17f   :  { %p11503_p7 = scmp.ne.s32.totalorder %s263_s5, %s11502_s8  ;;  %p11508_p9 = scmp.lt.s32.totalorder %s11502_s8, %s11502_s8 }
 0x181   :  { %p11509_p10 = por %p11508_p9, %p11507_p8 }
 0x183   :  { %p11510_p11 = pnand %p11509_p10, %p11503_p7 }
 0x185   :  { %11513 = shalt.err (!%p11510_p11)
}
 0x186   :  { %s13304_s22 = sld [smem:[#allocation82_spill]] }
 0x187   :  { %268 = dma.hbm_to_vmem [thread:$0]  %s13303_s16, 32, %s263_s5, [#allocation22], %s11817_s2, %s11817_s2, %s11818_s7  }
 0x18c   :  { %s11514_s24 = scalar_lea.hbm %s13304_s22, 32 }
 0x18d   :  { %p11515_p12 = scmp.ne.s32.totalorder %s13304_s22, %s11514_s24  ;;  %p11518_p13 = scmp.lt.u32.totalorder %s11514_s24, %s13304_s22 }
 0x18f   :  { %p11520_p0 = pnand %p11518_p13, %p11515_p12 }
 0x191   :  { %11523 = shalt.err (!%p11520_p0)
}
 0x192   :  { %s11524_s23 = scalar_lea.vmem %s287_s0, 32  ;;  %p11529_p2 = scmp.lt.s32.totalorder %s287_s0, %s287_s0 }
 0x193   :  { %p11525_p1 = scmp.ne.s32.totalorder %s287_s0, %s11524_s23  ;;  %p11530_p3 = scmp.lt.s32.totalorder %s11524_s23, %s11524_s23 }
 0x195   :  { %p11531_p4 = por %p11530_p3, %p11529_p2 }
 0x197   :  { %p11532_p5 = pnand %p11531_p4, %p11525_p1 }
 0x199   :  { %11535 = shalt.err (!%p11532_p5)
}
 0x19a   :  { %s13305_s20 = sld [smem:[#allocation85_spill]]  ;;  %s11838_s9 = smov [#allocation29]  }
 0x19b   :  { %292 = dma.hbm_to_vmem [thread:$0]  %s13304_s22, 32, %s287_s0, [#allocation25], %s11817_s2, %s11817_s2, %s11818_s7  }
 0x19c   :  { %s314_s26 = sshll.u32 %s11838_s9, 4  ;;  %s11839_s28 = smov [#allocation32]   ;;  %s315_s26 = int_to_ptr.vmem [resolvable:$true] %s314_s26 }
 0x19d   :  { %s338_s27 = sshll.u32 %s11839_s28, 4  ;;  %s339_s27 = int_to_ptr.vmem [resolvable:$true] %s338_s27 }
 0x1a0   :  { %s11536_s1 = scalar_lea.hbm %s13305_s20, 32 }
 0x1a1   :  { %p11537_p6 = scmp.ne.s32.totalorder %s13305_s20, %s11536_s1  ;;  %p11540_p7 = scmp.lt.u32.totalorder %s11536_s1, %s13305_s20 }
 0x1a3   :  { %p11542_p8 = pnand %p11540_p7, %p11537_p6 }
 0x1a5   :  { %11545 = shalt.err (!%p11542_p8)
}
 0x1a6   :  { %s11546_s3 = scalar_lea.vmem %s315_s26, 32  ;;  %p11551_p10 = scmp.lt.s32.totalorder %s315_s26, %s315_s26 }
 0x1a7   :  { %p11547_p9 = scmp.ne.s32.totalorder %s315_s26, %s11546_s3  ;;  %p11552_p11 = scmp.lt.s32.totalorder %s11546_s3, %s11546_s3 }
 0x1a9   :  { %p11553_p12 = por %p11552_p11, %p11551_p10 }
 0x1ab   :  { %p11554_p13 = pnand %p11553_p12, %p11547_p9 }
 0x1ad   :  { %11557 = shalt.err (!%p11554_p13)
}
 0x1ae   :  { %s13306_s25 = sld [smem:[#allocation86_spill]] }
 0x1af   :  { %320 = dma.hbm_to_vmem [thread:$0]  %s13305_s20, 32, %s315_s26, [#allocation28], %s11817_s2, %s11817_s2, %s11818_s7  }
 0x1b4   :  { %s11558_s10 = scalar_lea.hbm %s13306_s25, 32 }
 0x1b5   :  { %p11559_p0 = scmp.ne.s32.totalorder %s13306_s25, %s11558_s10  ;;  %p11562_p1 = scmp.lt.u32.totalorder %s11558_s10, %s13306_s25 }
 0x1b7   :  { %p11564_p2 = pnand %p11562_p1, %p11559_p0 }
 0x1b9   :  { %11567 = shalt.err (!%p11564_p2)
}
 0x1ba   :  { %s11568_s11 = scalar_lea.vmem %s339_s27, 32  ;;  %p11573_p4 = scmp.lt.s32.totalorder %s339_s27, %s339_s27 }
 0x1bb   :  { %p11569_p3 = scmp.ne.s32.totalorder %s339_s27, %s11568_s11  ;;  %p11574_p5 = scmp.lt.s32.totalorder %s11568_s11, %s11568_s11 }
 0x1bd   :  { %p11575_p6 = por %p11574_p5, %p11573_p4 }
 0x1bf   :  { %p11576_p7 = pnand %p11575_p6, %p11569_p3 }
 0x1c1   :  { %11579 = shalt.err (!%p11576_p7)
}
 0x1c2   :  { %s13307_s21 = sld [smem:[#allocation87_spill]]  ;;  %s11840_s14 = smov [#allocation35]  }
 0x1c3   :  { %344 = dma.hbm_to_vmem [thread:$0]  %s13306_s25, 32, %s339_s27, [#allocation31], %s11817_s2, %s11817_s2, %s11818_s7  }
 0x1c4   :  { %s362_s13 = sshll.u32 %s11840_s14, 4  ;;  %s11841_s30 = smov [#allocation38]   ;;  %s363_s13 = int_to_ptr.vmem [resolvable:$true] %s362_s13 }
 0x1c5   :  { %s386_s15 = sshll.u32 %s11841_s30, 4  ;;  %s387_s15 = int_to_ptr.vmem [resolvable:$true] %s386_s15 }
 0x1c8   :  { %s11580_s16 = scalar_lea.hbm %s13307_s21, 32 }
 0x1c9   :  { %p11581_p8 = scmp.ne.s32.totalorder %s13307_s21, %s11580_s16  ;;  %p11584_p9 = scmp.lt.u32.totalorder %s11580_s16, %s13307_s21 }
 0x1cb   :  { %p11586_p10 = pnand %p11584_p9, %p11581_p8 }
 0x1cd   :  { %11589 = shalt.err (!%p11586_p10)
}
 0x1ce   :  { %s11590_s12 = scalar_lea.vmem %s363_s13, 32  ;;  %p11595_p12 = scmp.lt.s32.totalorder %s363_s13, %s363_s13 }
 0x1cf   :  { %p11591_p11 = scmp.ne.s32.totalorder %s363_s13, %s11590_s12  ;;  %p11596_p13 = scmp.lt.s32.totalorder %s11590_s12, %s11590_s12 }
 0x1d1   :  { %p11597_p0 = por %p11596_p13, %p11595_p12 }
 0x1d3   :  { %p11598_p1 = pnand %p11597_p0, %p11591_p11 }
 0x1d5   :  { %11601 = shalt.err (!%p11598_p1)
}
 0x1d6   :  { %s13308_s5 = sld [smem:[#allocation88_spill]] }
 0x1d7   :  { %368 = dma.hbm_to_vmem [thread:$0]  %s13307_s21, 32, %s363_s13, [#allocation34], %s11817_s2, %s11817_s2, %s11818_s7  }
 0x1dc   :  { %s11602_s18 = scalar_lea.hbm %s13308_s5, 32 }
 0x1dd   :  { %p11603_p2 = scmp.ne.s32.totalorder %s13308_s5, %s11602_s18  ;;  %p11606_p3 = scmp.lt.u32.totalorder %s11602_s18, %s13308_s5 }
 0x1df   :  { %p11608_p4 = pnand %p11606_p3, %p11603_p2 }
 0x1e1   :  { %11611 = shalt.err (!%p11608_p4)
}
 0x1e2   :  { %s11612_s0 = scalar_lea.vmem %s387_s15, 32  ;;  %p11617_p6 = scmp.lt.s32.totalorder %s387_s15, %s387_s15 }
 0x1e3   :  { %p11613_p5 = scmp.ne.s32.totalorder %s387_s15, %s11612_s0  ;;  %p11618_p7 = scmp.lt.s32.totalorder %s11612_s0, %s11612_s0 }
 0x1e5   :  { %p11619_p8 = por %p11618_p7, %p11617_p6 }
 0x1e7   :  { %p11620_p9 = pnand %p11619_p8, %p11613_p5 }
 0x1e9   :  { %11623 = shalt.err (!%p11620_p9)
}
 0x1ea   :  { %s13309_s4 = sld [smem:[#allocation89_spill]]  ;;  %s11842_s8 = smov [#allocation41]  }
 0x1eb   :  { %392 = dma.hbm_to_vmem [thread:$0]  %s13308_s5, 32, %s387_s15, [#allocation37], %s11817_s2, %s11817_s2, %s11818_s7  }
 0x1ec   :  { %s410_s22 = sshll.u32 %s11842_s8, 4  ;;  %s11843_s24 = smov [#allocation44]   ;;  %s411_s22 = int_to_ptr.vmem [resolvable:$true] %s410_s22 }
 0x1ed   :  { %s434_s23 = sshll.u32 %s11843_s24, 4  ;;  %s435_s23 = int_to_ptr.vmem [resolvable:$true] %s434_s23 }
 0x1f0   :  { %s11624_s20 = scalar_lea.hbm %s13309_s4, 32 }
 0x1f1   :  { %p11625_p10 = scmp.ne.s32.totalorder %s13309_s4, %s11624_s20  ;;  %p11628_p11 = scmp.lt.u32.totalorder %s11624_s20, %s13309_s4 }
 0x1f3   :  { %p11630_p12 = pnand %p11628_p11, %p11625_p10 }
 0x1f5   :  { %11633 = shalt.err (!%p11630_p12)
}
 0x1f6   :  { %s11634_s9 = scalar_lea.vmem %s411_s22, 32  ;;  %p11639_p0 = scmp.lt.s32.totalorder %s411_s22, %s411_s22 }
 0x1f7   :  { %p11635_p13 = scmp.ne.s32.totalorder %s411_s22, %s11634_s9  ;;  %p11640_p1 = scmp.lt.s32.totalorder %s11634_s9, %s11634_s9 }
 0x1f9   :  { %p11641_p2 = por %p11640_p1, %p11639_p0 }
 0x1fb   :  { %p11642_p3 = pnand %p11641_p2, %p11635_p13 }
 0x1fd   :  { %11645 = shalt.err (!%p11642_p3)
}
 0x1fe   :  { %s13310_s26 = sld [smem:[#allocation90_spill]] }
 0x1ff   :  { %416 = dma.hbm_to_vmem [thread:$0]  %s13309_s4, 32, %s411_s22, [#allocation40], %s11817_s2, %s11817_s2, %s11818_s7  }
 0x204   :  { %s11646_s28 = scalar_lea.hbm %s13310_s26, 32 }
 0x205   :  { %p11647_p4 = scmp.ne.s32.totalorder %s13310_s26, %s11646_s28  ;;  %p11650_p5 = scmp.lt.u32.totalorder %s11646_s28, %s13310_s26 }
 0x207   :  { %p11652_p6 = pnand %p11650_p5, %p11647_p4 }
 0x209   :  { %11655 = shalt.err (!%p11652_p6)
}
 0x20a   :  { %s11656_s27 = scalar_lea.vmem %s435_s23, 32  ;;  %p11661_p8 = scmp.lt.s32.totalorder %s435_s23, %s435_s23 }
 0x20b   :  { %p11657_p7 = scmp.ne.s32.totalorder %s435_s23, %s11656_s27  ;;  %p11662_p9 = scmp.lt.s32.totalorder %s11656_s27, %s11656_s27 }
 0x20d   :  { %p11663_p10 = por %p11662_p9, %p11661_p8 }
 0x20f   :  { %p11664_p11 = pnand %p11663_p10, %p11657_p7 }
 0x211   :  { %11667 = shalt.err (!%p11664_p11)
}
 0x212   :  { %s13311_s1 = sld [smem:[#allocation93_spill]]  ;;  %s11844_s3 = smov [#allocation45]  }
 0x213   :  { %440 = dma.hbm_to_vmem [thread:$0]  %s13310_s26, 32, %s435_s23, [#allocation43], %s11817_s2, %s11817_s2, %s11818_s7  }
 0x214   :  { %s450_s25 = sshll.u32 %s11844_s3, 4  ;;  %s451_s25 = int_to_ptr.vmem [resolvable:$true] %s450_s25 }
 0x218   :  { %s11668_s10 = scalar_lea.hbm %s13311_s1, 32768 }
 0x219   :  { %p11669_p12 = scmp.ne.s32.totalorder %s13311_s1, %s11668_s10  ;;  %p11672_p13 = scmp.lt.u32.totalorder %s11668_s10, %s13311_s1 }
 0x21b   :  { %p11674_p0 = pnand %p11672_p13, %p11669_p12 }
 0x21d   :  { %11677 = shalt.err (!%p11674_p0)
}
 0x21e   :  { %s11678_s11 = scalar_lea.vmem %s451_s25, 32768  ;;  %p11683_p2 = scmp.lt.s32.totalorder %s451_s25, %s451_s25 }
 0x21f   :  { %p11679_p1 = scmp.ne.s32.totalorder %s451_s25, %s11678_s11  ;;  %p11684_p3 = scmp.lt.s32.totalorder %s11678_s11, %s11678_s11 }
 0x221   :  { %p11685_p4 = por %p11684_p3, %p11683_p2 }
 0x223   :  { %p11686_p5 = pnand %p11685_p4, %p11679_p1 }
 0x225   :  { %11689 = shalt.err (!%p11686_p5)
}
 0x226   :  { %s11845_s21 = smov 512   ;;  %s11846_s14 = smov 32  }
 0x227   :  { %456 = dma.hbm_to_vmem [thread:$0]  %s13311_s1, 32768, %s451_s25, [#allocation46], %s11845_s21, %s11845_s21, %s11846_s14  }
 0x228   :  { %11734 = dma.done.wait [#allocation8], 16  }
 0x229   :  { %11735 = vsyncadd [#allocation8], 4294967280 }
 0x22a   :  { %11736 = dma.done.wait [#allocation10], 16  }
 0x22b   :  { %11737 = vsyncadd [#allocation10], 4294967280 }
 0x22c   :  { %11738 = dma.done.wait [#allocation6], 32  }
 0x22d   :  { %11739 = vsyncadd [#allocation6], 4294967264 }
 0x22e   :  { %11740 = dma.done.wait [#allocation13], 64  }
 0x22f   :  { %11741 = vsyncadd [#allocation13], 4294967232 }
 0x230   :  { %11742 = dma.done.wait [#allocation16], 64  }
 0x231   :  { %11743 = vsyncadd [#allocation16], 4294967232 }
 0x232   :  { %11744 = dma.done.wait [#allocation19], 64  }
 0x233   :  { %11745 = vsyncadd [#allocation19], 4294967232 }
 0x234   :  { %11746 = dma.done.wait [#allocation22], 64  }
 0x235   :  { %11747 = vsyncadd [#allocation22], 4294967232 }
 0x236   :  { %11748 = dma.done.wait [#allocation25], 64  }
 0x237   :  { %11749 = vsyncadd [#allocation25], 4294967232 }
 0x238   :  { %11750 = dma.done.wait [#allocation28], 64  }
 0x239   :  { %11751 = vsyncadd [#allocation28], 4294967232 }
 0x23a   :  { %11752 = dma.done.wait [#allocation31], 1056  }
 0x23b   :  { %11753 = vsyncadd [#allocation31], 4294966240 }
 0x23c   :  { %11754 = dma.done.wait [#allocation34], 64  }
 0x23d   :  { %11755 = vsyncadd [#allocation34], 4294967232 }
 0x23e   :  { %11756 = dma.done.wait [#allocation37], 1056  }
 0x23f   :  { %11757 = vsyncadd [#allocation37], 4294966240 }
 0x240   :  { %11758 = dma.done.wait [#allocation40], 1056  }
 0x241   :  { %11759 = vsyncadd [#allocation40], 4294966240 }
 0x242   :  { %11760 = dma.done.wait [#allocation43], 64  }
 0x243   :  { %11761 = vsyncadd [#allocation43], 4294967232 }
 0x244   :  { %11762 = dma.done.wait [#allocation46], 32768  }
 0x245   :  { %11763 = vsyncadd [#allocation46], 4294934528 }
 0x246   :  { %545 = sfence }
 0x247   :  { %s13312_s2 = sld [smem:[#allocation68_spill]]  ;;  %s13313_s13 = sld [smem:[#allocation71_spill]]  ;;  %v546_v2 = vlaneseq  ;;  %v11847_v4 = vmov 0.0|0.0   ;;  %vm11848_vm0 = vmmov 0   ;;  %v11849_v6 = vmov 0.0  }
 0x248   :  { %10475 = vmatprep.subr.bf16.mxu0 %v11847_v4  ;;  %9929 = vmatprep.mubr.msk.f32.mxu0 %vm11848_vm0, %v11849_v6  ;;  %s548_s30 = sld [smem:[#allocation5]]  ;;  %s9405_s15 = sld [smem:[#allocation5 + $0x1]]  ;;  %vm553_vm1 = vcmask 122880   ;;  %vm648_vm10 = vcmask 130048   ;;  %vm736_vm11 = vcmask 261120   ;;  %vm818_vm12 = vcmask 64512  }
 0x249   :  { %s9407_s16 = sld [smem:[#allocation5 + $0x2]]  ;;  %s9409_s12 = sld [smem:[#allocation5 + $0x3]]  ;;  %10478 = vmatprep.subr.bf16.mxu1 %v11847_v4  ;;  %9940 = vmatprep.mubr.msk.f32.mxu1 %vm11848_vm0, %v11849_v6  ;;  %v12308_v9 = vand.u32 127, %v546_v2  ;;  %v9435_v35 = vld [vmem:[#allocation11] ss:$0 sm:$0xff] }
 0x24a   :  { %s9411_s5 = sld [smem:[#allocation5 + $0x4]]  ;;  %s9413_s18 = sld [smem:[#allocation5 + $0x5]] }
 0x24b   :  { %s9415_s0 = sld [smem:[#allocation5 + $0x6]]  ;;  %s9417_s4 = sld [smem:[#allocation5 + $0x7]] }
 0x24c   :  { %s13314_s8 = sld [smem:[#allocation70_spill]]  ;;  %s11850_s22 = smov 120  }
 0x24d   :  { %v646_v0 = vld [vmem:[%s13312_s2] sm:$0xff]  ;;  %v647_v1 = vld [vmem:[%s13312_s2 + $0x8] sm:$0xff]  ;;  %v727_v27 = vld [vmem:[%s13313_s13 + $0x10] sm:$0xff]  ;;  %s11851_s24 = smov 96   ;;  %s11852_s23 = smov 88  }
 0x24e   :  { %v725_v3 = vld [vmem:[%s13313_s13] sm:$0xff]  ;;  %v10476_v5 = vpack.c.bf16 %v647_v1, %v646_v0  ;;  %v726_v7 = vld [vmem:[%s13313_s13 + $0x8] sm:$0xff]  ;;  %v549_v10 = vstv %s548_s30  ;;  %v556_v11 = vstv %s9405_s15  ;;  %s13315_s20 = sld [smem:[#allocation72_spill]]  ;;  %s11853_s9 = smov 56  }
 0x24f   :  { %v10479_v8 = vpack.c.bf16 %v726_v7, %v725_v3  ;;  %vm550_vm2 = vcmp.eq.s32.totalorder %v12308_v9, %v549_v10  ;;  %vm557_vm3 = vcmp.eq.s32.totalorder %v12308_v9, %v556_v11  ;;  %v562_v12 = vstv %s9407_s16  ;;  %v728_v28 = vld [vmem:[%s13313_s13 + $0x18] sm:$0xff]  ;;  %s11854_s26 = smov 64   ;;  %s11855_s28 = smov 80  }
 0x250   :  { %10477 = vmatpush3.bf16.msra.mxu0 %v10476_v5  ;;  %v568_v13 = vstv %s9409_s12  ;;  %v9404_v14 = vsel %vm550_vm2, 1.0, %v11849_v6  ;;  %v9406_v15 = vsel %vm557_vm3, 1.0, %v11849_v6  ;;  %vm563_vm4 = vcmp.eq.s32.totalorder %v12308_v9, %v562_v12  ;;  %s11856_s27 = smov 112   ;;  %s11857_s1 = smov 72  }
 0x251   :  { %9943 = vmatprep.subr.mxu0 %v11849_v6  ;;  %10480 = vmatpush3.bf16.msra.mxu1 %v10479_v8  ;;  %vm569_vm5 = vcmp.eq.s32.totalorder %v12308_v9, %v568_v13  ;;  %554 = vst.msk [vmem:[#allocation2] sm:$0x1] %vm553_vm1, %v9404_v14  ;;  %560 = vst.msk [vmem:[#allocation2 + $0x1] sm:$0x1] %vm553_vm1, %v9406_v15  ;;  %v9408_v16 = vsel %vm563_vm4, 1.0, %v11849_v6  ;;  %v574_v18 = vstv %s9411_s5  ;;  %v580_v19 = vstv %s9413_s18  ;;  %s11858_s3 = smov 104  }
 0x252   :  { %10481 = vmatprep.subr.bf16.mxu1 %v11847_v4  ;;  %v9410_v17 = vsel %vm569_vm5, 1.0, %v11849_v6  ;;  %566 = vst.msk [vmem:[#allocation2 + $0x2] sm:$0x1] %vm553_vm1, %v9408_v16  ;;  %vm575_vm6 = vcmp.eq.s32.totalorder %v12308_v9, %v574_v18  ;;  %vm581_vm7 = vcmp.eq.s32.totalorder %v12308_v9, %v580_v19  ;;  %v586_v20 = vstv %s9415_s0  ;;  %v723_v31 = vld [vmem:[%s13314_s8] sm:$0xff]  ;;  %s11859_s25 = smov 48   ;;  %s11860_s10 = smov 40  }
 0x253   :  { %572 = vst.msk [vmem:[#allocation2 + $0x3] sm:$0x1] %vm553_vm1, %v9410_v17  ;;  %v592_v21 = vstv %s9417_s4  ;;  %v9412_v22 = vsel %vm575_vm6, 1.0, %v11849_v6  ;;  %v9414_v23 = vsel %vm581_vm7, 1.0, %v11849_v6  ;;  %vm587_vm8 = vcmp.eq.s32.totalorder %v12308_v9, %v586_v20  ;;  %s13316_s11 = sld [smem:[#allocation74_spill]]  ;;  %s13317_s21 = sld [smem:[#allocation76_spill]] }
 0x254   :  { %vm593_vm9 = vcmp.eq.s32.totalorder %v12308_v9, %v592_v21  ;;  %578 = vst.msk [vmem:[#allocation2 + $0x4] sm:$0x1] %vm553_vm1, %v9412_v22  ;;  %584 = vst.msk [vmem:[#allocation2 + $0x5] sm:$0x1] %vm553_vm1, %v9414_v23  ;;  %v9416_v24 = vsel %vm587_vm8, 1.0, %v11849_v6  ;;  %v10482_v29 = vpack.c.bf16 %v728_v28, %v727_v27  ;;  %v811_v60 = vld [vmem:[%s13315_s20 + $0x8] sm:$0xff] }
 0x255   :  { %v9418_v25 = vsel %vm593_vm9, 1.0, %v11849_v6  ;;  %590 = vst.msk [vmem:[#allocation2 + $0x6] sm:$0x1] %vm553_vm1, %v9416_v24  ;;  %v810_v8 = vld [vmem:[%s13315_s20] sm:$0xff]  ;;  %s13318_s14 = sld [smem:[#allocation77_spill]]  ;;  %s597_s2 = sld [smem:[#allocation9]] }
 0x256   :  { %596 = vst.msk [vmem:[#allocation2 + $0x7] sm:$0x1] %vm553_vm1, %v9418_v25  ;;  %10483 = vmatpush3.bf16.msra.mxu1 %v10482_v29  ;;  %s9422_s30 = sld [smem:[#allocation9 + $0x2]]  ;;  %s9424_s15 = sld [smem:[#allocation9 + $0x3]] }
 0x257   :  { %9953 = vmatprep.subr.mxu1 %v11849_v6  ;;  %s9426_s16 = sld [smem:[#allocation9 + $0x4]]  ;;  %s9428_s12 = sld [smem:[#allocation9 + $0x5]] }
 0x258   :  { %s12575_s5 = sld [smem:[#allocation9 + $0x6]]  ;;  %s12577_s18 = sld [smem:[#allocation9 + $0x7]] }
 0x259   :  { %s13319_s0 = sld [smem:[#allocation69_spill]]  ;;  %s13320_s4 = sld [smem:[#allocation79_spill]] }
 0x25d   :  { %v645_v26 = vld [vmem:[#allocation2] sm:$0xff] }
 0x25e   :  { %9930 = vmatmul.mubr.msk.f32.vlgmr.msra.gmra.mrb[0].mxu0 %vm648_vm10, %v645_v26 }
 0x25f   :  { %9945 = vmatprep.mubr.msk.f32.mxu0 %vm11848_vm0, %v11849_v6 }
 0x331   :  { %v718_v30 = vpop.f32.mrb[0].mxu0 }
 0x332   :  { %v722_v32 = vmul.f32 5.656854, %v718_v30  ;;  %v9931_v33 = vpop.f32.mrb[1].mxu0 }
 0x334   :  { %v12343_v34 = vadd.f32 %v723_v31, %v722_v32 }
 0x336   :  { %9941 = vmatmul.mubr.msk.f32.vlgmr.msra.gmra.mrb[0].mxu1 %vm736_vm11, %v12343_v34 }
 0x337   :  { %9955 = vmatprep.mubr.msk.f32.mxu1 %vm11848_vm0, %v11849_v6 }
 0x409   :  { %v806_v36 = vpop.f32.mrb[0].mxu1 }
 0x40a   :  { %v12349_v37 = vadd.f32 %v9435_v35, %v806_v36  ;;  %v9942_v38 = vpop.f32.mrb[1].mxu1 }
 0x40b   :  { %v812_v38 = vld [vmem:[%s13315_s20 + $0x10] sm:$0xff] }
 0x40c   :  { %981 = vrot.lane.b32.xlu1 %v12349_v37, %s11850_s22  ;;  %816 = vrot.lane.b32.xlu0 %v12349_v37, %s11851_s24 }
 0x410   :  { %983 = vrot.lane.b32.xlu0 %v12349_v37, %s11852_s23 }
 0x47e   :  { %v817_v39 = vpop.permute.xlu0 %816  ;;  %v982_v41 = vpop.permute.xlu1 %981 }
 0x47f   :  { %9944 = vmatpush3.xpose.msk.msra.mxu0 %vm818_vm12, %v817_v39 }
 0x480   :  { %9948 = vmatprep.subr.mxu0 %v11849_v6 }
 0x482   :  { %9946 = vmatmul.mubr.msk.f32.vlgmr.msra.gmra.mrb[2].mxu0 %vm818_vm12, %v12349_v37  ;;  %v984_v40 = vpop.permute.xlu0 %983 }
 0x483   :  { %9954 = vmatpush3.xpose.msk.msra.mxu1 %vm818_vm12, %v984_v40  ;;  %9950 = vmatprep.mubr.msk.f32.mxu0 %vm11848_vm0, %v11849_v6 }
 0x484   :  { %9963 = vmatprep.subr.mxu1 %v11849_v6 }
 0x486   :  { %9956 = vmatmul.mubr.msk.f32.vlgmr.msra.gmra.mrb[2].mxu1 %vm818_vm12, %v982_v41 }
 0x487   :  { %9965 = vmatprep.mubr.msk.f32.mxu1 %vm11848_vm0, %v11849_v6  ;;  %9964 = vmatpush3.msra.mxu1 %v811_v60 }
 0x488   :  { %9973 = vmatprep.subr.mxu1 %v11849_v6 }
 0x555   :  { %v889_v42 = vpop.f32.mrb[2].mxu0 }
 0x556   :  { %v893_v43 = vmul.f32 0.35355338, %v889_v42  ;;  %v9947_v44 = vpop.f32.mrb[3].mxu0 }
 0x558   :  { %v894_v45 = vsel %vm818_vm12, %v893_v43, -inf }
 0x559   :  { %v1055_v46 = vpop.f32.mrb[2].mxu1  ;;  %895 = vmax.xlane.f32.xlu1 %v894_v45 }
 0x55a   :  { %v1059_v47 = vmul.f32 0.35355338, %v1055_v46  ;;  %v9957_v48 = vpop.f32.mrb[3].mxu1 }
 0x55c   :  { %v1060_v49 = vsel %vm818_vm12, %v1059_v47, -inf }
 0x55d   :  { %1061 = vmax.xlane.f32.xlu0 %v1060_v49 }
 0x5e6   :  { %v896_v50 = vpop.xlane.xlu1 %895 }
 0x5e7   :  { %v897_v51 = vsub.f32 %v893_v43, %v896_v50 }
 0x5e9   :  { %v898_v52 = vmul.f32 1.442695, %v897_v51  ;;  %v813_v51 = vld [vmem:[%s13315_s20 + $0x18] sm:$0xff] }
 0x5ea   :  { %v1062_v53 = vpop.xlane.xlu0 %1061 }
 0x5eb   :  { %11017 = vpow2.f32 %v898_v52  ;;  %v1063_v54 = vsub.f32 %v1059_v47, %v1062_v53 }
 0x5ed   :  { %v1064_v55 = vmul.f32 1.442695, %v1063_v54 }
 0x5ef   :  { %11019 = vpow2.f32 %v1064_v55 }
 0x5f5   :  { %v11018_v56 = vpop.eup %11017 }
 0x5f6   :  { %v900_v57 = vsel %vm818_vm12, %v11018_v56, 0.0 }
 0x5f7   :  { %901 = vadd.xlane.f32.xlu0 %v900_v57 }
 0x5f9   :  { %v11020_v58 = vpop.eup %11019 }
 0x5fa   :  { %v1066_v59 = vsel %vm818_vm12, %v11020_v58, 0.0 }
 0x5fb   :  { %1067 = vadd.xlane.f32.xlu1 %v1066_v59  ;;  %v9453_v59 = vld [vmem:[#allocation12] ss:$0 sm:$0xff] }
 0x60c   :  { %1071 = vrot.lane.b32.xlu1 %v12349_v37, %s11853_s9 }
 0x60d   :  { %905 = vrot.lane.b32.xlu0 %v12349_v37, %s11854_s26 }
 0x610   :  { %1295 = vrot.lane.b32.xlu1 %v12349_v37, %s11855_s28 }
 0x611   :  { %1293 = vrot.lane.b32.xlu0 %v12349_v37, %s11856_s27 }
 0x684   :  { %v902_v61 = vpop.xlane.xlu0 %901 }
 0x685   :  { %11021 = vrcp.f32 %v902_v61 }
 0x688   :  { %v906_v62 = vpop.permute.xlu0 %905  ;;  %v1068_v63 = vpop.xlane.xlu1 %1067 }
 0x689   :  { %11023 = vrcp.f32 %v1068_v63  ;;  %9949 = vmatpush3.msra.mxu0 %v906_v62 }
 0x68a   :  { %9958 = vmatprep.subr.mxu0 %v11849_v6 }
 0x68c   :  { %v1072_v3 = vpop.permute.xlu1 %1071  ;;  %v1294_v15 = vpop.permute.xlu0 %1293 }
 0x68f   :  { %v11022_v0 = vpop.eup %11021 }
 0x690   :  { %v904_v1 = vmul.f32 %v11022_v0, %v11018_v56  ;;  %v1296_v13 = vpop.permute.xlu1 %1295 }
 0x692   :  { %9951 = vmatmul.mubr.msk.f32.vlgmr.msra.gmra.mrb[4].mxu0 %vm818_vm12, %v904_v1 }
 0x693   :  { %v11024_v5 = vpop.eup %11023  ;;  %9959 = vmatpush3.msra.mxu0 %v1072_v3  ;;  %9960 = vmatprep.mubr.msk.f32.mxu0 %vm11848_vm0, %v11849_v6 }
 0x694   :  { %v1070_v7 = vmul.f32 %v11024_v5, %v11020_v58  ;;  %9968 = vmatprep.subr.mxu0 %v11849_v6 }
 0x696   :  { %9961 = vmatmul.mubr.msk.f32.vlgmr.msra.gmra.mrb[6].mxu0 %vm818_vm12, %v1070_v7 }
 0x697   :  { %9970 = vmatprep.mubr.msk.f32.mxu0 %vm11848_vm0, %v11849_v6  ;;  %9969 = vmatpush3.msra.mxu0 %v810_v8 }
 0x698   :  { %9978 = vmatprep.subr.mxu0 %v11849_v6 }
 0x765   :  { %v977_v10 = vpop.f32.mrb[4].mxu0 }
 0x766   :  { %v9952_v11 = vpop.f32.mrb[5].mxu0  ;;  %9971 = vmatmul.mubr.msk.f32.vlgmr.msra.gmra.mrb[8].mxu0 %vm818_vm12, %v977_v10 }
 0x767   :  { %9980 = vmatprep.mubr.msk.f32.mxu0 %vm11848_vm0, %v11849_v6  ;;  %v1811_v11 = vld [vmem:[%s13316_s11] sm:$0xff] }
 0x769   :  { %v1143_v12 = vpop.f32.mrb[6].mxu0 }
 0x76a   :  { %v9962_v14 = vpop.f32.mrb[7].mxu0  ;;  %9966 = vmatmul.mubr.msk.f32.vlgmr.msra.gmra.mrb[4].mxu1 %vm818_vm12, %v1143_v12  ;;  %v1812_v12 = vld [vmem:[%s13316_s11 + $0x8] sm:$0xff] }
 0x76b   :  { %9974 = vmatpush3.xpose.msk.msra.mxu1 %vm818_vm12, %v1296_v13  ;;  %9975 = vmatprep.mubr.msk.f32.mxu1 %vm11848_vm0, %v11849_v6  ;;  %v10485_v13 = vpack.c.bf16 %v1812_v12, %v1811_v11  ;;  %v1813_v14 = vld [vmem:[%s13316_s11 + $0x10] sm:$0xff] }
 0x76c   :  { %9983 = vmatprep.subr.mxu1 %v11849_v6 }
 0x76e   :  { %9976 = vmatmul.mubr.msk.f32.vlgmr.msra.gmra.mrb[6].mxu1 %vm818_vm12, %v1294_v15  ;;  %v1814_v15 = vld [vmem:[%s13316_s11 + $0x18] sm:$0xff] }
 0x76f   :  { %9985 = vmatprep.mubr.msk.f32.mxu1 %vm11848_vm0, %v11849_v6  ;;  %9984 = vmatpush3.msra.mxu1 %v812_v38  ;;  %v9458_v38 = vld [vmem:[#allocation18] ss:$0 sm:$0xff] }
 0x770   :  { %9993 = vmatprep.subr.mxu1 %v11849_v6 }
 0x839   :  { %v1289_v16 = vpop.f32.mrb[8].mxu0 }
 0x83a   :  { %v9972_v17 = vpop.f32.mrb[9].mxu0 }
 0x83b   :  { %v1897_v17 = vld [vmem:[%s13317_s21 + $0x8] sm:$0xff] }
 0x83d   :  { %v1216_v18 = vpop.f32.mrb[4].mxu1 }
 0x83e   :  { %v12403_v19 = vadd.f32 %v1289_v16, %v1216_v18  ;;  %v9967_v20 = vpop.f32.mrb[5].mxu1  ;;  %v1896_v16 = vld [vmem:[%s13317_s21] sm:$0xff] }
 0x83f   :  { %v10491_v18 = vpack.c.bf16 %v1897_v17, %v1896_v16 }
 0x841   :  { %v1367_v21 = vpop.f32.mrb[6].mxu1 }
 0x842   :  { %v1371_v22 = vmul.f32 0.35355338, %v1367_v21  ;;  %v9977_v23 = vpop.f32.mrb[7].mxu1 }
 0x843   :  { %v9454_v23 = vld [vmem:[#allocation14] ss:$0 sm:$0xff] }
 0x844   :  { %v1372_v24 = vsel %vm818_vm12, %v1371_v22, -inf }
 0x845   :  { %1373 = vmax.xlane.f32.xlu1 %v1372_v24 }
 0x856   :  { %1535 = vrot.lane.b32.xlu1 %v12349_v37, %s11857_s1 }
 0x85a   :  { %1533 = vrot.lane.b32.xlu1 %v12349_v37, %s11858_s3 }
 0x8d2   :  { %v1374_v25 = vpop.xlane.xlu1 %1373 }
 0x8d3   :  { %v1375_v26 = vsub.f32 %v1371_v22, %v1374_v25  ;;  %v9455_v25 = vld [vmem:[#allocation15] ss:$0 sm:$0xff] }
 0x8d5   :  { %v1376_v27 = vmul.f32 1.442695, %v1375_v26 }
 0x8d6   :  { %v1536_v33 = vpop.permute.xlu1 %1535 }
 0x8d7   :  { %11025 = vpow2.f32 %v1376_v27 }
 0x8da   :  { %v1534_v36 = vpop.permute.xlu1 %1533 }
 0x8e1   :  { %v11026_v28 = vpop.eup %11025 }
 0x8e2   :  { %v1378_v29 = vsel %vm818_vm12, %v11026_v28, 0.0 }
 0x8e3   :  { %1379 = vadd.xlane.f32.xlu0 %v1378_v29  ;;  %v1899_v29 = vld [vmem:[%s13317_s21 + $0x18] sm:$0xff] }
 0x8f9   :  { %1383 = vrot.lane.b32.xlu0 %v12349_v37, %s11859_s25 }
 0x970   :  { %v1380_v30 = vpop.xlane.xlu0 %1379 }
 0x971   :  { %11027 = vrcp.f32 %v1380_v30 }
 0x974   :  { %v1384_v31 = vpop.permute.xlu0 %1383 }
 0x975   :  { %9979 = vmatpush3.msra.mxu0 %v1384_v31  ;;  %v9456_v31 = vld [vmem:[#allocation17] ss:$0 sm:$0xff] }
 0x976   :  { %9988 = vmatprep.subr.mxu0 %v11849_v6 }
 0x97b   :  { %v11028_v32 = vpop.eup %11027 }
 0x97c   :  { %v1382_v35 = vmul.f32 %v11028_v32, %v11026_v28  ;;  %v1898_v28 = vld [vmem:[%s13317_s21 + $0x10] sm:$0xff] }
 0x97d   :  { %v10494_v30 = vpack.c.bf16 %v1899_v29, %v1898_v28 }
 0x97e   :  { %9981 = vmatmul.mubr.msk.f32.vlgmr.msra.gmra.mrb[10].mxu0 %vm818_vm12, %v1382_v35 }
 0x97f   :  { %9989 = vmatpush3.xpose.msk.msra.mxu0 %vm818_vm12, %v1536_v33  ;;  %9990 = vmatprep.mubr.msk.f32.mxu0 %vm11848_vm0, %v11849_v6 }
 0x980   :  { %9998 = vmatprep.subr.mxu0 %v11849_v6 }
 0x982   :  { %9991 = vmatmul.mubr.msk.f32.vlgmr.msra.gmra.mrb[12].mxu0 %vm818_vm12, %v1534_v36 }
 0x983   :  { %10000 = vmatprep.mubr.msk.f32.mxu0 %vm11848_vm0, %v11849_v6  ;;  %9999 = vmatpush3.msra.mxu0 %v813_v51 }
 0x984   :  { %10490 = vmatprep.subr.bf16.mxu0 %v11847_v4 }
 0xa51   :  { %v1455_v39 = vpop.f32.mrb[10].mxu0 }
 0xa52   :  { %v9982_v40 = vpop.f32.mrb[11].mxu0  ;;  %9986 = vmatmul.mubr.msk.f32.vlgmr.msra.gmra.mrb[8].mxu1 %vm818_vm12, %v1455_v39 }
 0xa53   :  { %9995 = vmatprep.mubr.msk.f32.mxu1 %vm11848_vm0, %v11849_v6 }
 0xa55   :  { %v1607_v41 = vpop.f32.mrb[12].mxu0 }
 0xa56   :  { %v1611_v42 = vmul.f32 0.35355338, %v1607_v41  ;;  %v9992_v43 = vpop.f32.mrb[13].mxu0 }
 0xa58   :  { %v1612_v44 = vsel %vm818_vm12, %v1611_v42, -inf }
 0xa59   :  { %1613 = vmax.xlane.f32.xlu0 %v1612_v44 }
 0xa6f   :  { %1623 = vrot.lane.b32.xlu0 %v12349_v37, %s11860_s10 }
 0xae6   :  { %v1614_v45 = vpop.xlane.xlu0 %1613 }
 0xae7   :  { %v1615_v46 = vsub.f32 %v1611_v42, %v1614_v45 }
 0xae9   :  { %v1616_v47 = vmul.f32 1.442695, %v1615_v46 }
 0xaea   :  { %v1624_v48 = vpop.permute.xlu0 %1623 }
 0xaeb   :  { %11029 = vpow2.f32 %v1616_v47  ;;  %9994 = vmatpush3.msra.mxu1 %v1624_v48 }
 0xaec   :  { %10484 = vmatprep.subr.bf16.mxu1 %v11847_v4 }
 0xaf5   :  { %v11030_v49 = vpop.eup %11029 }
 0xaf6   :  { %v1618_v50 = vsel %vm818_vm12, %v11030_v49, 0.0 }
 0xaf7   :  { %1619 = vadd.xlane.f32.xlu1 %v1618_v50  ;;  %v9463_v50 = vld [vmem:[%s13313_s13 + $0x28] sm:$0xff] }
 0xb25   :  { %v1528_v52 = vpop.f32.mrb[8].mxu1 }
 0xb26   :  { %v1532_v53 = vadd.f32 %v1528_v52, %v12403_v19  ;;  %v9987_v37 = vpop.f32.mrb[9].mxu1  ;;  %v9464_v52 = vld [vmem:[%s13313_s13 + $0x30] sm:$0xff] }
 0xb84   :  { %v1620_v54 = vpop.xlane.xlu1 %1619 }
 0xb85   :  { %11031 = vrcp.f32 %v1620_v54 }
 0xb8f   :  { %v11032_v55 = vpop.eup %11031 }
 0xb90   :  { %v1622_v56 = vmul.f32 %v11032_v55, %v11030_v49  ;;  %v9462_v49 = vld [vmem:[%s13313_s13 + $0x20] sm:$0xff] }
 0xb91   :  { %v10497_v51 = vpack.c.bf16 %v9463_v50, %v9462_v49 }
 0xb92   :  { %9996 = vmatmul.mubr.msk.f32.vlgmr.msra.gmra.mrb[10].mxu1 %vm818_vm12, %v1622_v56 }
 0xb93   :  { %10011 = vmatprep.mubr.msk.f32.mxu1 %vm11848_vm0, %v11849_v6  ;;  %10486 = vmatpush3.bf16.msra.mxu1 %v10485_v13 }
 0xb94   :  { %10487 = vmatprep.subr.bf16.mxu1 %v11847_v4 }
 0xc65   :  { %v1695_v57 = vpop.f32.mrb[10].mxu1 }
 0xc66   :  { %v9997_v58 = vpop.f32.mrb[11].mxu1  ;;  %10001 = vmatmul.mubr.msk.f32.vlgmr.msra.gmra.mrb[14].mxu0 %vm818_vm12, %v1695_v57 }
 0xc67   :  { %10022 = vmatprep.mubr.msk.f32.mxu0 %vm11848_vm0, %v11849_v6  ;;  %10492 = vmatpush3.bf16.msra.mxu0 %v10491_v18  ;;  %v9460_v58 = vld [vmem:[%s13318_s14] ss:$0 sm:$0xff] }
 0xc68   :  { %10493 = vmatprep.subr.bf16.mxu0 %v11847_v4 }
 0xc6b   :  { %10495 = vmatpush3.bf16.msra.mxu0 %v10494_v30 }
 0xc6c   :  { %10036 = vmatprep.subr.mxu0 %v11849_v6 }
 0xd39   :  { %v1768_v60 = vpop.f32.mrb[14].mxu0 }
 0xd3a   :  { %v1772_v61 = vadd.f32 %v1768_v60, %v1532_v53  ;;  %v10002_v62 = vpop.f32.mrb[15].mxu0  ;;  %v9465_v53 = vld [vmem:[%s13313_s13 + $0x38] sm:$0xff]  ;;  %s9420_s13 = sld [smem:[#allocation9 + $0x1]] }
 0xd3b   :  { %v10500_v37 = vpack.c.bf16 %v9465_v53, %v9464_v52  ;;  %v9461_v60 = vld [vmem:[#allocation20] ss:$0 sm:$0xff] }
 0xd3c   :  { %v1779_v63 = vadd.f32 %v9453_v59, %v1772_v61 }
 0xd3e   :  { %v1780_v0 = vadd.f32 %v1779_v63, %v12343_v34  ;;  %v10488_v34 = vpack.c.bf16 %v1814_v15, %v1813_v14  ;;  %v9466_v63 = vld [vmem:[#allocation11 + $0x1] ss:$0 sm:$0xff] }
 0xd40   :  { %v1783_v1 = vsel %vm736_vm11, %v1780_v0, 0.0  ;;  %10489 = vmatpush3.bf16.msra.mxu1 %v10488_v34 }
 0xd41   :  { %1784 = vadd.xlane.f32.xlu1 %v1783_v1  ;;  %10496 = vmatprep.subr.bf16.mxu1 %v11847_v4 }
 0xdce   :  { %v1785_v3 = vpop.xlane.xlu1 %1784 }
 0xdcf   :  { %v1787_v5 = vmul.f32 0.03125, %v1785_v3 }
 0xdd1   :  { %v1788_v7 = vsub.f32 %v1780_v0, %v1787_v5 }
 0xdd3   :  { %v1789_v8 = vmul.f32 %v1788_v7, %v1788_v7 }
 0xdd5   :  { %v1790_v10 = vsel %vm736_vm11, %v1789_v8, 0.0 }
 0xdd6   :  { %1791 = vadd.xlane.f32.xlu1 %v1790_v10 }
 0xe63   :  { %v1792_v19 = vpop.xlane.xlu1 %1791 }
 0xe64   :  { %v1793_v20 = vmul.f32 0.03125, %v1792_v19 }
 0xe66   :  { %v1794_v21 = vadd.f32 1e-05, %v1793_v20 }
 0xe68   :  { %11033 = vrsqrt.f32 %v1794_v21 }
 0xe72   :  { %v11034_v22 = vpop.eup %11033 }
 0xe73   :  { %v1796_v24 = vmul.f32 %v11034_v22, %v1788_v7 }
 0xe75   :  { %v1803_v26 = vmul.f32 %v9454_v23, %v1796_v24 }
 0xe77   :  { %v1810_v27 = vadd.f32 %v9455_v25, %v1803_v26 }
 0xe79   :  { %10012 = vmatmul.mubr.msk.f32.vlgmr.msra.gmra.mrb[12].mxu1 %vm736_vm11, %v1810_v27 }
 0xe7a   :  { %10033 = vmatprep.mubr.msk.f32.mxu1 %vm11848_vm0, %v11849_v6  ;;  %10498 = vmatpush3.bf16.msra.mxu1 %v10497_v51 }
 0xe7b   :  { %10499 = vmatprep.subr.bf16.mxu1 %v11847_v4 }
 0xe7e   :  { %10501 = vmatpush3.bf16.msra.mxu1 %v10500_v37 }
 0xe7f   :  { %10046 = vmatprep.subr.mxu1 %v11849_v6 }
 0xf4c   :  { %v1891_v32 = vpop.f32.mrb[12].mxu1 }
 0xf4d   :  { %v1892_v33 = vadd.f32 %v9456_v31, %v1891_v32  ;;  %v10013_v35 = vpop.f32.mrb[13].mxu1 }
 0xf4f   :  { %v1895_v36 = vmax.f32 %v1892_v33, 0.0 }
 0xf51   :  { %10023 = vmatmul.mubr.msk.f32.vlgmr.msra.gmra.mrb[16].mxu0 %vm736_vm11, %v1895_v36 }
 0xf52   :  { %10038 = vmatprep.mubr.msk.f32.mxu0 %vm11848_vm0, %v11849_v6 }
0x1024   :  { %v1976_v39 = vpop.f32.mrb[16].mxu0 }
0x1025   :  { %v1977_v40 = vadd.f32 %v9458_v38, %v1976_v39  ;;  %v10024_v41 = vpop.f32.mrb[17].mxu0  ;;  %v9468_v38 = vld [vmem:[%s13315_s20 + $0x20] sm:$0xff] }
0x1027   :  { %v1980_v42 = vadd.f32 %v1977_v40, %v1810_v27  ;;  %v9469_v27 = vld [vmem:[%s13315_s20 + $0x28] sm:$0xff] }
0x1029   :  { %v1983_v43 = vsel %vm736_vm11, %v1980_v42, 0.0 }
0x102a   :  { %1984 = vadd.xlane.f32.xlu1 %v1983_v43 }
0x10b7   :  { %v1985_v44 = vpop.xlane.xlu1 %1984 }
0x10b8   :  { %v1986_v45 = vmul.f32 0.03125, %v1985_v44 }
0x10ba   :  { %v1987_v46 = vsub.f32 %v1980_v42, %v1986_v45 }
0x10bc   :  { %v1988_v47 = vmul.f32 %v1987_v46, %v1987_v46 }
0x10be   :  { %v1989_v48 = vsel %vm736_vm11, %v1988_v47, 0.0 }
0x10bf   :  { %1990 = vadd.xlane.f32.xlu1 %v1989_v48 }
0x114c   :  { %v1991_v54 = vpop.xlane.xlu1 %1990 }
0x114d   :  { %v1992_v55 = vmul.f32 0.03125, %v1991_v54 }
0x114f   :  { %v1993_v56 = vadd.f32 1e-05, %v1992_v55 }
0x1151   :  { %11035 = vrsqrt.f32 %v1993_v56 }
0x115b   :  { %v11036_v57 = vpop.eup %11035 }
0x115c   :  { %v1995_v59 = vmul.f32 %v11036_v57, %v1987_v46 }
0x115e   :  { %v2002_v61 = vmul.f32 %v9460_v58, %v1995_v59 }
0x1160   :  { %v12471_v62 = vadd.f32 %v9461_v60, %v2002_v61 }
0x1162   :  { %10034 = vmatmul.mubr.msk.f32.vlgmr.msra.gmra.mrb[14].mxu1 %vm736_vm11, %v12471_v62 }
0x1163   :  { %10048 = vmatprep.mubr.msk.f32.mxu1 %vm11848_vm0, %v11849_v6 }
0x1235   :  { %v2092_v0 = vpop.f32.mrb[14].mxu1 }
0x1236   :  { %v12477_v1 = vadd.f32 %v9466_v63, %v2092_v0  ;;  %v10035_v3 = vpop.f32.mrb[15].mxu1 }
0x1237   :  { %v9470_v3 = vld [vmem:[%s13315_s20 + $0x30] sm:$0xff] }
0x1238   :  { %2270 = vrot.lane.b32.xlu0 %v12477_v1, %s11852_s23  ;;  %2104 = vrot.lane.b32.xlu1 %v12477_v1, %s11851_s24 }
0x123c   :  { %2268 = vrot.lane.b32.xlu0 %v12477_v1, %s11850_s22 }
0x12aa   :  { %v2271_v5 = vpop.permute.xlu0 %2270  ;;  %v2105_v7 = vpop.permute.xlu1 %2104 }
0x12ab   :  { %10037 = vmatpush3.xpose.msk.msra.mxu0 %vm818_vm12, %v2105_v7  ;;  %10047 = vmatpush3.xpose.msk.msra.mxu1 %vm818_vm12, %v2271_v5 }
0x12ac   :  { %10041 = vmatprep.subr.mxu0 %v11849_v6  ;;  %10056 = vmatprep.subr.mxu1 %v11849_v6 }
0x12ae   :  { %v2269_v8 = vpop.permute.xlu0 %2268  ;;  %10039 = vmatmul.mubr.msk.f32.vlgmr.msra.gmra.mrb[18].mxu0 %vm818_vm12, %v12477_v1 }
0x12af   :  { %10049 = vmatmul.mubr.msk.f32.vlgmr.msra.gmra.mrb[16].mxu1 %vm818_vm12, %v2269_v8  ;;  %10043 = vmatprep.mubr.msk.f32.mxu0 %vm11848_vm0, %v11849_v6 }
0x12b0   :  { %10058 = vmatprep.mubr.msk.f32.mxu1 %vm11848_vm0, %v11849_v6  ;;  %10057 = vmatpush3.msra.mxu1 %v9469_v27 }
0x12b1   :  { %10066 = vmatprep.subr.mxu1 %v11849_v6 }
0x1381   :  { %v2176_v10 = vpop.f32.mrb[18].mxu0 }
0x1382   :  { %v2180_v11 = vmul.f32 0.35355338, %v2176_v10  ;;  %v10040_v12 = vpop.f32.mrb[19].mxu0  ;;  %v2342_v13 = vpop.f32.mrb[16].mxu1 }
0x1383   :  { %v2346_v14 = vmul.f32 0.35355338, %v2342_v13  ;;  %v10050_v15 = vpop.f32.mrb[17].mxu1 }
0x1384   :  { %v2181_v34 = vsel %vm818_vm12, %v2180_v11, -inf }
0x1385   :  { %2182 = vmax.xlane.f32.xlu0 %v2181_v34  ;;  %v2347_v16 = vsel %vm818_vm12, %v2346_v14, -inf }
0x1386   :  { %2348 = vmax.xlane.f32.xlu1 %v2347_v16 }
0x1397   :  { %2358 = vrot.lane.b32.xlu1 %v12477_v1, %s11853_s9 }
0x139b   :  { %2580 = vrot.lane.b32.xlu1 %v12477_v1, %s11856_s27 }
0x1412   :  { %v2183_v17 = vpop.xlane.xlu0 %2182 }
0x1413   :  { %v2184_v18 = vsub.f32 %v2180_v11, %v2183_v17  ;;  %v2349_v19 = vpop.xlane.xlu1 %2348  ;;  %v9471_v17 = vld [vmem:[%s13315_s20 + $0x38] sm:$0xff]  ;;  %s13322_s20 = sld [smem:[#allocation84_spill]] }
0x1414   :  { %v2350_v20 = vsub.f32 %v2346_v14, %v2349_v19 }
0x1415   :  { %v2185_v21 = vmul.f32 1.442695, %v2184_v18 }
0x1416   :  { %v2351_v22 = vmul.f32 1.442695, %v2350_v20 }
0x1417   :  { %11037 = vpow2.f32 %v2185_v21  ;;  %v2359_v33 = vpop.permute.xlu1 %2358 }
0x1418   :  { %11039 = vpow2.f32 %v2351_v22 }
0x141b   :  { %v2581_v44 = vpop.permute.xlu1 %2580 }
0x1421   :  { %v11038_v23 = vpop.eup %11037 }
0x1422   :  { %v2187_v24 = vsel %vm818_vm12, %v11038_v23, 0.0  ;;  %v11040_v25 = vpop.eup %11039 }
0x1423   :  { %2188 = vadd.xlane.f32.xlu0 %v2187_v24  ;;  %v2353_v26 = vsel %vm818_vm12, %v11040_v25, 0.0 }
0x1427   :  { %2354 = vadd.xlane.f32.xlu0 %v2353_v26  ;;  %v9488_v26 = vld [vmem:[#allocation12 + $0x1] ss:$0 sm:$0xff] }
0x143d   :  { %2192 = vrot.lane.b32.xlu0 %v12477_v1, %s11854_s26 }
0x1441   :  { %2582 = vrot.lane.b32.xlu0 %v12477_v1, %s11855_s28 }
0x14b0   :  { %v2189_v28 = vpop.xlane.xlu0 %2188 }
0x14b1   :  { %11041 = vrcp.f32 %v2189_v28 }
0x14b4   :  { %v2355_v29 = vpop.xlane.xlu0 %2354 }
0x14b5   :  { %11043 = vrcp.f32 %v2355_v29 }
0x14b8   :  { %v2193_v30 = vpop.permute.xlu0 %2192 }
0x14b9   :  { %10042 = vmatpush3.msra.mxu0 %v2193_v30 }
0x14ba   :  { %10051 = vmatprep.subr.mxu0 %v11849_v6 }
0x14bb   :  { %v11042_v31 = vpop.eup %11041 }
0x14bc   :  { %v2191_v32 = vmul.f32 %v11042_v31, %v11038_v23  ;;  %v2583_v42 = vpop.permute.xlu0 %2582 }
0x14be   :  { %10044 = vmatmul.mubr.msk.f32.vlgmr.msra.gmra.mrb[20].mxu0 %vm818_vm12, %v2191_v32 }
0x14bf   :  { %v11044_v35 = vpop.eup %11043  ;;  %10052 = vmatpush3.msra.mxu0 %v2359_v33  ;;  %10053 = vmatprep.mubr.msk.f32.mxu0 %vm11848_vm0, %v11849_v6 }
0x14c0   :  { %v2357_v36 = vmul.f32 %v11044_v35, %v11040_v25  ;;  %10061 = vmatprep.subr.mxu0 %v11849_v6 }
0x14c2   :  { %10054 = vmatmul.mubr.msk.f32.vlgmr.msra.gmra.mrb[22].mxu0 %vm818_vm12, %v2357_v36 }
0x14c3   :  { %10063 = vmatprep.mubr.msk.f32.mxu0 %vm11848_vm0, %v11849_v6  ;;  %10062 = vmatpush3.msra.mxu0 %v9468_v38 }
0x14c4   :  { %10071 = vmatprep.subr.mxu0 %v11849_v6 }
0x1591   :  { %v2264_v39 = vpop.f32.mrb[20].mxu0 }
0x1592   :  { %v10045_v40 = vpop.f32.mrb[21].mxu0  ;;  %10064 = vmatmul.mubr.msk.f32.vlgmr.msra.gmra.mrb[24].mxu0 %vm818_vm12, %v2264_v39 }
0x1593   :  { %10073 = vmatprep.mubr.msk.f32.mxu0 %vm11848_vm0, %v11849_v6  ;;  %v9491_v40 = vld [vmem:[%s13316_s11 + $0x20] sm:$0xff] }
0x1595   :  { %v2430_v41 = vpop.f32.mrb[22].mxu0 }
0x1596   :  { %v10055_v43 = vpop.f32.mrb[23].mxu0  ;;  %10059 = vmatmul.mubr.msk.f32.vlgmr.msra.gmra.mrb[18].mxu1 %vm818_vm12, %v2430_v41  ;;  %v9492_v41 = vld [vmem:[%s13316_s11 + $0x28] sm:$0xff] }
0x1597   :  { %10067 = vmatpush3.xpose.msk.msra.mxu1 %vm818_vm12, %v2583_v42  ;;  %10068 = vmatprep.mubr.msk.f32.mxu1 %vm11848_vm0, %v11849_v6  ;;  %v9493_v42 = vld [vmem:[%s13316_s11 + $0x30] sm:$0xff]  ;;  %v9494_v43 = vld [vmem:[%s13316_s11 + $0x38] sm:$0xff]  ;;  %s13323_s11 = sld [smem:[#allocation83_spill]] }
0x1598   :  { %10076 = vmatprep.subr.mxu1 %v11849_v6 }
0x159a   :  { %10069 = vmatmul.mubr.msk.f32.vlgmr.msra.gmra.mrb[20].mxu1 %vm818_vm12, %v2581_v44  ;;  %v10506_v44 = vpack.c.bf16 %v9494_v43, %v9493_v42 }
0x159b   :  { %10078 = vmatprep.mubr.msk.f32.mxu1 %vm11848_vm0, %v11849_v6  ;;  %10077 = vmatpush3.msra.mxu1 %v9470_v3 }
0x159c   :  { %10086 = vmatprep.subr.mxu1 %v11849_v6 }
0x1665   :  { %v2576_v45 = vpop.f32.mrb[24].mxu0 }
0x1666   :  { %v10065_v46 = vpop.f32.mrb[25].mxu0 }
0x1667   :  { %v604_v46 = vstv %s9420_s13 }
0x1668   :  { %vm605_vm14 = vcmp.eq.s32.totalorder %v12308_v9, %v604_v46 }
0x1669   :  { %v2503_v47 = vpop.f32.mrb[18].mxu1 }
0x166a   :  { %v2577_v48 = vadd.f32 %v2576_v45, %v2503_v47  ;;  %v10060_v49 = vpop.f32.mrb[19].mxu1  ;;  %v598_v45 = vstv %s597_s2  ;;  %v610_v47 = vstv %s9422_s30 }
0x166b   :  { %vm599_vm13 = vcmp.eq.s32.totalorder %v12308_v9, %v598_v45  ;;  %vm611_vm15 = vcmp.eq.s32.totalorder %v12308_v9, %v610_v47 }
0x166c   :  { %v9419_v49 = vsel %vm599_vm13, 1.0, %v11849_v6 }
0x166d   :  { %v2654_v50 = vpop.f32.mrb[20].mxu1  ;;  %602 = vst.msk [vmem:[#allocation3] sm:$0x1] %vm553_vm1, %v9419_v49 }
0x166e   :  { %v2658_v51 = vmul.f32 0.35355338, %v2654_v50  ;;  %v10070_v52 = vpop.f32.mrb[21].mxu1  ;;  %v9421_v50 = vsel %vm605_vm14, 1.0, %v11849_v6 }
0x166f   :  { %608 = vst.msk [vmem:[#allocation3 + $0x1] sm:$0x1] %vm553_vm1, %v9421_v50 }
0x1670   :  { %v2659_v53 = vsel %vm818_vm12, %v2658_v51, -inf }
0x1671   :  { %2660 = vmax.xlane.f32.xlu0 %v2659_v53  ;;  %v622_v53 = vstv %s9426_s16 }
0x1672   :  { %vm623_vm3 = vcmp.eq.s32.totalorder %v12308_v9, %v622_v53 }
0x1687   :  { %2670 = vrot.lane.b32.xlu0 %v12477_v1, %s11859_s25 }
0x168b   :  { %2820 = vrot.lane.b32.xlu0 %v12477_v1, %s11858_s3 }
0x16fe   :  { %v2661_v37 = vpop.xlane.xlu0 %2660 }
0x16ff   :  { %v2662_v54 = vsub.f32 %v2658_v51, %v2661_v37  ;;  %v9423_v51 = vsel %vm611_vm15, 1.0, %v11849_v6  ;;  %v628_v37 = vstv %s9428_s12 }
0x1700   :  { %614 = vst.msk [vmem:[#allocation3 + $0x2] sm:$0x1] %vm553_vm1, %v9423_v51  ;;  %vm629_vm4 = vcmp.eq.s32.totalorder %v12308_v9, %v628_v37 }
0x1701   :  { %v2663_v55 = vmul.f32 1.442695, %v2662_v54  ;;  %v634_v54 = vstv %s12575_s5 }
0x1702   :  { %v2671_v56 = vpop.permute.xlu0 %2670  ;;  %vm635_vm5 = vcmp.eq.s32.totalorder %v12308_v9, %v634_v54 }
0x1703   :  { %11045 = vpow2.f32 %v2663_v55  ;;  %10072 = vmatpush3.msra.mxu0 %v2671_v56  ;;  %v640_v55 = vstv %s12577_s18  ;;  %v9427_v56 = vsel %vm623_vm3, 1.0, %v11849_v6 }
0x1704   :  { %10081 = vmatprep.subr.mxu0 %v11849_v6  ;;  %626 = vst.msk [vmem:[#allocation3 + $0x4] sm:$0x1] %vm553_vm1, %v9427_v56  ;;  %vm641_vm6 = vcmp.eq.s32.totalorder %v12308_v9, %v640_v55 }
0x1706   :  { %v2821_v0 = vpop.permute.xlu0 %2820 }
0x170d   :  { %v11046_v57 = vpop.eup %11045 }
0x170e   :  { %v2665_v58 = vsel %vm818_vm12, %v11046_v57, 0.0 }
0x170f   :  { %2666 = vadd.xlane.f32.xlu1 %v2665_v58  ;;  %v9431_v58 = vsel %vm635_vm5, 1.0, %v11849_v6 }
0x1710   :  { %638 = vst.msk [vmem:[#allocation3 + $0x6] sm:$0x1] %vm553_vm1, %v9431_v58 }
0x1720   :  { %2822 = vrot.lane.b32.xlu1 %v12477_v1, %s11857_s1 }
0x179c   :  { %v2667_v59 = vpop.xlane.xlu1 %2666 }
0x179d   :  { %11047 = vrcp.f32 %v2667_v59  ;;  %v9433_v59 = vsel %vm641_vm6, 1.0, %v11849_v6 }
0x179e   :  { %644 = vst.msk [vmem:[#allocation3 + $0x7] sm:$0x1] %vm553_vm1, %v9433_v59 }
0x17a0   :  { %v2823_v63 = vpop.permute.xlu1 %2822 }
0x17a7   :  { %v11048_v60 = vpop.eup %11047 }
0x17a8   :  { %v2669_v61 = vmul.f32 %v11048_v60, %v11046_v57  ;;  %v9429_v57 = vsel %vm629_vm4, 1.0, %v11849_v6  ;;  %v9497_v60 = vld [vmem:[%s13317_s21 + $0x20] sm:$0xff] }
0x17a9   :  { %632 = vst.msk [vmem:[#allocation3 + $0x5] sm:$0x1] %vm553_vm1, %v9429_v57 }
0x17aa   :  { %10074 = vmatmul.mubr.msk.f32.vlgmr.msra.gmra.mrb[26].mxu0 %vm818_vm12, %v2669_v61  ;;  %v9498_v61 = vld [vmem:[%s13317_s21 + $0x28] sm:$0xff] }
0x17ab   :  { %10082 = vmatpush3.xpose.msk.msra.mxu0 %vm818_vm12, %v2823_v63  ;;  %10083 = vmatprep.mubr.msk.f32.mxu0 %vm11848_vm0, %v11849_v6  ;;  %v10509_v63 = vpack.c.bf16 %v9498_v61, %v9497_v60 }
0x17ac   :  { %10091 = vmatprep.subr.mxu0 %v11849_v6 }
0x17ae   :  { %10084 = vmatmul.mubr.msk.f32.vlgmr.msra.gmra.mrb[28].mxu0 %vm818_vm12, %v2821_v0 }
0x17af   :  { %10093 = vmatprep.mubr.msk.f32.mxu0 %vm11848_vm0, %v11849_v6  ;;  %10092 = vmatpush3.msra.mxu0 %v9471_v17  ;;  %v9500_v17 = vld [vmem:[%s13317_s21 + $0x38] sm:$0xff] }
0x17b0   :  { %10508 = vmatprep.subr.bf16.mxu0 %v11847_v4 }
0x187d   :  { %v2742_v5 = vpop.f32.mrb[26].mxu0 }
0x187e   :  { %v10075_v7 = vpop.f32.mrb[27].mxu0  ;;  %10079 = vmatmul.mubr.msk.f32.vlgmr.msra.gmra.mrb[22].mxu1 %vm818_vm12, %v2742_v5 }
0x187f   :  { %10088 = vmatprep.mubr.msk.f32.mxu1 %vm11848_vm0, %v11849_v6 }
0x1881   :  { %v2894_v8 = vpop.f32.mrb[28].mxu0 }
0x1882   :  { %v2898_v10 = vmul.f32 0.35355338, %v2894_v8  ;;  %v10085_v11 = vpop.f32.mrb[29].mxu0 }
0x1883   :  { %v3306_v11 = vld [vmem:[%s13319_s0 + $0x8] sm:$0xff] }
0x1884   :  { %v2899_v12 = vsel %vm818_vm12, %v2898_v10, -inf }
0x1885   :  { %2900 = vmax.xlane.f32.xlu1 %v2899_v12  ;;  %v9490_v12 = vld [vmem:[#allocation15 + $0x1] ss:$0 sm:$0xff] }
0x1912   :  { %v2901_v13 = vpop.xlane.xlu1 %2900 }
0x1913   :  { %v2902_v14 = vsub.f32 %v2898_v10, %v2901_v13  ;;  %v3305_v10 = vld [vmem:[%s13319_s0] sm:$0xff] }
0x1915   :  { %v2903_v15 = vmul.f32 1.442695, %v2902_v14  ;;  %v10515_v14 = vpack.c.bf16 %v3306_v11, %v3305_v10 }
0x1917   :  { %11049 = vpow2.f32 %v2903_v15 }
0x1921   :  { %v11050_v34 = vpop.eup %11049 }
0x1922   :  { %v2905_v16 = vsel %vm818_vm12, %v11050_v34, 0.0 }
0x1923   :  { %2906 = vadd.xlane.f32.xlu0 %v2905_v16  ;;  %v9499_v16 = vld [vmem:[%s13317_s21 + $0x30] sm:$0xff] }
0x1939   :  { %2910 = vrot.lane.b32.xlu0 %v12477_v1, %s11860_s10 }
0x1951   :  { %v2815_v18 = vpop.f32.mrb[22].mxu1 }
0x1952   :  { %v2819_v19 = vadd.f32 %v2815_v18, %v2577_v48  ;;  %v10080_v20 = vpop.f32.mrb[23].mxu1  ;;  %v616_v48 = vstv %s9424_s15  ;;  %v10512_v18 = vpack.c.bf16 %v9500_v17, %v9499_v16 }
0x1953   :  { %vm617_vm2 = vcmp.eq.s32.totalorder %v12308_v9, %v616_v48  ;;  %v9489_v9 = vld [vmem:[#allocation14 + $0x1] ss:$0 sm:$0xff]  ;;  %v3382_v20 = vld [vmem:[%s13320_s4] sm:$0xff] }
0x1954   :  { %v9425_v52 = vsel %vm617_vm2, 1.0, %v11849_v6 }
0x1955   :  { %620 = vst.msk [vmem:[#allocation3 + $0x3] sm:$0x1] %vm553_vm1, %v9425_v52 }
0x19b0   :  { %v2907_v21 = vpop.xlane.xlu0 %2906 }
0x19b1   :  { %11051 = vrcp.f32 %v2907_v21  ;;  %v3383_v21 = vld [vmem:[%s13320_s4 + $0x8] sm:$0xff] }
0x19b4   :  { %v2911_v22 = vpop.permute.xlu0 %2910 }
0x19b5   :  { %10087 = vmatpush3.msra.mxu1 %v2911_v22 }
0x19b6   :  { %10502 = vmatprep.subr.bf16.mxu1 %v11847_v4 }
0x19bb   :  { %v11052_v23 = vpop.eup %11051 }
0x19bc   :  { %v2909_v24 = vmul.f32 %v11052_v23, %v11050_v34  ;;  %v3304_v34 = vld [vmem:[#allocation3] sm:$0xff] }
0x19be   :  { %10089 = vmatmul.mubr.msk.f32.vlgmr.msra.gmra.mrb[24].mxu1 %vm818_vm12, %v2909_v24 }
0x19bf   :  { %10104 = vmatprep.mubr.msk.f32.mxu1 %vm11848_vm0, %v11849_v6 }
0x1a91   :  { %v2982_v1 = vpop.f32.mrb[24].mxu1 }
0x1a92   :  { %v10090_v25 = vpop.f32.mrb[25].mxu1  ;;  %10094 = vmatmul.mubr.msk.f32.vlgmr.msra.gmra.mrb[30].mxu0 %vm818_vm12, %v2982_v1  ;;  %v10518_v1 = vpack.c.bf16 %v3383_v21, %v3382_v20 }
0x1a93   :  { %10115 = vmatprep.mubr.msk.f32.mxu0 %vm11848_vm0, %v11849_v6  ;;  %10510 = vmatpush3.bf16.msra.mxu0 %v10509_v63 }
0x1a94   :  { %10511 = vmatprep.subr.bf16.mxu0 %v11847_v4 }
0x1a97   :  { %10513 = vmatpush3.bf16.msra.mxu0 %v10512_v18 }
0x1a98   :  { %10517 = vmatprep.subr.bf16.mxu0 %v11847_v4 }
0x1b65   :  { %v3055_v27 = vpop.f32.mrb[30].mxu0 }
0x1b66   :  { %v3059_v28 = vadd.f32 %v3055_v27, %v2819_v19  ;;  %v10095_v29 = vpop.f32.mrb[31].mxu0  ;;  %v9495_v19 = vld [vmem:[#allocation17 + $0x1] ss:$0 sm:$0xff] }
0x1b67   :  { %v3385_v27 = vld [vmem:[%s13320_s4 + $0x18] sm:$0xff] }
0x1b68   :  { %v3066_v30 = vadd.f32 %v9488_v26, %v3059_v28  ;;  %v3384_v26 = vld [vmem:[%s13320_s4 + $0x10] sm:$0xff] }
0x1b6a   :  { %v3067_v31 = vadd.f32 %v3066_v30, %v12471_v62  ;;  %v10503_v62 = vpack.c.bf16 %v9492_v41, %v9491_v40 }
0x1b6c   :  { %v3072_v32 = vsel %vm736_vm11, %v3067_v31, 0.0  ;;  %10504 = vmatpush3.bf16.msra.mxu1 %v10503_v62 }
0x1b6d   :  { %3073 = vadd.xlane.f32.xlu1 %v3072_v32  ;;  %10505 = vmatprep.subr.bf16.mxu1 %v11847_v4  ;;  %v11137_v32 = vld [vmem:[%s13314_s8] sm:$0xff]  ;;  %s13321_s8 = sld [smem:[#allocation80_spill]] }
0x1b70   :  { %10507 = vmatpush3.bf16.msra.mxu1 %v10506_v44 }
0x1b71   :  { %10514 = vmatprep.subr.bf16.mxu1 %v11847_v4 }
0x1b73   :  { %v3467_v61 = vld [vmem:[%s13321_s8 + $0x8] sm:$0xff]  ;;  %v3466_v11 = vld [vmem:[%s13321_s8] sm:$0xff] }
0x1bfa   :  { %v3074_v33 = vpop.xlane.xlu1 %3073 }
0x1bfb   :  { %v3075_v35 = vmul.f32 0.03125, %v3074_v33 }
0x1bfd   :  { %v12568_v36 = vsub.f32 %v3067_v31, %v3075_v35  ;;  %v10521_v31 = vpack.c.bf16 %v3385_v27, %v3384_v26 }
0x1bff   :  { %v3077_v38 = vmul.f32 %v12568_v36, %v12568_v36 }
0x1c01   :  { %v3078_v39 = vsel %vm736_vm11, %v3077_v38, 0.0  ;;  %v9507_v38 = vld [vmem:[#allocation21] ss:$0 sm:$0xff] }
0x1c02   :  { %3079 = vadd.xlane.f32.xlu1 %v3078_v39 }
0x1c8f   :  { %v3080_v0 = vpop.xlane.xlu1 %3079 }
0x1c90   :  { %v3081_v3 = vmul.f32 0.03125, %v3080_v0 }
0x1c92   :  { %v3082_v5 = vadd.f32 1e-05, %v3081_v3 }
0x1c94   :  { %11053 = vrsqrt.f32 %v3082_v5 }
0x1c9e   :  { %v11054_v7 = vpop.eup %11053 }
0x1c9f   :  { %v3084_v8 = vmul.f32 %v11054_v7, %v12568_v36 }
0x1ca1   :  { %v3091_v13 = vmul.f32 %v9489_v9, %v3084_v8 }
0x1ca3   :  { %v12615_v15 = vadd.f32 %v9490_v12, %v3091_v13 }
0x1ca5   :  { %10105 = vmatmul.mubr.msk.f32.vlgmr.msra.gmra.mrb[26].mxu1 %vm736_vm11, %v12615_v15 }
0x1ca6   :  { %10516 = vmatpush3.bf16.msra.mxu1 %v10515_v14  ;;  %10122 = vmatprep.mubr.msk.f32.mxu1 %vm11848_vm0, %v11849_v6 }
0x1ca7   :  { %10136 = vmatprep.subr.mxu1 %v11849_v6 }
0x1ca9   :  { %10123 = vmatmul.mubr.msk.f32.vlgmr.msra.gmra.mrb[28].mxu1 %vm648_vm10, %v3304_v34  ;;  %vm9307_vm10 = vcmask 0  }
0x1caa   :  { %10138 = vmatprep.mubr.msk.f32.mxu1 %vm11848_vm0, %v11849_v6 }
0x1d78   :  { %v3181_v22 = vpop.f32.mrb[26].mxu1 }
0x1d79   :  { %v3182_v23 = vadd.f32 %v9495_v19, %v3181_v22  ;;  %v10106_v24 = vpop.f32.mrb[27].mxu1 }
0x1d7b   :  { %v3185_v25 = vmax.f32 %v3182_v23, 0.0 }
0x1d7c   :  { %v3376_v28 = vpop.f32.mrb[28].mxu1 }
0x1d7d   :  { %10116 = vmatmul.mubr.msk.f32.vlgmr.msra.gmra.mrb[32].mxu0 %vm736_vm11, %v3185_v25  ;;  %v3380_v29 = vmul.f32 5.656854, %v3376_v28  ;;  %v10124_v30 = vpop.f32.mrb[29].mxu1 }
0x1d7e   :  { %10519 = vmatpush3.bf16.msra.mxu0 %v10518_v1  ;;  %10133 = vmatprep.mubr.msk.f32.mxu0 %vm11848_vm0, %v11849_v6 }
0x1d7f   :  { %10520 = vmatprep.subr.bf16.mxu0 %v11847_v4  ;;  %v12637_v33 = vadd.f32 %v11137_v32, %v3380_v29 }
0x1d82   :  { %10522 = vmatpush3.bf16.msra.mxu0 %v10521_v31 }
0x1d83   :  { %10146 = vmatprep.subr.mxu0 %v11849_v6 }
0x1d85   :  { %10134 = vmatmul.mubr.msk.f32.vlgmr.msra.gmra.mrb[34].mxu0 %vm736_vm11, %v12637_v33 }
0x1d86   :  { %10148 = vmatprep.mubr.msk.f32.mxu0 %vm11848_vm0, %v11849_v6 }
0x1e50   :  { %v12644_v35 = vpop.f32.mrb[32].mxu0 }
0x1e51   :  { %v10117_v36 = vpop.f32.mrb[33].mxu0 }
0x1e58   :  { %v3462_v39 = vpop.f32.mrb[34].mxu0 }
0x1e59   :  { %v12646_v40 = vadd.f32 %v9507_v38, %v3462_v39  ;;  %v10135_v41 = vpop.f32.mrb[35].mxu0 }
0x1e5b   :  { %3638 = vrot.lane.b32.xlu0 %v12646_v40, %s11852_s23  ;;  %3472 = vrot.lane.b32.xlu1 %v12646_v40, %s11851_s24 }
0x1e5f   :  { %3636 = vrot.lane.b32.xlu0 %v12646_v40, %s11850_s22 }
0x1ecd   :  { %v3639_v62 = vpop.permute.xlu0 %3638  ;;  %v3473_v42 = vpop.permute.xlu1 %3472 }
0x1ece   :  { %10137 = vmatpush3.xpose.msk.msra.mxu1 %vm818_vm12, %v3473_v42  ;;  %10147 = vmatpush3.xpose.msk.msra.mxu0 %vm818_vm12, %v3639_v62  ;;  %v3468_v62 = vld [vmem:[%s13321_s8 + $0x10] sm:$0xff] }
0x1ecf   :  { %10141 = vmatprep.subr.mxu1 %v11849_v6  ;;  %10156 = vmatprep.subr.mxu0 %v11849_v6 }
0x1ed1   :  { %v3637_v43 = vpop.permute.xlu0 %3636  ;;  %10139 = vmatmul.mubr.msk.f32.vlgmr.msra.gmra.mrb[30].mxu1 %vm818_vm12, %v12646_v40 }
0x1ed2   :  { %10149 = vmatmul.mubr.msk.f32.vlgmr.msra.gmra.mrb[36].mxu0 %vm818_vm12, %v3637_v43  ;;  %10143 = vmatprep.mubr.msk.f32.mxu1 %vm11848_vm0, %v11849_v6 }
0x1ed3   :  { %10158 = vmatprep.mubr.msk.f32.mxu0 %vm11848_vm0, %v11849_v6  ;;  %10157 = vmatpush3.msra.mxu0 %v3467_v61 }
0x1ed4   :  { %10166 = vmatprep.subr.mxu0 %v11849_v6 }
0x1fa4   :  { %v3544_v44 = vpop.f32.mrb[30].mxu1 }
0x1fa5   :  { %v3548_v45 = vmul.f32 0.35355338, %v3544_v44  ;;  %v10140_v46 = vpop.f32.mrb[31].mxu1  ;;  %v3710_v47 = vpop.f32.mrb[36].mxu0 }
0x1fa6   :  { %v3714_v48 = vmul.f32 0.35355338, %v3710_v47  ;;  %v10150_v49 = vpop.f32.mrb[37].mxu0 }
0x1fa7   :  { %v3549_v50 = vsel %vm818_vm12, %v3548_v45, -inf }
0x1fa8   :  { %3550 = vmax.xlane.f32.xlu1 %v3549_v50  ;;  %v3715_v51 = vsel %vm818_vm12, %v3714_v48, -inf }
0x1fa9   :  { %3716 = vmax.xlane.f32.xlu0 %v3715_v51 }
0x2035   :  { %v3551_v52 = vpop.xlane.xlu1 %3550 }
0x2036   :  { %v3552_v53 = vsub.f32 %v3548_v45, %v3551_v52  ;;  %v3717_v37 = vpop.xlane.xlu0 %3716  ;;  %v9501_v52 = vld [vmem:[#allocation18 + $0x1] ss:$0 sm:$0xff] }
0x2037   :  { %v3718_v54 = vsub.f32 %v3714_v48, %v3717_v37 }
0x2038   :  { %v3553_v55 = vmul.f32 1.442695, %v3552_v53  ;;  %v3269_v53 = vadd.f32 %v9501_v52, %v12644_v35 }
0x2039   :  { %v3719_v56 = vmul.f32 1.442695, %v3718_v54 }
0x203a   :  { %11055 = vpow2.f32 %v3553_v55  ;;  %v3272_v55 = vadd.f32 %v3269_v53, %v12615_v15  ;;  %v9530_v53 = vld [vmem:[#allocation29] ss:$0 sm:$0xff] }
0x203b   :  { %11057 = vpow2.f32 %v3719_v56  ;;  %v3469_v56 = vld [vmem:[%s13321_s8 + $0x18] sm:$0xff] }
0x2044   :  { %v11056_v57 = vpop.eup %11055 }
0x2045   :  { %v11058_v58 = vpop.eup %11057  ;;  %v3555_v59 = vsel %vm818_vm12, %v11056_v57, 0.0 }
0x2046   :  { %3556 = vadd.xlane.f32.xlu0 %v3555_v59  ;;  %v3721_v60 = vsel %vm818_vm12, %v11058_v58, 0.0 }
0x2047   :  { %3722 = vadd.xlane.f32.xlu1 %v3721_v60 }
0x2058   :  { %3726 = vrot.lane.b32.xlu1 %v12646_v40, %s11853_s9 }
0x205c   :  { %3560 = vrot.lane.b32.xlu0 %v12646_v40, %s11854_s26  ;;  %3950 = vrot.lane.b32.xlu1 %v12646_v40, %s11855_s28 }
0x2060   :  { %3948 = vrot.lane.b32.xlu0 %v12646_v40, %s11856_s27 }
0x20d3   :  { %v3557_v63 = vpop.xlane.xlu0 %3556 }
0x20d4   :  { %11059 = vrcp.f32 %v3557_v63  ;;  %v3723_v0 = vpop.xlane.xlu1 %3722 }
0x20d5   :  { %11061 = vrcp.f32 %v3723_v0 }
0x20d7   :  { %v3561_v3 = vpop.permute.xlu0 %3560 }
0x20d8   :  { %10142 = vmatpush3.msra.mxu1 %v3561_v3  ;;  %v3727_v8 = vpop.permute.xlu1 %3726 }
0x20d9   :  { %10151 = vmatprep.subr.mxu1 %v11849_v6 }
0x20db   :  { %v3949_v17 = vpop.permute.xlu0 %3948 }
0x20dc   :  { %v3951_v34 = vpop.permute.xlu1 %3950 }
0x20de   :  { %v11060_v5 = vpop.eup %11059 }
0x20df   :  { %v3559_v7 = vmul.f32 %v11060_v5, %v11056_v57  ;;  %v11062_v9 = vpop.eup %11061  ;;  %v9525_v5 = vld [vmem:[#allocation23] ss:$0 sm:$0xff] }
0x20e0   :  { %v3725_v10 = vmul.f32 %v11062_v9, %v11058_v58 }
0x20e1   :  { %10144 = vmatmul.mubr.msk.f32.vlgmr.msra.gmra.mrb[32].mxu1 %vm818_vm12, %v3559_v7 }
0x20e2   :  { %10152 = vmatpush3.msra.mxu1 %v3727_v8  ;;  %10153 = vmatprep.mubr.msk.f32.mxu1 %vm11848_vm0, %v11849_v6 }
0x20e3   :  { %10161 = vmatprep.subr.mxu1 %v11849_v6 }
0x20e5   :  { %10154 = vmatmul.mubr.msk.f32.vlgmr.msra.gmra.mrb[34].mxu1 %vm818_vm12, %v3725_v10 }
0x20e6   :  { %10163 = vmatprep.mubr.msk.f32.mxu1 %vm11848_vm0, %v11849_v6  ;;  %10162 = vmatpush3.msra.mxu1 %v3466_v11 }
0x20e7   :  { %10171 = vmatprep.subr.mxu1 %v11849_v6 }
0x21b4   :  { %v3632_v12 = vpop.f32.mrb[32].mxu1 }
0x21b5   :  { %v10145_v13 = vpop.f32.mrb[33].mxu1  ;;  %10164 = vmatmul.mubr.msk.f32.vlgmr.msra.gmra.mrb[36].mxu1 %vm818_vm12, %v3632_v12 }
0x21b6   :  { %10173 = vmatprep.mubr.msk.f32.mxu1 %vm11848_vm0, %v11849_v6 }
0x21b8   :  { %v3798_v14 = vpop.f32.mrb[34].mxu1 }
0x21b9   :  { %v10155_v16 = vpop.f32.mrb[35].mxu1  ;;  %10159 = vmatmul.mubr.msk.f32.vlgmr.msra.gmra.mrb[38].mxu0 %vm818_vm12, %v3798_v14 }
0x21ba   :  { %10167 = vmatpush3.xpose.msk.msra.mxu0 %vm818_vm12, %v3951_v34  ;;  %10168 = vmatprep.mubr.msk.f32.mxu0 %vm11848_vm0, %v11849_v6  ;;  %v4549_v16 = vld [vmem:[%s13322_s20] sm:$0xff] }
0x21bb   :  { %10176 = vmatprep.subr.mxu0 %v11849_v6 }
0x21bd   :  { %10169 = vmatmul.mubr.msk.f32.vlgmr.msra.gmra.mrb[40].mxu0 %vm818_vm12, %v3949_v17  ;;  %v4550_v17 = vld [vmem:[%s13322_s20 + $0x8] sm:$0xff] }
0x21be   :  { %10178 = vmatprep.mubr.msk.f32.mxu0 %vm11848_vm0, %v11849_v6  ;;  %10177 = vmatpush3.msra.mxu0 %v3468_v62  ;;  %v4467_v62 = vld [vmem:[%s13323_s11 + $0x10] sm:$0xff] }
0x21bf   :  { %10186 = vmatprep.subr.mxu0 %v11849_v6 }
0x2288   :  { %v3944_v18 = vpop.f32.mrb[36].mxu1 }
0x2289   :  { %v10165_v19 = vpop.f32.mrb[37].mxu1 }
0x228a   :  { %v4551_v19 = vld [vmem:[%s13322_s20 + $0x10] sm:$0xff] }
0x228c   :  { %v3871_v20 = vpop.f32.mrb[38].mxu0 }
0x228d   :  { %v12700_v21 = vadd.f32 %v3944_v18, %v3871_v20  ;;  %v10160_v22 = vpop.f32.mrb[39].mxu0  ;;  %v10530_v18 = vpack.c.bf16 %v4550_v17, %v4549_v16  ;;  %v4552_v20 = vld [vmem:[%s13322_s20 + $0x18] sm:$0xff] }
0x2290   :  { %v4022_v23 = vpop.f32.mrb[40].mxu0 }
0x2291   :  { %v4026_v24 = vmul.f32 0.35355338, %v4022_v23  ;;  %v10170_v1 = vpop.f32.mrb[41].mxu0 }
0x2293   :  { %v4027_v25 = vsel %vm818_vm12, %v4026_v24, -inf }
0x2294   :  { %4028 = vmax.xlane.f32.xlu1 %v4027_v25 }
0x22a5   :  { %4190 = vrot.lane.b32.xlu1 %v12646_v40, %s11857_s1 }
0x22a9   :  { %4188 = vrot.lane.b32.xlu1 %v12646_v40, %s11858_s3 }
0x2321   :  { %v4029_v26 = vpop.xlane.xlu1 %4028 }
0x2322   :  { %v4030_v27 = vsub.f32 %v4026_v24, %v4029_v26 }
0x2324   :  { %v4031_v28 = vmul.f32 1.442695, %v4030_v27 }
0x2325   :  { %v4191_v38 = vpop.permute.xlu1 %4190 }
0x2326   :  { %11063 = vpow2.f32 %v4031_v28 }
0x2329   :  { %v4189_v41 = vpop.permute.xlu1 %4188 }
0x2330   :  { %v11064_v29 = vpop.eup %11063 }
0x2331   :  { %v4033_v30 = vsel %vm818_vm12, %v11064_v29, 0.0 }
0x2332   :  { %4034 = vadd.xlane.f32.xlu0 %v4033_v30 }
0x2348   :  { %4038 = vrot.lane.b32.xlu0 %v12646_v40, %s11859_s25 }
0x23bf   :  { %v4035_v31 = vpop.xlane.xlu0 %4034 }
0x23c0   :  { %11065 = vrcp.f32 %v4035_v31  ;;  %v9505_v31 = vld [vmem:[#allocation20 + $0x1] ss:$0 sm:$0xff] }
0x23c3   :  { %v4039_v32 = vpop.permute.xlu0 %4038 }
0x23c4   :  { %10172 = vmatpush3.msra.mxu1 %v4039_v32 }
0x23c5   :  { %10181 = vmatprep.subr.mxu1 %v11849_v6 }
0x23ca   :  { %v11066_v36 = vpop.eup %11065 }
0x23cb   :  { %v4037_v39 = vmul.f32 %v11066_v36, %v11064_v29  ;;  %v9504_v29 = vld [vmem:[%s13318_s14 + $0x1] ss:$0 sm:$0xff] }
0x23cd   :  { %10174 = vmatmul.mubr.msk.f32.vlgmr.msra.gmra.mrb[38].mxu1 %vm818_vm12, %v4037_v39  ;;  %v4466_v39 = vld [vmem:[%s13323_s11 + $0x8] sm:$0xff] }
0x23ce   :  { %10182 = vmatpush3.xpose.msk.msra.mxu1 %vm818_vm12, %v4191_v38  ;;  %10183 = vmatprep.mubr.msk.f32.mxu1 %vm11848_vm0, %v11849_v6  ;;  %v4465_v38 = vld [vmem:[%s13323_s11] sm:$0xff] }
0x23cf   :  { %10191 = vmatprep.subr.mxu1 %v11849_v6 }
0x23d1   :  { %10184 = vmatmul.mubr.msk.f32.vlgmr.msra.gmra.mrb[40].mxu1 %vm818_vm12, %v4189_v41  ;;  %v10524_v41 = vpack.c.bf16 %v4466_v39, %v4465_v38 }
0x23d2   :  { %10193 = vmatprep.mubr.msk.f32.mxu1 %vm11848_vm0, %v11849_v6  ;;  %10192 = vmatpush3.msra.mxu1 %v3469_v56 }
0x23d3   :  { %10529 = vmatprep.subr.bf16.mxu1 %v11847_v4 }
0x24a0   :  { %v4110_v42 = vpop.f32.mrb[38].mxu1 }
0x24a1   :  { %v10175_v43 = vpop.f32.mrb[39].mxu1  ;;  %10179 = vmatmul.mubr.msk.f32.vlgmr.msra.gmra.mrb[42].mxu0 %vm818_vm12, %v4110_v42  ;;  %v4468_v42 = vld [vmem:[%s13323_s11 + $0x18] sm:$0xff] }
0x24a2   :  { %10188 = vmatprep.mubr.msk.f32.mxu0 %vm11848_vm0, %v11849_v6  ;;  %v10527_v43 = vpack.c.bf16 %v4468_v42, %v4467_v62 }
0x24a4   :  { %v4262_v44 = vpop.f32.mrb[40].mxu1 }
0x24a5   :  { %v4266_v45 = vmul.f32 0.35355338, %v4262_v44  ;;  %v10185_v46 = vpop.f32.mrb[41].mxu1 }
0x24a7   :  { %v4267_v47 = vsel %vm818_vm12, %v4266_v45, -inf }
0x24a8   :  { %4268 = vmax.xlane.f32.xlu0 %v4267_v47 }
0x24be   :  { %4278 = vrot.lane.b32.xlu0 %v12646_v40, %s11860_s10  ;;  %v3277_v40 = vsel %vm736_vm11, %v3272_v55, 0.0 }
0x2535   :  { %v4269_v48 = vpop.xlane.xlu0 %4268 }
0x2536   :  { %v4270_v49 = vsub.f32 %v4266_v45, %v4269_v48  ;;  %v9526_v48 = vld [vmem:[#allocation24] ss:$0 sm:$0xff] }
0x2538   :  { %v4271_v50 = vmul.f32 1.442695, %v4270_v49 }
0x2539   :  { %v4279_v51 = vpop.permute.xlu0 %4278 }
0x253a   :  { %11067 = vpow2.f32 %v4271_v50  ;;  %10187 = vmatpush3.msra.mxu0 %v4279_v51  ;;  %v9527_v50 = vld [vmem:[#allocation26] ss:$0 sm:$0xff] }
0x253b   :  { %10523 = vmatprep.subr.bf16.mxu0 %v11847_v4 }
0x2544   :  { %v11068_v37 = vpop.eup %11067 }
0x2545   :  { %v4273_v54 = vsel %vm818_vm12, %v11068_v37, 0.0 }
0x2546   :  { %4274 = vadd.xlane.f32.xlu1 %v4273_v54 }
0x254a   :  { %3278 = vadd.xlane.f32.xlu1 %v3277_v40  ;;  %v9528_v40 = vld [vmem:[#allocation27] ss:$0 sm:$0xff] }
0x2574   :  { %v4183_v57 = vpop.f32.mrb[42].mxu0 }
0x2575   :  { %v4187_v58 = vadd.f32 %v4183_v57, %v12700_v21  ;;  %v10180_v59 = vpop.f32.mrb[43].mxu0  ;;  %v10533_v21 = vpack.c.bf16 %v4552_v20, %v4551_v19 }
0x25d3   :  { %v4275_v60 = vpop.xlane.xlu1 %4274 }
0x25d4   :  { %11069 = vrcp.f32 %v4275_v60 }
0x25d7   :  { %v3279_v0 = vpop.xlane.xlu1 %3278 }
0x25d8   :  { %v3280_v3 = vmul.f32 0.03125, %v3279_v0 }
0x25da   :  { %v3281_v10 = vsub.f32 %v3272_v55, %v3280_v3 }
0x25dc   :  { %v3282_v14 = vmul.f32 %v3281_v10, %v3281_v10 }
0x25de   :  { %v11070_v35 = vpop.eup %11069  ;;  %v3283_v34 = vsel %vm736_vm11, %v3282_v14, 0.0 }
0x25df   :  { %v4277_v61 = vmul.f32 %v11070_v35, %v11068_v37 }
0x25e1   :  { %10189 = vmatmul.mubr.msk.f32.vlgmr.msra.gmra.mrb[44].mxu0 %vm818_vm12, %v4277_v61 }
0x25e2   :  { %10204 = vmatprep.mubr.msk.f32.mxu0 %vm11848_vm0, %v11849_v6  ;;  %10525 = vmatpush3.bf16.msra.mxu0 %v10524_v41 }
0x25e3   :  { %10526 = vmatprep.subr.bf16.mxu0 %v11847_v4 }
0x25e6   :  { %10528 = vmatpush3.bf16.msra.mxu0 %v10527_v43 }
0x25e7   :  { %10218 = vmatprep.subr.mxu0 %v11849_v6 }
0x26b4   :  { %v4350_v15 = vpop.f32.mrb[44].mxu0 }
0x26b5   :  { %v10190_v63 = vpop.f32.mrb[45].mxu0  ;;  %10194 = vmatmul.mubr.msk.f32.vlgmr.msra.gmra.mrb[42].mxu1 %vm818_vm12, %v4350_v15 }
0x26b6   :  { %10215 = vmatprep.mubr.msk.f32.mxu1 %vm11848_vm0, %v11849_v6  ;;  %10531 = vmatpush3.bf16.msra.mxu1 %v10530_v18 }
0x26b7   :  { %10532 = vmatprep.subr.bf16.mxu1 %v11847_v4 }
0x26ba   :  { %10534 = vmatpush3.bf16.msra.mxu1 %v10533_v21 }
0x26bb   :  { %10223 = vmatprep.subr.mxu1 %v11849_v6 }
0x2788   :  { %v4423_v7 = vpop.f32.mrb[42].mxu1 }
0x2789   :  { %v4427_v9 = vadd.f32 %v4423_v7, %v4187_v58  ;;  %v10195_v8 = vpop.f32.mrb[43].mxu1 }
0x278b   :  { %v4434_v11 = vadd.f32 %v9525_v5, %v4427_v9 }
0x278d   :  { %v4435_v12 = vadd.f32 %v4434_v11, %v12637_v33 }
0x278f   :  { %v4438_v13 = vsel %vm736_vm11, %v4435_v12, 0.0 }
0x2790   :  { %4439 = vadd.xlane.f32.xlu1 %v4438_v13 }
0x2794   :  { %3284 = vadd.xlane.f32.xlu1 %v3283_v34 }
0x281d   :  { %v4440_v33 = vpop.xlane.xlu1 %4439 }
0x281e   :  { %v4441_v22 = vmul.f32 0.03125, %v4440_v33 }
0x2820   :  { %v4442_v23 = vsub.f32 %v4435_v12, %v4441_v22 }
0x2821   :  { %v3285_v24 = vpop.xlane.xlu1 %3284 }
0x2822   :  { %v3286_v1 = vmul.f32 0.03125, %v3285_v24  ;;  %v4443_v25 = vmul.f32 %v4442_v23, %v4442_v23 }
0x2824   :  { %v3287_v26 = vadd.f32 1e-05, %v3286_v1  ;;  %v4444_v27 = vsel %vm736_vm11, %v4443_v25, 0.0  ;;  %v4633_v1 = vld [vmem:[#allocation30] sm:$0xff]  ;;  %v4634_v25 = vld [vmem:[#allocation30 + $0x8] sm:$0xff] }
0x2825   :  { %4445 = vadd.xlane.f32.xlu1 %v4444_v27 }
0x2826   :  { %11071 = vrsqrt.f32 %v3287_v26 }
0x2830   :  { %v11072_v28 = vpop.eup %11071 }
0x2831   :  { %v3289_v30 = vmul.f32 %v11072_v28, %v3281_v10 }
0x2833   :  { %v3296_v32 = vmul.f32 %v9504_v29, %v3289_v30 }
0x2835   :  { %v12752_v36 = vadd.f32 %v9505_v31, %v3296_v32 }
0x2837   :  { %10216 = vmatmul.mubr.msk.f32.vlgmr.msra.gmra.mrb[44].mxu1 %vm736_vm11, %v12752_v36 }
0x2838   :  { %10225 = vmatprep.mubr.msk.f32.mxu1 %vm11848_vm0, %v11849_v6 }
0x28b2   :  { %v4446_v44 = vpop.xlane.xlu1 %4445 }
0x28b3   :  { %v4447_v45 = vmul.f32 0.03125, %v4446_v44 }
0x28b5   :  { %v4448_v46 = vadd.f32 1e-05, %v4447_v45 }
0x28b7   :  { %11073 = vrsqrt.f32 %v4448_v46 }
0x28c1   :  { %v11074_v47 = vpop.eup %11073 }
0x28c2   :  { %v4450_v49 = vmul.f32 %v11074_v47, %v4442_v23 }
0x28c4   :  { %v4457_v51 = vmul.f32 %v9526_v48, %v4450_v49 }
0x28c6   :  { %v12764_v52 = vadd.f32 %v9527_v50, %v4457_v51 }
0x28c8   :  { %10205 = vmatmul.mubr.msk.f32.vlgmr.msra.gmra.mrb[46].mxu0 %vm736_vm11, %v12764_v52 }
0x28c9   :  { %10220 = vmatprep.mubr.msk.f32.mxu0 %vm11848_vm0, %v11849_v6 }
0x290a   :  { %v4629_v37 = vpop.f32.mrb[44].mxu1 }
0x290b   :  { %v12770_v54 = vadd.f32 %v9530_v53, %v4629_v37  ;;  %v10217_v55 = vpop.f32.mrb[45].mxu1 }
0x290d   :  { %4804 = vrot.lane.b32.xlu1 %v12770_v54, %s11850_s22  ;;  %10219 = vmatpush3.xpose.msk.msra.mxu0 %vm818_vm12, %v12770_v54 }
0x290e   :  { %10228 = vmatprep.subr.mxu0 %v11849_v6 }
0x297f   :  { %v4805_v59 = vpop.permute.xlu1 %4804 }
0x299b   :  { %v4545_v56 = vpop.f32.mrb[46].mxu0 }
0x299c   :  { %v12777_v57 = vadd.f32 %v9528_v40, %v4545_v56  ;;  %v10206_v58 = vpop.f32.mrb[47].mxu0 }
0x299e   :  { %4802 = vrot.lane.b32.xlu0 %v12777_v57, %s11850_s22  ;;  %10221 = vmatmul.mubr.msk.f32.vlgmr.msra.gmra.mrb[48].mxu0 %vm818_vm12, %v12777_v57 }
0x299f   :  { %10229 = vmatpush3.xpose.msk.msra.mxu0 %vm818_vm12, %v4805_v59  ;;  %10230 = vmatprep.mubr.msk.f32.mxu0 %vm11848_vm0, %v11849_v6 }
0x29a0   :  { %10238 = vmatprep.subr.mxu0 %v11849_v6 }
0x2a10   :  { %v4803_v60 = vpop.permute.xlu0 %4802 }
0x2a11   :  { %10231 = vmatmul.mubr.msk.f32.vlgmr.msra.gmra.mrb[50].mxu0 %vm818_vm12, %v4803_v60 }
0x2a12   :  { %10240 = vmatprep.mubr.msk.f32.mxu0 %vm11848_vm0, %v11849_v6  ;;  %10239 = vmatpush3.msra.mxu0 %v4634_v25 }
0x2a13   :  { %10248 = vmatprep.subr.mxu0 %v11849_v6 }
0x2a71   :  { %v4710_v35 = vpop.f32.mrb[48].mxu0 }
0x2a72   :  { %v4714_v61 = vmul.f32 0.35355338, %v4710_v35  ;;  %v10222_v15 = vpop.f32.mrb[49].mxu0 }
0x2a74   :  { %v4715_v63 = vsel %vm818_vm12, %v4714_v61, -inf }
0x2a75   :  { %4716 = vmax.xlane.f32.xlu0 %v4715_v63 }
0x2ae4   :  { %v4876_v0 = vpop.f32.mrb[50].mxu0 }
0x2ae5   :  { %v4880_v3 = vmul.f32 0.35355338, %v4876_v0  ;;  %v10232_v5 = vpop.f32.mrb[51].mxu0 }
0x2ae7   :  { %v4881_v7 = vsel %vm818_vm12, %v4880_v3, -inf }
0x2ae8   :  { %4882 = vmax.xlane.f32.xlu1 %v4881_v7 }
0x2af9   :  { %4892 = vrot.lane.b32.xlu1 %v12770_v54, %s11852_s23 }
0x2b02   :  { %v4717_v9 = vpop.xlane.xlu0 %4716 }
0x2b03   :  { %v4718_v8 = vsub.f32 %v4714_v61, %v4717_v9 }
0x2b05   :  { %v4719_v10 = vmul.f32 1.442695, %v4718_v8  ;;  %v4636_v8 = vld [vmem:[#allocation30 + $0x18] sm:$0xff] }
0x2b07   :  { %11075 = vpow2.f32 %v4719_v10 }
0x2b11   :  { %v11076_v11 = vpop.eup %11075 }
0x2b12   :  { %v4721_v12 = vsel %vm818_vm12, %v11076_v11, 0.0 }
0x2b13   :  { %4722 = vadd.xlane.f32.xlu0 %v4721_v12 }
0x2b75   :  { %v4883_v13 = vpop.xlane.xlu1 %4882 }
0x2b76   :  { %v4884_v14 = vsub.f32 %v4880_v3, %v4883_v13 }
0x2b78   :  { %v4885_v34 = vmul.f32 1.442695, %v4884_v14 }
0x2b79   :  { %v4893_v22 = vpop.permute.xlu1 %4892 }
0x2b7a   :  { %11077 = vpow2.f32 %v4885_v34 }
0x2b84   :  { %v11078_v16 = vpop.eup %11077 }
0x2b85   :  { %v4887_v17 = vsel %vm818_vm12, %v11078_v16, 0.0 }
0x2b86   :  { %4888 = vadd.xlane.f32.xlu0 %v4887_v17  ;;  %v9548_v17 = vld [vmem:[#allocation32] ss:$0 sm:$0xff] }
0x2b9c   :  { %4726 = vrot.lane.b32.xlu0 %v12770_v54, %s11851_s24 }
0x2ba0   :  { %5116 = vrot.lane.b32.xlu0 %v12770_v54, %s11856_s27  ;;  %v4723_v18 = vpop.xlane.xlu0 %4722 }
0x2ba1   :  { %11079 = vrcp.f32 %v4723_v18 }
0x2ba4   :  { %5114 = vrot.lane.b32.xlu0 %v12777_v57, %s11856_s27 }
0x2bab   :  { %v11080_v20 = vpop.eup %11079 }
0x2bac   :  { %v4725_v21 = vmul.f32 %v11080_v20, %v11076_v11 }
0x2c13   :  { %v4889_v19 = vpop.xlane.xlu0 %4888 }
0x2c14   :  { %11081 = vrcp.f32 %v4889_v19 }
0x2c17   :  { %v4727_v33 = vpop.permute.xlu0 %4726 }
0x2c18   :  { %10224 = vmatpush3.msra.mxu1 %v4727_v33 }
0x2c19   :  { %10226 = vmatmul.mubr.msk.f32.vlgmr.msra.gmra.mrb[46].mxu1 %vm818_vm12, %v4725_v21  ;;  %10233 = vmatprep.subr.mxu1 %v11849_v6 }
0x2c1a   :  { %10234 = vmatpush3.msra.mxu1 %v4893_v22  ;;  %10235 = vmatprep.mubr.msk.f32.mxu1 %vm11848_vm0, %v11849_v6 }
0x2c1b   :  { %10243 = vmatprep.subr.mxu1 %v11849_v6  ;;  %v5117_v28 = vpop.permute.xlu0 %5116 }
0x2c1e   :  { %v11082_v23 = vpop.eup %11081 }
0x2c1f   :  { %v4891_v24 = vmul.f32 %v11082_v23, %v11078_v16  ;;  %v5115_v31 = vpop.permute.xlu0 %5114 }
0x2c21   :  { %10236 = vmatmul.mubr.msk.f32.vlgmr.msra.gmra.mrb[48].mxu1 %vm818_vm12, %v4891_v24 }
0x2c22   :  { %10245 = vmatprep.mubr.msk.f32.mxu1 %vm11848_vm0, %v11849_v6  ;;  %10244 = vmatpush3.msra.mxu1 %v4633_v1 }
0x2c23   :  { %10253 = vmatprep.subr.mxu1 %v11849_v6 }
0x2cec   :  { %v4798_v26 = vpop.f32.mrb[46].mxu1 }
0x2ced   :  { %v10227_v27 = vpop.f32.mrb[47].mxu1  ;;  %10246 = vmatmul.mubr.msk.f32.vlgmr.msra.gmra.mrb[50].mxu1 %vm818_vm12, %v4798_v26 }
0x2cee   :  { %10255 = vmatprep.mubr.msk.f32.mxu1 %vm11848_vm0, %v11849_v6  ;;  %v5631_v27 = vld [vmem:[#allocation36] sm:$0xff] }
0x2cf4   :  { %v4964_v29 = vpop.f32.mrb[48].mxu1 }
0x2cf5   :  { %v10237_v30 = vpop.f32.mrb[49].mxu1  ;;  %10241 = vmatmul.mubr.msk.f32.vlgmr.msra.gmra.mrb[52].mxu0 %vm818_vm12, %v4964_v29 }
0x2cf6   :  { %10249 = vmatpush3.xpose.msk.msra.mxu0 %vm818_vm12, %v5117_v28  ;;  %10250 = vmatprep.mubr.msk.f32.mxu0 %vm11848_vm0, %v11849_v6  ;;  %v5632_v28 = vld [vmem:[#allocation36 + $0x8] sm:$0xff]  ;;  %v5633_v30 = vld [vmem:[#allocation36 + $0x10] sm:$0xff] }
0x2cf7   :  { %10258 = vmatprep.subr.mxu0 %v11849_v6  ;;  %v10536_v29 = vpack.c.bf16 %v5632_v28, %v5631_v27 }
0x2cf9   :  { %10251 = vmatmul.mubr.msk.f32.vlgmr.msra.gmra.mrb[54].mxu0 %vm818_vm12, %v5115_v31  ;;  %v5634_v31 = vld [vmem:[#allocation36 + $0x18] sm:$0xff] }
0x2cfa   :  { %10260 = vmatprep.mubr.msk.f32.mxu0 %vm11848_vm0, %v11849_v6 }
0x2dc0   :  { %v5110_v32 = vpop.f32.mrb[50].mxu1 }
0x2dc1   :  { %v10247_v38 = vpop.f32.mrb[51].mxu1 }
0x2dc2   :  { %v5717_v38 = vld [vmem:[#allocation39 + $0x8] sm:$0xff] }
0x2dc8   :  { %v5037_v39 = vpop.f32.mrb[52].mxu0 }
0x2dc9   :  { %v5111_v41 = vadd.f32 %v5110_v32, %v5037_v39  ;;  %v10242_v62 = vpop.f32.mrb[53].mxu0  ;;  %v10539_v32 = vpack.c.bf16 %v5634_v31, %v5633_v30 }
0x2dcc   :  { %v5188_v42 = vpop.f32.mrb[54].mxu0 }
0x2dcd   :  { %v5192_v43 = vmul.f32 0.35355338, %v5188_v42  ;;  %v10252_v44 = vpop.f32.mrb[55].mxu0 }
0x2dce   :  { %v9549_v44 = vld [vmem:[#allocation33] ss:$0 sm:$0xff] }
0x2dcf   :  { %v5193_v45 = vsel %vm818_vm12, %v5192_v43, -inf }
0x2dd0   :  { %5194 = vmax.xlane.f32.xlu1 %v5193_v45 }
0x2de1   :  { %5356 = vrot.lane.b32.xlu1 %v12770_v54, %s11858_s3 }
0x2de5   :  { %5354 = vrot.lane.b32.xlu1 %v12777_v57, %s11858_s3  ;;  %v4635_v57 = vld [vmem:[#allocation30 + $0x10] sm:$0xff] }
0x2de6   :  { %10259 = vmatpush3.msra.mxu0 %v4635_v57  ;;  %v9553_v57 = vld [vmem:[#allocation41] ss:$0 sm:$0xff] }
0x2de7   :  { %10268 = vmatprep.subr.mxu0 %v11849_v6 }
0x2e5d   :  { %v5195_v46 = vpop.xlane.xlu1 %5194 }
0x2e5e   :  { %v5196_v47 = vsub.f32 %v5192_v43, %v5195_v46  ;;  %v9550_v46 = vld [vmem:[#allocation35] ss:$0 sm:$0xff] }
0x2e60   :  { %v5197_v48 = vmul.f32 1.442695, %v5196_v47 }
0x2e61   :  { %v5357_v55 = vpop.permute.xlu1 %5356 }
0x2e62   :  { %11083 = vpow2.f32 %v5197_v48 }
0x2e65   :  { %v5355_v56 = vpop.permute.xlu1 %5354 }
0x2e6c   :  { %v11084_v49 = vpop.eup %11083 }
0x2e6d   :  { %v5199_v50 = vsel %vm818_vm12, %v11084_v49, 0.0 }
0x2e6e   :  { %5200 = vadd.xlane.f32.xlu0 %v5199_v50  ;;  %v5719_v50 = vld [vmem:[#allocation39 + $0x18] sm:$0xff] }
0x2e84   :  { %5204 = vrot.lane.b32.xlu0 %v12770_v54, %s11855_s28 }
0x2efb   :  { %v5201_v51 = vpop.xlane.xlu0 %5200 }
0x2efc   :  { %11085 = vrcp.f32 %v5201_v51 }
0x2eff   :  { %v5205_v53 = vpop.permute.xlu0 %5204 }
0x2f00   :  { %10254 = vmatpush3.msra.mxu1 %v5205_v53  ;;  %v9551_v53 = vld [vmem:[#allocation38] ss:$0 sm:$0xff] }
0x2f01   :  { %10263 = vmatprep.subr.mxu1 %v11849_v6 }
0x2f06   :  { %v11086_v37 = vpop.eup %11085 }
0x2f07   :  { %v5203_v40 = vmul.f32 %v11086_v37, %v11084_v49  ;;  %v5718_v49 = vld [vmem:[#allocation39 + $0x10] sm:$0xff] }
0x2f08   :  { %v10545_v51 = vpack.c.bf16 %v5719_v50, %v5718_v49 }
0x2f09   :  { %10256 = vmatmul.mubr.msk.f32.vlgmr.msra.gmra.mrb[52].mxu1 %vm818_vm12, %v5203_v40 }
0x2f0a   :  { %10264 = vmatpush3.xpose.msk.msra.mxu1 %vm818_vm12, %v5357_v55  ;;  %10265 = vmatprep.mubr.msk.f32.mxu1 %vm11848_vm0, %v11849_v6 }
0x2f0b   :  { %10273 = vmatprep.subr.mxu1 %v11849_v6 }
0x2f0d   :  { %10266 = vmatmul.mubr.msk.f32.vlgmr.msra.gmra.mrb[54].mxu1 %vm818_vm12, %v5355_v56 }
0x2f0e   :  { %10275 = vmatprep.mubr.msk.f32.mxu1 %vm11848_vm0, %v11849_v6  ;;  %10274 = vmatpush3.msra.mxu1 %v4636_v8 }
0x2f0f   :  { %10541 = vmatprep.subr.bf16.mxu1 %v11847_v4 }
0x2fdc   :  { %v5276_v58 = vpop.f32.mrb[52].mxu1 }
0x2fdd   :  { %v10257_v59 = vpop.f32.mrb[53].mxu1  ;;  %10261 = vmatmul.mubr.msk.f32.vlgmr.msra.gmra.mrb[56].mxu0 %vm818_vm12, %v5276_v58 }
0x2fde   :  { %10270 = vmatprep.mubr.msk.f32.mxu0 %vm11848_vm0, %v11849_v6 }
0x2fe0   :  { %v5428_v60 = vpop.f32.mrb[54].mxu1 }
0x2fe1   :  { %v5432_v35 = vmul.f32 0.35355338, %v5428_v60  ;;  %v10267_v61 = vpop.f32.mrb[55].mxu1 }
0x2fe3   :  { %v5433_v15 = vsel %vm818_vm12, %v5432_v35, -inf }
0x2fe4   :  { %5434 = vmax.xlane.f32.xlu0 %v5433_v15 }
0x2ffa   :  { %5444 = vrot.lane.b32.xlu0 %v12770_v54, %s11857_s1 }
0x3071   :  { %v5435_v63 = vpop.xlane.xlu0 %5434 }
0x3072   :  { %v5436_v0 = vsub.f32 %v5432_v35, %v5435_v63 }
0x3074   :  { %v5437_v3 = vmul.f32 1.442695, %v5436_v0 }
0x3075   :  { %v5445_v5 = vpop.permute.xlu0 %5444 }
0x3076   :  { %11087 = vpow2.f32 %v5437_v3  ;;  %10269 = vmatpush3.msra.mxu0 %v5445_v5 }
0x3077   :  { %10535 = vmatprep.subr.bf16.mxu0 %v11847_v4 }
0x3080   :  { %v11088_v7 = vpop.eup %11087 }
0x3081   :  { %v5439_v9 = vsel %vm818_vm12, %v11088_v7, 0.0 }
0x3082   :  { %5440 = vadd.xlane.f32.xlu1 %v5439_v9  ;;  %v9558_v9 = vld [vmem:[%s13320_s4 + $0x28] sm:$0xff] }
0x30b0   :  { %v5349_v10 = vpop.f32.mrb[56].mxu0 }
0x30b1   :  { %v5353_v11 = vadd.f32 %v5349_v10, %v5111_v41  ;;  %v10262_v12 = vpop.f32.mrb[57].mxu0  ;;  %v9559_v10 = vld [vmem:[%s13320_s4 + $0x30] sm:$0xff] }
0x310f   :  { %v5441_v54 = vpop.xlane.xlu1 %5440 }
0x3110   :  { %11089 = vrcp.f32 %v5441_v54 }
0x311a   :  { %v11090_v13 = vpop.eup %11089 }
0x311b   :  { %v5443_v14 = vmul.f32 %v11090_v13, %v11088_v7  ;;  %v9557_v7 = vld [vmem:[%s13320_s4 + $0x20] sm:$0xff] }
0x311c   :  { %v10548_v8 = vpack.c.bf16 %v9558_v9, %v9557_v7 }
0x311d   :  { %10271 = vmatmul.mubr.msk.f32.vlgmr.msra.gmra.mrb[58].mxu0 %vm818_vm12, %v5443_v14 }
0x311e   :  { %10286 = vmatprep.mubr.msk.f32.mxu0 %vm11848_vm0, %v11849_v6  ;;  %10537 = vmatpush3.bf16.msra.mxu0 %v10536_v29 }
0x311f   :  { %10538 = vmatprep.subr.bf16.mxu0 %v11847_v4 }
0x3122   :  { %10540 = vmatpush3.bf16.msra.mxu0 %v10539_v32 }
0x3123   :  { %10547 = vmatprep.subr.bf16.mxu0 %v11847_v4 }
0x31f0   :  { %v5516_v34 = vpop.f32.mrb[58].mxu0 }
0x31f1   :  { %v10272_v16 = vpop.f32.mrb[59].mxu0  ;;  %10276 = vmatmul.mubr.msk.f32.vlgmr.msra.gmra.mrb[56].mxu1 %vm818_vm12, %v5516_v34 }
0x31f2   :  { %10297 = vmatprep.mubr.msk.f32.mxu1 %vm11848_vm0, %v11849_v6  ;;  %v9555_v16 = vld [vmem:[#allocation42] ss:$0 sm:$0xff] }
0x32c4   :  { %v5589_v18 = vpop.f32.mrb[56].mxu1 }
0x32c5   :  { %v5593_v19 = vadd.f32 %v5589_v18, %v5353_v11  ;;  %v10277_v20 = vpop.f32.mrb[57].mxu1  ;;  %v9560_v11 = vld [vmem:[%s13320_s4 + $0x38] sm:$0xff]  ;;  %v9556_v18 = vld [vmem:[#allocation44] ss:$0 sm:$0xff] }
0x32c6   :  { %v10551_v12 = vpack.c.bf16 %v9560_v11, %v9559_v10 }
0x32c7   :  { %v5600_v21 = vadd.f32 %v9548_v17, %v5593_v19 }
0x32c9   :  { %v5601_v33 = vadd.f32 %v5600_v21, %v12764_v52  ;;  %v5716_v52 = vld [vmem:[#allocation39] sm:$0xff]  ;;  %v9561_v21 = vld [vmem:[#allocation21 + $0x1] ss:$0 sm:$0xff] }
0x32ca   :  { %v10542_v39 = vpack.c.bf16 %v5717_v38, %v5716_v52 }
0x32cb   :  { %v5604_v22 = vsel %vm736_vm11, %v5601_v33, 0.0 }
0x32cc   :  { %5605 = vadd.xlane.f32.xlu1 %v5604_v22  ;;  %10543 = vmatpush3.bf16.msra.mxu1 %v10542_v39 }
0x32cd   :  { %10544 = vmatprep.subr.bf16.mxu1 %v11847_v4 }
0x32d0   :  { %10546 = vmatpush3.bf16.msra.mxu1 %v10545_v51 }
0x32d1   :  { %10311 = vmatprep.subr.mxu1 %v11849_v6 }
0x3359   :  { %v5606_v23 = vpop.xlane.xlu1 %5605 }
0x335a   :  { %v5607_v24 = vmul.f32 0.03125, %v5606_v23 }
0x335c   :  { %v5608_v1 = vsub.f32 %v5601_v33, %v5607_v24 }
0x335e   :  { %v5609_v25 = vmul.f32 %v5608_v1, %v5608_v1 }
0x3360   :  { %v5610_v26 = vsel %vm736_vm11, %v5609_v25, 0.0 }
0x3361   :  { %5611 = vadd.xlane.f32.xlu1 %v5610_v26 }
0x33ee   :  { %v5612_v41 = vpop.xlane.xlu1 %5611 }
0x33ef   :  { %v5613_v62 = vmul.f32 0.03125, %v5612_v41 }
0x33f1   :  { %v5614_v42 = vadd.f32 1e-05, %v5613_v62 }
0x33f3   :  { %11091 = vrsqrt.f32 %v5614_v42 }
0x33fd   :  { %v11092_v43 = vpop.eup %11091 }
0x33fe   :  { %v5616_v45 = vmul.f32 %v11092_v43, %v5608_v1 }
0x3400   :  { %v5623_v47 = vmul.f32 %v9549_v44, %v5616_v45 }
0x3402   :  { %v5630_v48 = vadd.f32 %v9550_v46, %v5623_v47 }
0x3404   :  { %10287 = vmatmul.mubr.msk.f32.vlgmr.msra.gmra.mrb[60].mxu0 %vm736_vm11, %v5630_v48 }
0x3405   :  { %10308 = vmatprep.mubr.msk.f32.mxu0 %vm11848_vm0, %v11849_v6  ;;  %10549 = vmatpush3.bf16.msra.mxu0 %v10548_v8 }
0x3406   :  { %10550 = vmatprep.subr.bf16.mxu0 %v11847_v4 }
0x3409   :  { %10552 = vmatpush3.bf16.msra.mxu0 %v10551_v12 }
0x340a   :  { %10321 = vmatprep.subr.mxu0 %v11849_v6 }
0x34d7   :  { %v5711_v37 = vpop.f32.mrb[60].mxu0 }
0x34d8   :  { %v5712_v55 = vadd.f32 %v9551_v53, %v5711_v37  ;;  %v10288_v40 = vpop.f32.mrb[61].mxu0 }
0x34da   :  { %v5715_v56 = vmax.f32 %v5712_v55, 0.0 }
0x34dc   :  { %10298 = vmatmul.mubr.msk.f32.vlgmr.msra.gmra.mrb[58].mxu1 %vm736_vm11, %v5715_v56 }
0x34dd   :  { %10313 = vmatprep.mubr.msk.f32.mxu1 %vm11848_vm0, %v11849_v6 }
0x35af   :  { %v5796_v58 = vpop.f32.mrb[58].mxu1 }
0x35b0   :  { %v5797_v59 = vadd.f32 %v9553_v57, %v5796_v58  ;;  %v10299_v60 = vpop.f32.mrb[59].mxu1  ;;  %v9563_v57 = vld [vmem:[%s13321_s8 + $0x20] sm:$0xff] }
0x35b2   :  { %v5800_v35 = vadd.f32 %v5797_v59, %v5630_v48  ;;  %v9564_v48 = vld [vmem:[%s13321_s8 + $0x28] sm:$0xff] }
0x35b4   :  { %v5803_v61 = vsel %vm736_vm11, %v5800_v35, 0.0 }
0x35b5   :  { %5804 = vadd.xlane.f32.xlu1 %v5803_v61 }
0x3642   :  { %v5805_v15 = vpop.xlane.xlu1 %5804 }
0x3643   :  { %v5806_v63 = vmul.f32 0.03125, %v5805_v15 }
0x3645   :  { %v5807_v0 = vsub.f32 %v5800_v35, %v5806_v63 }
0x3647   :  { %v5808_v3 = vmul.f32 %v5807_v0, %v5807_v0 }
0x3649   :  { %v5809_v5 = vsel %vm736_vm11, %v5808_v3, 0.0 }
0x364a   :  { %5810 = vadd.xlane.f32.xlu1 %v5809_v5 }
0x36d7   :  { %v5811_v54 = vpop.xlane.xlu1 %5810 }
0x36d8   :  { %v5812_v13 = vmul.f32 0.03125, %v5811_v54 }
0x36da   :  { %v5813_v14 = vadd.f32 1e-05, %v5812_v13 }
0x36dc   :  { %11093 = vrsqrt.f32 %v5813_v14 }
0x36e6   :  { %v11094_v34 = vpop.eup %11093 }
0x36e7   :  { %v5815_v17 = vmul.f32 %v11094_v34, %v5807_v0 }
0x36e9   :  { %v5822_v19 = vmul.f32 %v9555_v16, %v5815_v17 }
0x36eb   :  { %v12877_v20 = vadd.f32 %v9556_v18, %v5822_v19 }
0x36ed   :  { %10309 = vmatmul.mubr.msk.f32.vlgmr.msra.gmra.mrb[62].mxu0 %vm736_vm11, %v12877_v20 }
0x36ee   :  { %10323 = vmatprep.mubr.msk.f32.mxu0 %vm11848_vm0, %v11849_v6 }
0x37c0   :  { %v5912_v33 = vpop.f32.mrb[62].mxu0 }
0x37c1   :  { %v12883_v22 = vadd.f32 %v9561_v21, %v5912_v33  ;;  %v10310_v23 = vpop.f32.mrb[63].mxu0 }
0x37c2   :  { %v9565_v23 = vld [vmem:[%s13321_s8 + $0x30] sm:$0xff] }
0x37c3   :  { %6090 = vrot.lane.b32.xlu0 %v12883_v22, %s11852_s23  ;;  %5924 = vrot.lane.b32.xlu1 %v12883_v22, %s11851_s24 }
0x37c7   :  { %6088 = vrot.lane.b32.xlu0 %v12883_v22, %s11850_s22 }
0x3835   :  { %v6091_v24 = vpop.permute.xlu0 %6090  ;;  %v5925_v1 = vpop.permute.xlu1 %5924 }
0x3836   :  { %10312 = vmatpush3.xpose.msk.msra.mxu1 %vm818_vm12, %v5925_v1  ;;  %10322 = vmatpush3.xpose.msk.msra.mxu0 %vm818_vm12, %v6091_v24 }
0x3837   :  { %10316 = vmatprep.subr.mxu1 %v11849_v6  ;;  %10331 = vmatprep.subr.mxu0 %v11849_v6 }
0x3839   :  { %v6089_v25 = vpop.permute.xlu0 %6088  ;;  %10314 = vmatmul.mubr.msk.f32.vlgmr.msra.gmra.mrb[60].mxu1 %vm818_vm12, %v12883_v22 }
0x383a   :  { %10324 = vmatmul.mubr.msk.f32.vlgmr.msra.gmra.mrb[64].mxu0 %vm818_vm12, %v6089_v25  ;;  %10318 = vmatprep.mubr.msk.f32.mxu1 %vm11848_vm0, %v11849_v6 }
0x383b   :  { %10333 = vmatprep.mubr.msk.f32.mxu0 %vm11848_vm0, %v11849_v6  ;;  %10332 = vmatpush3.msra.mxu0 %v9564_v48  ;;  %v9594_v48 = vld [vmem:[%s13322_s20 + $0x30] sm:$0xff] }
0x383c   :  { %10341 = vmatprep.subr.mxu0 %v11849_v6 }
0x390c   :  { %v5996_v26 = vpop.f32.mrb[60].mxu1 }
0x390d   :  { %v6000_v27 = vmul.f32 0.35355338, %v5996_v26  ;;  %v10315_v28 = vpop.f32.mrb[61].mxu1  ;;  %v6162_v29 = vpop.f32.mrb[64].mxu0 }
0x390e   :  { %v6166_v30 = vmul.f32 0.35355338, %v6162_v29  ;;  %v10325_v31 = vpop.f32.mrb[65].mxu0 }
0x390f   :  { %v6001_v32 = vsel %vm818_vm12, %v6000_v27, -inf }
0x3910   :  { %6002 = vmax.xlane.f32.xlu0 %v6001_v32  ;;  %v6167_v52 = vsel %vm818_vm12, %v6166_v30, -inf }
0x3911   :  { %6168 = vmax.xlane.f32.xlu1 %v6167_v52 }
0x3922   :  { %6178 = vrot.lane.b32.xlu1 %v12883_v22, %s11853_s9  ;;  %s13327_s9 = sld [smem:[#allocation67_spill]] }
0x3926   :  { %6400 = vrot.lane.b32.xlu1 %v12883_v22, %s11856_s27 }
0x3928   :  { %p9254_p6 = scmp.gt.s32.totalorder %s13327_s9, 30 }
0x399d   :  { %v6003_v38 = vpop.xlane.xlu0 %6002 }
0x399e   :  { %v6004_v39 = vsub.f32 %v6000_v27, %v6003_v38  ;;  %v6169_v41 = vpop.xlane.xlu1 %6168  ;;  %v9566_v38 = vld [vmem:[%s13321_s8 + $0x38] sm:$0xff] }
0x399f   :  { %v6170_v62 = vsub.f32 %v6166_v30, %v6169_v41 }
0x39a0   :  { %v6005_v42 = vmul.f32 1.442695, %v6004_v39 }
0x39a1   :  { %v6171_v43 = vmul.f32 1.442695, %v6170_v62 }
0x39a2   :  { %11095 = vpow2.f32 %v6005_v42  ;;  %v6179_v55 = vpop.permute.xlu1 %6178 }
0x39a3   :  { %11097 = vpow2.f32 %v6171_v43 }
0x39a6   :  { %v6401_v15 = vpop.permute.xlu1 %6400 }
0x39ac   :  { %v11096_v44 = vpop.eup %11095 }
0x39ad   :  { %v6007_v45 = vsel %vm818_vm12, %v11096_v44, 0.0  ;;  %v11098_v46 = vpop.eup %11097 }
0x39ae   :  { %6008 = vadd.xlane.f32.xlu0 %v6007_v45  ;;  %v6173_v47 = vsel %vm818_vm12, %v11098_v46, 0.0 }
0x39b2   :  { %6174 = vadd.xlane.f32.xlu0 %v6173_v47 }
0x39c8   :  { %6012 = vrot.lane.b32.xlu0 %v12883_v22, %s11854_s26  ;;  %s9255_s26 = sld [smem:[#allocation5]] }
0x39cc   :  { %6402 = vrot.lane.b32.xlu0 %v12883_v22, %s11855_s28 }
0x39ce   :  { %p9265_p7 = scmp.eq.s32.totalorder %s9255_s26, 1  ;;  %p9273_p8 = scmp.eq.s32.totalorder %s9255_s26, 2 }
0x39cf   :  { %p9281_p9 = scmp.eq.s32.totalorder %s9255_s26, 3 }
0x3a3b   :  { %v6009_v49 = vpop.xlane.xlu0 %6008 }
0x3a3c   :  { %11099 = vrcp.f32 %v6009_v49  ;;  %v9595_v49 = vld [vmem:[%s13322_s20 + $0x38] sm:$0xff] }
0x3a3f   :  { %v6175_v50 = vpop.xlane.xlu0 %6174 }
0x3a40   :  { %11101 = vrcp.f32 %v6175_v50 }
0x3a43   :  { %v6013_v51 = vpop.permute.xlu0 %6012 }
0x3a44   :  { %10317 = vmatpush3.msra.mxu1 %v6013_v51 }
0x3a45   :  { %10326 = vmatprep.subr.mxu1 %v11849_v6 }
0x3a46   :  { %v11100_v53 = vpop.eup %11099 }
0x3a47   :  { %v6011_v37 = vmul.f32 %v11100_v53, %v11096_v44  ;;  %v6403_v35 = vpop.permute.xlu0 %6402  ;;  %v10563_v53 = vpack.c.bf16 %v9595_v49, %v9594_v48 }
0x3a49   :  { %10319 = vmatmul.mubr.msk.f32.vlgmr.msra.gmra.mrb[62].mxu1 %vm818_vm12, %v6011_v37  ;;  %v9583_v37 = vld [vmem:[#allocation23 + $0x1] ss:$0 sm:$0xff] }
0x3a4a   :  { %v11102_v40 = vpop.eup %11101  ;;  %10327 = vmatpush3.msra.mxu1 %v6179_v55  ;;  %10328 = vmatprep.mubr.msk.f32.mxu1 %vm11848_vm0, %v11849_v6 }
0x3a4b   :  { %v6177_v56 = vmul.f32 %v11102_v40, %v11098_v46  ;;  %10336 = vmatprep.subr.mxu1 %v11849_v6  ;;  %v9593_v46 = vld [vmem:[%s13322_s20 + $0x28] sm:$0xff] }
0x3a4d   :  { %10329 = vmatmul.mubr.msk.f32.vlgmr.msra.gmra.mrb[64].mxu1 %vm818_vm12, %v6177_v56 }
0x3a4e   :  { %10338 = vmatprep.mubr.msk.f32.mxu1 %vm11848_vm0, %v11849_v6  ;;  %10337 = vmatpush3.msra.mxu1 %v9563_v57 }
0x3a4f   :  { %10346 = vmatprep.subr.mxu1 %v11849_v6 }
0x3b1c   :  { %v6084_v58 = vpop.f32.mrb[62].mxu1 }
0x3b1d   :  { %v10320_v59 = vpop.f32.mrb[63].mxu1  ;;  %10339 = vmatmul.mubr.msk.f32.vlgmr.msra.gmra.mrb[66].mxu1 %vm818_vm12, %v6084_v58 }
0x3b1e   :  { %10348 = vmatprep.mubr.msk.f32.mxu1 %vm11848_vm0, %v11849_v6 }
0x3b20   :  { %v6250_v60 = vpop.f32.mrb[64].mxu1 }
0x3b21   :  { %v10330_v61 = vpop.f32.mrb[65].mxu1  ;;  %10334 = vmatmul.mubr.msk.f32.vlgmr.msra.gmra.mrb[66].mxu0 %vm818_vm12, %v6250_v60 }
0x3b22   :  { %10342 = vmatpush3.xpose.msk.msra.mxu0 %vm818_vm12, %v6403_v35  ;;  %10343 = vmatprep.mubr.msk.f32.mxu0 %vm11848_vm0, %v11849_v6 }
0x3b23   :  { %10351 = vmatprep.subr.mxu0 %v11849_v6 }
0x3b25   :  { %10344 = vmatmul.mubr.msk.f32.vlgmr.msra.gmra.mrb[68].mxu0 %vm818_vm12, %v6401_v15 }
0x3b26   :  { %10353 = vmatprep.mubr.msk.f32.mxu0 %vm11848_vm0, %v11849_v6  ;;  %10352 = vmatpush3.msra.mxu0 %v9565_v23 }
0x3b27   :  { %10361 = vmatprep.subr.mxu0 %v11849_v6 }
0x3bf0   :  { %v6396_v63 = vpop.f32.mrb[66].mxu1 }
0x3bf1   :  { %v10340_v0 = vpop.f32.mrb[67].mxu1 }
0x3bf4   :  { %v6323_v3 = vpop.f32.mrb[66].mxu0 }
0x3bf5   :  { %v6397_v5 = vadd.f32 %v6396_v63, %v6323_v3  ;;  %v10335_v7 = vpop.f32.mrb[67].mxu0  ;;  %v9596_v3 = vld [vmem:[#allocation29 + $0x1] ss:$0 sm:$0xff] }
0x3bf6   :  { %v9587_v7 = vld [vmem:[%s13323_s11 + $0x28] sm:$0xff] }
0x3bf8   :  { %v6474_v9 = vpop.f32.mrb[68].mxu0 }
0x3bf9   :  { %v6478_v8 = vmul.f32 0.35355338, %v6474_v9  ;;  %v10345_v10 = vpop.f32.mrb[69].mxu0 }
0x3bfa   :  { %v9589_v10 = vld [vmem:[%s13323_s11 + $0x38] sm:$0xff] }
0x3bfb   :  { %v6479_v11 = vsel %vm818_vm12, %v6478_v8, -inf }
0x3bfc   :  { %6480 = vmax.xlane.f32.xlu0 %v6479_v11 }
0x3c12   :  { %6490 = vrot.lane.b32.xlu0 %v12883_v22, %s11859_s25  ;;  %s9282_s25 = scalar_select %p9281_p9, 1, 0 }
0x3c16   :  { %6640 = vrot.lane.b32.xlu0 %v12883_v22, %s11858_s3 }
0x3c89   :  { %v6481_v12 = vpop.xlane.xlu0 %6480 }
0x3c8a   :  { %v6482_v54 = vsub.f32 %v6478_v8, %v6481_v12  ;;  %v9588_v8 = vld [vmem:[%s13323_s11 + $0x30] sm:$0xff] }
0x3c8b   :  { %v10557_v11 = vpack.c.bf16 %v9589_v10, %v9588_v8 }
0x3c8c   :  { %v6483_v13 = vmul.f32 1.442695, %v6482_v54 }
0x3c8d   :  { %v6491_v14 = vpop.permute.xlu0 %6490 }
0x3c8e   :  { %11103 = vpow2.f32 %v6483_v13  ;;  %10347 = vmatpush3.msra.mxu1 %v6491_v14 }
0x3c8f   :  { %10356 = vmatprep.subr.mxu1 %v11849_v6 }
0x3c91   :  { %v6641_v33 = vpop.permute.xlu0 %6640 }
0x3c98   :  { %v11104_v34 = vpop.eup %11103 }
0x3c99   :  { %v6485_v16 = vsel %vm818_vm12, %v11104_v34, 0.0 }
0x3c9a   :  { %6486 = vadd.xlane.f32.xlu1 %v6485_v16 }
0x3cab   :  { %6642 = vrot.lane.b32.xlu1 %v12883_v22, %s11857_s1 }
0x3d27   :  { %v6487_v17 = vpop.xlane.xlu1 %6486 }
0x3d28   :  { %11105 = vrcp.f32 %v6487_v17  ;;  %v9585_v17 = vld [vmem:[#allocation26 + $0x1] ss:$0 sm:$0xff] }
0x3d2b   :  { %v6643_v21 = vpop.permute.xlu1 %6642 }
0x3d32   :  { %v11106_v18 = vpop.eup %11105 }
0x3d33   :  { %v6489_v19 = vmul.f32 %v11106_v18, %v11104_v34  ;;  %v9584_v34 = vld [vmem:[#allocation24 + $0x1] ss:$0 sm:$0xff] }
0x3d35   :  { %10349 = vmatmul.mubr.msk.f32.vlgmr.msra.gmra.mrb[68].mxu1 %vm818_vm12, %v6489_v19 }
0x3d36   :  { %10357 = vmatpush3.xpose.msk.msra.mxu1 %vm818_vm12, %v6643_v21  ;;  %10358 = vmatprep.mubr.msk.f32.mxu1 %vm11848_vm0, %v11849_v6  ;;  %v9590_v21 = vld [vmem:[#allocation27 + $0x1] ss:$0 sm:$0xff] }
0x3d37   :  { %10366 = vmatprep.subr.mxu1 %v11849_v6 }
0x3d39   :  { %10359 = vmatmul.mubr.msk.f32.vlgmr.msra.gmra.mrb[70].mxu1 %vm818_vm12, %v6641_v33 }
0x3d3a   :  { %10368 = vmatprep.mubr.msk.f32.mxu1 %vm11848_vm0, %v11849_v6  ;;  %10367 = vmatpush3.msra.mxu1 %v9566_v38 }
0x3d3b   :  { %10559 = vmatprep.subr.bf16.mxu1 %v11847_v4 }
0x3e08   :  { %v6562_v24 = vpop.f32.mrb[68].mxu1 }
0x3e09   :  { %v10350_v1 = vpop.f32.mrb[69].mxu1  ;;  %10354 = vmatmul.mubr.msk.f32.vlgmr.msra.gmra.mrb[70].mxu0 %vm818_vm12, %v6562_v24 }
0x3e0a   :  { %10363 = vmatprep.mubr.msk.f32.mxu0 %vm11848_vm0, %v11849_v6 }
0x3e0c   :  { %v6714_v25 = vpop.f32.mrb[70].mxu1 }
0x3e0d   :  { %v6718_v26 = vmul.f32 0.35355338, %v6714_v25  ;;  %v10360_v27 = vpop.f32.mrb[71].mxu1 }
0x3e0f   :  { %v6719_v28 = vsel %vm818_vm12, %v6718_v26, -inf }
0x3e10   :  { %6720 = vmax.xlane.f32.xlu1 %v6719_v28 }
0x3e9d   :  { %v6721_v29 = vpop.xlane.xlu1 %6720 }
0x3e9e   :  { %v6722_v30 = vsub.f32 %v6718_v26, %v6721_v29 }
0x3ea0   :  { %v6723_v31 = vmul.f32 1.442695, %v6722_v30 }
0x3ea2   :  { %11107 = vpow2.f32 %v6723_v31 }
0x3eac   :  { %v11108_v32 = vpop.eup %11107 }
0x3ead   :  { %v6725_v52 = vsel %vm818_vm12, %v11108_v32, 0.0 }
0x3eae   :  { %6726 = vadd.xlane.f32.xlu0 %v6725_v52 }
0x3ec4   :  { %6730 = vrot.lane.b32.xlu0 %v12883_v22, %s11860_s10  ;;  %v9592_v22 = vld [vmem:[%s13322_s20 + $0x20] sm:$0xff] }
0x3ec5   :  { %v10560_v47 = vpack.c.bf16 %v9593_v46, %v9592_v22 }
0x3edc   :  { %v6635_v39 = vpop.f32.mrb[70].mxu0 }
0x3edd   :  { %v6639_v41 = vadd.f32 %v6635_v39, %v6397_v5  ;;  %v10355_v62 = vpop.f32.mrb[71].mxu0 }
0x3f3b   :  { %v6727_v42 = vpop.xlane.xlu0 %6726 }
0x3f3c   :  { %11109 = vrcp.f32 %v6727_v42 }
0x3f3f   :  { %v6731_v43 = vpop.permute.xlu0 %6730 }
0x3f40   :  { %10362 = vmatpush3.msra.mxu0 %v6731_v43 }
0x3f41   :  { %10553 = vmatprep.subr.bf16.mxu0 %v11847_v4 }
0x3f46   :  { %v11110_v44 = vpop.eup %11109 }
0x3f47   :  { %v6729_v45 = vmul.f32 %v11110_v44, %v11108_v32 }
0x3f49   :  { %10364 = vmatmul.mubr.msk.f32.vlgmr.msra.gmra.mrb[72].mxu0 %vm818_vm12, %v6729_v45 }
0x3f4a   :  { %10379 = vmatprep.mubr.msk.f32.mxu0 %vm11848_vm0, %v11849_v6 }
0x401c   :  { %v6802_v50 = vpop.f32.mrb[72].mxu0 }
0x401d   :  { %v10365_v51 = vpop.f32.mrb[73].mxu0  ;;  %10369 = vmatmul.mubr.msk.f32.vlgmr.msra.gmra.mrb[72].mxu1 %vm818_vm12, %v6802_v50 }
0x401e   :  { %10561 = vmatpush3.bf16.msra.mxu1 %v10560_v47  ;;  %10390 = vmatprep.mubr.msk.f32.mxu1 %vm11848_vm0, %v11849_v6  ;;  %v7090_v51 = vld [vmem:[#allocation30 + $0x28] sm:$0xff] }
0x401f   :  { %10562 = vmatprep.subr.bf16.mxu1 %v11847_v4 }
0x4022   :  { %10564 = vmatpush3.bf16.msra.mxu1 %v10563_v53 }
0x4023   :  { %10398 = vmatprep.subr.mxu1 %v11849_v6 }
0x4025   :  { %10391 = vmatmul.mubr.msk.f32.vlgmr.msra.gmra.mrb[74].mxu1 %vm736_vm11, %v12752_v36 }
0x4026   :  { %10400 = vmatprep.mubr.msk.f32.mxu1 %vm11848_vm0, %v11849_v6 }
0x40f0   :  { %v6875_v55 = vpop.f32.mrb[72].mxu1 }
0x40f1   :  { %v6879_v40 = vadd.f32 %v6875_v55, %v6639_v41  ;;  %v10370_v56 = vpop.f32.mrb[73].mxu1 }
0x40f2   :  { %v7089_v56 = vld [vmem:[#allocation30 + $0x20] sm:$0xff] }
0x40f3   :  { %v6886_v57 = vadd.f32 %v9583_v37, %v6879_v40 }
0x40f5   :  { %v6887_v58 = vadd.f32 %v6886_v57, %v12877_v20  ;;  %v9586_v20 = vld [vmem:[%s13323_s11 + $0x20] sm:$0xff] }
0x40f6   :  { %v10554_v9 = vpack.c.bf16 %v9587_v7, %v9586_v20 }
0x40f7   :  { %v6892_v59 = vsel %vm736_vm11, %v6887_v58, 0.0 }
0x40f8   :  { %v7084_v60 = vpop.f32.mrb[74].mxu1  ;;  %6893 = vadd.xlane.f32.xlu1 %v6892_v59  ;;  %10555 = vmatpush3.bf16.msra.mxu0 %v10554_v9 }
0x40f9   :  { %v10392_v35 = vpop.f32.mrb[75].mxu1  ;;  %v12985_v5 = vadd.f32 %v9596_v3, %v7084_v60  ;;  %10556 = vmatprep.subr.bf16.mxu0 %v11847_v4 }
0x40fc   :  { %10558 = vmatpush3.bf16.msra.mxu0 %v10557_v11 }
0x40fd   :  { %10393 = vmatprep.subr.mxu0 %v11849_v6 }
0x4185   :  { %v6894_v36 = vpop.xlane.xlu1 %6893 }
0x4186   :  { %v6895_v61 = vmul.f32 0.03125, %v6894_v36 }
0x4188   :  { %v6896_v15 = vsub.f32 %v6887_v58, %v6895_v61 }
0x418a   :  { %v6897_v63 = vmul.f32 %v6896_v15, %v6896_v15 }
0x418c   :  { %v6898_v0 = vsel %vm736_vm11, %v6897_v63, 0.0 }
0x418d   :  { %6899 = vadd.xlane.f32.xlu1 %v6898_v0 }
0x419e   :  { %7261 = vrot.lane.b32.xlu1 %v12985_v5, %s11850_s22 }
0x421a   :  { %v6900_v12 = vpop.xlane.xlu1 %6899 }
0x421b   :  { %v6901_v54 = vmul.f32 0.03125, %v6900_v12 }
0x421d   :  { %v6902_v13 = vadd.f32 1e-05, %v6901_v54 }
0x421e   :  { %v7262_v1 = vpop.permute.xlu1 %7261 }
0x421f   :  { %11111 = vrsqrt.f32 %v6902_v13 }
0x4229   :  { %v11112_v14 = vpop.eup %11111 }
0x422a   :  { %v6904_v16 = vmul.f32 %v11112_v14, %v6896_v15 }
0x422c   :  { %v6911_v18 = vmul.f32 %v9584_v34, %v6904_v16 }
0x422e   :  { %v12995_v19 = vadd.f32 %v9585_v17, %v6911_v18 }
0x4230   :  { %10380 = vmatmul.mubr.msk.f32.vlgmr.msra.gmra.mrb[74].mxu0 %vm736_vm11, %v12995_v19 }
0x4231   :  { %10394 = vmatpush3.xpose.msk.msra.mxu0 %vm818_vm12, %v12985_v5  ;;  %10395 = vmatprep.mubr.msk.f32.mxu0 %vm11848_vm0, %v11849_v6 }
0x4232   :  { %10403 = vmatprep.subr.mxu0 %v11849_v6 }
0x4303   :  { %v7001_v33 = vpop.f32.mrb[74].mxu0 }
0x4304   :  { %v13004_v23 = vadd.f32 %v9590_v21, %v7001_v33  ;;  %v10381_v24 = vpop.f32.mrb[75].mxu0  ;;  %v7091_v33 = vld [vmem:[#allocation30 + $0x30] sm:$0xff] }
0x4306   :  { %7259 = vrot.lane.b32.xlu0 %v13004_v23, %s11850_s22  ;;  %10396 = vmatmul.mubr.msk.f32.vlgmr.msra.gmra.mrb[76].mxu0 %vm818_vm12, %v13004_v23  ;;  %s13324_s22 = sld [smem:[#allocation91_spill]] }
0x4307   :  { %10404 = vmatpush3.xpose.msk.msra.mxu0 %vm818_vm12, %v7262_v1  ;;  %10405 = vmatprep.mubr.msk.f32.mxu0 %vm11848_vm0, %v11849_v6 }
0x4308   :  { %10413 = vmatprep.subr.mxu0 %v11849_v6 }
0x4378   :  { %v7260_v25 = vpop.permute.xlu0 %7259 }
0x4379   :  { %10406 = vmatmul.mubr.msk.f32.vlgmr.msra.gmra.mrb[78].mxu0 %vm818_vm12, %v7260_v25 }
0x437a   :  { %10415 = vmatprep.mubr.msk.f32.mxu0 %vm11848_vm0, %v11849_v6  ;;  %10414 = vmatpush3.msra.mxu0 %v7090_v51 }
0x437b   :  { %10423 = vmatprep.subr.mxu0 %v11849_v6 }
0x43d9   :  { %v7167_v26 = vpop.f32.mrb[76].mxu0 }
0x43da   :  { %v7171_v27 = vmul.f32 0.35355338, %v7167_v26  ;;  %v10397_v28 = vpop.f32.mrb[77].mxu0 }
0x43dc   :  { %v7172_v29 = vsel %vm818_vm12, %v7171_v27, -inf }
0x43dd   :  { %7173 = vmax.xlane.f32.xlu0 %v7172_v29 }
0x444c   :  { %v7333_v30 = vpop.f32.mrb[78].mxu0 }
0x444d   :  { %v7337_v31 = vmul.f32 0.35355338, %v7333_v30  ;;  %v10407_v32 = vpop.f32.mrb[79].mxu0 }
0x444f   :  { %v7338_v52 = vsel %vm818_vm12, %v7337_v31, -inf }
0x4450   :  { %7339 = vmax.xlane.f32.xlu1 %v7338_v52  ;;  %v7092_v52 = vld [vmem:[#allocation30 + $0x38] sm:$0xff] }
0x4461   :  { %7183 = vrot.lane.b32.xlu1 %v12985_v5, %s11851_s24  ;;  %s13325_s24 = sld [smem:[#allocation92_spill]] }
0x4465   :  { %7573 = vrot.lane.b32.xlu1 %v12985_v5, %s11856_s27 }
0x4469   :  { %7571 = vrot.lane.b32.xlu1 %v13004_v23, %s11856_s27  ;;  %s9266_s27 = scalar_select %p9265_p7, 1, 0 }
0x446a   :  { %v7174_v38 = vpop.xlane.xlu0 %7173 }
0x446b   :  { %v7175_v39 = vsub.f32 %v7171_v27, %v7174_v38 }
0x446d   :  { %v7176_v41 = vmul.f32 1.442695, %v7175_v39 }
0x446f   :  { %11113 = vpow2.f32 %v7176_v41 }
0x4479   :  { %v11114_v62 = vpop.eup %11113 }
0x447a   :  { %v7178_v42 = vsel %vm818_vm12, %v11114_v62, 0.0 }
0x447b   :  { %7179 = vadd.xlane.f32.xlu0 %v7178_v42 }
0x44dd   :  { %v7340_v43 = vpop.xlane.xlu1 %7339 }
0x44de   :  { %v7341_v44 = vsub.f32 %v7337_v31, %v7340_v43 }
0x44e0   :  { %v7342_v45 = vmul.f32 1.442695, %v7341_v44 }
0x44e1   :  { %v7184_v22 = vpop.permute.xlu1 %7183 }
0x44e2   :  { %11115 = vpow2.f32 %v7342_v45  ;;  %10399 = vmatpush3.msra.mxu1 %v7184_v22  ;;  %v9614_v22 = vld [vmem:[#allocation32 + $0x1] ss:$0 sm:$0xff] }
0x44e3   :  { %10408 = vmatprep.subr.mxu1 %v11849_v6 }
0x44e5   :  { %v7574_v59 = vpop.permute.xlu1 %7573 }
0x44e9   :  { %v7572_v36 = vpop.permute.xlu1 %7571 }
0x44ec   :  { %v11116_v46 = vpop.eup %11115 }
0x44ed   :  { %v7344_v47 = vsel %vm818_vm12, %v11116_v46, 0.0 }
0x44ee   :  { %7345 = vadd.xlane.f32.xlu0 %v7344_v47 }
0x4504   :  { %7349 = vrot.lane.b32.xlu0 %v12985_v5, %s11852_s23  ;;  %s13326_s23 = sld [smem:[#allocation95_spill]] }
0x4508   :  { %v7180_v48 = vpop.xlane.xlu0 %7179 }
0x4509   :  { %11117 = vrcp.f32 %v7180_v48 }
0x4513   :  { %v11118_v49 = vpop.eup %11117 }
0x4514   :  { %v7182_v50 = vmul.f32 %v11118_v49, %v11114_v62 }
0x4516   :  { %10401 = vmatmul.mubr.msk.f32.vlgmr.msra.gmra.mrb[76].mxu1 %vm818_vm12, %v7182_v50 }
0x4517   :  { %10410 = vmatprep.mubr.msk.f32.mxu1 %vm11848_vm0, %v11849_v6 }
0x457b   :  { %v7346_v53 = vpop.xlane.xlu0 %7345 }
0x457c   :  { %11119 = vrcp.f32 %v7346_v53 }
0x457f   :  { %v7350_v37 = vpop.permute.xlu0 %7349 }
0x4580   :  { %10409 = vmatpush3.msra.mxu1 %v7350_v37 }
0x4581   :  { %10418 = vmatprep.subr.mxu1 %v11849_v6 }
0x4586   :  { %v11120_v55 = vpop.eup %11119 }
0x4587   :  { %v7348_v40 = vmul.f32 %v11120_v55, %v11116_v46 }
0x4589   :  { %10411 = vmatmul.mubr.msk.f32.vlgmr.msra.gmra.mrb[78].mxu1 %vm818_vm12, %v7348_v40 }
0x458a   :  { %10419 = vmatpush3.msra.mxu1 %v7089_v56  ;;  %10420 = vmatprep.mubr.msk.f32.mxu1 %vm11848_vm0, %v11849_v6 }
0x458b   :  { %10428 = vmatprep.subr.mxu1 %v11849_v6 }
0x45e9   :  { %v7255_v57 = vpop.f32.mrb[76].mxu1 }
0x45ea   :  { %v10402_v58 = vpop.f32.mrb[77].mxu1  ;;  %10421 = vmatmul.mubr.msk.f32.vlgmr.msra.gmra.mrb[80].mxu1 %vm818_vm12, %v7255_v57  ;;  %v8091_v57 = vld [vmem:[#allocation36 + $0x20] sm:$0xff] }
0x45eb   :  { %10430 = vmatprep.mubr.msk.f32.mxu1 %vm11848_vm0, %v11849_v6  ;;  %v8092_v58 = vld [vmem:[#allocation36 + $0x28] sm:$0xff] }
0x465c   :  { %v7421_v60 = vpop.f32.mrb[78].mxu1 }
0x465d   :  { %v10412_v35 = vpop.f32.mrb[79].mxu1  ;;  %10416 = vmatmul.mubr.msk.f32.vlgmr.msra.gmra.mrb[80].mxu0 %vm818_vm12, %v7421_v60  ;;  %v8093_v60 = vld [vmem:[#allocation36 + $0x30] sm:$0xff] }
0x465e   :  { %10424 = vmatpush3.xpose.msk.msra.mxu0 %vm818_vm12, %v7574_v59  ;;  %10425 = vmatprep.mubr.msk.f32.mxu0 %vm11848_vm0, %v11849_v6  ;;  %v10566_v59 = vpack.c.bf16 %v8092_v58, %v8091_v57  ;;  %v8094_v35 = vld [vmem:[#allocation36 + $0x38] sm:$0xff]  ;;  %v8485_v57 = vld [vmem:[#allocation45 + $0x18] sm:$0xff] }
0x465f   :  { %10433 = vmatprep.subr.mxu0 %v11849_v6 }
0x4661   :  { %10426 = vmatmul.mubr.msk.f32.vlgmr.msra.gmra.mrb[82].mxu0 %vm818_vm12, %v7572_v36  ;;  %v10569_v36 = vpack.c.bf16 %v8094_v35, %v8093_v60 }
0x4662   :  { %10435 = vmatprep.mubr.msk.f32.mxu0 %vm11848_vm0, %v11849_v6  ;;  %10434 = vmatpush3.msra.mxu0 %v7091_v33 }
0x4663   :  { %10443 = vmatprep.subr.mxu0 %v11849_v6 }
0x46bd   :  { %v7567_v61 = vpop.f32.mrb[80].mxu1 }
0x46be   :  { %v10422_v15 = vpop.f32.mrb[81].mxu1 }
0x4730   :  { %v7494_v63 = vpop.f32.mrb[80].mxu0 }
0x4731   :  { %v7568_v0 = vadd.f32 %v7567_v61, %v7494_v63  ;;  %v10417_v3 = vpop.f32.mrb[81].mxu0  ;;  %v8179_v61 = vld [vmem:[#allocation39 + $0x28] sm:$0xff] }
0x4734   :  { %v7645_v20 = vpop.f32.mrb[82].mxu0 }
0x4735   :  { %v7649_v7 = vmul.f32 0.35355338, %v7645_v20  ;;  %v10427_v9 = vpop.f32.mrb[83].mxu0 }
0x4737   :  { %v7650_v8 = vsel %vm818_vm12, %v7649_v7, -inf }
0x4738   :  { %7651 = vmax.xlane.f32.xlu0 %v7650_v8  ;;  %v9616_v8 = vld [vmem:[#allocation35 + $0x1] ss:$0 sm:$0xff] }
0x474e   :  { %7661 = vrot.lane.b32.xlu0 %v12985_v5, %s11855_s28  ;;  %s9258_s28 = scalar_select %p9254_p6, 1, 0 }
0x4752   :  { %7811 = vrot.lane.b32.xlu0 %v13004_v23, %s11858_s3 }
0x47c5   :  { %v7652_v10 = vpop.xlane.xlu0 %7651 }
0x47c6   :  { %v7653_v11 = vsub.f32 %v7649_v7, %v7652_v10  ;;  %v9615_v7 = vld [vmem:[#allocation33 + $0x1] ss:$0 sm:$0xff] }
0x47c8   :  { %v7654_v12 = vmul.f32 1.442695, %v7653_v11 }
0x47c9   :  { %v7662_v54 = vpop.permute.xlu0 %7661 }
0x47ca   :  { %11121 = vpow2.f32 %v7654_v12  ;;  %10429 = vmatpush3.msra.mxu1 %v7662_v54  ;;  %v8180_v12 = vld [vmem:[#allocation39 + $0x30] sm:$0xff]  ;;  %v8181_v54 = vld [vmem:[#allocation39 + $0x38] sm:$0xff] }
0x47cb   :  { %10438 = vmatprep.subr.mxu1 %v11849_v6 }
0x47cd   :  { %v7812_v21 = vpop.permute.xlu0 %7811 }
0x47d4   :  { %v11122_v13 = vpop.eup %11121 }
0x47d5   :  { %v7656_v14 = vsel %vm818_vm12, %v11122_v13, 0.0 }
0x47d6   :  { %7657 = vadd.xlane.f32.xlu1 %v7656_v14  ;;  %v9617_v14 = vld [vmem:[#allocation38 + $0x1] ss:$0 sm:$0xff] }
0x47e7   :  { %7813 = vrot.lane.b32.xlu1 %v12985_v5, %s11858_s3  ;;  %s9274_s3 = scalar_select %p9273_p8, 1, 0 }
0x4863   :  { %v7658_v34 = vpop.xlane.xlu1 %7657 }
0x4864   :  { %11123 = vrcp.f32 %v7658_v34 }
0x4867   :  { %v7814_v18 = vpop.permute.xlu1 %7813 }
0x486e   :  { %v11124_v16 = vpop.eup %11123 }
0x486f   :  { %v7660_v17 = vmul.f32 %v11124_v16, %v11122_v13  ;;  %v10575_v13 = vpack.c.bf16 %v8181_v54, %v8180_v12  ;;  %v8497_v12 = vld [vmem:[#allocation45 + $0x78] sm:$0xff] }
0x4871   :  { %10431 = vmatmul.mubr.msk.f32.vlgmr.msra.gmra.mrb[82].mxu1 %vm818_vm12, %v7660_v17 }
0x4872   :  { %10439 = vmatpush3.xpose.msk.msra.mxu1 %vm818_vm12, %v7814_v18  ;;  %10440 = vmatprep.mubr.msk.f32.mxu1 %vm11848_vm0, %v11849_v6  ;;  %v9619_v18 = vld [vmem:[#allocation41 + $0x1] ss:$0 sm:$0xff] }
0x4873   :  { %10448 = vmatprep.subr.mxu1 %v11849_v6 }
0x4875   :  { %10441 = vmatmul.mubr.msk.f32.vlgmr.msra.gmra.mrb[84].mxu1 %vm818_vm12, %v7812_v21 }
0x4876   :  { %10450 = vmatprep.mubr.msk.f32.mxu1 %vm11848_vm0, %v11849_v6  ;;  %10449 = vmatpush3.msra.mxu1 %v7092_v52  ;;  %v8302_v52 = vld [vmem:[%s13324_s22 + $0x38] sm:$0xff] }
0x4877   :  { %10571 = vmatprep.subr.bf16.mxu1 %v11847_v4 }
0x4944   :  { %v7733_v23 = vpop.f32.mrb[82].mxu1 }
0x4945   :  { %v10432_v24 = vpop.f32.mrb[83].mxu1  ;;  %10436 = vmatmul.mubr.msk.f32.vlgmr.msra.gmra.mrb[84].mxu0 %vm818_vm12, %v7733_v23 }
0x4946   :  { %10445 = vmatprep.mubr.msk.f32.mxu0 %vm11848_vm0, %v11849_v6 }
0x4948   :  { %v7885_v1 = vpop.f32.mrb[84].mxu1 }
0x4949   :  { %v7889_v25 = vmul.f32 0.35355338, %v7885_v1  ;;  %v10442_v26 = vpop.f32.mrb[85].mxu1 }
0x494b   :  { %v7890_v27 = vsel %vm818_vm12, %v7889_v25, -inf }
0x494c   :  { %7891 = vmax.xlane.f32.xlu1 %v7890_v27 }
0x49d9   :  { %v7892_v28 = vpop.xlane.xlu1 %7891 }
0x49da   :  { %v7893_v29 = vsub.f32 %v7889_v25, %v7892_v28 }
0x49dc   :  { %v7894_v30 = vmul.f32 1.442695, %v7893_v29  ;;  %v8296_v29 = vld [vmem:[%s13324_s22 + $0x8] sm:$0xff] }
0x49de   :  { %11125 = vpow2.f32 %v7894_v30  ;;  %v8300_v30 = vld [vmem:[%s13324_s22 + $0x28] sm:$0xff] }
0x49e8   :  { %v11126_v31 = vpop.eup %11125 }
0x49e9   :  { %v7896_v32 = vsel %vm818_vm12, %v11126_v31, 0.0 }
0x49ea   :  { %7897 = vadd.xlane.f32.xlu0 %v7896_v32  ;;  %v10577_v32 = vpack.c.bf16 %v8300_v30, %v8296_v29 }
0x4a00   :  { %7901 = vrot.lane.b32.xlu0 %v12985_v5, %s11857_s1  ;;  %s13330_s1 = sld [smem:[#allocation94_spill]] }
0x4a18   :  { %v7806_v38 = vpop.f32.mrb[84].mxu0 }
0x4a19   :  { %v7810_v39 = vadd.f32 %v7806_v38, %v7568_v0  ;;  %v10437_v41 = vpop.f32.mrb[85].mxu0  ;;  %v8295_v38 = vld [vmem:[%s13324_s22] sm:$0xff] }
0x4a77   :  { %v7898_v62 = vpop.xlane.xlu0 %7897 }
0x4a78   :  { %11127 = vrcp.f32 %v7898_v62 }
0x4a7b   :  { %v7902_v42 = vpop.permute.xlu0 %7901 }
0x4a7c   :  { %10444 = vmatpush3.msra.mxu0 %v7902_v42  ;;  %v8297_v42 = vld [vmem:[%s13324_s22 + $0x10] sm:$0xff] }
0x4a7d   :  { %10565 = vmatprep.subr.bf16.mxu0 %v11847_v4 }
0x4a82   :  { %v11128_v43 = vpop.eup %11127 }
0x4a83   :  { %v7900_v44 = vmul.f32 %v11128_v43, %v11126_v31  ;;  %v8298_v31 = vld [vmem:[%s13324_s22 + $0x18] sm:$0xff]  ;;  %v8301_v43 = vld [vmem:[%s13324_s22 + $0x30] sm:$0xff] }
0x4a84   :  { %v10585_v41 = vpack.c.bf16 %v8302_v52, %v8298_v31  ;;  %v8500_v31 = vld [vmem:[#allocation45 + $0x90] sm:$0xff]  ;;  %v8507_v52 = vld [vmem:[#allocation45 + $0xc8] sm:$0xff] }
0x4a85   :  { %10446 = vmatmul.mubr.msk.f32.vlgmr.msra.gmra.mrb[86].mxu0 %vm818_vm12, %v7900_v44  ;;  %v10587_v44 = vpack.c.bf16 %v8301_v43, %v8297_v42  ;;  %v8506_v43 = vld [vmem:[#allocation45 + $0xc0] sm:$0xff] }
0x4a86   :  { %10461 = vmatprep.mubr.msk.f32.mxu0 %vm11848_vm0, %v11849_v6  ;;  %10567 = vmatpush3.bf16.msra.mxu0 %v10566_v59  ;;  %v8489_v59 = vld [vmem:[#allocation45 + $0x38] sm:$0xff] }
0x4a87   :  { %10568 = vmatprep.subr.bf16.mxu0 %v11847_v4  ;;  %v10721_v60 = vpack.c.bf16 %v8489_v59, %v8485_v57  ;;  %v8516_v57 = vld [vmem:[#allocation45 + $0x110] sm:$0xff]  ;;  %v8523_v59 = vld [vmem:[#allocation45 + $0x148] sm:$0xff] }
0x4a8a   :  { %10570 = vmatpush3.bf16.msra.mxu0 %v10569_v36 }
0x4a8b   :  { %10578 = vmatprep.subr.bf16.mxu0 %v10577_v32  ;;  %v8504_v32 = vld [vmem:[#allocation45 + $0xb0] sm:$0xff] }
0x4a8c   :  { %v10731_v42 = vpack.c.bf16 %v8504_v32, %v8500_v31  ;;  %v8551_v31 = vld [vmem:[#allocation45 + $0x228] sm:$0xff]  ;;  %v8549_v32 = vld [vmem:[#allocation45 + $0x218] sm:$0xff] }
0x4b58   :  { %v7973_v5 = vpop.f32.mrb[86].mxu0 }
0x4b59   :  { %v10447_v45 = vpop.f32.mrb[87].mxu0  ;;  %10451 = vmatmul.mubr.msk.f32.vlgmr.msra.gmra.mrb[86].mxu1 %vm818_vm12, %v7973_v5  ;;  %v8304_v5 = vld [vmem:[%s13324_s22 + $0x48] sm:$0xff] }
0x4b5a   :  { %10472 = vmatprep.mubr.msk.f32.mxu1 %vm11848_vm0, %v11849_v6  ;;  %v8308_v45 = vld [vmem:[%s13324_s22 + $0x68] sm:$0xff] }
0x4c2c   :  { %v8046_v46 = vpop.f32.mrb[86].mxu1 }
0x4c2d   :  { %v8050_v47 = vadd.f32 %v8046_v46, %v7810_v39  ;;  %v10452_v48 = vpop.f32.mrb[87].mxu1  ;;  %v8299_v39 = vld [vmem:[%s13324_s22 + $0x20] sm:$0xff]  ;;  %v10581_v46 = vpack.c.bf16 %v8308_v45, %v8304_v5 }
0x4c2e   :  { %v10579_v62 = vpack.c.bf16 %v8299_v39, %v8295_v38  ;;  %v8303_v48 = vld [vmem:[%s13324_s22 + $0x40] sm:$0xff]  ;;  %v8509_v39 = vld [vmem:[#allocation45 + $0xd8] sm:$0xff] }
0x4c2f   :  { %v8057_v49 = vadd.f32 %v9614_v22, %v8050_v47  ;;  %v8306_v22 = vld [vmem:[%s13324_s22 + $0x58] sm:$0xff]  ;;  %v8511_v38 = vld [vmem:[#allocation45 + $0xe8] sm:$0xff] }
0x4c30   :  { %v8310_v47 = vld [vmem:[%s13324_s22 + $0x78] sm:$0xff]  ;;  %v10605_v5 = vpack.c.bf16 %v8511_v38, %v8507_v52  ;;  %v8553_v52 = vld [vmem:[#allocation45 + $0x238] sm:$0xff] }
0x4c31   :  { %v8058_v50 = vadd.f32 %v8057_v49, %v12995_v19  ;;  %v8178_v19 = vld [vmem:[#allocation39 + $0x20] sm:$0xff]  ;;  %v8307_v49 = vld [vmem:[%s13324_s22 + $0x60] sm:$0xff] }
0x4c32   :  { %v10572_v15 = vpack.c.bf16 %v8179_v61, %v8178_v19  ;;  %v9621_v61 = vld [vmem:[#allocation42 + $0x1] ss:$0 sm:$0xff] }
0x4c33   :  { %v8063_v51 = vsel %vm736_vm11, %v8058_v50, 0.0 }
0x4c34   :  { %8064 = vadd.xlane.f32.xlu1 %v8063_v51  ;;  %10573 = vmatpush3.bf16.msra.mxu1 %v10572_v15  ;;  %v10583_v51 = vpack.c.bf16 %v8307_v49, %v8303_v48  ;;  %v8519_v48 = vld [vmem:[#allocation45 + $0x128] sm:$0xff]  ;;  %v8517_v49 = vld [vmem:[#allocation45 + $0x118] sm:$0xff] }
0x4c35   :  { %10574 = vmatprep.subr.bf16.mxu1 %v11847_v4 }
0x4c38   :  { %10576 = vmatpush3.bf16.msra.mxu1 %v10575_v13 }
0x4c39   :  { %10586 = vmatprep.subr.bf16.mxu1 %v10585_v41  ;;  %v8513_v41 = vld [vmem:[#allocation45 + $0xf8] sm:$0xff] }
0x4c3a   :  { %v10733_v45 = vpack.c.bf16 %v8513_v41, %v8509_v39  ;;  %v8546_v41 = vld [vmem:[#allocation45 + $0x200] sm:$0xff] }
0x4cc1   :  { %v8065_v53 = vpop.xlane.xlu1 %8064 }
0x4cc2   :  { %v8066_v37 = vmul.f32 0.03125, %v8065_v53  ;;  %v8305_v53 = vld [vmem:[%s13324_s22 + $0x50] sm:$0xff] }
0x4cc4   :  { %v8067_v55 = vsub.f32 %v8058_v50, %v8066_v37  ;;  %v10589_v50 = vpack.c.bf16 %v8310_v47, %v8306_v22  ;;  %v8309_v37 = vld [vmem:[%s13324_s22 + $0x70] sm:$0xff]  ;;  %v8508_v22 = vld [vmem:[#allocation45 + $0xd0] sm:$0xff]  ;;  %v8515_v47 = vld [vmem:[#allocation45 + $0x108] sm:$0xff] }
0x4cc6   :  { %v8068_v40 = vmul.f32 %v8067_v55, %v8067_v55 }
0x4cc8   :  { %v8069_v56 = vsel %vm736_vm11, %v8068_v40, 0.0  ;;  %v8483_v40 = vld [vmem:[#allocation45 + $0x8] sm:$0xff] }
0x4cc9   :  { %8070 = vadd.xlane.f32.xlu1 %v8069_v56  ;;  %v8487_v56 = vld [vmem:[#allocation45 + $0x28] sm:$0xff] }
0x4cca   :  { %v10593_v58 = vpack.c.bf16 %v8487_v56, %v8483_v40  ;;  %v10609_v40 = vpack.c.bf16 %v8519_v48, %v8515_v47  ;;  %v8561_v47 = vld [vmem:[#allocation45 + $0x278] sm:$0xff] }
0x4d56   :  { %v8071_v63 = vpop.xlane.xlu1 %8070 }
0x4d57   :  { %v8072_v0 = vmul.f32 0.03125, %v8071_v63  ;;  %v9622_v63 = vld [vmem:[#allocation44 + $0x1] ss:$0 sm:$0xff] }
0x4d59   :  { %v8073_v3 = vadd.f32 1e-05, %v8072_v0  ;;  %v8482_v0 = vld [vmem:[#allocation45] sm:$0xff] }
0x4d5b   :  { %11129 = vrsqrt.f32 %v8073_v3  ;;  %v8486_v3 = vld [vmem:[#allocation45 + $0x20] sm:$0xff] }
0x4d5c   :  { %v10595_v13 = vpack.c.bf16 %v8486_v3, %v8482_v0 }
0x4d65   :  { %v11130_v20 = vpop.eup %11129 }
0x4d66   :  { %v8075_v9 = vmul.f32 %v11130_v20, %v8067_v55  ;;  %v10591_v55 = vpack.c.bf16 %v8309_v37, %v8305_v53  ;;  %v8514_v37 = vld [vmem:[#allocation45 + $0x100] sm:$0xff] }
0x4d68   :  { %v8082_v10 = vmul.f32 %v9615_v7, %v8075_v9  ;;  %v8484_v7 = vld [vmem:[#allocation45 + $0x10] sm:$0xff] }
0x4d69   :  { %v8488_v9 = vld [vmem:[#allocation45 + $0x30] sm:$0xff] }
0x4d6a   :  { %v8089_v11 = vadd.f32 %v9616_v8, %v8082_v10  ;;  %v8491_v8 = vld [vmem:[#allocation45 + $0x48] sm:$0xff] }
0x4d6b   :  { %v8495_v10 = vld [vmem:[#allocation45 + $0x68] sm:$0xff] }
0x4d6c   :  { %10462 = vmatmul.mubr.msk.f32.vlgmr.msra.gmra.mrb[88].mxu0 %vm736_vm11, %v8089_v11 }
0x4d6d   :  { %8400 = vmatprep.mubr.f32.mxu0 %v11849_v6  ;;  %10580 = vmatpush1.bf16.msra.mxu0 %v10579_v62 }
0x4d6e   :  { %10582 = vmatprep.subr.bf16.mxu0 %v10581_v46  ;;  %v8512_v46 = vld [vmem:[#allocation45 + $0xf0] sm:$0xff] }
0x4d6f   :  { %v10735_v53 = vpack.c.bf16 %v8512_v46, %v8508_v22  ;;  %v8559_v22 = vld [vmem:[#allocation45 + $0x268] sm:$0xff]  ;;  %v8557_v46 = vld [vmem:[#allocation45 + $0x258] sm:$0xff] }
0x4d71   :  { %10584 = vmatpush1.bf16.msra.mxu0 %v10583_v51 }
0x4d72   :  { %10594 = vmatprep.subr.bf16.mxu0 %v10593_v58  ;;  %v8520_v58 = vld [vmem:[#allocation45 + $0x130] sm:$0xff] }
0x4e3f   :  { %v8172_v4 = vpop.f32.mrb[88].mxu0 }
0x4e40   :  { %v8173_v34 = vadd.f32 %v9617_v14, %v8172_v4  ;;  %v10463_v16 = vpop.f32.mrb[89].mxu0  ;;  %v10723_v14 = vpack.c.bf16 %v8488_v9, %v8484_v7  ;;  %v8490_v4 = vld [vmem:[#allocation45 + $0x40] sm:$0xff]  ;;  %v8528_v7 = vld [vmem:[#allocation45 + $0x170] sm:$0xff]  ;;  %v8531_v9 = vld [vmem:[#allocation45 + $0x188] sm:$0xff] }
0x4e42   :  { %v8176_v17 = vmax.f32 %v8173_v34, 0.0  ;;  %v8494_v34 = vld [vmem:[#allocation45 + $0x60] sm:$0xff] }
0x4e44   :  { %10473 = vmatmul.mubr.msk.f32.vlgmr.msra.gmra.mrb[88].mxu1 %vm736_vm11, %v8176_v17  ;;  %v10597_v17 = vpack.c.bf16 %v8495_v10, %v8491_v8  ;;  %v8535_v8 = vld [vmem:[#allocation45 + $0x1a8] sm:$0xff]  ;;  %v8533_v10 = vld [vmem:[#allocation45 + $0x198] sm:$0xff] }
0x4e45   :  { %8471 = vmatprep.mubr.f32.mxu1 %v11849_v6  ;;  %10588 = vmatpush1.bf16.msra.mxu1 %v10587_v44  ;;  %v8510_v44 = vld [vmem:[#allocation45 + $0xe0] sm:$0xff] }
0x4e46   :  { %10590 = vmatprep.subr.bf16.mxu1 %v10589_v50  ;;  %v8521_v50 = vld [vmem:[#allocation45 + $0x138] sm:$0xff]  ;;  %v10607_v51 = vpack.c.bf16 %v8510_v44, %v8506_v43  ;;  %v10753_v43 = vpack.c.bf16 %v8553_v52, %v8549_v32  ;;  %v8548_v44 = vld [vmem:[#allocation45 + $0x210] sm:$0xff]  ;;  %v8586_v52 = vld [vmem:[#allocation45 + $0x340] sm:$0xff] }
0x4e47   :  { %v10737_v56 = vpack.c.bf16 %v8521_v50, %v8517_v49  ;;  %v8554_v50 = vld [vmem:[#allocation45 + $0x240] sm:$0xff] }
0x4e49   :  { %10592 = vmatpush1.bf16.msra.mxu1 %v10591_v55  ;;  %v8518_v55 = vld [vmem:[#allocation45 + $0x120] sm:$0xff] }
0x4e4a   :  { %10722 = vmatprep.subr.bf16.mxu1 %v10721_v60  ;;  %v8527_v60 = vld [vmem:[#allocation45 + $0x168] sm:$0xff] }
0x4e4b   :  { %v10613_v0 = vpack.c.bf16 %v8527_v60, %v8523_v59  ;;  %v8569_v59 = vld [vmem:[#allocation45 + $0x2b8] sm:$0xff] }
0x4f17   :  { %v8259_v21 = vpop.f32.mrb[88].mxu1 }
0x4f18   :  { %v8260_v33 = vadd.f32 %v9619_v18, %v8259_v21  ;;  %v10474_v23 = vpop.f32.mrb[89].mxu1  ;;  %v8492_v21 = vld [vmem:[#allocation45 + $0x50] sm:$0xff] }
0x4f19   :  { %v8499_v23 = vld [vmem:[#allocation45 + $0x88] sm:$0xff] }
0x4f1a   :  { %v8263_v24 = vadd.f32 %v8260_v33, %v8089_v11  ;;  %v8493_v11 = vld [vmem:[#allocation45 + $0x58] sm:$0xff]  ;;  %v8496_v33 = vld [vmem:[#allocation45 + $0x70] sm:$0xff] }
0x4f1b   :  { %v10725_v18 = vpack.c.bf16 %v8497_v12, %v8493_v11  ;;  %v8537_v11 = vld [vmem:[#allocation45 + $0x1b8] sm:$0xff] }
0x4f1c   :  { %v8268_v1 = vsel %vm736_vm11, %v8263_v24, 0.0 }
0x4f1d   :  { %8269 = vadd.xlane.f32.xlu1 %v8268_v1  ;;  %v8501_v1 = vld [vmem:[#allocation45 + $0x98] sm:$0xff] }
0x4faa   :  { %v8270_v25 = vpop.xlane.xlu1 %8269 }
0x4fab   :  { %v8271_v26 = vmul.f32 0.03125, %v8270_v25  ;;  %v8505_v25 = vld [vmem:[#allocation45 + $0xb8] sm:$0xff] }
0x4fac   :  { %v10729_v30 = vpack.c.bf16 %v8505_v25, %v8501_v1  ;;  %v8538_v25 = vld [vmem:[#allocation45 + $0x1c0] sm:$0xff] }
0x4fad   :  { %v8272_v27 = vsub.f32 %v8263_v24, %v8271_v26  ;;  %v8503_v24 = vld [vmem:[#allocation45 + $0xa8] sm:$0xff]  ;;  %v10599_v26 = vpack.c.bf16 %v8494_v34, %v8490_v4  ;;  %v10617_v4 = vpack.c.bf16 %v8535_v8, %v8531_v9  ;;  %v10745_v34 = vpack.c.bf16 %v8537_v11, %v8533_v10  ;;  %v8577_v9 = vld [vmem:[#allocation45 + $0x2f8] sm:$0xff]  ;;  %v8570_v11 = vld [vmem:[#allocation45 + $0x2c0] sm:$0xff] }
0x4fae   :  { %v10601_v29 = vpack.c.bf16 %v8503_v24, %v8499_v23  ;;  %v8545_v23 = vld [vmem:[#allocation45 + $0x1f8] sm:$0xff] }
0x4faf   :  { %v8273_v28 = vmul.f32 %v8272_v27, %v8272_v27 }
0x4fb1   :  { %v8274_v6 = vsel %vm736_vm11, %v8273_v28, 0.0  ;;  %v8498_v28 = vld [vmem:[#allocation45 + $0x80] sm:$0xff] }
0x4fb2   :  { %8275 = vadd.xlane.f32.xlu1 %v8274_v6  ;;  %v8502_v6 = vld [vmem:[#allocation45 + $0xa0] sm:$0xff] }
0x4fb3   :  { %v10603_v62 = vpack.c.bf16 %v8502_v6, %v8498_v28  ;;  %v8540_v6 = vld [vmem:[#allocation45 + $0x1d0] sm:$0xff] }
0x503f   :  { %v8276_v35 = vpop.xlane.xlu1 %8275 }
0x5040   :  { %v8277_v36 = vmul.f32 0.03125, %v8276_v35  ;;  %v8525_v35 = vld [vmem:[#allocation45 + $0x158] sm:$0xff] }
0x5042   :  { %v8278_v19 = vadd.f32 1e-05, %v8277_v36  ;;  %v8529_v36 = vld [vmem:[#allocation45 + $0x178] sm:$0xff] }
0x5043   :  { %v10741_v3 = vpack.c.bf16 %v8529_v36, %v8525_v35  ;;  %v8562_v36 = vld [vmem:[#allocation45 + $0x280] sm:$0xff] }
0x5044   :  { %11131 = vrsqrt.f32 %v8278_v19  ;;  %v10611_v19 = vpack.c.bf16 %v8518_v55, %v8514_v37  ;;  %v10757_v37 = vpack.c.bf16 %v8561_v47, %v8557_v46  ;;  %v8556_v55 = vld [vmem:[#allocation45 + $0x250] sm:$0xff]  ;;  %v8594_v47 = vld [vmem:[#allocation45 + $0x380] sm:$0xff] }
0x504e   :  { %v11132_v15 = vpop.eup %11131 }
0x504f   :  { %v8280_v20 = vmul.f32 %v11132_v15, %v8272_v27  ;;  %v10727_v27 = vpack.c.bf16 %v8496_v33, %v8492_v21  ;;  %v8522_v15 = vld [vmem:[#allocation45 + $0x140] sm:$0xff]  ;;  %v8543_v21 = vld [vmem:[#allocation45 + $0x1e8] sm:$0xff]  ;;  %v8541_v33 = vld [vmem:[#allocation45 + $0x1d8] sm:$0xff] }
0x5050   :  { %v10749_v28 = vpack.c.bf16 %v8545_v23, %v8541_v33  ;;  %v8578_v23 = vld [vmem:[#allocation45 + $0x300] sm:$0xff] }
0x5051   :  { %v8287_v54 = vmul.f32 %v9621_v61, %v8280_v20  ;;  %v10739_v61 = vpack.c.bf16 %v8520_v58, %v8516_v57  ;;  %v8524_v20 = vld [vmem:[#allocation45 + $0x150] sm:$0xff]  ;;  %v8567_v57 = vld [vmem:[#allocation45 + $0x2a8] sm:$0xff]  ;;  %v8565_v58 = vld [vmem:[#allocation45 + $0x298] sm:$0xff] }
0x5053   :  { %v8294_v16 = vadd.f32 %v9622_v63, %v8287_v54  ;;  %v8526_v63 = vld [vmem:[#allocation45 + $0x160] sm:$0xff]  ;;  %v10743_v54 = vpack.c.bf16 %v8528_v7, %v8524_v20  ;;  %v8575_v20 = vld [vmem:[#allocation45 + $0x2e8] sm:$0xff]  ;;  %v8573_v7 = vld [vmem:[#allocation45 + $0x2d8] sm:$0xff] }
0x5054   :  { %v10615_v12 = vpack.c.bf16 %v8526_v63, %v8522_v15  ;;  %v10761_v15 = vpack.c.bf16 %v8569_v59, %v8565_v58  ;;  %v8564_v63 = vld [vmem:[#allocation45 + $0x290] sm:$0xff]  ;;  %v8609_v59 = vld [vmem:[#allocation45 + $0x3f8] sm:$0xff] }
0x5055   :  { %9623 = vmatmul.mubr.msk.f32.vlgmr.msra.gmra.mrb[90].mxu0 %vm736_vm11, %v8294_v16  ;;  %9624 = vmatmul.mubr.msk.f32.vlgmr.msra.gmra.mrb[90].mxu1 %vm736_vm11, %v8294_v16  ;;  %v8532_v16 = vld [vmem:[#allocation45 + $0x190] sm:$0xff]  ;;  %vm9291_vm11 = vcmask 131080  }
0x5056   :  { %10596 = vmatpush1.bf16.msra.mxu0 %v10595_v13  ;;  %10724 = vmatpush1.bf16.msra.mxu1 %v10723_v14  ;;  %v8530_v13 = vld [vmem:[#allocation45 + $0x180] sm:$0xff] }
0x5057   :  { %10598 = vmatprep.subr.bf16.mxu0 %v10597_v17  ;;  %10726 = vmatprep.subr.bf16.mxu1 %v10725_v18  ;;  %v8534_v14 = vld [vmem:[#allocation45 + $0x1a0] sm:$0xff]  ;;  %v8536_v17 = vld [vmem:[#allocation45 + $0x1b0] sm:$0xff]  ;;  %v8539_v18 = vld [vmem:[#allocation45 + $0x1c8] sm:$0xff] }
0x5058   :  { %v10619_v24 = vpack.c.bf16 %v8534_v14, %v8530_v13  ;;  %v10747_v1 = vpack.c.bf16 %v8536_v17, %v8532_v16  ;;  %v10765_v13 = vpack.c.bf16 %v8577_v9, %v8573_v7  ;;  %v8572_v14 = vld [vmem:[#allocation45 + $0x2d0] sm:$0xff]  ;;  %v8583_v16 = vld [vmem:[#allocation45 + $0x328] sm:$0xff]  ;;  %v8581_v17 = vld [vmem:[#allocation45 + $0x318] sm:$0xff] }
0x5059   :  { %v8617_v9 = vld [vmem:[#allocation45 + $0x438] sm:$0xff] }
0x505a   :  { %10600 = vmatpush1.bf16.msra.mxu0 %v10599_v26  ;;  %10728 = vmatpush1.bf16.msra.mxu1 %v10727_v27  ;;  %v8542_v26 = vld [vmem:[#allocation45 + $0x1e0] sm:$0xff]  ;;  %v10621_v27 = vpack.c.bf16 %v8543_v21, %v8539_v18  ;;  %v8585_v18 = vld [vmem:[#allocation45 + $0x338] sm:$0xff] }
0x505b   :  { %10602 = vmatprep.subr.bf16.mxu0 %v10601_v29  ;;  %10730 = vmatprep.subr.bf16.mxu1 %v10729_v30  ;;  %v8544_v29 = vld [vmem:[#allocation45 + $0x1f0] sm:$0xff]  ;;  %v8547_v30 = vld [vmem:[#allocation45 + $0x208] sm:$0xff]  ;;  %v10623_v38 = vpack.c.bf16 %v8542_v26, %v8538_v25  ;;  %v10769_v25 = vpack.c.bf16 %v8585_v18, %v8581_v17  ;;  %v8610_v17 = vld [vmem:[#allocation45 + $0x400] sm:$0xff] }
0x505c   :  { %v10751_v39 = vpack.c.bf16 %v8544_v29, %v8540_v6  ;;  %v8580_v26 = vld [vmem:[#allocation45 + $0x310] sm:$0xff]  ;;  %v8591_v6 = vld [vmem:[#allocation45 + $0x368] sm:$0xff]  ;;  %v8589_v29 = vld [vmem:[#allocation45 + $0x358] sm:$0xff] }
0x505e   :  { %10604 = vmatpush1.bf16.msra.mxu0 %v10603_v62  ;;  %10732 = vmatpush1.bf16.msra.mxu1 %v10731_v42  ;;  %v8550_v62 = vld [vmem:[#allocation45 + $0x220] sm:$0xff]  ;;  %v10625_v42 = vpack.c.bf16 %v8551_v31, %v8547_v30  ;;  %v8593_v30 = vld [vmem:[#allocation45 + $0x378] sm:$0xff] }
0x505f   :  { %10606 = vmatprep.subr.bf16.mxu0 %v10605_v5  ;;  %10734 = vmatprep.subr.bf16.mxu1 %v10733_v45  ;;  %v8552_v5 = vld [vmem:[#allocation45 + $0x230] sm:$0xff]  ;;  %v8555_v45 = vld [vmem:[#allocation45 + $0x248] sm:$0xff]  ;;  %v10627_v48 = vpack.c.bf16 %v8550_v62, %v8546_v41  ;;  %v10773_v41 = vpack.c.bf16 %v8593_v30, %v8589_v29  ;;  %v8625_v29 = vld [vmem:[#allocation45 + $0x478] sm:$0xff] }
0x5060   :  { %v10755_v49 = vpack.c.bf16 %v8552_v5, %v8548_v44  ;;  %v8588_v62 = vld [vmem:[#allocation45 + $0x350] sm:$0xff]  ;;  %v8599_v44 = vld [vmem:[#allocation45 + $0x3a8] sm:$0xff]  ;;  %v8597_v5 = vld [vmem:[#allocation45 + $0x398] sm:$0xff] }
0x5062   :  { %10608 = vmatpush1.bf16.msra.mxu0 %v10607_v51  ;;  %10736 = vmatpush1.bf16.msra.mxu1 %v10735_v53  ;;  %v8558_v51 = vld [vmem:[#allocation45 + $0x260] sm:$0xff]  ;;  %v10629_v53 = vpack.c.bf16 %v8559_v22, %v8555_v45  ;;  %v8601_v45 = vld [vmem:[#allocation45 + $0x3b8] sm:$0xff] }
0x5063   :  { %10610 = vmatprep.subr.bf16.mxu0 %v10609_v40  ;;  %10738 = vmatprep.subr.bf16.mxu1 %v10737_v56  ;;  %v8560_v40 = vld [vmem:[#allocation45 + $0x270] sm:$0xff]  ;;  %v8563_v56 = vld [vmem:[#allocation45 + $0x288] sm:$0xff]  ;;  %v10631_v60 = vpack.c.bf16 %v8558_v51, %v8554_v50  ;;  %v8598_v50 = vld [vmem:[#allocation45 + $0x3a0] sm:$0xff] }
0x5064   :  { %v10759_v35 = vpack.c.bf16 %v8560_v40, %v8556_v55  ;;  %v8596_v51 = vld [vmem:[#allocation45 + $0x390] sm:$0xff]  ;;  %v8603_v40 = vld [vmem:[#allocation45 + $0x3c8] sm:$0xff] }
0x5066   :  { %10612 = vmatpush1.bf16.msra.mxu0 %v10611_v19  ;;  %10740 = vmatpush1.bf16.msra.mxu1 %v10739_v61  ;;  %v8566_v19 = vld [vmem:[#allocation45 + $0x2a0] sm:$0xff]  ;;  %v10633_v61 = vpack.c.bf16 %v8567_v57, %v8563_v56  ;;  %v8607_v56 = vld [vmem:[#allocation45 + $0x3e8] sm:$0xff]  ;;  %v8605_v57 = vld [vmem:[#allocation45 + $0x3d8] sm:$0xff] }
0x5067   :  { %10614 = vmatprep.subr.bf16.mxu0 %v10613_v0  ;;  %10742 = vmatprep.subr.bf16.mxu1 %v10741_v3  ;;  %v8568_v0 = vld [vmem:[#allocation45 + $0x2b0] sm:$0xff]  ;;  %v8571_v3 = vld [vmem:[#allocation45 + $0x2c8] sm:$0xff]  ;;  %v10635_v8 = vpack.c.bf16 %v8566_v19, %v8562_v36  ;;  %v10653_v58 = vpack.c.bf16 %v8607_v56, %v8603_v40  ;;  %v10781_v36 = vpack.c.bf16 %v8609_v59, %v8605_v57  ;;  %v8637_v57 = vld [vmem:[#allocation45 + $0x4d8] sm:$0xff] }
0x5068   :  { %v10763_v10 = vpack.c.bf16 %v8568_v0, %v8564_v63  ;;  %v8611_v0 = vld [vmem:[#allocation45 + $0x408] sm:$0xff] }
0x5069   :  { %v8635_v40 = vld [vmem:[#allocation45 + $0x4c8] sm:$0xff] }
0x506a   :  { %10616 = vmatpush1.bf16.msra.mxu0 %v10615_v12  ;;  %10744 = vmatpush1.bf16.msra.mxu1 %v10743_v54  ;;  %v8574_v12 = vld [vmem:[#allocation45 + $0x2e0] sm:$0xff]  ;;  %v10637_v54 = vpack.c.bf16 %v8575_v20, %v8571_v3  ;;  %v8615_v3 = vld [vmem:[#allocation45 + $0x428] sm:$0xff]  ;;  %v8613_v20 = vld [vmem:[#allocation45 + $0x418] sm:$0xff] }
0x506b   :  { %10618 = vmatprep.subr.bf16.mxu0 %v10617_v4  ;;  %10746 = vmatprep.subr.bf16.mxu1 %v10745_v34  ;;  %v8576_v4 = vld [vmem:[#allocation45 + $0x2f0] sm:$0xff]  ;;  %v8579_v34 = vld [vmem:[#allocation45 + $0x308] sm:$0xff]  ;;  %v10639_v21 = vpack.c.bf16 %v8574_v12, %v8570_v11  ;;  %v10657_v7 = vpack.c.bf16 %v8615_v3, %v8611_v0 }
0x506c   :  { %v10767_v33 = vpack.c.bf16 %v8576_v4, %v8572_v14  ;;  %v13117_v12 = vld [vmem:[%s13325_s24] sm:$0xf] }
0x506d   :  { %v8639_v56 = vld [vmem:[#allocation45 + $0x4e8] sm:$0xff] }
0x506e   :  { %10620 = vmatpush1.bf16.msra.mxu0 %v10619_v24  ;;  %10748 = vmatpush1.bf16.msra.mxu1 %v10747_v1  ;;  %v8582_v24 = vld [vmem:[#allocation45 + $0x320] sm:$0xff]  ;;  %v10641_v1 = vpack.c.bf16 %v8583_v16, %v8579_v34  ;;  %v8643_v0 = vld [vmem:[#allocation45 + $0x508] sm:$0xff] }
0x506f   :  { %10622 = vmatprep.subr.bf16.mxu0 %v10621_v27  ;;  %10750 = vmatprep.subr.bf16.mxu1 %v10749_v28  ;;  %v8584_v27 = vld [vmem:[#allocation45 + $0x330] sm:$0xff]  ;;  %v8587_v28 = vld [vmem:[#allocation45 + $0x348] sm:$0xff]  ;;  %v10643_v31 = vpack.c.bf16 %v8582_v24, %v8578_v23  ;;  %v8614_v23 = vld [vmem:[#allocation45 + $0x420] sm:$0xff] }
0x5070   :  { %v10771_v32 = vpack.c.bf16 %v8584_v27, %v8580_v26  ;;  %v8612_v24 = vld [vmem:[#allocation45 + $0x410] sm:$0xff]  ;;  %v8619_v26 = vld [vmem:[#allocation45 + $0x448] sm:$0xff] }
0x5071   :  { %v8647_v3 = vld [vmem:[#allocation45 + $0x528] sm:$0xff] }
0x5072   :  { %10624 = vmatpush1.bf16.msra.mxu0 %v10623_v38  ;;  %10752 = vmatpush1.bf16.msra.mxu1 %v10751_v39  ;;  %v8590_v38 = vld [vmem:[#allocation45 + $0x360] sm:$0xff]  ;;  %v10645_v39 = vpack.c.bf16 %v8591_v6, %v8587_v28  ;;  %v8623_v28 = vld [vmem:[#allocation45 + $0x468] sm:$0xff]  ;;  %v8621_v6 = vld [vmem:[#allocation45 + $0x458] sm:$0xff] }
0x5073   :  { %10626 = vmatprep.subr.bf16.mxu0 %v10625_v42  ;;  %10754 = vmatprep.subr.bf16.mxu1 %v10753_v43  ;;  %v8592_v42 = vld [vmem:[#allocation45 + $0x370] sm:$0xff]  ;;  %v8595_v43 = vld [vmem:[#allocation45 + $0x388] sm:$0xff]  ;;  %v10647_v22 = vpack.c.bf16 %v8590_v38, %v8586_v52  ;;  %v8618_v52 = vld [vmem:[#allocation45 + $0x440] sm:$0xff] }
0x5074   :  { %v10775_v46 = vpack.c.bf16 %v8592_v42, %v8588_v62  ;;  %v8622_v38 = vld [vmem:[#allocation45 + $0x460] sm:$0xff]  ;;  %v8624_v62 = vld [vmem:[#allocation45 + $0x470] sm:$0xff]  ;;  %v8627_v42 = vld [vmem:[#allocation45 + $0x488] sm:$0xff] }
0x5076   :  { %10628 = vmatpush1.bf16.msra.mxu0 %v10627_v48  ;;  %10756 = vmatpush1.bf16.msra.mxu1 %v10755_v49  ;;  %v10649_v48 = vpack.c.bf16 %v8599_v44, %v8595_v43  ;;  %v10777_v49 = vpack.c.bf16 %v8601_v45, %v8597_v5  ;;  %v10661_v43 = vpack.c.bf16 %v8623_v28, %v8619_v26  ;;  %v8631_v5 = vld [vmem:[#allocation45 + $0x4a8] sm:$0xff]  ;;  %v8629_v45 = vld [vmem:[#allocation45 + $0x498] sm:$0xff]  ;;  %v8650_v26 = vld [vmem:[#allocation45 + $0x540] sm:$0xff] }
0x5077   :  { %10630 = vmatprep.subr.bf16.mxu0 %v10629_v53  ;;  %10758 = vmatprep.subr.bf16.mxu1 %v10757_v37  ;;  %v8600_v53 = vld [vmem:[#allocation45 + $0x3b0] sm:$0xff]  ;;  %v10651_v37 = vpack.c.bf16 %v8598_v50, %v8594_v47  ;;  %v10789_v44 = vpack.c.bf16 %v8625_v29, %v8621_v6  ;;  %v10663_v47 = vpack.c.bf16 %v8622_v38, %v8618_v52  ;;  %v8630_v50 = vld [vmem:[#allocation45 + $0x4a0] sm:$0xff]  ;;  %v8661_v52 = vld [vmem:[#allocation45 + $0x598] sm:$0xff] }
0x5078   :  { %v10779_v55 = vpack.c.bf16 %v8600_v53, %v8596_v51  ;;  %v10665_v51 = vpack.c.bf16 %v8631_v5, %v8627_v42  ;;  %v8652_v29 = vld [vmem:[#allocation45 + $0x550] sm:$0xff]  ;;  %v8665_v38 = vld [vmem:[#allocation45 + $0x5b8] sm:$0xff]  ;;  %v8662_v42 = vld [vmem:[#allocation45 + $0x5a0] sm:$0xff] }
0x5079   :  { %v8660_v5 = vld [vmem:[#allocation45 + $0x590] sm:$0xff] }
0x507a   :  { %10632 = vmatpush1.bf16.msra.mxu0 %v10631_v60  ;;  %10760 = vmatpush1.bf16.msra.mxu1 %v10759_v35  ;;  %v8602_v60 = vld [vmem:[#allocation45 + $0x3c0] sm:$0xff] }
0x507b   :  { %10634 = vmatprep.subr.bf16.mxu0 %v10633_v61  ;;  %10762 = vmatprep.subr.bf16.mxu1 %v10761_v15  ;;  %v8606_v35 = vld [vmem:[#allocation45 + $0x3e0] sm:$0xff]  ;;  %v8604_v61 = vld [vmem:[#allocation45 + $0x3d0] sm:$0xff] }
0x507c   :  { %v10655_v19 = vpack.c.bf16 %v8606_v35, %v8602_v60  ;;  %v8608_v15 = vld [vmem:[#allocation45 + $0x3f0] sm:$0xff]  ;;  %v8634_v35 = vld [vmem:[#allocation45 + $0x4c0] sm:$0xff] }
0x507d   :  { %v10783_v63 = vpack.c.bf16 %v8608_v15, %v8604_v61  ;;  %v8636_v15 = vld [vmem:[#allocation45 + $0x4d0] sm:$0xff] }
0x507e   :  { %10636 = vmatpush1.bf16.msra.mxu0 %v10635_v8  ;;  %10764 = vmatpush1.bf16.msra.mxu1 %v10763_v10  ;;  %v10785_v8 = vpack.c.bf16 %v8617_v9, %v8613_v20  ;;  %v13113_v10 = vshrl.u32 %v546_v2, 7  ;;  %v8645_v20 = vld [vmem:[#allocation45 + $0x518] sm:$0xff] }
0x507f   :  { %10638 = vmatprep.subr.bf16.mxu0 %v10637_v54  ;;  %10766 = vmatprep.subr.bf16.mxu1 %v10765_v13 }
0x5080   :  { %v8315_v11 = vsub.s32 0, %v13113_v10  ;;  %v8319_v54 = vsub.s32 1, %v13113_v10  ;;  %v8327_v13 = vsub.s32 3, %v13113_v10 }
0x5082   :  { %10640 = vmatpush1.bf16.msra.mxu0 %v10639_v21  ;;  %10768 = vmatpush1.bf16.msra.mxu1 %v10767_v33  ;;  %v8316_v14 = vrot.slane %v13117_v12, %v8315_v11  ;;  %v8320_v4 = vrot.slane %v13117_v12, %v8319_v54  ;;  %v8328_v2 = vrot.slane %v13117_v12, %v8327_v13 }
0x5083   :  { %10642 = vmatprep.subr.bf16.mxu0 %v10641_v1  ;;  %10770 = vmatprep.subr.bf16.mxu1 %v10769_v25  ;;  %v8616_v1 = vld [vmem:[#allocation45 + $0x430] sm:$0xff] }
0x5086   :  { %10644 = vmatpush1.bf16.msra.mxu0 %v10643_v31  ;;  %10772 = vmatpush1.bf16.msra.mxu1 %v10771_v32  ;;  %v10659_v31 = vpack.c.bf16 %v8614_v23, %v8610_v17  ;;  %v10787_v32 = vpack.c.bf16 %v8616_v1, %v8612_v24  ;;  %v8644_v17 = vld [vmem:[#allocation45 + $0x510] sm:$0xff]  ;;  %v8653_v23 = vld [vmem:[#allocation45 + $0x558] sm:$0xff] }
0x5087   :  { %10646 = vmatprep.subr.bf16.mxu0 %v10645_v39  ;;  %10774 = vmatprep.subr.bf16.mxu1 %v10773_v41  ;;  %v8620_v41 = vld [vmem:[#allocation45 + $0x450] sm:$0xff]  ;;  %v8657_v24 = vld [vmem:[#allocation45 + $0x578] sm:$0xff] }
0x5088   :  { %v10805_v6 = vpack.c.bf16 %v8657_v24, %v8653_v23  ;;  %v8691_v23 = vld [vmem:[#allocation45 + $0x688] sm:$0xff] }
0x5089   :  { %v8695_v24 = vld [vmem:[#allocation45 + $0x6a8] sm:$0xff] }
0x508a   :  { %10648 = vmatpush1.bf16.msra.mxu0 %v10647_v22  ;;  %10776 = vmatpush1.bf16.msra.mxu1 %v10775_v46  ;;  %v8633_v22 = vld [vmem:[#allocation45 + $0x4b8] sm:$0xff] }
0x508b   :  { %10650 = vmatprep.subr.bf16.mxu0 %v10649_v48  ;;  %10778 = vmatprep.subr.bf16.mxu1 %v10777_v49  ;;  %v10791_v48 = vpack.c.bf16 %v8624_v62, %v8620_v41  ;;  %v8626_v49 = vld [vmem:[#allocation45 + $0x480] sm:$0xff]  ;;  %v10793_v53 = vpack.c.bf16 %v8633_v22, %v8629_v45  ;;  %v8664_v45 = vld [vmem:[#allocation45 + $0x5b0] sm:$0xff]  ;;  %v8667_v22 = vld [vmem:[#allocation45 + $0x5c8] sm:$0xff] }
0x508c   :  { %v10667_v59 = vpack.c.bf16 %v8630_v50, %v8626_v49  ;;  %v8658_v62 = vld [vmem:[#allocation45 + $0x580] sm:$0xff]  ;;  %v10811_v50 = vpack.c.bf16 %v8664_v45, %v8660_v5 }
0x508d   :  { %v10683_v49 = vpack.c.bf16 %v8662_v42, %v8658_v62 }
0x508e   :  { %10652 = vmatpush1.bf16.msra.mxu0 %v10651_v37  ;;  %10780 = vmatpush1.bf16.msra.mxu1 %v10779_v55  ;;  %v8628_v37 = vld [vmem:[#allocation45 + $0x490] sm:$0xff] }
0x508f   :  { %10654 = vmatprep.subr.bf16.mxu0 %v10653_v58  ;;  %10782 = vmatprep.subr.bf16.mxu1 %v10781_v36  ;;  %v8632_v55 = vld [vmem:[#allocation45 + $0x4b0] sm:$0xff]  ;;  %v8641_v58 = vld [vmem:[#allocation45 + $0x4f8] sm:$0xff]  ;;  %v8638_v36 = vld [vmem:[#allocation45 + $0x4e0] sm:$0xff] }
0x5090   :  { %v10795_v60 = vpack.c.bf16 %v8632_v55, %v8628_v37  ;;  %v10797_v61 = vpack.c.bf16 %v8641_v58, %v8637_v57  ;;  %v10671_v9 = vpack.c.bf16 %v8638_v36, %v8634_v35  ;;  %v8675_v57 = vld [vmem:[#allocation45 + $0x608] sm:$0xff] }
0x5091   :  { %v8679_v58 = vld [vmem:[#allocation45 + $0x628] sm:$0xff] }
0x5092   :  { %10656 = vmatpush1.bf16.msra.mxu0 %v10655_v19  ;;  %10784 = vmatpush1.bf16.msra.mxu1 %v10783_v63  ;;  %v10669_v19 = vpack.c.bf16 %v8639_v56, %v8635_v40  ;;  %v8640_v63 = vld [vmem:[#allocation45 + $0x4f0] sm:$0xff] }
0x5093   :  { %10658 = vmatprep.subr.bf16.mxu0 %v10657_v7  ;;  %10786 = vmatprep.subr.bf16.mxu1 %v10785_v8  ;;  %v8649_v7 = vld [vmem:[#allocation45 + $0x538] sm:$0xff]  ;;  %v10799_v8 = vpack.c.bf16 %v8640_v63, %v8636_v15  ;;  %v8668_v40 = vld [vmem:[#allocation45 + $0x5d0] sm:$0xff]  ;;  %v10689_v15 = vpack.c.bf16 %v8679_v58, %v8675_v57 }
0x5094   :  { %v8672_v56 = vld [vmem:[#allocation45 + $0x5f0] sm:$0xff] }
0x5095   :  { %v10815_v36 = vpack.c.bf16 %v8672_v56, %v8668_v40  ;;  %v8708_v57 = vld [vmem:[#allocation45 + $0x710] sm:$0xff] }
0x5096   :  { %v8712_v58 = vld [vmem:[#allocation45 + $0x730] sm:$0xff] }
0x5128   :  { %v8402_v34 = vpop.f32.mrb[90].mxu0  ;;  %v13130_v16 = vpop.f32.mrb[90].mxu1 }
0x5129   :  { %v8403_v18 = vadd.f32 %v8402_v34, %v8316_v14  ;;  %v8404_v21 = vpop.f32.mrb[91].mxu0  ;;  %v8475_v33 = vpop.f32.mrb[91].mxu1  ;;  %v8642_v14 = vld [vmem:[#allocation45 + $0x500] sm:$0xff]  ;;  %v10801_v34 = vpack.c.bf16 %v8649_v7, %v8645_v20  ;;  %v8683_v20 = vld [vmem:[#allocation45 + $0x648] sm:$0xff] }
0x512a   :  { %v8405_v25 = vadd.f32 %v8404_v21, %v8320_v4  ;;  %v8476_v27 = vadd.f32 %v8475_v33, %v8328_v2  ;;  %v8646_v4 = vld [vmem:[#allocation45 + $0x520] sm:$0xff]  ;;  %v10673_v2 = vpack.c.bf16 %v8647_v3, %v8643_v0  ;;  %v8651_v21 = vld [vmem:[#allocation45 + $0x548] sm:$0xff]  ;;  %v8676_v0 = vld [vmem:[#allocation45 + $0x610] sm:$0xff] }
0x512b   :  { %v8478_v39 = vmax.f32 %v8403_v18, 0.0  ;;  %v8648_v18 = vld [vmem:[#allocation45 + $0x530] sm:$0xff]  ;;  %v8655_v33 = vld [vmem:[#allocation45 + $0x568] sm:$0xff]  ;;  %v10675_v1 = vpack.c.bf16 %v8646_v4, %v8642_v14 }
0x512c   :  { %v8479_v30 = vmax.f32 %v8405_v25, 0.0  ;;  %v8481_v46 = vmax.f32 %v8476_v27, 0.0  ;;  %v10803_v25 = vpack.c.bf16 %v8648_v18, %v8644_v17  ;;  %v8654_v27 = vld [vmem:[#allocation45 + $0x560] sm:$0xff]  ;;  %v10677_v28 = vpack.c.bf16 %v8655_v33, %v8651_v21  ;;  %v8680_v3 = vld [vmem:[#allocation45 + $0x630] sm:$0xff]  ;;  %v8687_v7 = vld [vmem:[#allocation45 + $0x668] sm:$0xff] }
0x512d   :  { %v10819_v4 = vpack.c.bf16 %v8680_v3, %v8676_v0  ;;  %v10693_v17 = vpack.c.bf16 %v8687_v7, %v8683_v20  ;;  %v8684_v21 = vld [vmem:[#allocation45 + $0x650] sm:$0xff] }
0x512e   :  { %8824 = vmatprep.mubr.f32.mxu0 %v8479_v30  ;;  %8966 = vmatprep.mubr.f32.mxu1 %v8479_v30  ;;  %v8656_v30 = vld [vmem:[#allocation45 + $0x570] sm:$0xff] }
0x512f   :  { %8825 = vmatmul.mubr.f32.vlgmr.msra.gmra.mrb[92].mxu0 %v8478_v39  ;;  %8967 = vmatmul.mubr.f32.vlgmr.msra.gmra.mrb[92].mxu1 %v8478_v39  ;;  %v10679_v39 = vpack.c.bf16 %v8654_v27, %v8650_v26  ;;  %v10807_v41 = vpack.c.bf16 %v8656_v30, %v8652_v29  ;;  %v8688_v33 = vld [vmem:[#allocation45 + $0x670] sm:$0xff]  ;;  %v10697_v29 = vpack.c.bf16 %v8695_v24, %v8691_v23 }
0x5130   :  { %10660 = vmatpush1.bf16.msra.mxu0 %v10659_v31  ;;  %10788 = vmatpush1.bf16.msra.mxu1 %v10787_v32  ;;  %v8659_v31 = vld [vmem:[#allocation45 + $0x588] sm:$0xff]  ;;  %v10823_v27 = vpack.c.bf16 %v8688_v33, %v8684_v21  ;;  %v8716_v20 = vld [vmem:[#allocation45 + $0x750] sm:$0xff]  ;;  %v8323_v21 = vsub.s32 2, %v13113_v10 }
0x5131   :  { %8895 = vmatprep.mubr.f32.mxu0 %v8481_v46  ;;  %9037 = vmatprep.mubr.f32.mxu1 %v8481_v46  ;;  %v8663_v32 = vld [vmem:[#allocation45 + $0x5a8] sm:$0xff]  ;;  %v8720_v7 = vld [vmem:[#allocation45 + $0x770] sm:$0xff] }
0x5132   :  { %10662 = vmatprep.subr.bf16.mxu0 %v10661_v43  ;;  %10790 = vmatprep.subr.bf16.mxu1 %v10789_v44  ;;  %v10681_v43 = vpack.c.bf16 %v8663_v32, %v8659_v31  ;;  %v10809_v44 = vpack.c.bf16 %v8665_v38, %v8661_v52  ;;  %v8671_v46 = vld [vmem:[#allocation45 + $0x5e8] sm:$0xff]  ;;  %v8692_v31 = vld [vmem:[#allocation45 + $0x690] sm:$0xff] }
0x5133   :  { %v10685_v37 = vpack.c.bf16 %v8671_v46, %v8667_v22  ;;  %v8696_v32 = vld [vmem:[#allocation45 + $0x6b0] sm:$0xff]  ;;  %v8699_v52 = vld [vmem:[#allocation45 + $0x6c8] sm:$0xff] }
0x5134   :  { %10664 = vmatpush1.bf16.msra.mxu0 %v10663_v47  ;;  %10792 = vmatpush1.bf16.msra.mxu1 %v10791_v48  ;;  %v8669_v47 = vld [vmem:[#allocation45 + $0x5d8] sm:$0xff]  ;;  %v8703_v38 = vld [vmem:[#allocation45 + $0x6e8] sm:$0xff]  ;;  %v10827_v42 = vpack.c.bf16 %v8696_v32, %v8692_v31  ;;  %v8700_v22 = vld [vmem:[#allocation45 + $0x6d0] sm:$0xff]  ;;  %v8324_v32 = vrot.slane %v13117_v12, %v8323_v21 }
0x5135   :  { %10666 = vmatprep.subr.bf16.mxu0 %v10665_v51  ;;  %10794 = vmatprep.subr.bf16.mxu1 %v10793_v53  ;;  %v8673_v48 = vld [vmem:[#allocation45 + $0x5f8] sm:$0xff]  ;;  %v8666_v51 = vld [vmem:[#allocation45 + $0x5c0] sm:$0xff]  ;;  %v10701_v5 = vpack.c.bf16 %v8703_v38, %v8699_v52  ;;  %v8704_v46 = vld [vmem:[#allocation45 + $0x6f0] sm:$0xff] }
0x5136   :  { %v8670_v53 = vld [vmem:[#allocation45 + $0x5e0] sm:$0xff]  ;;  %v10813_v55 = vpack.c.bf16 %v8673_v48, %v8669_v47  ;;  %v8707_v47 = vld [vmem:[#allocation45 + $0x708] sm:$0xff]  ;;  %v8724_v24 = vld [vmem:[#allocation45 + $0x790] sm:$0xff] }
0x5137   :  { %v10687_v35 = vpack.c.bf16 %v8670_v53, %v8666_v51  ;;  %v8711_v48 = vld [vmem:[#allocation45 + $0x728] sm:$0xff]  ;;  %v10831_v53 = vpack.c.bf16 %v8704_v46, %v8700_v22  ;;  %v8734_v31 = vld [vmem:[#allocation45 + $0x7e0] sm:$0xff]  ;;  %v9049_v22 = vld [vmem:[%s13326_s23 + $0x8] sm:$0xff]  ;;  %v8474_v46 = vadd.f32 %v13130_v16, %v8324_v32 }
0x5138   :  { %10668 = vmatpush1.bf16.msra.mxu0 %v10667_v59  ;;  %10796 = vmatpush1.bf16.msra.mxu1 %v10795_v60  ;;  %v8677_v59 = vld [vmem:[#allocation45 + $0x618] sm:$0xff]  ;;  %v10705_v40 = vpack.c.bf16 %v8711_v48, %v8707_v47 }
0x5139   :  { %10670 = vmatprep.subr.bf16.mxu0 %v10669_v19  ;;  %10798 = vmatprep.subr.bf16.mxu1 %v10797_v61  ;;  %v8681_v60 = vld [vmem:[#allocation45 + $0x638] sm:$0xff]  ;;  %v8674_v19 = vld [vmem:[#allocation45 + $0x600] sm:$0xff] }
0x513a   :  { %v8678_v61 = vld [vmem:[#allocation45 + $0x620] sm:$0xff]  ;;  %v10817_v63 = vpack.c.bf16 %v8681_v60, %v8677_v59  ;;  %v8715_v59 = vld [vmem:[#allocation45 + $0x748] sm:$0xff] }
0x513b   :  { %v10691_v14 = vpack.c.bf16 %v8678_v61, %v8674_v19  ;;  %v8719_v60 = vld [vmem:[#allocation45 + $0x768] sm:$0xff]  ;;  %v10835_v61 = vpack.c.bf16 %v8712_v58, %v8708_v57  ;;  %v9051_v57 = vld [vmem:[%s13326_s23 + $0x18] sm:$0xff]  ;;  %v8480_v58 = vmax.f32 %v8474_v46, 0.0 }
0x513c   :  { %10672 = vmatpush1.bf16.msra.mxu0 %v10671_v9  ;;  %10800 = vmatpush1.bf16.msra.mxu1 %v10799_v8  ;;  %v8685_v9 = vld [vmem:[#allocation45 + $0x658] sm:$0xff]  ;;  %v10709_v0 = vpack.c.bf16 %v8719_v60, %v8715_v59 }
0x513d   :  { %10674 = vmatprep.subr.bf16.mxu0 %v10673_v2  ;;  %10802 = vmatprep.subr.bf16.mxu1 %v10801_v34  ;;  %v8689_v8 = vld [vmem:[#allocation45 + $0x678] sm:$0xff]  ;;  %v8682_v2 = vld [vmem:[#allocation45 + $0x640] sm:$0xff] }
0x513e   :  { %v8686_v34 = vld [vmem:[#allocation45 + $0x660] sm:$0xff]  ;;  %v10821_v18 = vpack.c.bf16 %v8689_v8, %v8685_v9  ;;  %v8723_v9 = vld [vmem:[#allocation45 + $0x788] sm:$0xff] }
0x513f   :  { %v10695_v26 = vpack.c.bf16 %v8686_v34, %v8682_v2  ;;  %v8727_v8 = vld [vmem:[#allocation45 + $0x7a8] sm:$0xff]  ;;  %v10839_v34 = vpack.c.bf16 %v8720_v7, %v8716_v20  ;;  %v9053_v7 = vld [vmem:[%s13326_s23 + $0x28] sm:$0xff] }
0x5140   :  { %10676 = vmatpush1.bf16.msra.mxu0 %v10675_v1  ;;  %10804 = vmatpush1.bf16.msra.mxu1 %v10803_v25  ;;  %v8693_v1 = vld [vmem:[#allocation45 + $0x698] sm:$0xff]  ;;  %v10713_v33 = vpack.c.bf16 %v8727_v8, %v8723_v9  ;;  %v9052_v20 = vld [vmem:[%s13326_s23 + $0x20] sm:$0xff] }
0x5141   :  { %10678 = vmatprep.subr.bf16.mxu0 %v10677_v28  ;;  %10806 = vmatprep.subr.bf16.mxu1 %v10805_v6  ;;  %v8697_v25 = vld [vmem:[#allocation45 + $0x6b8] sm:$0xff]  ;;  %v8690_v28 = vld [vmem:[#allocation45 + $0x680] sm:$0xff] }
0x5142   :  { %v8694_v6 = vld [vmem:[#allocation45 + $0x6a0] sm:$0xff]  ;;  %v10825_v30 = vpack.c.bf16 %v8697_v25, %v8693_v1  ;;  %v8728_v1 = vld [vmem:[#allocation45 + $0x7b0] sm:$0xff]  ;;  %v8731_v25 = vld [vmem:[#allocation45 + $0x7c8] sm:$0xff] }
0x5143   :  { %v10699_v62 = vpack.c.bf16 %v8694_v6, %v8690_v28  ;;  %v8737_v28 = vld [vmem:[#allocation45 + $0x7f8] sm:$0xff] }
0x5144   :  { %10680 = vmatpush1.bf16.msra.mxu0 %v10679_v39  ;;  %10808 = vmatpush1.bf16.msra.mxu1 %v10807_v41  ;;  %v8701_v39 = vld [vmem:[#allocation45 + $0x6d8] sm:$0xff] }
0x5145   :  { %10682 = vmatprep.subr.bf16.mxu0 %v10681_v43  ;;  %10810 = vmatprep.subr.bf16.mxu1 %v10809_v44  ;;  %v8705_v41 = vld [vmem:[#allocation45 + $0x6f8] sm:$0xff]  ;;  %v8698_v43 = vld [vmem:[#allocation45 + $0x6c0] sm:$0xff] }
0x5146   :  { %v8702_v44 = vld [vmem:[#allocation45 + $0x6e0] sm:$0xff]  ;;  %v10829_v45 = vpack.c.bf16 %v8705_v41, %v8701_v39  ;;  %v8732_v39 = vld [vmem:[#allocation45 + $0x7d0] sm:$0xff] }
0x5147   :  { %v10703_v51 = vpack.c.bf16 %v8702_v44, %v8698_v43  ;;  %v8736_v41 = vld [vmem:[#allocation45 + $0x7f0] sm:$0xff]  ;;  %v9096_v43 = vld [vmem:[%s13326_s23 + $0x180] sm:$0xff] }
0x5148   :  { %10684 = vmatpush1.bf16.msra.mxu0 %v10683_v49  ;;  %10812 = vmatpush1.bf16.msra.mxu1 %v10811_v50  ;;  %v8709_v49 = vld [vmem:[#allocation45 + $0x718] sm:$0xff]  ;;  %v9097_v44 = vld [vmem:[%s13326_s23 + $0x188] sm:$0xff] }
0x5149   :  { %10686 = vmatprep.subr.bf16.mxu0 %v10685_v37  ;;  %10814 = vmatprep.subr.bf16.mxu1 %v10813_v55  ;;  %v8713_v50 = vld [vmem:[#allocation45 + $0x738] sm:$0xff]  ;;  %v8706_v37 = vld [vmem:[#allocation45 + $0x700] sm:$0xff]  ;;  %v10881_v48 = vpack.c.bf16 %v9097_v44, %v9096_v43  ;;  %v9089_v43 = vld [vmem:[%s13326_s23 + $0x148] sm:$0xff] }
0x514a   :  { %v8710_v55 = vld [vmem:[#allocation45 + $0x720] sm:$0xff]  ;;  %v10833_v56 = vpack.c.bf16 %v8713_v50, %v8709_v49  ;;  %v9080_v49 = vld [vmem:[%s13326_s23 + $0x100] sm:$0xff]  ;;  %v9081_v50 = vld [vmem:[%s13326_s23 + $0x108] sm:$0xff] }
0x514b   :  { %v10707_v19 = vpack.c.bf16 %v8710_v55, %v8706_v37  ;;  %v9098_v37 = vld [vmem:[%s13326_s23 + $0x190] sm:$0xff]  ;;  %v9099_v55 = vld [vmem:[%s13326_s23 + $0x198] sm:$0xff] }
0x514c   :  { %10688 = vmatpush1.bf16.msra.mxu0 %v10687_v35  ;;  %10816 = vmatpush1.bf16.msra.mxu1 %v10815_v36  ;;  %v8717_v35 = vld [vmem:[#allocation45 + $0x758] sm:$0xff]  ;;  %v10885_v60 = vpack.c.bf16 %v9099_v55, %v9098_v37  ;;  %v9076_v37 = vld [vmem:[%s13326_s23 + $0xe0] sm:$0xff]  ;;  %v9077_v55 = vld [vmem:[%s13326_s23 + $0xe8] sm:$0xff] }
0x514d   :  { %10690 = vmatprep.subr.bf16.mxu0 %v10689_v15  ;;  %10818 = vmatprep.subr.bf16.mxu1 %v10817_v63  ;;  %v8721_v36 = vld [vmem:[#allocation45 + $0x778] sm:$0xff]  ;;  %v8714_v15 = vld [vmem:[#allocation45 + $0x740] sm:$0xff] }
0x514e   :  { %v8718_v63 = vld [vmem:[#allocation45 + $0x760] sm:$0xff]  ;;  %v10837_v3 = vpack.c.bf16 %v8721_v36, %v8717_v35  ;;  %v9082_v35 = vld [vmem:[%s13326_s23 + $0x110] sm:$0xff] }
0x514f   :  { %v10711_v2 = vpack.c.bf16 %v8718_v63, %v8714_v15  ;;  %v9083_v36 = vld [vmem:[%s13326_s23 + $0x118] sm:$0xff]  ;;  %v9100_v15 = vld [vmem:[%s13326_s23 + $0x1a0] sm:$0xff]  ;;  %v9101_v63 = vld [vmem:[%s13326_s23 + $0x1a8] sm:$0xff] }
0x5150   :  { %10692 = vmatpush1.bf16.msra.mxu0 %v10691_v14  ;;  %10820 = vmatpush1.bf16.msra.mxu1 %v10819_v4  ;;  %v8725_v14 = vld [vmem:[#allocation45 + $0x798] sm:$0xff]  ;;  %v10889_v8 = vpack.c.bf16 %v9101_v63, %v9100_v15 }
0x5151   :  { %10694 = vmatprep.subr.bf16.mxu0 %v10693_v17  ;;  %10822 = vmatprep.subr.bf16.mxu1 %v10821_v18  ;;  %v8729_v4 = vld [vmem:[#allocation45 + $0x7b8] sm:$0xff]  ;;  %v8722_v17 = vld [vmem:[#allocation45 + $0x780] sm:$0xff] }
0x5152   :  { %v8726_v18 = vld [vmem:[#allocation45 + $0x7a0] sm:$0xff]  ;;  %v10841_v23 = vpack.c.bf16 %v8729_v4, %v8725_v14  ;;  %v9084_v14 = vld [vmem:[%s13326_s23 + $0x120] sm:$0xff]  ;;  %v9085_v4 = vld [vmem:[%s13326_s23 + $0x128] sm:$0xff] }
0x5153   :  { %v10715_v6 = vpack.c.bf16 %v8726_v18, %v8722_v17  ;;  %v9102_v17 = vld [vmem:[%s13326_s23 + $0x1b0] sm:$0xff]  ;;  %v9103_v18 = vld [vmem:[%s13326_s23 + $0x1b8] sm:$0xff] }
0x5154   :  { %10696 = vmatpush1.bf16.msra.mxu0 %v10695_v26  ;;  %10824 = vmatpush1.bf16.msra.mxu1 %v10823_v27  ;;  %v8735_v26 = vld [vmem:[#allocation45 + $0x7e8] sm:$0xff]  ;;  %v8733_v27 = vld [vmem:[#allocation45 + $0x7d8] sm:$0xff] }
0x5155   :  { %10698 = vmatprep.subr.bf16.mxu0 %v10697_v29  ;;  %10826 = vmatprep.subr.bf16.mxu1 %v10825_v30  ;;  %v10843_v29 = vpack.c.bf16 %v8728_v1, %v8724_v24  ;;  %v8730_v30 = vld [vmem:[#allocation45 + $0x7c0] sm:$0xff]  ;;  %v10717_v52 = vpack.c.bf16 %v8735_v26, %v8731_v25  ;;  %v10845_v38 = vpack.c.bf16 %v8737_v28, %v8733_v27  ;;  %v9054_v24 = vld [vmem:[%s13326_s23 + $0x30] sm:$0xff] }
0x5156   :  { %v10719_v12 = vpack.c.bf16 %v8734_v31, %v8730_v30  ;;  %v9055_v1 = vld [vmem:[%s13326_s23 + $0x38] sm:$0xff]  ;;  %v10893_v26 = vpack.c.bf16 %v9103_v18, %v9102_v17  ;;  %v9086_v27 = vld [vmem:[%s13326_s23 + $0x130] sm:$0xff]  ;;  %v9104_v30 = vld [vmem:[%s13326_s23 + $0x1c0] sm:$0xff]  ;;  %v9259_v18 = vstv %s9258_s28 }
0x5157   :  { %v9087_v28 = vld [vmem:[%s13326_s23 + $0x138] sm:$0xff]  ;;  %v9105_v31 = vld [vmem:[%s13326_s23 + $0x1c8] sm:$0xff]  ;;  %v10863_v32 = vpack.c.bf16 %v9055_v1, %v9054_v24  ;;  %v9074_v44 = vld [vmem:[%s13326_s23 + $0xd0] sm:$0xff]  ;;  %vm13205_vm0 = vcmp.eq.s32.totalorder %v9259_v18, 1 }
0x5158   :  { %10700 = vmatpush1.bf16.msra.mxu0 %v10699_v62  ;;  %10828 = vmatpush1.bf16.msra.mxu1 %v10827_v42  ;;  %v9064_v62 = vld [vmem:[%s13326_s23 + $0x80] sm:$0xff]  ;;  %v9065_v42 = vld [vmem:[%s13326_s23 + $0x88] sm:$0xff]  ;;  %v9078_v63 = vld [vmem:[%s13326_s23 + $0xf0] sm:$0xff] }
0x5159   :  { %10702 = vmatprep.subr.bf16.mxu0 %v10701_v5  ;;  %10830 = vmatprep.subr.bf16.mxu1 %v10829_v45  ;;  %v10847_v5 = vpack.c.bf16 %v8736_v41, %v8732_v39  ;;  %v9048_v45 = vld [vmem:[%s13326_s23] sm:$0xff]  ;;  %v10849_v47 = vpack.c.bf16 %v9065_v42, %v9064_v62  ;;  %v9057_v39 = vld [vmem:[%s13326_s23 + $0x48] sm:$0xff]  ;;  %v10897_v62 = vpack.c.bf16 %v9105_v31, %v9104_v30  ;;  %v9267_v31 = vstv %s9266_s27 }
0x515a   :  { %v10851_v16 = vpack.c.bf16 %v9049_v22, %v9048_v45  ;;  %v9088_v42 = vld [vmem:[%s13326_s23 + $0x140] sm:$0xff]  ;;  %v9107_v45 = vld [vmem:[%s13326_s23 + $0x1d8] sm:$0xff]  ;;  %vm9268_vm7 = vcmp.eq.s32.totalorder %v9267_v31, 1 }
0x515b   :  { %v10899_v46 = vpack.c.bf16 %v9089_v43, %v9088_v42  ;;  %v9262_v24 = vld [vmem:[%s12097_s17 + $0x1] sm:$0x1] }
0x515c   :  { %10704 = vmatpush1.bf16.msra.mxu0 %v10703_v51  ;;  %10832 = vmatpush1.bf16.msra.mxu1 %v10831_v53  ;;  %v9066_v51 = vld [vmem:[%s13326_s23 + $0x90] sm:$0xff]  ;;  %v9067_v53 = vld [vmem:[%s13326_s23 + $0x98] sm:$0xff]  ;;  %v8738_v43 = vld [vmem:[%s13330_s1] sm:$0xf] }
0x515d   :  { %10706 = vmatprep.subr.bf16.mxu0 %v10705_v40  ;;  %10834 = vmatprep.subr.bf16.mxu1 %v10833_v56  ;;  %v10883_v40 = vpack.c.bf16 %v9081_v50, %v9080_v49  ;;  %v9050_v56 = vld [vmem:[%s13326_s23 + $0x10] sm:$0xff]  ;;  %v10853_v59 = vpack.c.bf16 %v9067_v53, %v9066_v51  ;;  %v9091_v53 = vld [vmem:[%s13326_s23 + $0x158] sm:$0xff] }
0x515e   :  { %v9090_v51 = vld [vmem:[%s13326_s23 + $0x150] sm:$0xff] }
0x5160   :  { %10708 = vmatpush1.bf16.msra.mxu0 %v10707_v19  ;;  %10836 = vmatpush1.bf16.msra.mxu1 %v10835_v61  ;;  %v9068_v19 = vld [vmem:[%s13326_s23 + $0xa0] sm:$0xff]  ;;  %v9069_v61 = vld [vmem:[%s13326_s23 + $0xa8] sm:$0xff] }
0x5161   :  { %10710 = vmatprep.subr.bf16.mxu0 %v10709_v0  ;;  %10838 = vmatprep.subr.bf16.mxu1 %v10837_v3  ;;  %v10855_v0 = vpack.c.bf16 %v9051_v57, %v9050_v56  ;;  %v10887_v3 = vpack.c.bf16 %v9083_v36, %v9082_v35  ;;  %v10857_v9 = vpack.c.bf16 %v9069_v61, %v9068_v19  ;;  %v9061_v35 = vld [vmem:[%s13326_s23 + $0x68] sm:$0xff]  ;;  %v9092_v36 = vld [vmem:[%s13326_s23 + $0x160] sm:$0xff] }
0x5162   :  { %v10903_v57 = vpack.c.bf16 %v9091_v53, %v9090_v51  ;;  %v9093_v61 = vld [vmem:[%s13326_s23 + $0x168] sm:$0xff] }
0x5163   :  { %v10907_v15 = vpack.c.bf16 %v9093_v61, %v9092_v36 }
0x5164   :  { %10712 = vmatpush1.bf16.msra.mxu0 %v10711_v2  ;;  %10840 = vmatpush1.bf16.msra.mxu1 %v10839_v34  ;;  %v9070_v2 = vld [vmem:[%s13326_s23 + $0xb0] sm:$0xff]  ;;  %v9071_v34 = vld [vmem:[%s13326_s23 + $0xb8] sm:$0xff] }
0x5165   :  { %10714 = vmatprep.subr.bf16.mxu0 %v10713_v33  ;;  %10842 = vmatprep.subr.bf16.mxu1 %v10841_v23  ;;  %v10859_v33 = vpack.c.bf16 %v9053_v7, %v9052_v20  ;;  %v10891_v23 = vpack.c.bf16 %v9085_v4, %v9084_v14  ;;  %v10861_v25 = vpack.c.bf16 %v9071_v34, %v9070_v2  ;;  %v9111_v7 = vld [vmem:[%s13326_s23 + $0x1f8] sm:$0xff]  ;;  %v9094_v2 = vld [vmem:[%s13326_s23 + $0x170] sm:$0xff] }
0x5166   :  { %v9095_v34 = vld [vmem:[%s13326_s23 + $0x178] sm:$0xff] }
0x5167   :  { %v10911_v17 = vpack.c.bf16 %v9095_v34, %v9094_v2 }
0x5168   :  { %10716 = vmatpush1.bf16.msra.mxu0 %v10715_v6  ;;  %10844 = vmatpush1.bf16.msra.mxu1 %v10843_v29  ;;  %v9072_v6 = vld [vmem:[%s13326_s23 + $0xc0] sm:$0xff]  ;;  %v9073_v29 = vld [vmem:[%s13326_s23 + $0xc8] sm:$0xff] }
0x5169   :  { %10718 = vmatprep.subr.bf16.mxu0 %v10717_v52  ;;  %10846 = vmatprep.subr.bf16.mxu1 %v10845_v38  ;;  %v10895_v52 = vpack.c.bf16 %v9087_v28, %v9086_v27  ;;  %v9056_v38 = vld [vmem:[%s13326_s23 + $0x40] sm:$0xff]  ;;  %v10865_v41 = vpack.c.bf16 %v9073_v29, %v9072_v6 }
0x516a   :  { %v10867_v22 = vpack.c.bf16 %v9057_v39, %v9056_v38  ;;  %v9271_v27 = vld [vmem:[%s12092_s19 + $0x2] sm:$0x1]  ;;  %v9278_v28 = vld [vmem:[%s12097_s17 + $0x3] sm:$0x1] }
0x516b   :  { %v9279_v6 = vld [vmem:[%s12092_s19 + $0x3] sm:$0x1] }
0x516c   :  { %10720 = vmatpush1.bf16.msra.mxu0 %v10719_v12  ;;  %10848 = vmatpush1.bf16.msra.mxu1 %v10847_v5  ;;  %v9075_v12 = vld [vmem:[%s13326_s23 + $0xd8] sm:$0xff]  ;;  %v9106_v5 = vld [vmem:[%s13326_s23 + $0x1d0] sm:$0xff]  ;;  %v9280_v38 = vsel %vm13205_vm0, %v9278_v28, %v9279_v6 }
0x516d   :  { %10850 = vmatprep.subr.bf16.mxu0 %v10849_v47  ;;  %10882 = vmatprep.subr.bf16.mxu1 %v10881_v48  ;;  %v9058_v47 = vld [vmem:[%s13326_s23 + $0x50] sm:$0xff]  ;;  %v9059_v48 = vld [vmem:[%s13326_s23 + $0x58] sm:$0xff]  ;;  %v10869_v49 = vpack.c.bf16 %v9075_v12, %v9074_v44  ;;  %v10901_v50 = vpack.c.bf16 %v9107_v45, %v9106_v5  ;;  %v8743_v44 = vrot.slane %v8738_v43, %v8315_v11 }
0x516e   :  { %v10871_v56 = vpack.c.bf16 %v9059_v48, %v9058_v47  ;;  %v8751_v12 = vrot.slane %v8738_v43, %v8323_v21  ;;  %v8747_v5 = vrot.slane %v8738_v43, %v8319_v54  ;;  %v8755_v45 = vrot.slane %v8738_v43, %v8327_v13 }
0x516f   :  { %8896 = vmatmul.mubr.f32.vlgmr.msra.gmra.mrb[92].mxu0 %v8480_v58  ;;  %9038 = vmatmul.mubr.f32.vlgmr.msra.gmra.mrb[92].mxu1 %v8480_v58  ;;  %v10873_v58 = vpack.c.bf16 %v9077_v55, %v9076_v37 }
0x5170   :  { %10852 = vmatpush3.bf16.msra.mxu0 %v10851_v16  ;;  %10884 = vmatpush3.bf16.msra.mxu1 %v10883_v40  ;;  %v9108_v16 = vld [vmem:[%s13326_s23 + $0x1e0] sm:$0xff]  ;;  %v9109_v40 = vld [vmem:[%s13326_s23 + $0x1e8] sm:$0xff] }
0x5171   :  { %10854 = vmatprep.subr.bf16.mxu0 %v10853_v59  ;;  %10886 = vmatprep.subr.bf16.mxu1 %v10885_v60  ;;  %v10905_v59 = vpack.c.bf16 %v9109_v40, %v9108_v16  ;;  %v9060_v60 = vld [vmem:[%s13326_s23 + $0x60] sm:$0xff] }
0x5172   :  { %v10875_v19 = vpack.c.bf16 %v9061_v35, %v9060_v60 }
0x5174   :  { %10856 = vmatpush3.bf16.msra.mxu0 %v10855_v0  ;;  %10888 = vmatpush3.bf16.msra.mxu1 %v10887_v3  ;;  %v9079_v0 = vld [vmem:[%s13326_s23 + $0xf8] sm:$0xff]  ;;  %v9110_v3 = vld [vmem:[%s13326_s23 + $0x1f0] sm:$0xff] }
0x5175   :  { %10858 = vmatprep.subr.bf16.mxu0 %v10857_v9  ;;  %10890 = vmatprep.subr.bf16.mxu1 %v10889_v8  ;;  %v10877_v20 = vpack.c.bf16 %v9079_v0, %v9078_v63  ;;  %v9062_v9 = vld [vmem:[%s13326_s23 + $0x70] sm:$0xff]  ;;  %v9063_v8 = vld [vmem:[%s13326_s23 + $0x78] sm:$0xff]  ;;  %v10909_v14 = vpack.c.bf16 %v9111_v7, %v9110_v3 }
0x5176   :  { %v10879_v4 = vpack.c.bf16 %v9063_v8, %v9062_v9 }
0x5178   :  { %10860 = vmatpush3.bf16.msra.mxu0 %v10859_v33  ;;  %10892 = vmatpush3.bf16.msra.mxu1 %v10891_v23  ;;  %v9256_v33 = vld [vmem:[%s12097_s17] sm:$0x1] }
0x5179   :  { %10862 = vmatprep.subr.bf16.mxu0 %v10861_v25  ;;  %10894 = vmatprep.subr.bf16.mxu1 %v10893_v26  ;;  %v9257_v23 = vld [vmem:[%s12092_s19] sm:$0x1]  ;;  %v9263_v25 = vld [vmem:[%s12092_s19 + $0x1] sm:$0x1]  ;;  %v9270_v26 = vld [vmem:[%s12097_s17 + $0x2] sm:$0x1] }
0x517a   :  { %v9261_v29 = vsel %vm13205_vm0, %v9256_v33, %v9257_v23  ;;  %v9264_v30 = vsel %vm13205_vm0, %v9262_v24, %v9263_v25  ;;  %s13331_s17 = sld [smem:[#allocation96_spill]]  ;;  %s11861_s19 = smov 127  }
0x517b   :  { %v9269_v39 = vsel %vm9268_vm7, %v9264_v30, %v9261_v29 }
0x517c   :  { %10864 = vmatpush3.bf16.msra.mxu0 %v10863_v32  ;;  %10896 = vmatpush3.bf16.msra.mxu1 %v10895_v52  ;;  %v9272_v32 = vsel %vm13205_vm0, %v9270_v26, %v9271_v27  ;;  %v9275_v52 = vstv %s9274_s3 }
0x517d   :  { %10866 = vmatprep.subr.bf16.mxu0 %v10865_v41  ;;  %10898 = vmatprep.subr.bf16.mxu1 %v10897_v62  ;;  %vm9276_vm8 = vcmp.eq.s32.totalorder %v9275_v52, 1  ;;  %v9283_v41 = vstv %s9282_s25 }
0x517e   :  { %v9277_v62 = vsel %vm9276_vm8, %v9272_v32, %v9269_v39  ;;  %vm9284_vm9 = vcmp.eq.s32.totalorder %v9283_v41, 1 }
0x517f   :  { %v9285_v42 = vsel %vm9284_vm9, %v9280_v38, %v9277_v62 }
0x5180   :  { %10868 = vmatpush3.bf16.msra.mxu0 %v10867_v22  ;;  %10900 = vmatpush3.bf16.msra.mxu1 %v10899_v46  ;;  %v9112_v13 = vld [vmem:[%s13331_s17] sm:$0x1] }
0x5181   :  { %10870 = vmatprep.subr.bf16.mxu0 %v10869_v49  ;;  %10902 = vmatprep.subr.bf16.mxu1 %v10901_v50 }
0x5182   :  { %9287 = vrot.lane.b32.xlu1 %v9285_v42, %s11818_s7  ;;  %s11862_s7 = smov [#allocation47]  }
0x5183   :  { %s9320_s10 = sshll.u32 %s11862_s7, 4  ;;  %s9321_s10 = int_to_ptr.vmem [resolvable:$true] %s9320_s10 }
0x5184   :  { %10872 = vmatpush3.bf16.msra.mxu0 %v10871_v56  ;;  %10904 = vmatpush3.bf16.msra.mxu1 %v10903_v57  ;;  %s11690_s21 = scalar_lea.vmem %s9321_s10, 16  ;;  %s11694_s14 = scalar_lea.vmem %s9321_s10, 32 }
0x5185   :  { %10874 = vmatprep.subr.bf16.mxu0 %v10873_v58  ;;  %10906 = vmatprep.subr.bf16.mxu1 %v10905_v59  ;;  %p11691_p10 = scmp.ne.s32.totalorder %s9321_s10, %s11690_s21  ;;  %p11695_p11 = scmp.lt.s32.totalorder %s9321_s10, %s9321_s10 }
0x5186   :  { %p11696_p12 = scmp.lt.s32.totalorder %s11694_s14, %s11690_s21 }
0x5188   :  { %10876 = vmatpush3.bf16.msra.mxu0 %v10875_v19  ;;  %10908 = vmatpush3.bf16.msra.mxu1 %v10907_v15  ;;  %p11697_p13 = por %p11696_p12, %p11695_p11 }
0x5189   :  { %10878 = vmatprep.subr.bf16.mxu0 %v10877_v20  ;;  %10910 = vmatprep.subr.bf16.mxu1 %v10909_v14 }
0x518a   :  { %p11698_p0 = pnand %p11697_p13, %p11691_p10 }
0x518c   :  { %10880 = vmatpush3.bf16.msra.mxu0 %v10879_v4  ;;  %10912 = vmatpush3.bf16.msra.mxu1 %v10911_v17 }
0x51f4   :  { %v9288_v59 = vpop.permute.xlu1 %9287 }
0x5242   :  { %v8897_v22 = vpop.f32.mrb[92].mxu0  ;;  %v9039_v46 = vpop.f32.mrb[92].mxu1 }
0x5243   :  { %v10913_v47 = vadd.f32 %v8897_v22, %v8743_v44  ;;  %v10915_v48 = vadd.f32 %v9039_v46, %v8751_v12  ;;  %v8899_v49 = vpop.f32.mrb[93].mxu0  ;;  %v9041_v50 = vpop.f32.mrb[93].mxu1 }
0x5244   :  { %v10914_v51 = vadd.f32 %v8899_v49, %v8747_v5  ;;  %v10916_v53 = vadd.f32 %v9041_v50, %v8755_v45 }
0x5245   :  { %v9044_v55 = vmax.f32 %v10913_v47, 0.0  ;;  %v9046_v16 = vmax.f32 %v10915_v48, 0.0 }
0x5246   :  { %v9045_v37 = vmax.f32 %v10914_v51, 0.0  ;;  %v9047_v11 = vmax.f32 %v10916_v53, 0.0 }
0x5248   :  { %9177 = vmatprep.mubr.f32.mxu0 %v9045_v37  ;;  %9247 = vmatprep.mubr.f32.mxu1 %v9047_v11 }
0x5249   :  { %9178 = vmatmul.mubr.f32.vlgmr.msra.gmra.mrb[94].mxu0 %v9044_v55  ;;  %9248 = vmatmul.mubr.f32.vlgmr.msra.gmra.mrb[94].mxu1 %v9046_v16 }
0x531c   :  { %v9887_v54 = vpop.f32.mrb[94].mxu0  ;;  %v9922_v10 = vpop.f32.mrb[94].mxu1 }
0x531d   :  { %v9888_v21 = vpop.f32.mrb[95].mxu0  ;;  %v9923_v40 = vpop.f32.mrb[95].mxu1 }
0x531e   :  { %v9889_v56 = vadd.f32 %v9888_v21, %v9887_v54  ;;  %v9924_v57 = vadd.f32 %v9923_v40, %v9922_v10 }
0x5320   :  { %v9180_v58 = vadd.f32 %v9889_v56, %v9112_v13 }
0x5322   :  { %v9250_v60 = vadd.f32 %v9924_v57, %v9180_v58 }
0x5324   :  { %v9290_v35 = vadd.f32 %v9288_v59, %v9250_v60  ;;  %9308 = vst.msk [vmem:[#allocation47] sm:$0x1] %vm9307_vm10, %v9250_v60 }
0x5326   :  { %v9292_v36 = vsel %vm9291_vm11, %v9290_v35, -inf }
0x5327   :  { %9293 = vmax.xlane.f32.xlu0 %v9292_v36 }
0x53b4   :  { %v9294_v19 = vpop.xlane.xlu0 %9293 }
0x53b5   :  { %v9295_v61 = vsub.f32 %v9290_v35, %v9294_v19 }
0x53b7   :  { %v9296_v15 = vmul.f32 1.442695, %v9295_v61 }
0x53b9   :  { %11133 = vpow2.f32 %v9296_v15 }
0x53c3   :  { %v11134_v63 = vpop.eup %11133 }
0x53c4   :  { %9299 = vrot.lane.b32.xlu1 %v11134_v63, %s11861_s19 }
0x5436   :  { %v9300_v0 = vpop.permute.xlu1 %9299 }
0x5437   :  { %v9302_v3 = vsel %vm553_vm1, %v9300_v0, 0.0 }
0x5438   :  { %9303 = vadd.xlane.f32.xlu1 %v9302_v3 }
0x54c5   :  { %v9304_v20 = vpop.xlane.xlu1 %9303 }
0x54c6   :  { %11135 = vrcp.f32 %v9304_v20 }
0x54c7   :  { %11701 = shalt.err (!%p11698_p0)
}
0x54c8   :  { %s11702_s2 = scalar_lea.hbm %s12102_s6, 16 }
0x54c9   :  { %p11703_p1 = scmp.ne.s32.totalorder %s12102_s6, %s11702_s2  ;;  %p11706_p2 = scmp.lt.u32.totalorder %s11702_s2, %s12102_s6 }
0x54cb   :  { %p11708_p3 = pnand %p11706_p2, %p11703_p1 }
0x54cd   :  { %11711 = shalt.err (!%p11708_p3)
}
0x54ce   :  { %9323 = dma.vmem_to_hbm [thread:$0]  %s9321_s10, 16, %s12102_s6, [#allocation7]  }
0x54cf   :  { %s11863_s13 = smov [#allocation48]  }
0x54d0   :  { %v11136_v7 = vpop.eup %11135  ;;  %s9330_s30 = sshll.u32 %s11863_s13, 4  ;;  %s9331_s30 = int_to_ptr.vmem [resolvable:$true] %s9330_s30 }
0x54d1   :  { %v9306_v9 = vmul.f32 %v11136_v7, %v11134_v63  ;;  %s11712_s15 = scalar_lea.vmem %s9331_s30, 16  ;;  %s11716_s16 = scalar_lea.vmem %s9331_s30, 32 }
0x54d2   :  { %p11713_p4 = scmp.ne.s32.totalorder %s9331_s30, %s11712_s15  ;;  %p11717_p5 = scmp.lt.s32.totalorder %s9331_s30, %s9331_s30 }
0x54d3   :  { %9310 = vrot.lane.b32.xlu0 %v9306_v9, %s11861_s19  ;;  %p11718_p6 = scmp.lt.s32.totalorder %s11716_s16, %s11712_s15 }
0x54d5   :  { %p11719_p7 = por %p11718_p6, %p11717_p5 }
0x54d7   :  { %p11720_p8 = pnand %p11719_p7, %p11713_p4 }
0x5545   :  { %v9311_v8 = vpop.permute.xlu0 %9310 }
0x5546   :  { %9313 = vst.msk [vmem:[#allocation48] sm:$0x1] %vm553_vm1, %v9311_v8 }
0x5547   :  { %11723 = shalt.err (!%p11720_p8)
}
0x5548   :  { %s11724_s6 = scalar_lea.hbm %s12107_s29, 16 }
0x5549   :  { %p11725_p9 = scmp.ne.s32.totalorder %s12107_s29, %s11724_s6  ;;  %p11728_p10 = scmp.lt.u32.totalorder %s11724_s6, %s12107_s29 }
0x554b   :  { %p11730_p11 = pnand %p11728_p10, %p11725_p9 }
0x554d   :  { %11733 = shalt.err (!%p11730_p11)
}
0x554e   :  { %9333 = dma.vmem_to_hbm [thread:$0]  %s9331_s30, 16, %s12107_s29, [#allocation49]  }
0x554f   :  { %11764 = dma.done.wait [#allocation7], 16  }
0x5550   :  { %11765 = vsyncadd [#allocation7], 4294967280 }
0x5551   :  { %11766 = dma.done.wait [#allocation49], 16  }
0x5552   :  { %11767 = vsyncadd [#allocation49], 4294967280 }
0x5553   :  { %9340 = vsyncpa [#allocation6], 1 }
0x5554   :  { %9341 = vsyncpa [#allocation13], 1 }
0x5555   :  { %9342 = vsyncpa [#allocation16], 1 }
0x5556   :  { %9343 = vsyncpa [#allocation19], 1 }
0x5557   :  { %9344 = vsyncpa [#allocation22], 1 }
0x5558   :  { %9345 = vsyncpa [#allocation25], 1 }
0x5559   :  { %9346 = vsyncpa [#allocation28], 1 }
0x555a   :  { %9347 = vsyncpa [#allocation31], 1 }
0x555b   :  { %9348 = vsyncpa [#allocation34], 1 }
0x555c   :  { %9349 = vsyncpa [#allocation37], 1 }
0x555d   :  { %9350 = vsyncpa [#allocation40], 1 }
0x555e   :  { %9351 = vsyncpa [#allocation43], 1 }
0x555f   :  { %9352 = vsyncpa [#allocation46], 1 }
0x5560   :  { %9353 = vsyncpa [#allocation7], 1 }
0x5561   :  { %9354 = vsyncpa [#allocation49], 1 }
0x5562   :  { %9355 = vsyncpa [#allocation8], 1 }
0x5563   :  { %9356 = vsyncpa [#allocation10], 1 }

</bundles_post_ra>
